<compile_context>
chip_gen: v5e
topology: v5e:2x2
jax: 0.10.0
libtpu: 0.0.40
codegen_flags: <defaults>
</compile_context>

<pallas_src>
import functools

import jax
import jax.numpy as jnp
from jax.experimental import pallas as pl
from jax.experimental.pallas import tpu as pltpu  # noqa: F401  (TPU backend)

# ---------------- model hyper-parameters (small, consistent with the module) -------------
DIM = 64
N_HEADS = 4
DIM_HEAD = DIM // N_HEADS
FACTOR = 4
HIDDEN = DIM * FACTOR
SEQ = 16
BATCH = 2
KSIZE = 31
PAD = (KSIZE - 1) // 2
LN_EPS = 1e-5
BN_EPS = 1e-5
NEG_INF = -1e9


# ---------------------------------- in-kernel helpers ------------------------------------
def _layer_norm(x, g, b):
    mu = jnp.mean(x, axis=-1, keepdims=True)
    var = jnp.mean(jnp.square(x - mu), axis=-1, keepdims=True)
    return (x - mu) * jax.lax.rsqrt(var + LN_EPS) * g + b


def _sigmoid(x):
    # overflow-safe sigmoid (no inf intermediate for large |x|)
    ez = jnp.exp(-jnp.abs(x))
    return jnp.where(x >= 0.0, 1.0 / (1.0 + ez), ez / (1.0 + ez))


def _silu(x):
    return x * _sigmoid(x)


def _ffn(x, lng, lnb, w1, b1, w2, b2):
    h = _silu(jnp.dot(_layer_norm(x, lng, lnb), w1, preferred_element_type=jnp.float32) + b1)
    return jnp.dot(h, w2, preferred_element_type=jnp.float32) + b2


def _block_roll_lanes(x, amount, block):
    """Roll every contiguous `block`-wide lane group of 2-D `x` right by static `amount`."""
    if amount % block == 0:
        return x
    lane = jax.lax.broadcasted_iota(jnp.int32, x.shape, 1) & (block - 1)
    return jnp.where(lane >= amount,
                     jnp.roll(x, amount, axis=1),
                     jnp.roll(x, amount - block, axis=1))


def _block_reduce_lanes(x, block, combine):
    """Reduce each contiguous `block`-wide lane group of `x` with `combine`; the reduced
    value is broadcast back to every lane of the group.  log2(block) roll+combine steps."""
    r = x
    bit = 1
    while bit < block:
        r = combine(r, _block_roll_lanes(r, bit, block))
        bit *= 2
    return r


def _block_softmax_lanes(scores, block):
    """Softmax over each `block`-wide lane group, fully in (BS, L) vreg layout."""
    m = _block_reduce_lanes(scores, block, jnp.maximum)
    e = jnp.exp(scores - m)
    denom = _block_reduce_lanes(e, block, jnp.add)
    return e * pl.reciprocal(denom, approx=True)


def _relative_shift(pos, S):
    """Vectorized Transformer-XL relative_shift (zero-pad + reshape trick), applied
    independently to every S-lane head block of `pos` (shape (B*S, H*S)).

      shifted[i, j <= i]   = pos[i,   j + S - 1 - i]
      shifted[i, j == i+1] = 0
      shifted[i, j >= i+2] = pos[i+1, j - i - 2]
    """
    BS, L = pos.shape
    up = jnp.roll(pos, -1, axis=0)                      # row r -> pos[r+1]; wrapped rows unused
    stacked = jnp.concatenate([pos, up], axis=1)        # (BS, 2L)

    row = jax.lax.broadcasted_iota(jnp.int32, stacked.shape, 0) & (S - 1)
    t = (row + 1) & (S - 1)                             # per-row block-local roll amount
    bit = 1
    while bit < S:                                      # binary-decomposed per-row roll
        stacked = jnp.where((t & bit) != 0, _block_roll_lanes(stacked, bit, S), stacked)
        bit *= 2

    lower = stacked[:, :L]
    upper = _block_roll_lanes(stacked[:, L:], 1, S)

    row_i = jax.lax.broadcasted_iota(jnp.int32, (BS, L), 0) & (S - 1)
    lane_j = jax.lax.broadcasted_iota(jnp.int32, (BS, L), 1) & (S - 1)
    d = lane_j - row_i
    return jnp.where(d <= 0, lower, jnp.where(d == 1, 0.0, upper))


def _log2(n):
    assert n > 0 and (n & (n - 1)) == 0
    return n.bit_length() - 1


# --------------------------------- fused Block kernel ------------------------------------
def _block_kernel(
    x_ref, maskt_ref,
    f1_lng, f1_lnb, f1_w1, f1_b1, f1_w2, f1_b2,
    a_lng, a_lnb, wq_ref, bq_ref, wk_ref, bk_ref, wv_ref, bv_ref,
    pblk_ref, u_ref, v_ref, wo_ref, bo_ref,
    c_lng, c_lnb, pw1_ref, pb1_ref, dw_ref, db_ref, bns_ref, bno_ref, pw2_ref, pb2_ref,
    f2_lng, f2_lnb, f2_w1, f2_b1, f2_w2, f2_b2,
    lnf_g, lnf_b,
    o_ref,
    *, seq_len,
):
    BS, D = x_ref.shape
    S = seq_len
    B = BS // S
    H = N_HEADS
    DH = D // H

    x = x_ref[...]                                                         # (BS, D)

    # ------------------------------ FFN1 (half-step) -------------------------------------
    x = x + 0.5 * _ffn(x, f1_lng[...], f1_lnb[...],
                       f1_w1[...], f1_b1[...], f1_w2[...], f1_b2[...])

    # -------------------------- relative-position MHSA -----------------------------------
    xn = _layer_norm(x, a_lng[...], a_lnb[...])
    q = jnp.dot(xn, wq_ref[...], preferred_element_type=jnp.float32) + bq_ref[...]
    k = jnp.dot(xn, wk_ref[...], preferred_element_type=jnp.float32) + bk_ref[...]
    v = jnp.dot(xn, wv_ref[...], preferred_element_type=jnp.float32) + bv_ref[...]

    qu = q + u_ref[...]
    qv = q + v_ref[...]

    # position scores for every (batch, head) in ONE matmul against the block-diagonal
    # positional matrix:  pos[b*S+i, h*S+j] = (q_bh[i] + v_h) . (enc @ Wp)_h[j]
    pos = jax.lax.dot_general(qv, pblk_ref[...], (((1,), (1,)), ((), ())),
                              preferred_element_type=jnp.float32)          # (BS, H*S)
    shifted = _relative_shift(pos, S)

    # block-diagonal head mask: stacked row h*S+j keeps only head-h feature columns
    hm_row = jax.lax.broadcasted_iota(jnp.int32, (H * S, D), 0) >> _log2(S)
    hm_col = jax.lax.broadcasted_iota(jnp.int32, (H * S, D), 1) >> _log2(DH)
    headmask = hm_row == hm_col

    cont = []
    for b in range(B):                                                     # static, B=2
        kb = k[b * S:(b + 1) * S]
        kstack = jnp.where(headmask, jnp.tile(kb, (H, 1)), 0.0)            # (H*S, D)
        cont.append(jax.lax.dot_general(qu[b * S:(b + 1) * S], kstack,
                                        (((1,), (1,)), ((), ())),
                                        preferred_element_type=jnp.float32))   # (S, H*S)
    content = jnp.concatenate(cont, axis=0)                                # (BS, H*S)

    scale = 1.0 / float(D) ** 0.5   # NOTE: matches PyTorch module (dim ** 0.5, not dim_head)
    scores = (content + shifted) * scale
    scores = jnp.where(maskt_ref[...] > 0.5, NEG_INF, scores)

    # per-head softmax without slicing: block-local (S-lane) max/sum via lane rolls
    attn = _block_softmax_lanes(scores, S)                                 # (BS, H*S)

    ctx = []
    for b in range(B):
        vb = v[b * S:(b + 1) * S]
        vstack = jnp.where(headmask, jnp.tile(vb, (H, 1)), 0.0)            # (H*S, D)
        ctx.append(jnp.dot(attn[b * S:(b + 1) * S], vstack,
                           preferred_element_type=jnp.float32))            # (S, D) heads concat
    ctx = jnp.concatenate(ctx, axis=0)                                     # (BS, D)

    x = x + jnp.dot(ctx, wo_ref[...], preferred_element_type=jnp.float32) + bo_ref[...]

    # ---------------------------------- ConvBlock ----------------------------------------
    xn = _layer_norm(x, c_lng[...], c_lnb[...])
    z = jnp.dot(xn, pw1_ref[...], preferred_element_type=jnp.float32) + pb1_ref[...]  # (BS, 2D)
    glu = z[:, :D] * _sigmoid(z[:, D:])                                    # GLU over channels

    # depthwise Conv1d(k=31, 'same', groups=dim) along the sequence (sublane) axis,
    # per batch block, as shifted adds with iota boundary masks (no padded scratch)
    row_i = jax.lax.broadcasted_iota(jnp.int32, (BS, D), 0) & (S - 1)
    dw = dw_ref[...]                                                       # (KSIZE, D)
    acc = jnp.zeros((BS, D), jnp.float32)
    for kk in range(KSIZE):                                                # static taps
        off = kk - PAD
        src = row_i + off
        valid = (src >= 0) & (src < S)
        shifted_g = glu if off == 0 else jnp.roll(glu, -off, axis=0)
        acc = acc + dw[kk:kk + 1, :] * jnp.where(valid, shifted_g, 0.0)
    acc = acc + db_ref[...]

    bn = acc * bns_ref[...] + bno_ref[...]           # BatchNorm1d folded (eval running stats)
    y = jnp.dot(_silu(bn), pw2_ref[...], preferred_element_type=jnp.float32) + pb2_ref[...]
    x = x + y

    # --------------------------- FFN2 (half-step) + final LN -----------------------------
    x = x + 0.5 * _ffn(x, f2_lng[...], f2_lnb[...],
                       f2_w1[...], f2_b1[...], f2_w2[...], f2_b2[...])
    o_ref[...] = _layer_norm(x, lnf_g[...], lnf_b[...])


# ------------------------------------ host wrapper ---------------------------------------
def sinusoid_enc(seq, dim):
    pos = jnp.arange(seq, dtype=jnp.float32)[:, None]
    div = 10000.0 ** (jnp.arange(0, dim, 2, dtype=jnp.float32) / dim)
    ang = pos / div
    enc = jnp.zeros((seq, dim), jnp.float32)
    enc = enc.at[:, 0::2].set(jnp.sin(ang))
    enc = enc.at[:, 1::2].set(jnp.cos(ang))
    return enc


@jax.jit
def block_forward(spectrogram, mask, params):
    """Conformer Block forward.  Returns (out, mask), like the PyTorch module."""
    B, S, D = spectrogram.shape
    H, DH = N_HEADS, D // N_HEADS
    assert S & (S - 1) == 0 and DH & (DH - 1) == 0    # in-kernel bitwise index tricks

    p = params
    enc = sinusoid_enc(S, D)
    penc = enc @ p["mhsa"]["wp"]                                   # hoisted: (S, D)

    # block-diagonal positional matrix (row h*S+j holds head-h slice of position j)
    r_blk = jnp.arange(H * S)[:, None] // S
    c_blk = jnp.arange(D)[None, :] // DH
    pblk = jnp.where(r_blk == c_blk, jnp.tile(penc, (H, 1)), 0.0).astype(jnp.float32)

    u_full = p["mhsa"]["u"].reshape(1, D)
    v_full = p["mhsa"]["v"].reshape(1, D)

    cv = p["conv"]
    bn_scale = cv["bn_g"] / jnp.sqrt(cv["bn_v"] + BN_EPS)          # fold BN (eval mode)
    bn_shift = cv["bn_b"] - cv["bn_m"] * bn_scale

    x2 = spectrogram.reshape(B * S, D)                             # lane-dense (B*S, D) layout
    maskt = jnp.tile(mask, (1, 1, H)).reshape(B * S, H * S)        # mask tiled over heads

    f1, f2, at, lnf = p["ffn1"], p["ffn2"], p["mhsa"], p["ln"]
    args = (
        x2, maskt,
        f1["ln_g"], f1["ln_b"], f1["w1"], f1["b1"], f1["w2"], f1["b2"],
        at["ln_g"], at["ln_b"], at["wq"], at["bq"], at["wk"], at["bk"], at["wv"], at["bv"],
        pblk, u_full, v_full, at["wo"], at["bo"],
        cv["ln_g"], cv["ln_b"], cv["pw1"], cv["pb1"], cv["dw"], cv["db"],
        bn_scale, bn_shift, cv["pw2"], cv["pb2"],
        f2["ln_g"], f2["ln_b"], f2["w1"], f2["b1"], f2["w2"], f2["b2"],
        lnf["g"], lnf["b"],
    )

    out2 = pl.pallas_call(
        functools.partial(_block_kernel, seq_len=S),
        out_shape=jax.ShapeDtypeStruct((B * S, D), jnp.float32),
        # no grid / BlockSpecs: single invocation, every operand whole-array resident in VMEM
    )(*args)
    return out2.reshape(B, S, D), mask


# ------------------------------- deterministic parameters --------------------------------
def init_params(key):
    keys = iter(jax.random.split(key, 64))

    def nrm(shape, scale=0.05):
        return (scale * jax.random.normal(next(keys), shape)).astype(jnp.float32)

    def const(n, val):
        return jnp.full((1, n), val, jnp.float32)

    def ffn_p():
        return dict(ln_g=const(DIM, 1.0), ln_b=const(DIM, 0.0),
                    w1=nrm((DIM, HIDDEN)), b1=nrm((1, HIDDEN)),
                    w2=nrm((HIDDEN, DIM)), b2=nrm((1, DIM)))

    params = {
        "ffn1": ffn_p(),
        "ffn2": ffn_p(),
        "mhsa": dict(ln_g=const(DIM, 1.0), ln_b=const(DIM, 0.0),
                     wq=nrm((DIM, DIM)), bq=nrm((1, DIM)),
                     wk=nrm((DIM, DIM)), bk=nrm((1, DIM)),
                     wv=nrm((DIM, DIM)), bv=nrm((1, DIM)),
                     wp=nrm((DIM, DIM)),
                     u=nrm((N_HEADS, DIM_HEAD), 0.1), v=nrm((N_HEADS, DIM_HEAD), 0.1),
                     wo=nrm((DIM, DIM)), bo=nrm((1, DIM))),
        "conv": dict(ln_g=const(DIM, 1.0), ln_b=const(DIM, 0.0),
                     pw1=nrm((DIM, 2 * DIM)), pb1=nrm((1, 2 * DIM)),
                     dw=nrm((KSIZE, DIM)), db=nrm((1, DIM)),
                     bn_g=const(DIM, 1.0), bn_b=const(DIM, 0.0),
                     bn_m=const(DIM, 0.0), bn_v=const(DIM, 1.0),
                     pw2=nrm((DIM, DIM)), pb2=nrm((1, DIM))),
        "ln": dict(g=const(DIM, 1.0), b=const(DIM, 0.0)),
    }
    return params


# ----------------------------- pure-JAX reference (mirrors PyTorch) ----------------------
def reference_block(x, mask, params):
    def ln(t, g, b):
        mu = t.mean(-1, keepdims=True)
        var = ((t - mu) ** 2).mean(-1, keepdims=True)
        return (t - mu) / jnp.sqrt(var + LN_EPS) * g + b

    def silu(t):
        return t * jax.nn.sigmoid(t)

    def ffn(t, p):
        h = silu(ln(t, p["ln_g"], p["ln_b"]) @ p["w1"] + p["b1"])
        return h @ p["w2"] + p["b2"]

    def attn(t, p):
        b, s, d = t.shape
        enc = sinusoid_enc(s, d)
        tn = ln(t, p["ln_g"], p["ln_b"])
        q = (tn @ p["wq"] + p["bq"]).reshape(b, s, N_HEADS, DIM_HEAD)
        k = (tn @ p["wk"] + p["bk"]).reshape(b, s, N_HEADS, DIM_HEAD)
        v = (tn @ p["wv"] + p["bv"]).reshape(b, s, N_HEADS, DIM_HEAD)
        pe = (enc @ p["wp"]).reshape(s, N_HEADS, DIM_HEAD)
        content = jnp.einsum("bihd,bjhd->bhij", q + p["u"], k)
        pos = jnp.einsum("bihd,jhd->bhij", q + p["v"], pe)
        zero = jnp.zeros((b, N_HEADS, s, 1), pos.dtype)
        padded = jnp.concatenate([zero, pos], axis=-1).reshape(b, N_HEADS, s + 1, s)
        shifted = padded[:, :, 1:, :].reshape(b, N_HEADS, s, s)
        qk = (content + shifted) / d ** 0.5
        qk = jnp.where(mask[:, None] > 0.5, NEG_INF, qk)
        a = jax.nn.softmax(qk, axis=-1)
        o = jnp.einsum("bhij,bjhd->bihd", a, v).reshape(b, s, d)
        return o @ p["wo"] + p["bo"]

    def conv(t, p):
        b, s, d = t.shape
        z = ln(t, p["ln_g"], p["ln_b"]) @ p["pw1"] + p["pb1"]
        glu = z[..., :d] * jax.nn.sigmoid(z[..., d:])
        padded = jnp.pad(glu, ((0, 0), (PAD, PAD), (0, 0)))
        dwout = sum(p["dw"][k] * padded[:, k:k + s, :] for k in range(KSIZE)) + p["db"]
        bn = (dwout - p["bn_m"]) / jnp.sqrt(p["bn_v"] + BN_EPS) * p["bn_g"] + p["bn_b"]
        return silu(bn) @ p["pw2"] + p["pb2"]

    out = x + 0.5 * ffn(x, params["ffn1"])
    out = out + attn(out, params["mhsa"])
    out = out + conv(out, params["conv"])
    out = out + 0.5 * ffn(out, params["ffn2"])
    return ln(out, params["ln"]["g"], params["ln"]["b"])


# ---------------------------------------- main --------------------------------------------
if __name__ == "__main__":
    key = jax.random.PRNGKey(0)
    pkey, xkey = jax.random.split(key)
    params = init_params(pkey)

    x = jax.random.normal(xkey, (BATCH, SEQ, DIM), dtype=jnp.float32)
    mask = jnp.zeros((BATCH, SEQ, SEQ), dtype=jnp.float32)   # no masked positions (mask=None path)

    out, out_mask = block_forward(x, mask, params)
    out = jax.block_until_ready(out)

    ref = reference_block(x, mask, params)
    err = float(jnp.max(jnp.abs(out - ref)))
    assert err < 2e-3, f"kernel/reference mismatch: max abs err = {err}"
    print("KERNEL_OK")
</pallas_src>

<mosaic_0001>
module attributes {stable_mosaic.version = 11 : i64} {
  func.func @_block_kernel(%arg0: memref<32x64xf32, #tpu.memory_space<vmem>>, %arg1: memref<32x64xf32, #tpu.memory_space<vmem>>, %arg2: memref<1x64xf32, #tpu.memory_space<vmem>>, %arg3: memref<1x64xf32, #tpu.memory_space<vmem>>, %arg4: memref<64x256xf32, #tpu.memory_space<vmem>>, %arg5: memref<1x256xf32, #tpu.memory_space<vmem>>, %arg6: memref<256x64xf32, #tpu.memory_space<vmem>>, %arg7: memref<1x64xf32, #tpu.memory_space<vmem>>, %arg8: memref<1x64xf32, #tpu.memory_space<vmem>>, %arg9: memref<1x64xf32, #tpu.memory_space<vmem>>, %arg10: memref<64x64xf32, #tpu.memory_space<vmem>>, %arg11: memref<1x64xf32, #tpu.memory_space<vmem>>, %arg12: memref<64x64xf32, #tpu.memory_space<vmem>>, %arg13: memref<1x64xf32, #tpu.memory_space<vmem>>, %arg14: memref<64x64xf32, #tpu.memory_space<vmem>>, %arg15: memref<1x64xf32, #tpu.memory_space<vmem>>, %arg16: memref<64x64xf32, #tpu.memory_space<vmem>>, %arg17: memref<1x64xf32, #tpu.memory_space<vmem>>, %arg18: memref<1x64xf32, #tpu.memory_space<vmem>>, %arg19: memref<64x64xf32, #tpu.memory_space<vmem>>, %arg20: memref<1x64xf32, #tpu.memory_space<vmem>>, %arg21: memref<1x64xf32, #tpu.memory_space<vmem>>, %arg22: memref<1x64xf32, #tpu.memory_space<vmem>>, %arg23: memref<64x128xf32, #tpu.memory_space<vmem>>, %arg24: memref<1x128xf32, #tpu.memory_space<vmem>>, %arg25: memref<31x64xf32, #tpu.memory_space<vmem>>, %arg26: memref<1x64xf32, #tpu.memory_space<vmem>>, %arg27: memref<1x64xf32, #tpu.memory_space<vmem>>, %arg28: memref<1x64xf32, #tpu.memory_space<vmem>>, %arg29: memref<64x64xf32, #tpu.memory_space<vmem>>, %arg30: memref<1x64xf32, #tpu.memory_space<vmem>>, %arg31: memref<1x64xf32, #tpu.memory_space<vmem>>, %arg32: memref<1x64xf32, #tpu.memory_space<vmem>>, %arg33: memref<64x256xf32, #tpu.memory_space<vmem>>, %arg34: memref<1x256xf32, #tpu.memory_space<vmem>>, %arg35: memref<256x64xf32, #tpu.memory_space<vmem>>, %arg36: memref<1x64xf32, #tpu.memory_space<vmem>>, %arg37: memref<1x64xf32, #tpu.memory_space<vmem>>, %arg38: memref<1x64xf32, #tpu.memory_space<vmem>>, %arg39: memref<32x64xf32, #tpu.memory_space<vmem>>) attributes {dimension_semantics = [], scalar_prefetch = 0 : i64, scratch_operands = 0 : i64, tpu.core_type = #tpu.core_type<tc>} {
    %c0 = arith.constant 0 : index
    %c0_0 = arith.constant 0 : index
    %0 = vector.load %arg0[%c0, %c0_0] : memref<32x64xf32, #tpu.memory_space<vmem>>, vector<32x64xf32>
    %c0_1 = arith.constant 0 : index
    %c0_2 = arith.constant 0 : index
    %1 = vector.load %arg2[%c0_1, %c0_2] : memref<1x64xf32, #tpu.memory_space<vmem>>, vector<1x64xf32>
    %c0_3 = arith.constant 0 : index
    %c0_4 = arith.constant 0 : index
    %2 = vector.load %arg3[%c0_3, %c0_4] : memref<1x64xf32, #tpu.memory_space<vmem>>, vector<1x64xf32>
    %c0_5 = arith.constant 0 : index
    %c0_6 = arith.constant 0 : index
    %3 = vector.load %arg4[%c0_5, %c0_6] : memref<64x256xf32, #tpu.memory_space<vmem>>, vector<64x256xf32>
    %c0_7 = arith.constant 0 : index
    %c0_8 = arith.constant 0 : index
    %4 = vector.load %arg5[%c0_7, %c0_8] : memref<1x256xf32, #tpu.memory_space<vmem>>, vector<1x256xf32>
    %c0_9 = arith.constant 0 : index
    %c0_10 = arith.constant 0 : index
    %5 = vector.load %arg6[%c0_9, %c0_10] : memref<256x64xf32, #tpu.memory_space<vmem>>, vector<256x64xf32>
    %c0_11 = arith.constant 0 : index
    %c0_12 = arith.constant 0 : index
    %6 = vector.load %arg7[%c0_11, %c0_12] : memref<1x64xf32, #tpu.memory_space<vmem>>, vector<1x64xf32>
    %cst = arith.constant dense<0.000000e+00> : vector<32xf32>
    %7 = vector.multi_reduction <add>, %0, %cst [1] : vector<32x64xf32> to vector<32xf32>
    %8 = vector.shape_cast %7 : vector<32xf32> to vector<32x1xf32>
    %cst_13 = arith.constant 6.400000e+01 : f32
    %9 = vector.broadcast %cst_13 : f32 to vector<32x1xf32>
    %10 = arith.divf %8, %9 : vector<32x1xf32>
    %11 = vector.broadcast %10 : vector<32x1xf32> to vector<32x64xf32>
    %12 = arith.subf %0, %11 : vector<32x64xf32>
    %13 = arith.mulf %12, %12 : vector<32x64xf32>
    %cst_14 = arith.constant dense<0.000000e+00> : vector<32xf32>
    %14 = vector.multi_reduction <add>, %13, %cst_14 [1] : vector<32x64xf32> to vector<32xf32>
    %15 = vector.shape_cast %14 : vector<32xf32> to vector<32x1xf32>
    %cst_15 = arith.constant 6.400000e+01 : f32
    %16 = vector.broadcast %cst_15 : f32 to vector<32x1xf32>
    %17 = arith.divf %15, %16 : vector<32x1xf32>
    %18 = vector.broadcast %10 : vector<32x1xf32> to vector<32x64xf32>
    %19 = arith.subf %0, %18 : vector<32x64xf32>
    %cst_16 = arith.constant 9.99999974E-6 : f32
    %20 = vector.broadcast %cst_16 : f32 to vector<32x1xf32>
    %21 = arith.addf %17, %20 : vector<32x1xf32>
    %22 = math.rsqrt %21 : vector<32x1xf32>
    %23 = vector.broadcast %22 : vector<32x1xf32> to vector<32x64xf32>
    %24 = arith.mulf %19, %23 : vector<32x64xf32>
    %25 = vector.broadcast %1 : vector<1x64xf32> to vector<32x64xf32>
    %26 = arith.mulf %24, %25 : vector<32x64xf32>
    %27 = vector.broadcast %2 : vector<1x64xf32> to vector<32x64xf32>
    %28 = arith.addf %26, %27 : vector<32x64xf32>
    %cst_17 = arith.constant dense<0.000000e+00> : vector<32x256xf32>
    %29 = tpu.matmul %28, %3, %cst_17 {dimension_numbers = #tpu.dot_dimension_numbers<[1], [0], [0], [1], [0, 0, 1, 1], [], []>} : vector<32x64xf32>, vector<64x256xf32>, vector<32x256xf32> -> vector<32x256xf32>
    %30 = vector.broadcast %4 : vector<1x256xf32> to vector<32x256xf32>
    %31 = arith.addf %29, %30 : vector<32x256xf32>
    %32 = math.absf %31 : vector<32x256xf32>
    %cst_18 = arith.constant 0.000000e+00 : f32
    %33 = vector.broadcast %cst_18 : f32 to vector<32x256xf32>
    %34 = arith.subf %33, %32 : vector<32x256xf32>
    %35 = math.exp %34 : vector<32x256xf32>
    %cst_19 = arith.constant 0.000000e+00 : f32
    %36 = vector.broadcast %cst_19 : f32 to vector<32x256xf32>
    %37 = arith.cmpf oge, %31, %36 : vector<32x256xf32>
    %cst_20 = arith.constant 1.000000e+00 : f32
    %38 = vector.broadcast %cst_20 : f32 to vector<32x256xf32>
    %39 = arith.addf %38, %35 : vector<32x256xf32>
    %cst_21 = arith.constant 1.000000e+00 : f32
    %40 = vector.broadcast %cst_21 : f32 to vector<32x256xf32>
    %41 = arith.divf %40, %39 : vector<32x256xf32>
    %cst_22 = arith.constant 1.000000e+00 : f32
    %42 = vector.broadcast %cst_22 : f32 to vector<32x256xf32>
    %43 = arith.addf %42, %35 : vector<32x256xf32>
    %44 = arith.divf %35, %43 : vector<32x256xf32>
    %45 = arith.select %37, %41, %44 : vector<32x256xi1>, vector<32x256xf32>
    %46 = arith.mulf %31, %45 : vector<32x256xf32>
    %cst_23 = arith.constant dense<0.000000e+00> : vector<32x64xf32>
    %47 = tpu.matmul %46, %5, %cst_23 {dimension_numbers = #tpu.dot_dimension_numbers<[1], [0], [0], [1], [0, 0, 1, 1], [], []>} : vector<32x256xf32>, vector<256x64xf32>, vector<32x64xf32> -> vector<32x64xf32>
    %48 = vector.broadcast %6 : vector<1x64xf32> to vector<32x64xf32>
    %49 = arith.addf %47, %48 : vector<32x64xf32>
    %cst_24 = arith.constant 5.000000e-01 : f32
    %50 = vector.broadcast %cst_24 : f32 to vector<32x64xf32>
    %51 = arith.mulf %50, %49 : vector<32x64xf32>
    %52 = arith.addf %0, %51 : vector<32x64xf32>
    %c0_25 = arith.constant 0 : index
    %c0_26 = arith.constant 0 : index
    %53 = vector.load %arg8[%c0_25, %c0_26] : memref<1x64xf32, #tpu.memory_space<vmem>>, vector<1x64xf32>
    %c0_27 = arith.constant 0 : index
    %c0_28 = arith.constant 0 : index
    %54 = vector.load %arg9[%c0_27, %c0_28] : memref<1x64xf32, #tpu.memory_space<vmem>>, vector<1x64xf32>
    %cst_29 = arith.constant dense<0.000000e+00> : vector<32xf32>
    %55 = vector.multi_reduction <add>, %52, %cst_29 [1] : vector<32x64xf32> to vector<32xf32>
    %56 = vector.shape_cast %55 : vector<32xf32> to vector<32x1xf32>
    %cst_30 = arith.constant 6.400000e+01 : f32
    %57 = vector.broadcast %cst_30 : f32 to vector<32x1xf32>
    %58 = arith.divf %56, %57 : vector<32x1xf32>
    %59 = vector.broadcast %58 : vector<32x1xf32> to vector<32x64xf32>
    %60 = arith.subf %52, %59 : vector<32x64xf32>
    %61 = arith.mulf %60, %60 : vector<32x64xf32>
    %cst_31 = arith.constant dense<0.000000e+00> : vector<32xf32>
    %62 = vector.multi_reduction <add>, %61, %cst_31 [1] : vector<32x64xf32> to vector<32xf32>
    %63 = vector.shape_cast %62 : vector<32xf32> to vector<32x1xf32>
    %cst_32 = arith.constant 6.400000e+01 : f32
    %64 = vector.broadcast %cst_32 : f32 to vector<32x1xf32>
    %65 = arith.divf %63, %64 : vector<32x1xf32>
    %66 = vector.broadcast %58 : vector<32x1xf32> to vector<32x64xf32>
    %67 = arith.subf %52, %66 : vector<32x64xf32>
    %cst_33 = arith.constant 9.99999974E-6 : f32
    %68 = vector.broadcast %cst_33 : f32 to vector<32x1xf32>
    %69 = arith.addf %65, %68 : vector<32x1xf32>
    %70 = math.rsqrt %69 : vector<32x1xf32>
    %71 = vector.broadcast %70 : vector<32x1xf32> to vector<32x64xf32>
    %72 = arith.mulf %67, %71 : vector<32x64xf32>
    %73 = vector.broadcast %53 : vector<1x64xf32> to vector<32x64xf32>
    %74 = arith.mulf %72, %73 : vector<32x64xf32>
    %75 = vector.broadcast %54 : vector<1x64xf32> to vector<32x64xf32>
    %76 = arith.addf %74, %75 : vector<32x64xf32>
    %c0_34 = arith.constant 0 : index
    %c0_35 = arith.constant 0 : index
    %77 = vector.load %arg10[%c0_34, %c0_35] : memref<64x64xf32, #tpu.memory_space<vmem>>, vector<64x64xf32>
    %cst_36 = arith.constant dense<0.000000e+00> : vector<32x64xf32>
    %78 = tpu.matmul %76, %77, %cst_36 {dimension_numbers = #tpu.dot_dimension_numbers<[1], [0], [0], [1], [0, 0, 1, 1], [], []>} : vector<32x64xf32>, vector<64x64xf32>, vector<32x64xf32> -> vector<32x64xf32>
    %c0_37 = arith.constant 0 : index
    %c0_38 = arith.constant 0 : index
    %79 = vector.load %arg11[%c0_37, %c0_38] : memref<1x64xf32, #tpu.memory_space<vmem>>, vector<1x64xf32>
    %80 = vector.broadcast %79 : vector<1x64xf32> to vector<32x64xf32>
    %81 = arith.addf %78, %80 : vector<32x64xf32>
    %c0_39 = arith.constant 0 : index
    %c0_40 = arith.constant 0 : index
    %82 = vector.load %arg12[%c0_39, %c0_40] : memref<64x64xf32, #tpu.memory_space<vmem>>, vector<64x64xf32>
    %cst_41 = arith.constant dense<0.000000e+00> : vector<32x64xf32>
    %83 = tpu.matmul %76, %82, %cst_41 {dimension_numbers = #tpu.dot_dimension_numbers<[1], [0], [0], [1], [0, 0, 1, 1], [], []>} : vector<32x64xf32>, vector<64x64xf32>, vector<32x64xf32> -> vector<32x64xf32>
    %c0_42 = arith.constant 0 : index
    %c0_43 = arith.constant 0 : index
    %84 = vector.load %arg13[%c0_42, %c0_43] : memref<1x64xf32, #tpu.memory_space<vmem>>, vector<1x64xf32>
    %85 = vector.broadcast %84 : vector<1x64xf32> to vector<32x64xf32>
    %86 = arith.addf %83, %85 : vector<32x64xf32>
    %c0_44 = arith.constant 0 : index
    %c0_45 = arith.constant 0 : index
    %87 = vector.load %arg14[%c0_44, %c0_45] : memref<64x64xf32, #tpu.memory_space<vmem>>, vector<64x64xf32>
    %cst_46 = arith.constant dense<0.000000e+00> : vector<32x64xf32>
    %88 = tpu.matmul %76, %87, %cst_46 {dimension_numbers = #tpu.dot_dimension_numbers<[1], [0], [0], [1], [0, 0, 1, 1], [], []>} : vector<32x64xf32>, vector<64x64xf32>, vector<32x64xf32> -> vector<32x64xf32>
    %c0_47 = arith.constant 0 : index
    %c0_48 = arith.constant 0 : index
    %89 = vector.load %arg15[%c0_47, %c0_48] : memref<1x64xf32, #tpu.memory_space<vmem>>, vector<1x64xf32>
    %90 = vector.broadcast %89 : vector<1x64xf32> to vector<32x64xf32>
    %91 = arith.addf %88, %90 : vector<32x64xf32>
    %c0_49 = arith.constant 0 : index
    %c0_50 = arith.constant 0 : index
    %92 = vector.load %arg17[%c0_49, %c0_50] : memref<1x64xf32, #tpu.memory_space<vmem>>, vector<1x64xf32>
    %93 = vector.broadcast %92 : vector<1x64xf32> to vector<32x64xf32>
    %94 = arith.addf %81, %93 : vector<32x64xf32>
    %c0_51 = arith.constant 0 : index
    %c0_52 = arith.constant 0 : index
    %95 = vector.load %arg18[%c0_51, %c0_52] : memref<1x64xf32, #tpu.memory_space<vmem>>, vector<1x64xf32>
    %96 = vector.broadcast %95 : vector<1x64xf32> to vector<32x64xf32>
    %97 = arith.addf %81, %96 : vector<32x64xf32>
    %c0_53 = arith.constant 0 : index
    %c0_54 = arith.constant 0 : index
    %98 = vector.load %arg16[%c0_53, %c0_54] : memref<64x64xf32, #tpu.memory_space<vmem>>, vector<64x64xf32>
    %cst_55 = arith.constant dense<0.000000e+00> : vector<32x64xf32>
    %99 = tpu.matmul %97, %98, %cst_55 {dimension_numbers = #tpu.dot_dimension_numbers<[1], [1], [0], [0], [0, 0, 1, 0], [], []>} : vector<32x64xf32>, vector<64x64xf32>, vector<32x64xf32> -> vector<32x64xf32>
    %100 = vector.extract_strided_slice %99 {offsets = [1, 0], sizes = [31, 64], strides = [1, 1]} : vector<32x64xf32> to vector<31x64xf32>
    %101 = vector.extract_strided_slice %99 {offsets = [0, 0], sizes = [1, 64], strides = [1, 1]} : vector<32x64xf32> to vector<1x64xf32>
    %102 = tpu.concatenate %100, %101 in 0 : vector<31x64xf32>, vector<1x64xf32> -> vector<32x64xf32>
    %103 = tpu.concatenate %99, %102 in 1 : vector<32x64xf32>, vector<32x64xf32> -> vector<32x128xf32>
    %104 = tpu.iota {dimensions = array<i32: 0>} : vector<32x128xi32>
    %c15_i32 = arith.constant 15 : i32
    %105 = vector.broadcast %c15_i32 : i32 to vector<32x128xi32>
    %106 = arith.andi %104, %105 : vector<32x128xi32>
    %c1_i32 = arith.constant 1 : i32
    %107 = vector.broadcast %c1_i32 : i32 to vector<32x128xi32>
    %108 = arith.addi %106, %107 : vector<32x128xi32>
    %c15_i32_56 = arith.constant 15 : i32
    %109 = vector.broadcast %c15_i32_56 : i32 to vector<32x128xi32>
    %110 = arith.andi %108, %109 : vector<32x128xi32>
    %c1_i32_57 = arith.constant 1 : i32
    %111 = vector.broadcast %c1_i32_57 : i32 to vector<32x128xi32>
    %112 = arith.andi %110, %111 : vector<32x128xi32>
    %c0_i32 = arith.constant 0 : i32
    %113 = vector.broadcast %c0_i32 : i32 to vector<32x128xi32>
    %114 = arith.cmpi ne, %112, %113 : vector<32x128xi32>
    %115 = tpu.iota {dimensions = array<i32: 1>} : vector<32x128xi32>
    %c15_i32_58 = arith.constant 15 : i32
    %116 = vector.broadcast %c15_i32_58 : i32 to vector<32x128xi32>
    %117 = arith.andi %115, %116 : vector<32x128xi32>
    %c1_i32_59 = arith.constant 1 : i32
    %118 = vector.broadcast %c1_i32_59 : i32 to vector<32x128xi32>
    %119 = arith.cmpi sge, %117, %118 : vector<32x128xi32>
    %120 = vector.extract_strided_slice %103 {offsets = [0, 127], sizes = [32, 1], strides = [1, 1]} : vector<32x128xf32> to vector<32x1xf32>
    %121 = vector.extract_strided_slice %103 {offsets = [0, 0], sizes = [32, 127], strides = [1, 1]} : vector<32x128xf32> to vector<32x127xf32>
    %122 = tpu.concatenate %120, %121 in 1 : vector<32x1xf32>, vector<32x127xf32> -> vector<32x128xf32>
    %123 = vector.extract_strided_slice %103 {offsets = [0, 15], sizes = [32, 113], strides = [1, 1]} : vector<32x128xf32> to vector<32x113xf32>
    %124 = vector.extract_strided_slice %103 {offsets = [0, 0], sizes = [32, 15], strides = [1, 1]} : vector<32x128xf32> to vector<32x15xf32>
    %125 = tpu.concatenate %123, %124 in 1 : vector<32x113xf32>, vector<32x15xf32> -> vector<32x128xf32>
    %126 = arith.select %119, %122, %125 : vector<32x128xi1>, vector<32x128xf32>
    %127 = arith.select %114, %126, %103 : vector<32x128xi1>, vector<32x128xf32>
    %c2_i32 = arith.constant 2 : i32
    %128 = vector.broadcast %c2_i32 : i32 to vector<32x128xi32>
    %129 = arith.andi %110, %128 : vector<32x128xi32>
    %c0_i32_60 = arith.constant 0 : i32
    %130 = vector.broadcast %c0_i32_60 : i32 to vector<32x128xi32>
    %131 = arith.cmpi ne, %129, %130 : vector<32x128xi32>
    %132 = tpu.iota {dimensions = array<i32: 1>} : vector<32x128xi32>
    %c15_i32_61 = arith.constant 15 : i32
    %133 = vector.broadcast %c15_i32_61 : i32 to vector<32x128xi32>
    %134 = arith.andi %132, %133 : vector<32x128xi32>
    %c2_i32_62 = arith.constant 2 : i32
    %135 = vector.broadcast %c2_i32_62 : i32 to vector<32x128xi32>
    %136 = arith.cmpi sge, %134, %135 : vector<32x128xi32>
    %137 = vector.extract_strided_slice %127 {offsets = [0, 126], sizes = [32, 2], strides = [1, 1]} : vector<32x128xf32> to vector<32x2xf32>
    %138 = vector.extract_strided_slice %127 {offsets = [0, 0], sizes = [32, 126], strides = [1, 1]} : vector<32x128xf32> to vector<32x126xf32>
    %139 = tpu.concatenate %137, %138 in 1 : vector<32x2xf32>, vector<32x126xf32> -> vector<32x128xf32>
    %140 = vector.extract_strided_slice %127 {offsets = [0, 14], sizes = [32, 114], strides = [1, 1]} : vector<32x128xf32> to vector<32x114xf32>
    %141 = vector.extract_strided_slice %127 {offsets = [0, 0], sizes = [32, 14], strides = [1, 1]} : vector<32x128xf32> to vector<32x14xf32>
    %142 = tpu.concatenate %140, %141 in 1 : vector<32x114xf32>, vector<32x14xf32> -> vector<32x128xf32>
    %143 = arith.select %136, %139, %142 : vector<32x128xi1>, vector<32x128xf32>
    %144 = arith.select %131, %143, %127 : vector<32x128xi1>, vector<32x128xf32>
    %c4_i32 = arith.constant 4 : i32
    %145 = vector.broadcast %c4_i32 : i32 to vector<32x128xi32>
    %146 = arith.andi %110, %145 : vector<32x128xi32>
    %c0_i32_63 = arith.constant 0 : i32
    %147 = vector.broadcast %c0_i32_63 : i32 to vector<32x128xi32>
    %148 = arith.cmpi ne, %146, %147 : vector<32x128xi32>
    %149 = tpu.iota {dimensions = array<i32: 1>} : vector<32x128xi32>
    %c15_i32_64 = arith.constant 15 : i32
    %150 = vector.broadcast %c15_i32_64 : i32 to vector<32x128xi32>
    %151 = arith.andi %149, %150 : vector<32x128xi32>
    %c4_i32_65 = arith.constant 4 : i32
    %152 = vector.broadcast %c4_i32_65 : i32 to vector<32x128xi32>
    %153 = arith.cmpi sge, %151, %152 : vector<32x128xi32>
    %154 = vector.extract_strided_slice %144 {offsets = [0, 124], sizes = [32, 4], strides = [1, 1]} : vector<32x128xf32> to vector<32x4xf32>
    %155 = vector.extract_strided_slice %144 {offsets = [0, 0], sizes = [32, 124], strides = [1, 1]} : vector<32x128xf32> to vector<32x124xf32>
    %156 = tpu.concatenate %154, %155 in 1 : vector<32x4xf32>, vector<32x124xf32> -> vector<32x128xf32>
    %157 = vector.extract_strided_slice %144 {offsets = [0, 12], sizes = [32, 116], strides = [1, 1]} : vector<32x128xf32> to vector<32x116xf32>
    %158 = vector.extract_strided_slice %144 {offsets = [0, 0], sizes = [32, 12], strides = [1, 1]} : vector<32x128xf32> to vector<32x12xf32>
    %159 = tpu.concatenate %157, %158 in 1 : vector<32x116xf32>, vector<32x12xf32> -> vector<32x128xf32>
    %160 = arith.select %153, %156, %159 : vector<32x128xi1>, vector<32x128xf32>
    %161 = arith.select %148, %160, %144 : vector<32x128xi1>, vector<32x128xf32>
    %c8_i32 = arith.constant 8 : i32
    %162 = vector.broadcast %c8_i32 : i32 to vector<32x128xi32>
    %163 = arith.andi %110, %162 : vector<32x128xi32>
    %c0_i32_66 = arith.constant 0 : i32
    %164 = vector.broadcast %c0_i32_66 : i32 to vector<32x128xi32>
    %165 = arith.cmpi ne, %163, %164 : vector<32x128xi32>
    %166 = tpu.iota {dimensions = array<i32: 1>} : vector<32x128xi32>
    %c15_i32_67 = arith.constant 15 : i32
    %167 = vector.broadcast %c15_i32_67 : i32 to vector<32x128xi32>
    %168 = arith.andi %166, %167 : vector<32x128xi32>
    %c8_i32_68 = arith.constant 8 : i32
    %169 = vector.broadcast %c8_i32_68 : i32 to vector<32x128xi32>
    %170 = arith.cmpi sge, %168, %169 : vector<32x128xi32>
    %171 = vector.extract_strided_slice %161 {offsets = [0, 120], sizes = [32, 8], strides = [1, 1]} : vector<32x128xf32> to vector<32x8xf32>
    %172 = vector.extract_strided_slice %161 {offsets = [0, 0], sizes = [32, 120], strides = [1, 1]} : vector<32x128xf32> to vector<32x120xf32>
    %173 = tpu.concatenate %171, %172 in 1 : vector<32x8xf32>, vector<32x120xf32> -> vector<32x128xf32>
    %174 = vector.extract_strided_slice %161 {offsets = [0, 8], sizes = [32, 120], strides = [1, 1]} : vector<32x128xf32> to vector<32x120xf32>
    %175 = vector.extract_strided_slice %161 {offsets = [0, 0], sizes = [32, 8], strides = [1, 1]} : vector<32x128xf32> to vector<32x8xf32>
    %176 = tpu.concatenate %174, %175 in 1 : vector<32x120xf32>, vector<32x8xf32> -> vector<32x128xf32>
    %177 = arith.select %170, %173, %176 : vector<32x128xi1>, vector<32x128xf32>
    %178 = arith.select %165, %177, %161 : vector<32x128xi1>, vector<32x128xf32>
    %179 = vector.extract_strided_slice %178 {offsets = [0, 0], sizes = [32, 64], strides = [1, 1]} : vector<32x128xf32> to vector<32x64xf32>
    %180 = vector.extract_strided_slice %178 {offsets = [0, 64], sizes = [32, 64], strides = [1, 1]} : vector<32x128xf32> to vector<32x64xf32>
    %181 = tpu.iota {dimensions = array<i32: 1>} : vector<32x64xi32>
    %c15_i32_69 = arith.constant 15 : i32
    %182 = vector.broadcast %c15_i32_69 : i32 to vector<32x64xi32>
    %183 = arith.andi %181, %182 : vector<32x64xi32>
    %c1_i32_70 = arith.constant 1 : i32
    %184 = vector.broadcast %c1_i32_70 : i32 to vector<32x64xi32>
    %185 = arith.cmpi sge, %183, %184 : vector<32x64xi32>
    %186 = vector.extract_strided_slice %180 {offsets = [0, 63], sizes = [32, 1], strides = [1, 1]} : vector<32x64xf32> to vector<32x1xf32>
    %187 = vector.extract_strided_slice %180 {offsets = [0, 0], sizes = [32, 63], strides = [1, 1]} : vector<32x64xf32> to vector<32x63xf32>
    %188 = tpu.concatenate %186, %187 in 1 : vector<32x1xf32>, vector<32x63xf32> -> vector<32x64xf32>
    %189 = vector.extract_strided_slice %180 {offsets = [0, 15], sizes = [32, 49], strides = [1, 1]} : vector<32x64xf32> to vector<32x49xf32>
    %190 = vector.extract_strided_slice %180 {offsets = [0, 0], sizes = [32, 15], strides = [1, 1]} : vector<32x64xf32> to vector<32x15xf32>
    %191 = tpu.concatenate %189, %190 in 1 : vector<32x49xf32>, vector<32x15xf32> -> vector<32x64xf32>
    %192 = arith.select %185, %188, %191 : vector<32x64xi1>, vector<32x64xf32>
    %193 = tpu.iota {dimensions = array<i32: 0>} : vector<32x64xi32>
    %c15_i32_71 = arith.constant 15 : i32
    %194 = vector.broadcast %c15_i32_71 : i32 to vector<32x64xi32>
    %195 = arith.andi %193, %194 : vector<32x64xi32>
    %196 = tpu.iota {dimensions = array<i32: 1>} : vector<32x64xi32>
    %c15_i32_72 = arith.constant 15 : i32
    %197 = vector.broadcast %c15_i32_72 : i32 to vector<32x64xi32>
    %198 = arith.andi %196, %197 : vector<32x64xi32>
    %199 = arith.subi %198, %195 : vector<32x64xi32>
    %c0_i32_73 = arith.constant 0 : i32
    %200 = vector.broadcast %c0_i32_73 : i32 to vector<32x64xi32>
    %201 = arith.cmpi sle, %199, %200 : vector<32x64xi32>
    %c1_i32_74 = arith.constant 1 : i32
    %202 = vector.broadcast %c1_i32_74 : i32 to vector<32x64xi32>
    %203 = arith.cmpi eq, %199, %202 : vector<32x64xi32>
    %cst_75 = arith.constant 0.000000e+00 : f32
    %204 = vector.broadcast %cst_75 : f32 to vector<32x64xf32>
    %205 = arith.select %203, %204, %192 : vector<32x64xi1>, vector<32x64xf32>
    %206 = arith.select %201, %179, %205 : vector<32x64xi1>, vector<32x64xf32>
    %207 = tpu.iota {dimensions = array<i32: 0>} : vector<64x64xi32>
    %c4_i32_76 = arith.constant 4 : i32
    %208 = vector.broadcast %c4_i32_76 : i32 to vector<64x64xi32>
    %209 = arith.shrsi %207, %208 : vector<64x64xi32>
    %210 = tpu.iota {dimensions = array<i32: 1>} : vector<64x64xi32>
    %c4_i32_77 = arith.constant 4 : i32
    %211 = vector.broadcast %c4_i32_77 : i32 to vector<64x64xi32>
    %212 = arith.shrsi %210, %211 : vector<64x64xi32>
    %213 = arith.cmpi eq, %209, %212 : vector<64x64xi32>
    %214 = vector.extract_strided_slice %86 {offsets = [0, 0], sizes = [16, 64], strides = [1, 1]} : vector<32x64xf32> to vector<16x64xf32>
    %215 = tpu.concatenate %214, %214, %214, %214 in 0 : vector<16x64xf32>, vector<16x64xf32>, vector<16x64xf32>, vector<16x64xf32> -> vector<64x64xf32>
    %cst_78 = arith.constant 0.000000e+00 : f32
    %216 = vector.broadcast %cst_78 : f32 to vector<64x64xf32>
    %217 = arith.select %213, %215, %216 : vector<64x64xi1>, vector<64x64xf32>
    %218 = vector.extract_strided_slice %94 {offsets = [0, 0], sizes = [16, 64], strides = [1, 1]} : vector<32x64xf32> to vector<16x64xf32>
    %cst_79 = arith.constant dense<0.000000e+00> : vector<16x64xf32>
    %219 = tpu.matmul %218, %217, %cst_79 {dimension_numbers = #tpu.dot_dimension_numbers<[1], [1], [0], [0], [0, 0, 1, 0], [], []>} : vector<16x64xf32>, vector<64x64xf32>, vector<16x64xf32> -> vector<16x64xf32>
    %220 = vector.extract_strided_slice %86 {offsets = [16, 0], sizes = [16, 64], strides = [1, 1]} : vector<32x64xf32> to vector<16x64xf32>
    %221 = tpu.concatenate %220, %220, %220, %220 in 0 : vector<16x64xf32>, vector<16x64xf32>, vector<16x64xf32>, vector<16x64xf32> -> vector<64x64xf32>
    %cst_80 = arith.constant 0.000000e+00 : f32
    %222 = vector.broadcast %cst_80 : f32 to vector<64x64xf32>
    %223 = arith.select %213, %221, %222 : vector<64x64xi1>, vector<64x64xf32>
    %224 = vector.extract_strided_slice %94 {offsets = [16, 0], sizes = [16, 64], strides = [1, 1]} : vector<32x64xf32> to vector<16x64xf32>
    %cst_81 = arith.constant dense<0.000000e+00> : vector<16x64xf32>
    %225 = tpu.matmul %224, %223, %cst_81 {dimension_numbers = #tpu.dot_dimension_numbers<[1], [1], [0], [0], [0, 0, 1, 0], [], []>} : vector<16x64xf32>, vector<64x64xf32>, vector<16x64xf32> -> vector<16x64xf32>
    %226 = tpu.concatenate %219, %225 in 0 : vector<16x64xf32>, vector<16x64xf32> -> vector<32x64xf32>
    %227 = arith.addf %226, %206 : vector<32x64xf32>
    %cst_82 = arith.constant 1.250000e-01 : f32
    %228 = vector.broadcast %cst_82 : f32 to vector<32x64xf32>
    %229 = arith.mulf %227, %228 : vector<32x64xf32>
    %c0_83 = arith.constant 0 : index
    %c0_84 = arith.constant 0 : index
    %230 = vector.load %arg1[%c0_83, %c0_84] : memref<32x64xf32, #tpu.memory_space<vmem>>, vector<32x64xf32>
    %cst_85 = arith.constant 5.000000e-01 : f32
    %231 = vector.broadcast %cst_85 : f32 to vector<32x64xf32>
    %232 = arith.cmpf ogt, %230, %231 : vector<32x64xf32>
    %cst_86 = arith.constant -1.000000e+09 : f32
    %233 = vector.broadcast %cst_86 : f32 to vector<32x64xf32>
    %234 = arith.select %232, %233, %229 : vector<32x64xi1>, vector<32x64xf32>
    %235 = tpu.iota {dimensions = array<i32: 1>} : vector<32x64xi32>
    %c15_i32_87 = arith.constant 15 : i32
    %236 = vector.broadcast %c15_i32_87 : i32 to vector<32x64xi32>
    %237 = arith.andi %235, %236 : vector<32x64xi32>
    %c1_i32_88 = arith.constant 1 : i32
    %238 = vector.broadcast %c1_i32_88 : i32 to vector<32x64xi32>
    %239 = arith.cmpi sge, %237, %238 : vector<32x64xi32>
    %240 = vector.extract_strided_slice %234 {offsets = [0, 63], sizes = [32, 1], strides = [1, 1]} : vector<32x64xf32> to vector<32x1xf32>
    %241 = vector.extract_strided_slice %234 {offsets = [0, 0], sizes = [32, 63], strides = [1, 1]} : vector<32x64xf32> to vector<32x63xf32>
    %242 = tpu.concatenate %240, %241 in 1 : vector<32x1xf32>, vector<32x63xf32> -> vector<32x64xf32>
    %243 = vector.extract_strided_slice %234 {offsets = [0, 15], sizes = [32, 49], strides = [1, 1]} : vector<32x64xf32> to vector<32x49xf32>
    %244 = vector.extract_strided_slice %234 {offsets = [0, 0], sizes = [32, 15], strides = [1, 1]} : vector<32x64xf32> to vector<32x15xf32>
    %245 = tpu.concatenate %243, %244 in 1 : vector<32x49xf32>, vector<32x15xf32> -> vector<32x64xf32>
    %246 = arith.select %239, %242, %245 : vector<32x64xi1>, vector<32x64xf32>
    %247 = arith.maximumf %234, %246 : vector<32x64xf32>
    %248 = tpu.iota {dimensions = array<i32: 1>} : vector<32x64xi32>
    %c15_i32_89 = arith.constant 15 : i32
    %249 = vector.broadcast %c15_i32_89 : i32 to vector<32x64xi32>
    %250 = arith.andi %248, %249 : vector<32x64xi32>
    %c2_i32_90 = arith.constant 2 : i32
    %251 = vector.broadcast %c2_i32_90 : i32 to vector<32x64xi32>
    %252 = arith.cmpi sge, %250, %251 : vector<32x64xi32>
    %253 = vector.extract_strided_slice %247 {offsets = [0, 62], sizes = [32, 2], strides = [1, 1]} : vector<32x64xf32> to vector<32x2xf32>
    %254 = vector.extract_strided_slice %247 {offsets = [0, 0], sizes = [32, 62], strides = [1, 1]} : vector<32x64xf32> to vector<32x62xf32>
    %255 = tpu.concatenate %253, %254 in 1 : vector<32x2xf32>, vector<32x62xf32> -> vector<32x64xf32>
    %256 = vector.extract_strided_slice %247 {offsets = [0, 14], sizes = [32, 50], strides = [1, 1]} : vector<32x64xf32> to vector<32x50xf32>
    %257 = vector.extract_strided_slice %247 {offsets = [0, 0], sizes = [32, 14], strides = [1, 1]} : vector<32x64xf32> to vector<32x14xf32>
    %258 = tpu.concatenate %256, %257 in 1 : vector<32x50xf32>, vector<32x14xf32> -> vector<32x64xf32>
    %259 = arith.select %252, %255, %258 : vector<32x64xi1>, vector<32x64xf32>
    %260 = arith.maximumf %247, %259 : vector<32x64xf32>
    %261 = tpu.iota {dimensions = array<i32: 1>} : vector<32x64xi32>
    %c15_i32_91 = arith.constant 15 : i32
    %262 = vector.broadcast %c15_i32_91 : i32 to vector<32x64xi32>
    %263 = arith.andi %261, %262 : vector<32x64xi32>
    %c4_i32_92 = arith.constant 4 : i32
    %264 = vector.broadcast %c4_i32_92 : i32 to vector<32x64xi32>
    %265 = arith.cmpi sge, %263, %264 : vector<32x64xi32>
    %266 = vector.extract_strided_slice %260 {offsets = [0, 60], sizes = [32, 4], strides = [1, 1]} : vector<32x64xf32> to vector<32x4xf32>
    %267 = vector.extract_strided_slice %260 {offsets = [0, 0], sizes = [32, 60], strides = [1, 1]} : vector<32x64xf32> to vector<32x60xf32>
    %268 = tpu.concatenate %266, %267 in 1 : vector<32x4xf32>, vector<32x60xf32> -> vector<32x64xf32>
    %269 = vector.extract_strided_slice %260 {offsets = [0, 12], sizes = [32, 52], strides = [1, 1]} : vector<32x64xf32> to vector<32x52xf32>
    %270 = vector.extract_strided_slice %260 {offsets = [0, 0], sizes = [32, 12], strides = [1, 1]} : vector<32x64xf32> to vector<32x12xf32>
    %271 = tpu.concatenate %269, %270 in 1 : vector<32x52xf32>, vector<32x12xf32> -> vector<32x64xf32>
    %272 = arith.select %265, %268, %271 : vector<32x64xi1>, vector<32x64xf32>
    %273 = arith.maximumf %260, %272 : vector<32x64xf32>
    %274 = tpu.iota {dimensions = array<i32: 1>} : vector<32x64xi32>
    %c15_i32_93 = arith.constant 15 : i32
    %275 = vector.broadcast %c15_i32_93 : i32 to vector<32x64xi32>
    %276 = arith.andi %274, %275 : vector<32x64xi32>
    %c8_i32_94 = arith.constant 8 : i32
    %277 = vector.broadcast %c8_i32_94 : i32 to vector<32x64xi32>
    %278 = arith.cmpi sge, %276, %277 : vector<32x64xi32>
    %279 = vector.extract_strided_slice %273 {offsets = [0, 56], sizes = [32, 8], strides = [1, 1]} : vector<32x64xf32> to vector<32x8xf32>
    %280 = vector.extract_strided_slice %273 {offsets = [0, 0], sizes = [32, 56], strides = [1, 1]} : vector<32x64xf32> to vector<32x56xf32>
    %281 = tpu.concatenate %279, %280 in 1 : vector<32x8xf32>, vector<32x56xf32> -> vector<32x64xf32>
    %282 = vector.extract_strided_slice %273 {offsets = [0, 8], sizes = [32, 56], strides = [1, 1]} : vector<32x64xf32> to vector<32x56xf32>
    %283 = vector.extract_strided_slice %273 {offsets = [0, 0], sizes = [32, 8], strides = [1, 1]} : vector<32x64xf32> to vector<32x8xf32>
    %284 = tpu.concatenate %282, %283 in 1 : vector<32x56xf32>, vector<32x8xf32> -> vector<32x64xf32>
    %285 = arith.select %278, %281, %284 : vector<32x64xi1>, vector<32x64xf32>
    %286 = arith.maximumf %273, %285 : vector<32x64xf32>
    %287 = arith.subf %234, %286 : vector<32x64xf32>
    %288 = math.exp %287 : vector<32x64xf32>
    %289 = tpu.iota {dimensions = array<i32: 1>} : vector<32x64xi32>
    %c15_i32_95 = arith.constant 15 : i32
    %290 = vector.broadcast %c15_i32_95 : i32 to vector<32x64xi32>
    %291 = arith.andi %289, %290 : vector<32x64xi32>
    %c1_i32_96 = arith.constant 1 : i32
    %292 = vector.broadcast %c1_i32_96 : i32 to vector<32x64xi32>
    %293 = arith.cmpi sge, %291, %292 : vector<32x64xi32>
    %294 = vector.extract_strided_slice %288 {offsets = [0, 63], sizes = [32, 1], strides = [1, 1]} : vector<32x64xf32> to vector<32x1xf32>
    %295 = vector.extract_strided_slice %288 {offsets = [0, 0], sizes = [32, 63], strides = [1, 1]} : vector<32x64xf32> to vector<32x63xf32>
    %296 = tpu.concatenate %294, %295 in 1 : vector<32x1xf32>, vector<32x63xf32> -> vector<32x64xf32>
    %297 = vector.extract_strided_slice %288 {offsets = [0, 15], sizes = [32, 49], strides = [1, 1]} : vector<32x64xf32> to vector<32x49xf32>
    %298 = vector.extract_strided_slice %288 {offsets = [0, 0], sizes = [32, 15], strides = [1, 1]} : vector<32x64xf32> to vector<32x15xf32>
    %299 = tpu.concatenate %297, %298 in 1 : vector<32x49xf32>, vector<32x15xf32> -> vector<32x64xf32>
    %300 = arith.select %293, %296, %299 : vector<32x64xi1>, vector<32x64xf32>
    %301 = arith.addf %288, %300 : vector<32x64xf32>
    %302 = tpu.iota {dimensions = array<i32: 1>} : vector<32x64xi32>
    %c15_i32_97 = arith.constant 15 : i32
    %303 = vector.broadcast %c15_i32_97 : i32 to vector<32x64xi32>
    %304 = arith.andi %302, %303 : vector<32x64xi32>
    %c2_i32_98 = arith.constant 2 : i32
    %305 = vector.broadcast %c2_i32_98 : i32 to vector<32x64xi32>
    %306 = arith.cmpi sge, %304, %305 : vector<32x64xi32>
    %307 = vector.extract_strided_slice %301 {offsets = [0, 62], sizes = [32, 2], strides = [1, 1]} : vector<32x64xf32> to vector<32x2xf32>
    %308 = vector.extract_strided_slice %301 {offsets = [0, 0], sizes = [32, 62], strides = [1, 1]} : vector<32x64xf32> to vector<32x62xf32>
    %309 = tpu.concatenate %307, %308 in 1 : vector<32x2xf32>, vector<32x62xf32> -> vector<32x64xf32>
    %310 = vector.extract_strided_slice %301 {offsets = [0, 14], sizes = [32, 50], strides = [1, 1]} : vector<32x64xf32> to vector<32x50xf32>
    %311 = vector.extract_strided_slice %301 {offsets = [0, 0], sizes = [32, 14], strides = [1, 1]} : vector<32x64xf32> to vector<32x14xf32>
    %312 = tpu.concatenate %310, %311 in 1 : vector<32x50xf32>, vector<32x14xf32> -> vector<32x64xf32>
    %313 = arith.select %306, %309, %312 : vector<32x64xi1>, vector<32x64xf32>
    %314 = arith.addf %301, %313 : vector<32x64xf32>
    %315 = tpu.iota {dimensions = array<i32: 1>} : vector<32x64xi32>
    %c15_i32_99 = arith.constant 15 : i32
    %316 = vector.broadcast %c15_i32_99 : i32 to vector<32x64xi32>
    %317 = arith.andi %315, %316 : vector<32x64xi32>
    %c4_i32_100 = arith.constant 4 : i32
    %318 = vector.broadcast %c4_i32_100 : i32 to vector<32x64xi32>
    %319 = arith.cmpi sge, %317, %318 : vector<32x64xi32>
    %320 = vector.extract_strided_slice %314 {offsets = [0, 60], sizes = [32, 4], strides = [1, 1]} : vector<32x64xf32> to vector<32x4xf32>
    %321 = vector.extract_strided_slice %314 {offsets = [0, 0], sizes = [32, 60], strides = [1, 1]} : vector<32x64xf32> to vector<32x60xf32>
    %322 = tpu.concatenate %320, %321 in 1 : vector<32x4xf32>, vector<32x60xf32> -> vector<32x64xf32>
    %323 = vector.extract_strided_slice %314 {offsets = [0, 12], sizes = [32, 52], strides = [1, 1]} : vector<32x64xf32> to vector<32x52xf32>
    %324 = vector.extract_strided_slice %314 {offsets = [0, 0], sizes = [32, 12], strides = [1, 1]} : vector<32x64xf32> to vector<32x12xf32>
    %325 = tpu.concatenate %323, %324 in 1 : vector<32x52xf32>, vector<32x12xf32> -> vector<32x64xf32>
    %326 = arith.select %319, %322, %325 : vector<32x64xi1>, vector<32x64xf32>
    %327 = arith.addf %314, %326 : vector<32x64xf32>
    %328 = tpu.iota {dimensions = array<i32: 1>} : vector<32x64xi32>
    %c15_i32_101 = arith.constant 15 : i32
    %329 = vector.broadcast %c15_i32_101 : i32 to vector<32x64xi32>
    %330 = arith.andi %328, %329 : vector<32x64xi32>
    %c8_i32_102 = arith.constant 8 : i32
    %331 = vector.broadcast %c8_i32_102 : i32 to vector<32x64xi32>
    %332 = arith.cmpi sge, %330, %331 : vector<32x64xi32>
    %333 = vector.extract_strided_slice %327 {offsets = [0, 56], sizes = [32, 8], strides = [1, 1]} : vector<32x64xf32> to vector<32x8xf32>
    %334 = vector.extract_strided_slice %327 {offsets = [0, 0], sizes = [32, 56], strides = [1, 1]} : vector<32x64xf32> to vector<32x56xf32>
    %335 = tpu.concatenate %333, %334 in 1 : vector<32x8xf32>, vector<32x56xf32> -> vector<32x64xf32>
    %336 = vector.extract_strided_slice %327 {offsets = [0, 8], sizes = [32, 56], strides = [1, 1]} : vector<32x64xf32> to vector<32x56xf32>
    %337 = vector.extract_strided_slice %327 {offsets = [0, 0], sizes = [32, 8], strides = [1, 1]} : vector<32x64xf32> to vector<32x8xf32>
    %338 = tpu.concatenate %336, %337 in 1 : vector<32x56xf32>, vector<32x8xf32> -> vector<32x64xf32>
    %339 = arith.select %332, %335, %338 : vector<32x64xi1>, vector<32x64xf32>
    %340 = arith.addf %327, %339 : vector<32x64xf32>
    %341 = tpu.reciprocal %340 {approx = true} : vector<32x64xf32> -> vector<32x64xf32>
    %342 = arith.mulf %288, %341 : vector<32x64xf32>
    %343 = vector.extract_strided_slice %91 {offsets = [0, 0], sizes = [16, 64], strides = [1, 1]} : vector<32x64xf32> to vector<16x64xf32>
    %344 = tpu.concatenate %343, %343, %343, %343 in 0 : vector<16x64xf32>, vector<16x64xf32>, vector<16x64xf32>, vector<16x64xf32> -> vector<64x64xf32>
    %cst_103 = arith.constant 0.000000e+00 : f32
    %345 = vector.broadcast %cst_103 : f32 to vector<64x64xf32>
    %346 = arith.select %213, %344, %345 : vector<64x64xi1>, vector<64x64xf32>
    %347 = vector.extract_strided_slice %342 {offsets = [0, 0], sizes = [16, 64], strides = [1, 1]} : vector<32x64xf32> to vector<16x64xf32>
    %cst_104 = arith.constant dense<0.000000e+00> : vector<16x64xf32>
    %348 = tpu.matmul %347, %346, %cst_104 {dimension_numbers = #tpu.dot_dimension_numbers<[1], [0], [0], [1], [0, 0, 1, 1], [], []>} : vector<16x64xf32>, vector<64x64xf32>, vector<16x64xf32> -> vector<16x64xf32>
    %349 = vector.extract_strided_slice %91 {offsets = [16, 0], sizes = [16, 64], strides = [1, 1]} : vector<32x64xf32> to vector<16x64xf32>
    %350 = tpu.concatenate %349, %349, %349, %349 in 0 : vector<16x64xf32>, vector<16x64xf32>, vector<16x64xf32>, vector<16x64xf32> -> vector<64x64xf32>
    %cst_105 = arith.constant 0.000000e+00 : f32
    %351 = vector.broadcast %cst_105 : f32 to vector<64x64xf32>
    %352 = arith.select %213, %350, %351 : vector<64x64xi1>, vector<64x64xf32>
    %353 = vector.extract_strided_slice %342 {offsets = [16, 0], sizes = [16, 64], strides = [1, 1]} : vector<32x64xf32> to vector<16x64xf32>
    %cst_106 = arith.constant dense<0.000000e+00> : vector<16x64xf32>
    %354 = tpu.matmul %353, %352, %cst_106 {dimension_numbers = #tpu.dot_dimension_numbers<[1], [0], [0], [1], [0, 0, 1, 1], [], []>} : vector<16x64xf32>, vector<64x64xf32>, vector<16x64xf32> -> vector<16x64xf32>
    %355 = tpu.concatenate %348, %354 in 0 : vector<16x64xf32>, vector<16x64xf32> -> vector<32x64xf32>
    %c0_107 = arith.constant 0 : index
    %c0_108 = arith.constant 0 : index
    %356 = vector.load %arg19[%c0_107, %c0_108] : memref<64x64xf32, #tpu.memory_space<vmem>>, vector<64x64xf32>
    %cst_109 = arith.constant dense<0.000000e+00> : vector<32x64xf32>
    %357 = tpu.matmul %355, %356, %cst_109 {dimension_numbers = #tpu.dot_dimension_numbers<[1], [0], [0], [1], [0, 0, 1, 1], [], []>} : vector<32x64xf32>, vector<64x64xf32>, vector<32x64xf32> -> vector<32x64xf32>
    %358 = arith.addf %52, %357 : vector<32x64xf32>
    %c0_110 = arith.constant 0 : index
    %c0_111 = arith.constant 0 : index
    %359 = vector.load %arg20[%c0_110, %c0_111] : memref<1x64xf32, #tpu.memory_space<vmem>>, vector<1x64xf32>
    %360 = vector.broadcast %359 : vector<1x64xf32> to vector<32x64xf32>
    %361 = arith.addf %358, %360 : vector<32x64xf32>
    %c0_112 = arith.constant 0 : index
    %c0_113 = arith.constant 0 : index
    %362 = vector.load %arg21[%c0_112, %c0_113] : memref<1x64xf32, #tpu.memory_space<vmem>>, vector<1x64xf32>
    %c0_114 = arith.constant 0 : index
    %c0_115 = arith.constant 0 : index
    %363 = vector.load %arg22[%c0_114, %c0_115] : memref<1x64xf32, #tpu.memory_space<vmem>>, vector<1x64xf32>
    %cst_116 = arith.constant dense<0.000000e+00> : vector<32xf32>
    %364 = vector.multi_reduction <add>, %361, %cst_116 [1] : vector<32x64xf32> to vector<32xf32>
    %365 = vector.shape_cast %364 : vector<32xf32> to vector<32x1xf32>
    %cst_117 = arith.constant 6.400000e+01 : f32
    %366 = vector.broadcast %cst_117 : f32 to vector<32x1xf32>
    %367 = arith.divf %365, %366 : vector<32x1xf32>
    %368 = vector.broadcast %367 : vector<32x1xf32> to vector<32x64xf32>
    %369 = arith.subf %361, %368 : vector<32x64xf32>
    %370 = arith.mulf %369, %369 : vector<32x64xf32>
    %cst_118 = arith.constant dense<0.000000e+00> : vector<32xf32>
    %371 = vector.multi_reduction <add>, %370, %cst_118 [1] : vector<32x64xf32> to vector<32xf32>
    %372 = vector.shape_cast %371 : vector<32xf32> to vector<32x1xf32>
    %cst_119 = arith.constant 6.400000e+01 : f32
    %373 = vector.broadcast %cst_119 : f32 to vector<32x1xf32>
    %374 = arith.divf %372, %373 : vector<32x1xf32>
    %375 = vector.broadcast %367 : vector<32x1xf32> to vector<32x64xf32>
    %376 = arith.subf %361, %375 : vector<32x64xf32>
    %cst_120 = arith.constant 9.99999974E-6 : f32
    %377 = vector.broadcast %cst_120 : f32 to vector<32x1xf32>
    %378 = arith.addf %374, %377 : vector<32x1xf32>
    %379 = math.rsqrt %378 : vector<32x1xf32>
    %380 = vector.broadcast %379 : vector<32x1xf32> to vector<32x64xf32>
    %381 = arith.mulf %376, %380 : vector<32x64xf32>
    %382 = vector.broadcast %362 : vector<1x64xf32> to vector<32x64xf32>
    %383 = arith.mulf %381, %382 : vector<32x64xf32>
    %384 = vector.broadcast %363 : vector<1x64xf32> to vector<32x64xf32>
    %385 = arith.addf %383, %384 : vector<32x64xf32>
    %c0_121 = arith.constant 0 : index
    %c0_122 = arith.constant 0 : index
    %386 = vector.load %arg23[%c0_121, %c0_122] : memref<64x128xf32, #tpu.memory_space<vmem>>, vector<64x128xf32>
    %cst_123 = arith.constant dense<0.000000e+00> : vector<32x128xf32>
    %387 = tpu.matmul %385, %386, %cst_123 {dimension_numbers = #tpu.dot_dimension_numbers<[1], [0], [0], [1], [0, 0, 1, 1], [], []>} : vector<32x64xf32>, vector<64x128xf32>, vector<32x128xf32> -> vector<32x128xf32>
    %c0_124 = arith.constant 0 : index
    %c0_125 = arith.constant 0 : index
    %388 = vector.load %arg24[%c0_124, %c0_125] : memref<1x128xf32, #tpu.memory_space<vmem>>, vector<1x128xf32>
    %389 = vector.broadcast %388 : vector<1x128xf32> to vector<32x128xf32>
    %390 = arith.addf %387, %389 : vector<32x128xf32>
    %391 = vector.extract_strided_slice %390 {offsets = [0, 0], sizes = [32, 64], strides = [1, 1]} : vector<32x128xf32> to vector<32x64xf32>
    %392 = vector.extract_strided_slice %390 {offsets = [0, 64], sizes = [32, 64], strides = [1, 1]} : vector<32x128xf32> to vector<32x64xf32>
    %393 = math.absf %392 : vector<32x64xf32>
    %cst_126 = arith.constant 0.000000e+00 : f32
    %394 = vector.broadcast %cst_126 : f32 to vector<32x64xf32>
    %395 = arith.subf %394, %393 : vector<32x64xf32>
    %396 = math.exp %395 : vector<32x64xf32>
    %cst_127 = arith.constant 0.000000e+00 : f32
    %397 = vector.broadcast %cst_127 : f32 to vector<32x64xf32>
    %398 = arith.cmpf oge, %392, %397 : vector<32x64xf32>
    %cst_128 = arith.constant 1.000000e+00 : f32
    %399 = vector.broadcast %cst_128 : f32 to vector<32x64xf32>
    %400 = arith.addf %399, %396 : vector<32x64xf32>
    %cst_129 = arith.constant 1.000000e+00 : f32
    %401 = vector.broadcast %cst_129 : f32 to vector<32x64xf32>
    %402 = arith.divf %401, %400 : vector<32x64xf32>
    %cst_130 = arith.constant 1.000000e+00 : f32
    %403 = vector.broadcast %cst_130 : f32 to vector<32x64xf32>
    %404 = arith.addf %403, %396 : vector<32x64xf32>
    %405 = arith.divf %396, %404 : vector<32x64xf32>
    %406 = arith.select %398, %402, %405 : vector<32x64xi1>, vector<32x64xf32>
    %407 = arith.mulf %391, %406 : vector<32x64xf32>
    %408 = tpu.iota {dimensions = array<i32: 0>} : vector<32x64xi32>
    %c15_i32_131 = arith.constant 15 : i32
    %409 = vector.broadcast %c15_i32_131 : i32 to vector<32x64xi32>
    %410 = arith.andi %408, %409 : vector<32x64xi32>
    %c0_132 = arith.constant 0 : index
    %c0_133 = arith.constant 0 : index
    %411 = vector.load %arg25[%c0_132, %c0_133] : memref<31x64xf32, #tpu.memory_space<vmem>>, vector<31x64xf32>
    %cst_134 = arith.constant 0.000000e+00 : f32
    %412 = vector.broadcast %cst_134 : f32 to vector<32x64xf32>
    %c-15_i32 = arith.constant -15 : i32
    %413 = vector.broadcast %c-15_i32 : i32 to vector<32x64xi32>
    %414 = arith.addi %410, %413 : vector<32x64xi32>
    %c0_i32_135 = arith.constant 0 : i32
    %415 = vector.broadcast %c0_i32_135 : i32 to vector<32x64xi32>
    %416 = arith.cmpi sge, %414, %415 : vector<32x64xi32>
    %c16_i32 = arith.constant 16 : i32
    %417 = vector.broadcast %c16_i32 : i32 to vector<32x64xi32>
    %418 = arith.cmpi slt, %414, %417 : vector<32x64xi32>
    %419 = arith.andi %416, %418 : vector<32x64xi1>
    %420 = vector.extract_strided_slice %407 {offsets = [17, 0], sizes = [15, 64], strides = [1, 1]} : vector<32x64xf32> to vector<15x64xf32>
    %421 = vector.extract_strided_slice %407 {offsets = [0, 0], sizes = [17, 64], strides = [1, 1]} : vector<32x64xf32> to vector<17x64xf32>
    %422 = tpu.concatenate %420, %421 in 0 : vector<15x64xf32>, vector<17x64xf32> -> vector<32x64xf32>
    %423 = vector.extract_strided_slice %411 {offsets = [0, 0], sizes = [1, 64], strides = [1, 1]} : vector<31x64xf32> to vector<1x64xf32>
    %cst_136 = arith.constant 0.000000e+00 : f32
    %424 = vector.broadcast %cst_136 : f32 to vector<32x64xf32>
    %425 = arith.select %419, %422, %424 : vector<32x64xi1>, vector<32x64xf32>
    %426 = vector.broadcast %423 : vector<1x64xf32> to vector<32x64xf32>
    %427 = arith.mulf %426, %425 : vector<32x64xf32>
    %428 = arith.addf %412, %427 : vector<32x64xf32>
    %c-14_i32 = arith.constant -14 : i32
    %429 = vector.broadcast %c-14_i32 : i32 to vector<32x64xi32>
    %430 = arith.addi %410, %429 : vector<32x64xi32>
    %c0_i32_137 = arith.constant 0 : i32
    %431 = vector.broadcast %c0_i32_137 : i32 to vector<32x64xi32>
    %432 = arith.cmpi sge, %430, %431 : vector<32x64xi32>
    %c16_i32_138 = arith.constant 16 : i32
    %433 = vector.broadcast %c16_i32_138 : i32 to vector<32x64xi32>
    %434 = arith.cmpi slt, %430, %433 : vector<32x64xi32>
    %435 = arith.andi %432, %434 : vector<32x64xi1>
    %436 = vector.extract_strided_slice %407 {offsets = [18, 0], sizes = [14, 64], strides = [1, 1]} : vector<32x64xf32> to vector<14x64xf32>
    %437 = vector.extract_strided_slice %407 {offsets = [0, 0], sizes = [18, 64], strides = [1, 1]} : vector<32x64xf32> to vector<18x64xf32>
    %438 = tpu.concatenate %436, %437 in 0 : vector<14x64xf32>, vector<18x64xf32> -> vector<32x64xf32>
    %439 = vector.extract_strided_slice %411 {offsets = [1, 0], sizes = [1, 64], strides = [1, 1]} : vector<31x64xf32> to vector<1x64xf32>
    %cst_139 = arith.constant 0.000000e+00 : f32
    %440 = vector.broadcast %cst_139 : f32 to vector<32x64xf32>
    %441 = arith.select %435, %438, %440 : vector<32x64xi1>, vector<32x64xf32>
    %442 = vector.broadcast %439 : vector<1x64xf32> to vector<32x64xf32>
    %443 = arith.mulf %442, %441 : vector<32x64xf32>
    %444 = arith.addf %428, %443 : vector<32x64xf32>
    %c-13_i32 = arith.constant -13 : i32
    %445 = vector.broadcast %c-13_i32 : i32 to vector<32x64xi32>
    %446 = arith.addi %410, %445 : vector<32x64xi32>
    %c0_i32_140 = arith.constant 0 : i32
    %447 = vector.broadcast %c0_i32_140 : i32 to vector<32x64xi32>
    %448 = arith.cmpi sge, %446, %447 : vector<32x64xi32>
    %c16_i32_141 = arith.constant 16 : i32
    %449 = vector.broadcast %c16_i32_141 : i32 to vector<32x64xi32>
    %450 = arith.cmpi slt, %446, %449 : vector<32x64xi32>
    %451 = arith.andi %448, %450 : vector<32x64xi1>
    %452 = vector.extract_strided_slice %407 {offsets = [19, 0], sizes = [13, 64], strides = [1, 1]} : vector<32x64xf32> to vector<13x64xf32>
    %453 = vector.extract_strided_slice %407 {offsets = [0, 0], sizes = [19, 64], strides = [1, 1]} : vector<32x64xf32> to vector<19x64xf32>
    %454 = tpu.concatenate %452, %453 in 0 : vector<13x64xf32>, vector<19x64xf32> -> vector<32x64xf32>
    %455 = vector.extract_strided_slice %411 {offsets = [2, 0], sizes = [1, 64], strides = [1, 1]} : vector<31x64xf32> to vector<1x64xf32>
    %cst_142 = arith.constant 0.000000e+00 : f32
    %456 = vector.broadcast %cst_142 : f32 to vector<32x64xf32>
    %457 = arith.select %451, %454, %456 : vector<32x64xi1>, vector<32x64xf32>
    %458 = vector.broadcast %455 : vector<1x64xf32> to vector<32x64xf32>
    %459 = arith.mulf %458, %457 : vector<32x64xf32>
    %460 = arith.addf %444, %459 : vector<32x64xf32>
    %c-12_i32 = arith.constant -12 : i32
    %461 = vector.broadcast %c-12_i32 : i32 to vector<32x64xi32>
    %462 = arith.addi %410, %461 : vector<32x64xi32>
    %c0_i32_143 = arith.constant 0 : i32
    %463 = vector.broadcast %c0_i32_143 : i32 to vector<32x64xi32>
    %464 = arith.cmpi sge, %462, %463 : vector<32x64xi32>
    %c16_i32_144 = arith.constant 16 : i32
    %465 = vector.broadcast %c16_i32_144 : i32 to vector<32x64xi32>
    %466 = arith.cmpi slt, %462, %465 : vector<32x64xi32>
    %467 = arith.andi %464, %466 : vector<32x64xi1>
    %468 = vector.extract_strided_slice %407 {offsets = [20, 0], sizes = [12, 64], strides = [1, 1]} : vector<32x64xf32> to vector<12x64xf32>
    %469 = vector.extract_strided_slice %407 {offsets = [0, 0], sizes = [20, 64], strides = [1, 1]} : vector<32x64xf32> to vector<20x64xf32>
    %470 = tpu.concatenate %468, %469 in 0 : vector<12x64xf32>, vector<20x64xf32> -> vector<32x64xf32>
    %471 = vector.extract_strided_slice %411 {offsets = [3, 0], sizes = [1, 64], strides = [1, 1]} : vector<31x64xf32> to vector<1x64xf32>
    %cst_145 = arith.constant 0.000000e+00 : f32
    %472 = vector.broadcast %cst_145 : f32 to vector<32x64xf32>
    %473 = arith.select %467, %470, %472 : vector<32x64xi1>, vector<32x64xf32>
    %474 = vector.broadcast %471 : vector<1x64xf32> to vector<32x64xf32>
    %475 = arith.mulf %474, %473 : vector<32x64xf32>
    %476 = arith.addf %460, %475 : vector<32x64xf32>
    %c-11_i32 = arith.constant -11 : i32
    %477 = vector.broadcast %c-11_i32 : i32 to vector<32x64xi32>
    %478 = arith.addi %410, %477 : vector<32x64xi32>
    %c0_i32_146 = arith.constant 0 : i32
    %479 = vector.broadcast %c0_i32_146 : i32 to vector<32x64xi32>
    %480 = arith.cmpi sge, %478, %479 : vector<32x64xi32>
    %c16_i32_147 = arith.constant 16 : i32
    %481 = vector.broadcast %c16_i32_147 : i32 to vector<32x64xi32>
    %482 = arith.cmpi slt, %478, %481 : vector<32x64xi32>
    %483 = arith.andi %480, %482 : vector<32x64xi1>
    %484 = vector.extract_strided_slice %407 {offsets = [21, 0], sizes = [11, 64], strides = [1, 1]} : vector<32x64xf32> to vector<11x64xf32>
    %485 = vector.extract_strided_slice %407 {offsets = [0, 0], sizes = [21, 64], strides = [1, 1]} : vector<32x64xf32> to vector<21x64xf32>
    %486 = tpu.concatenate %484, %485 in 0 : vector<11x64xf32>, vector<21x64xf32> -> vector<32x64xf32>
    %487 = vector.extract_strided_slice %411 {offsets = [4, 0], sizes = [1, 64], strides = [1, 1]} : vector<31x64xf32> to vector<1x64xf32>
    %cst_148 = arith.constant 0.000000e+00 : f32
    %488 = vector.broadcast %cst_148 : f32 to vector<32x64xf32>
    %489 = arith.select %483, %486, %488 : vector<32x64xi1>, vector<32x64xf32>
    %490 = vector.broadcast %487 : vector<1x64xf32> to vector<32x64xf32>
    %491 = arith.mulf %490, %489 : vector<32x64xf32>
    %492 = arith.addf %476, %491 : vector<32x64xf32>
    %c-10_i32 = arith.constant -10 : i32
    %493 = vector.broadcast %c-10_i32 : i32 to vector<32x64xi32>
    %494 = arith.addi %410, %493 : vector<32x64xi32>
    %c0_i32_149 = arith.constant 0 : i32
    %495 = vector.broadcast %c0_i32_149 : i32 to vector<32x64xi32>
    %496 = arith.cmpi sge, %494, %495 : vector<32x64xi32>
    %c16_i32_150 = arith.constant 16 : i32
    %497 = vector.broadcast %c16_i32_150 : i32 to vector<32x64xi32>
    %498 = arith.cmpi slt, %494, %497 : vector<32x64xi32>
    %499 = arith.andi %496, %498 : vector<32x64xi1>
    %500 = vector.extract_strided_slice %407 {offsets = [22, 0], sizes = [10, 64], strides = [1, 1]} : vector<32x64xf32> to vector<10x64xf32>
    %501 = vector.extract_strided_slice %407 {offsets = [0, 0], sizes = [22, 64], strides = [1, 1]} : vector<32x64xf32> to vector<22x64xf32>
    %502 = tpu.concatenate %500, %501 in 0 : vector<10x64xf32>, vector<22x64xf32> -> vector<32x64xf32>
    %503 = vector.extract_strided_slice %411 {offsets = [5, 0], sizes = [1, 64], strides = [1, 1]} : vector<31x64xf32> to vector<1x64xf32>
    %cst_151 = arith.constant 0.000000e+00 : f32
    %504 = vector.broadcast %cst_151 : f32 to vector<32x64xf32>
    %505 = arith.select %499, %502, %504 : vector<32x64xi1>, vector<32x64xf32>
    %506 = vector.broadcast %503 : vector<1x64xf32> to vector<32x64xf32>
    %507 = arith.mulf %506, %505 : vector<32x64xf32>
    %508 = arith.addf %492, %507 : vector<32x64xf32>
    %c-9_i32 = arith.constant -9 : i32
    %509 = vector.broadcast %c-9_i32 : i32 to vector<32x64xi32>
    %510 = arith.addi %410, %509 : vector<32x64xi32>
    %c0_i32_152 = arith.constant 0 : i32
    %511 = vector.broadcast %c0_i32_152 : i32 to vector<32x64xi32>
    %512 = arith.cmpi sge, %510, %511 : vector<32x64xi32>
    %c16_i32_153 = arith.constant 16 : i32
    %513 = vector.broadcast %c16_i32_153 : i32 to vector<32x64xi32>
    %514 = arith.cmpi slt, %510, %513 : vector<32x64xi32>
    %515 = arith.andi %512, %514 : vector<32x64xi1>
    %516 = vector.extract_strided_slice %407 {offsets = [23, 0], sizes = [9, 64], strides = [1, 1]} : vector<32x64xf32> to vector<9x64xf32>
    %517 = vector.extract_strided_slice %407 {offsets = [0, 0], sizes = [23, 64], strides = [1, 1]} : vector<32x64xf32> to vector<23x64xf32>
    %518 = tpu.concatenate %516, %517 in 0 : vector<9x64xf32>, vector<23x64xf32> -> vector<32x64xf32>
    %519 = vector.extract_strided_slice %411 {offsets = [6, 0], sizes = [1, 64], strides = [1, 1]} : vector<31x64xf32> to vector<1x64xf32>
    %cst_154 = arith.constant 0.000000e+00 : f32
    %520 = vector.broadcast %cst_154 : f32 to vector<32x64xf32>
    %521 = arith.select %515, %518, %520 : vector<32x64xi1>, vector<32x64xf32>
    %522 = vector.broadcast %519 : vector<1x64xf32> to vector<32x64xf32>
    %523 = arith.mulf %522, %521 : vector<32x64xf32>
    %524 = arith.addf %508, %523 : vector<32x64xf32>
    %c-8_i32 = arith.constant -8 : i32
    %525 = vector.broadcast %c-8_i32 : i32 to vector<32x64xi32>
    %526 = arith.addi %410, %525 : vector<32x64xi32>
    %c0_i32_155 = arith.constant 0 : i32
    %527 = vector.broadcast %c0_i32_155 : i32 to vector<32x64xi32>
    %528 = arith.cmpi sge, %526, %527 : vector<32x64xi32>
    %c16_i32_156 = arith.constant 16 : i32
    %529 = vector.broadcast %c16_i32_156 : i32 to vector<32x64xi32>
    %530 = arith.cmpi slt, %526, %529 : vector<32x64xi32>
    %531 = arith.andi %528, %530 : vector<32x64xi1>
    %532 = vector.extract_strided_slice %407 {offsets = [24, 0], sizes = [8, 64], strides = [1, 1]} : vector<32x64xf32> to vector<8x64xf32>
    %533 = vector.extract_strided_slice %407 {offsets = [0, 0], sizes = [24, 64], strides = [1, 1]} : vector<32x64xf32> to vector<24x64xf32>
    %534 = tpu.concatenate %532, %533 in 0 : vector<8x64xf32>, vector<24x64xf32> -> vector<32x64xf32>
    %535 = vector.extract_strided_slice %411 {offsets = [7, 0], sizes = [1, 64], strides = [1, 1]} : vector<31x64xf32> to vector<1x64xf32>
    %cst_157 = arith.constant 0.000000e+00 : f32
    %536 = vector.broadcast %cst_157 : f32 to vector<32x64xf32>
    %537 = arith.select %531, %534, %536 : vector<32x64xi1>, vector<32x64xf32>
    %538 = vector.broadcast %535 : vector<1x64xf32> to vector<32x64xf32>
    %539 = arith.mulf %538, %537 : vector<32x64xf32>
    %540 = arith.addf %524, %539 : vector<32x64xf32>
    %c-7_i32 = arith.constant -7 : i32
    %541 = vector.broadcast %c-7_i32 : i32 to vector<32x64xi32>
    %542 = arith.addi %410, %541 : vector<32x64xi32>
    %c0_i32_158 = arith.constant 0 : i32
    %543 = vector.broadcast %c0_i32_158 : i32 to vector<32x64xi32>
    %544 = arith.cmpi sge, %542, %543 : vector<32x64xi32>
    %c16_i32_159 = arith.constant 16 : i32
    %545 = vector.broadcast %c16_i32_159 : i32 to vector<32x64xi32>
    %546 = arith.cmpi slt, %542, %545 : vector<32x64xi32>
    %547 = arith.andi %544, %546 : vector<32x64xi1>
    %548 = vector.extract_strided_slice %407 {offsets = [25, 0], sizes = [7, 64], strides = [1, 1]} : vector<32x64xf32> to vector<7x64xf32>
    %549 = vector.extract_strided_slice %407 {offsets = [0, 0], sizes = [25, 64], strides = [1, 1]} : vector<32x64xf32> to vector<25x64xf32>
    %550 = tpu.concatenate %548, %549 in 0 : vector<7x64xf32>, vector<25x64xf32> -> vector<32x64xf32>
    %551 = vector.extract_strided_slice %411 {offsets = [8, 0], sizes = [1, 64], strides = [1, 1]} : vector<31x64xf32> to vector<1x64xf32>
    %cst_160 = arith.constant 0.000000e+00 : f32
    %552 = vector.broadcast %cst_160 : f32 to vector<32x64xf32>
    %553 = arith.select %547, %550, %552 : vector<32x64xi1>, vector<32x64xf32>
    %554 = vector.broadcast %551 : vector<1x64xf32> to vector<32x64xf32>
    %555 = arith.mulf %554, %553 : vector<32x64xf32>
    %556 = arith.addf %540, %555 : vector<32x64xf32>
    %c-6_i32 = arith.constant -6 : i32
    %557 = vector.broadcast %c-6_i32 : i32 to vector<32x64xi32>
    %558 = arith.addi %410, %557 : vector<32x64xi32>
    %c0_i32_161 = arith.constant 0 : i32
    %559 = vector.broadcast %c0_i32_161 : i32 to vector<32x64xi32>
    %560 = arith.cmpi sge, %558, %559 : vector<32x64xi32>
    %c16_i32_162 = arith.constant 16 : i32
    %561 = vector.broadcast %c16_i32_162 : i32 to vector<32x64xi32>
    %562 = arith.cmpi slt, %558, %561 : vector<32x64xi32>
    %563 = arith.andi %560, %562 : vector<32x64xi1>
    %564 = vector.extract_strided_slice %407 {offsets = [26, 0], sizes = [6, 64], strides = [1, 1]} : vector<32x64xf32> to vector<6x64xf32>
    %565 = vector.extract_strided_slice %407 {offsets = [0, 0], sizes = [26, 64], strides = [1, 1]} : vector<32x64xf32> to vector<26x64xf32>
    %566 = tpu.concatenate %564, %565 in 0 : vector<6x64xf32>, vector<26x64xf32> -> vector<32x64xf32>
    %567 = vector.extract_strided_slice %411 {offsets = [9, 0], sizes = [1, 64], strides = [1, 1]} : vector<31x64xf32> to vector<1x64xf32>
    %cst_163 = arith.constant 0.000000e+00 : f32
    %568 = vector.broadcast %cst_163 : f32 to vector<32x64xf32>
    %569 = arith.select %563, %566, %568 : vector<32x64xi1>, vector<32x64xf32>
    %570 = vector.broadcast %567 : vector<1x64xf32> to vector<32x64xf32>
    %571 = arith.mulf %570, %569 : vector<32x64xf32>
    %572 = arith.addf %556, %571 : vector<32x64xf32>
    %c-5_i32 = arith.constant -5 : i32
    %573 = vector.broadcast %c-5_i32 : i32 to vector<32x64xi32>
    %574 = arith.addi %410, %573 : vector<32x64xi32>
    %c0_i32_164 = arith.constant 0 : i32
    %575 = vector.broadcast %c0_i32_164 : i32 to vector<32x64xi32>
    %576 = arith.cmpi sge, %574, %575 : vector<32x64xi32>
    %c16_i32_165 = arith.constant 16 : i32
    %577 = vector.broadcast %c16_i32_165 : i32 to vector<32x64xi32>
    %578 = arith.cmpi slt, %574, %577 : vector<32x64xi32>
    %579 = arith.andi %576, %578 : vector<32x64xi1>
    %580 = vector.extract_strided_slice %407 {offsets = [27, 0], sizes = [5, 64], strides = [1, 1]} : vector<32x64xf32> to vector<5x64xf32>
    %581 = vector.extract_strided_slice %407 {offsets = [0, 0], sizes = [27, 64], strides = [1, 1]} : vector<32x64xf32> to vector<27x64xf32>
    %582 = tpu.concatenate %580, %581 in 0 : vector<5x64xf32>, vector<27x64xf32> -> vector<32x64xf32>
    %583 = vector.extract_strided_slice %411 {offsets = [10, 0], sizes = [1, 64], strides = [1, 1]} : vector<31x64xf32> to vector<1x64xf32>
    %cst_166 = arith.constant 0.000000e+00 : f32
    %584 = vector.broadcast %cst_166 : f32 to vector<32x64xf32>
    %585 = arith.select %579, %582, %584 : vector<32x64xi1>, vector<32x64xf32>
    %586 = vector.broadcast %583 : vector<1x64xf32> to vector<32x64xf32>
    %587 = arith.mulf %586, %585 : vector<32x64xf32>
    %588 = arith.addf %572, %587 : vector<32x64xf32>
    %c-4_i32 = arith.constant -4 : i32
    %589 = vector.broadcast %c-4_i32 : i32 to vector<32x64xi32>
    %590 = arith.addi %410, %589 : vector<32x64xi32>
    %c0_i32_167 = arith.constant 0 : i32
    %591 = vector.broadcast %c0_i32_167 : i32 to vector<32x64xi32>
    %592 = arith.cmpi sge, %590, %591 : vector<32x64xi32>
    %c16_i32_168 = arith.constant 16 : i32
    %593 = vector.broadcast %c16_i32_168 : i32 to vector<32x64xi32>
    %594 = arith.cmpi slt, %590, %593 : vector<32x64xi32>
    %595 = arith.andi %592, %594 : vector<32x64xi1>
    %596 = vector.extract_strided_slice %407 {offsets = [28, 0], sizes = [4, 64], strides = [1, 1]} : vector<32x64xf32> to vector<4x64xf32>
    %597 = vector.extract_strided_slice %407 {offsets = [0, 0], sizes = [28, 64], strides = [1, 1]} : vector<32x64xf32> to vector<28x64xf32>
    %598 = tpu.concatenate %596, %597 in 0 : vector<4x64xf32>, vector<28x64xf32> -> vector<32x64xf32>
    %599 = vector.extract_strided_slice %411 {offsets = [11, 0], sizes = [1, 64], strides = [1, 1]} : vector<31x64xf32> to vector<1x64xf32>
    %cst_169 = arith.constant 0.000000e+00 : f32
    %600 = vector.broadcast %cst_169 : f32 to vector<32x64xf32>
    %601 = arith.select %595, %598, %600 : vector<32x64xi1>, vector<32x64xf32>
    %602 = vector.broadcast %599 : vector<1x64xf32> to vector<32x64xf32>
    %603 = arith.mulf %602, %601 : vector<32x64xf32>
    %604 = arith.addf %588, %603 : vector<32x64xf32>
    %c-3_i32 = arith.constant -3 : i32
    %605 = vector.broadcast %c-3_i32 : i32 to vector<32x64xi32>
    %606 = arith.addi %410, %605 : vector<32x64xi32>
    %c0_i32_170 = arith.constant 0 : i32
    %607 = vector.broadcast %c0_i32_170 : i32 to vector<32x64xi32>
    %608 = arith.cmpi sge, %606, %607 : vector<32x64xi32>
    %c16_i32_171 = arith.constant 16 : i32
    %609 = vector.broadcast %c16_i32_171 : i32 to vector<32x64xi32>
    %610 = arith.cmpi slt, %606, %609 : vector<32x64xi32>
    %611 = arith.andi %608, %610 : vector<32x64xi1>
    %612 = vector.extract_strided_slice %407 {offsets = [29, 0], sizes = [3, 64], strides = [1, 1]} : vector<32x64xf32> to vector<3x64xf32>
    %613 = vector.extract_strided_slice %407 {offsets = [0, 0], sizes = [29, 64], strides = [1, 1]} : vector<32x64xf32> to vector<29x64xf32>
    %614 = tpu.concatenate %612, %613 in 0 : vector<3x64xf32>, vector<29x64xf32> -> vector<32x64xf32>
    %615 = vector.extract_strided_slice %411 {offsets = [12, 0], sizes = [1, 64], strides = [1, 1]} : vector<31x64xf32> to vector<1x64xf32>
    %cst_172 = arith.constant 0.000000e+00 : f32
    %616 = vector.broadcast %cst_172 : f32 to vector<32x64xf32>
    %617 = arith.select %611, %614, %616 : vector<32x64xi1>, vector<32x64xf32>
    %618 = vector.broadcast %615 : vector<1x64xf32> to vector<32x64xf32>
    %619 = arith.mulf %618, %617 : vector<32x64xf32>
    %620 = arith.addf %604, %619 : vector<32x64xf32>
    %c-2_i32 = arith.constant -2 : i32
    %621 = vector.broadcast %c-2_i32 : i32 to vector<32x64xi32>
    %622 = arith.addi %410, %621 : vector<32x64xi32>
    %c0_i32_173 = arith.constant 0 : i32
    %623 = vector.broadcast %c0_i32_173 : i32 to vector<32x64xi32>
    %624 = arith.cmpi sge, %622, %623 : vector<32x64xi32>
    %c16_i32_174 = arith.constant 16 : i32
    %625 = vector.broadcast %c16_i32_174 : i32 to vector<32x64xi32>
    %626 = arith.cmpi slt, %622, %625 : vector<32x64xi32>
    %627 = arith.andi %624, %626 : vector<32x64xi1>
    %628 = vector.extract_strided_slice %407 {offsets = [30, 0], sizes = [2, 64], strides = [1, 1]} : vector<32x64xf32> to vector<2x64xf32>
    %629 = vector.extract_strided_slice %407 {offsets = [0, 0], sizes = [30, 64], strides = [1, 1]} : vector<32x64xf32> to vector<30x64xf32>
    %630 = tpu.concatenate %628, %629 in 0 : vector<2x64xf32>, vector<30x64xf32> -> vector<32x64xf32>
    %631 = vector.extract_strided_slice %411 {offsets = [13, 0], sizes = [1, 64], strides = [1, 1]} : vector<31x64xf32> to vector<1x64xf32>
    %cst_175 = arith.constant 0.000000e+00 : f32
    %632 = vector.broadcast %cst_175 : f32 to vector<32x64xf32>
    %633 = arith.select %627, %630, %632 : vector<32x64xi1>, vector<32x64xf32>
    %634 = vector.broadcast %631 : vector<1x64xf32> to vector<32x64xf32>
    %635 = arith.mulf %634, %633 : vector<32x64xf32>
    %636 = arith.addf %620, %635 : vector<32x64xf32>
    %c-1_i32 = arith.constant -1 : i32
    %637 = vector.broadcast %c-1_i32 : i32 to vector<32x64xi32>
    %638 = arith.addi %410, %637 : vector<32x64xi32>
    %c0_i32_176 = arith.constant 0 : i32
    %639 = vector.broadcast %c0_i32_176 : i32 to vector<32x64xi32>
    %640 = arith.cmpi sge, %638, %639 : vector<32x64xi32>
    %c16_i32_177 = arith.constant 16 : i32
    %641 = vector.broadcast %c16_i32_177 : i32 to vector<32x64xi32>
    %642 = arith.cmpi slt, %638, %641 : vector<32x64xi32>
    %643 = arith.andi %640, %642 : vector<32x64xi1>
    %644 = vector.extract_strided_slice %407 {offsets = [31, 0], sizes = [1, 64], strides = [1, 1]} : vector<32x64xf32> to vector<1x64xf32>
    %645 = vector.extract_strided_slice %407 {offsets = [0, 0], sizes = [31, 64], strides = [1, 1]} : vector<32x64xf32> to vector<31x64xf32>
    %646 = tpu.concatenate %644, %645 in 0 : vector<1x64xf32>, vector<31x64xf32> -> vector<32x64xf32>
    %647 = vector.extract_strided_slice %411 {offsets = [14, 0], sizes = [1, 64], strides = [1, 1]} : vector<31x64xf32> to vector<1x64xf32>
    %cst_178 = arith.constant 0.000000e+00 : f32
    %648 = vector.broadcast %cst_178 : f32 to vector<32x64xf32>
    %649 = arith.select %643, %646, %648 : vector<32x64xi1>, vector<32x64xf32>
    %650 = vector.broadcast %647 : vector<1x64xf32> to vector<32x64xf32>
    %651 = arith.mulf %650, %649 : vector<32x64xf32>
    %652 = arith.addf %636, %651 : vector<32x64xf32>
    %c0_i32_179 = arith.constant 0 : i32
    %653 = vector.broadcast %c0_i32_179 : i32 to vector<32x64xi32>
    %654 = arith.addi %410, %653 : vector<32x64xi32>
    %c0_i32_180 = arith.constant 0 : i32
    %655 = vector.broadcast %c0_i32_180 : i32 to vector<32x64xi32>
    %656 = arith.cmpi sge, %654, %655 : vector<32x64xi32>
    %c16_i32_181 = arith.constant 16 : i32
    %657 = vector.broadcast %c16_i32_181 : i32 to vector<32x64xi32>
    %658 = arith.cmpi slt, %654, %657 : vector<32x64xi32>
    %659 = arith.andi %656, %658 : vector<32x64xi1>
    %660 = vector.extract_strided_slice %411 {offsets = [15, 0], sizes = [1, 64], strides = [1, 1]} : vector<31x64xf32> to vector<1x64xf32>
    %cst_182 = arith.constant 0.000000e+00 : f32
    %661 = vector.broadcast %cst_182 : f32 to vector<32x64xf32>
    %662 = arith.select %659, %407, %661 : vector<32x64xi1>, vector<32x64xf32>
    %663 = vector.broadcast %660 : vector<1x64xf32> to vector<32x64xf32>
    %664 = arith.mulf %663, %662 : vector<32x64xf32>
    %665 = arith.addf %652, %664 : vector<32x64xf32>
    %c1_i32_183 = arith.constant 1 : i32
    %666 = vector.broadcast %c1_i32_183 : i32 to vector<32x64xi32>
    %667 = arith.addi %410, %666 : vector<32x64xi32>
    %c0_i32_184 = arith.constant 0 : i32
    %668 = vector.broadcast %c0_i32_184 : i32 to vector<32x64xi32>
    %669 = arith.cmpi sge, %667, %668 : vector<32x64xi32>
    %c16_i32_185 = arith.constant 16 : i32
    %670 = vector.broadcast %c16_i32_185 : i32 to vector<32x64xi32>
    %671 = arith.cmpi slt, %667, %670 : vector<32x64xi32>
    %672 = arith.andi %669, %671 : vector<32x64xi1>
    %673 = vector.extract_strided_slice %407 {offsets = [1, 0], sizes = [31, 64], strides = [1, 1]} : vector<32x64xf32> to vector<31x64xf32>
    %674 = vector.extract_strided_slice %407 {offsets = [0, 0], sizes = [1, 64], strides = [1, 1]} : vector<32x64xf32> to vector<1x64xf32>
    %675 = tpu.concatenate %673, %674 in 0 : vector<31x64xf32>, vector<1x64xf32> -> vector<32x64xf32>
    %676 = vector.extract_strided_slice %411 {offsets = [16, 0], sizes = [1, 64], strides = [1, 1]} : vector<31x64xf32> to vector<1x64xf32>
    %cst_186 = arith.constant 0.000000e+00 : f32
    %677 = vector.broadcast %cst_186 : f32 to vector<32x64xf32>
    %678 = arith.select %672, %675, %677 : vector<32x64xi1>, vector<32x64xf32>
    %679 = vector.broadcast %676 : vector<1x64xf32> to vector<32x64xf32>
    %680 = arith.mulf %679, %678 : vector<32x64xf32>
    %681 = arith.addf %665, %680 : vector<32x64xf32>
    %c2_i32_187 = arith.constant 2 : i32
    %682 = vector.broadcast %c2_i32_187 : i32 to vector<32x64xi32>
    %683 = arith.addi %410, %682 : vector<32x64xi32>
    %c0_i32_188 = arith.constant 0 : i32
    %684 = vector.broadcast %c0_i32_188 : i32 to vector<32x64xi32>
    %685 = arith.cmpi sge, %683, %684 : vector<32x64xi32>
    %c16_i32_189 = arith.constant 16 : i32
    %686 = vector.broadcast %c16_i32_189 : i32 to vector<32x64xi32>
    %687 = arith.cmpi slt, %683, %686 : vector<32x64xi32>
    %688 = arith.andi %685, %687 : vector<32x64xi1>
    %689 = vector.extract_strided_slice %407 {offsets = [2, 0], sizes = [30, 64], strides = [1, 1]} : vector<32x64xf32> to vector<30x64xf32>
    %690 = vector.extract_strided_slice %407 {offsets = [0, 0], sizes = [2, 64], strides = [1, 1]} : vector<32x64xf32> to vector<2x64xf32>
    %691 = tpu.concatenate %689, %690 in 0 : vector<30x64xf32>, vector<2x64xf32> -> vector<32x64xf32>
    %692 = vector.extract_strided_slice %411 {offsets = [17, 0], sizes = [1, 64], strides = [1, 1]} : vector<31x64xf32> to vector<1x64xf32>
    %cst_190 = arith.constant 0.000000e+00 : f32
    %693 = vector.broadcast %cst_190 : f32 to vector<32x64xf32>
    %694 = arith.select %688, %691, %693 : vector<32x64xi1>, vector<32x64xf32>
    %695 = vector.broadcast %692 : vector<1x64xf32> to vector<32x64xf32>
    %696 = arith.mulf %695, %694 : vector<32x64xf32>
    %697 = arith.addf %681, %696 : vector<32x64xf32>
    %c3_i32 = arith.constant 3 : i32
    %698 = vector.broadcast %c3_i32 : i32 to vector<32x64xi32>
    %699 = arith.addi %410, %698 : vector<32x64xi32>
    %c0_i32_191 = arith.constant 0 : i32
    %700 = vector.broadcast %c0_i32_191 : i32 to vector<32x64xi32>
    %701 = arith.cmpi sge, %699, %700 : vector<32x64xi32>
    %c16_i32_192 = arith.constant 16 : i32
    %702 = vector.broadcast %c16_i32_192 : i32 to vector<32x64xi32>
    %703 = arith.cmpi slt, %699, %702 : vector<32x64xi32>
    %704 = arith.andi %701, %703 : vector<32x64xi1>
    %705 = vector.extract_strided_slice %407 {offsets = [3, 0], sizes = [29, 64], strides = [1, 1]} : vector<32x64xf32> to vector<29x64xf32>
    %706 = vector.extract_strided_slice %407 {offsets = [0, 0], sizes = [3, 64], strides = [1, 1]} : vector<32x64xf32> to vector<3x64xf32>
    %707 = tpu.concatenate %705, %706 in 0 : vector<29x64xf32>, vector<3x64xf32> -> vector<32x64xf32>
    %708 = vector.extract_strided_slice %411 {offsets = [18, 0], sizes = [1, 64], strides = [1, 1]} : vector<31x64xf32> to vector<1x64xf32>
    %cst_193 = arith.constant 0.000000e+00 : f32
    %709 = vector.broadcast %cst_193 : f32 to vector<32x64xf32>
    %710 = arith.select %704, %707, %709 : vector<32x64xi1>, vector<32x64xf32>
    %711 = vector.broadcast %708 : vector<1x64xf32> to vector<32x64xf32>
    %712 = arith.mulf %711, %710 : vector<32x64xf32>
    %713 = arith.addf %697, %712 : vector<32x64xf32>
    %c4_i32_194 = arith.constant 4 : i32
    %714 = vector.broadcast %c4_i32_194 : i32 to vector<32x64xi32>
    %715 = arith.addi %410, %714 : vector<32x64xi32>
    %c0_i32_195 = arith.constant 0 : i32
    %716 = vector.broadcast %c0_i32_195 : i32 to vector<32x64xi32>
    %717 = arith.cmpi sge, %715, %716 : vector<32x64xi32>
    %c16_i32_196 = arith.constant 16 : i32
    %718 = vector.broadcast %c16_i32_196 : i32 to vector<32x64xi32>
    %719 = arith.cmpi slt, %715, %718 : vector<32x64xi32>
    %720 = arith.andi %717, %719 : vector<32x64xi1>
    %721 = vector.extract_strided_slice %407 {offsets = [4, 0], sizes = [28, 64], strides = [1, 1]} : vector<32x64xf32> to vector<28x64xf32>
    %722 = vector.extract_strided_slice %407 {offsets = [0, 0], sizes = [4, 64], strides = [1, 1]} : vector<32x64xf32> to vector<4x64xf32>
    %723 = tpu.concatenate %721, %722 in 0 : vector<28x64xf32>, vector<4x64xf32> -> vector<32x64xf32>
    %724 = vector.extract_strided_slice %411 {offsets = [19, 0], sizes = [1, 64], strides = [1, 1]} : vector<31x64xf32> to vector<1x64xf32>
    %cst_197 = arith.constant 0.000000e+00 : f32
    %725 = vector.broadcast %cst_197 : f32 to vector<32x64xf32>
    %726 = arith.select %720, %723, %725 : vector<32x64xi1>, vector<32x64xf32>
    %727 = vector.broadcast %724 : vector<1x64xf32> to vector<32x64xf32>
    %728 = arith.mulf %727, %726 : vector<32x64xf32>
    %729 = arith.addf %713, %728 : vector<32x64xf32>
    %c5_i32 = arith.constant 5 : i32
    %730 = vector.broadcast %c5_i32 : i32 to vector<32x64xi32>
    %731 = arith.addi %410, %730 : vector<32x64xi32>
    %c0_i32_198 = arith.constant 0 : i32
    %732 = vector.broadcast %c0_i32_198 : i32 to vector<32x64xi32>
    %733 = arith.cmpi sge, %731, %732 : vector<32x64xi32>
    %c16_i32_199 = arith.constant 16 : i32
    %734 = vector.broadcast %c16_i32_199 : i32 to vector<32x64xi32>
    %735 = arith.cmpi slt, %731, %734 : vector<32x64xi32>
    %736 = arith.andi %733, %735 : vector<32x64xi1>
    %737 = vector.extract_strided_slice %407 {offsets = [5, 0], sizes = [27, 64], strides = [1, 1]} : vector<32x64xf32> to vector<27x64xf32>
    %738 = vector.extract_strided_slice %407 {offsets = [0, 0], sizes = [5, 64], strides = [1, 1]} : vector<32x64xf32> to vector<5x64xf32>
    %739 = tpu.concatenate %737, %738 in 0 : vector<27x64xf32>, vector<5x64xf32> -> vector<32x64xf32>
    %740 = vector.extract_strided_slice %411 {offsets = [20, 0], sizes = [1, 64], strides = [1, 1]} : vector<31x64xf32> to vector<1x64xf32>
    %cst_200 = arith.constant 0.000000e+00 : f32
    %741 = vector.broadcast %cst_200 : f32 to vector<32x64xf32>
    %742 = arith.select %736, %739, %741 : vector<32x64xi1>, vector<32x64xf32>
    %743 = vector.broadcast %740 : vector<1x64xf32> to vector<32x64xf32>
    %744 = arith.mulf %743, %742 : vector<32x64xf32>
    %745 = arith.addf %729, %744 : vector<32x64xf32>
    %c6_i32 = arith.constant 6 : i32
    %746 = vector.broadcast %c6_i32 : i32 to vector<32x64xi32>
    %747 = arith.addi %410, %746 : vector<32x64xi32>
    %c0_i32_201 = arith.constant 0 : i32
    %748 = vector.broadcast %c0_i32_201 : i32 to vector<32x64xi32>
    %749 = arith.cmpi sge, %747, %748 : vector<32x64xi32>
    %c16_i32_202 = arith.constant 16 : i32
    %750 = vector.broadcast %c16_i32_202 : i32 to vector<32x64xi32>
    %751 = arith.cmpi slt, %747, %750 : vector<32x64xi32>
    %752 = arith.andi %749, %751 : vector<32x64xi1>
    %753 = vector.extract_strided_slice %407 {offsets = [6, 0], sizes = [26, 64], strides = [1, 1]} : vector<32x64xf32> to vector<26x64xf32>
    %754 = vector.extract_strided_slice %407 {offsets = [0, 0], sizes = [6, 64], strides = [1, 1]} : vector<32x64xf32> to vector<6x64xf32>
    %755 = tpu.concatenate %753, %754 in 0 : vector<26x64xf32>, vector<6x64xf32> -> vector<32x64xf32>
    %756 = vector.extract_strided_slice %411 {offsets = [21, 0], sizes = [1, 64], strides = [1, 1]} : vector<31x64xf32> to vector<1x64xf32>
    %cst_203 = arith.constant 0.000000e+00 : f32
    %757 = vector.broadcast %cst_203 : f32 to vector<32x64xf32>
    %758 = arith.select %752, %755, %757 : vector<32x64xi1>, vector<32x64xf32>
    %759 = vector.broadcast %756 : vector<1x64xf32> to vector<32x64xf32>
    %760 = arith.mulf %759, %758 : vector<32x64xf32>
    %761 = arith.addf %745, %760 : vector<32x64xf32>
    %c7_i32 = arith.constant 7 : i32
    %762 = vector.broadcast %c7_i32 : i32 to vector<32x64xi32>
    %763 = arith.addi %410, %762 : vector<32x64xi32>
    %c0_i32_204 = arith.constant 0 : i32
    %764 = vector.broadcast %c0_i32_204 : i32 to vector<32x64xi32>
    %765 = arith.cmpi sge, %763, %764 : vector<32x64xi32>
    %c16_i32_205 = arith.constant 16 : i32
    %766 = vector.broadcast %c16_i32_205 : i32 to vector<32x64xi32>
    %767 = arith.cmpi slt, %763, %766 : vector<32x64xi32>
    %768 = arith.andi %765, %767 : vector<32x64xi1>
    %769 = vector.extract_strided_slice %407 {offsets = [7, 0], sizes = [25, 64], strides = [1, 1]} : vector<32x64xf32> to vector<25x64xf32>
    %770 = vector.extract_strided_slice %407 {offsets = [0, 0], sizes = [7, 64], strides = [1, 1]} : vector<32x64xf32> to vector<7x64xf32>
    %771 = tpu.concatenate %769, %770 in 0 : vector<25x64xf32>, vector<7x64xf32> -> vector<32x64xf32>
    %772 = vector.extract_strided_slice %411 {offsets = [22, 0], sizes = [1, 64], strides = [1, 1]} : vector<31x64xf32> to vector<1x64xf32>
    %cst_206 = arith.constant 0.000000e+00 : f32
    %773 = vector.broadcast %cst_206 : f32 to vector<32x64xf32>
    %774 = arith.select %768, %771, %773 : vector<32x64xi1>, vector<32x64xf32>
    %775 = vector.broadcast %772 : vector<1x64xf32> to vector<32x64xf32>
    %776 = arith.mulf %775, %774 : vector<32x64xf32>
    %777 = arith.addf %761, %776 : vector<32x64xf32>
    %c8_i32_207 = arith.constant 8 : i32
    %778 = vector.broadcast %c8_i32_207 : i32 to vector<32x64xi32>
    %779 = arith.addi %410, %778 : vector<32x64xi32>
    %c0_i32_208 = arith.constant 0 : i32
    %780 = vector.broadcast %c0_i32_208 : i32 to vector<32x64xi32>
    %781 = arith.cmpi sge, %779, %780 : vector<32x64xi32>
    %c16_i32_209 = arith.constant 16 : i32
    %782 = vector.broadcast %c16_i32_209 : i32 to vector<32x64xi32>
    %783 = arith.cmpi slt, %779, %782 : vector<32x64xi32>
    %784 = arith.andi %781, %783 : vector<32x64xi1>
    %785 = vector.extract_strided_slice %407 {offsets = [8, 0], sizes = [24, 64], strides = [1, 1]} : vector<32x64xf32> to vector<24x64xf32>
    %786 = vector.extract_strided_slice %407 {offsets = [0, 0], sizes = [8, 64], strides = [1, 1]} : vector<32x64xf32> to vector<8x64xf32>
    %787 = tpu.concatenate %785, %786 in 0 : vector<24x64xf32>, vector<8x64xf32> -> vector<32x64xf32>
    %788 = vector.extract_strided_slice %411 {offsets = [23, 0], sizes = [1, 64], strides = [1, 1]} : vector<31x64xf32> to vector<1x64xf32>
    %cst_210 = arith.constant 0.000000e+00 : f32
    %789 = vector.broadcast %cst_210 : f32 to vector<32x64xf32>
    %790 = arith.select %784, %787, %789 : vector<32x64xi1>, vector<32x64xf32>
    %791 = vector.broadcast %788 : vector<1x64xf32> to vector<32x64xf32>
    %792 = arith.mulf %791, %790 : vector<32x64xf32>
    %793 = arith.addf %777, %792 : vector<32x64xf32>
    %c9_i32 = arith.constant 9 : i32
    %794 = vector.broadcast %c9_i32 : i32 to vector<32x64xi32>
    %795 = arith.addi %410, %794 : vector<32x64xi32>
    %c0_i32_211 = arith.constant 0 : i32
    %796 = vector.broadcast %c0_i32_211 : i32 to vector<32x64xi32>
    %797 = arith.cmpi sge, %795, %796 : vector<32x64xi32>
    %c16_i32_212 = arith.constant 16 : i32
    %798 = vector.broadcast %c16_i32_212 : i32 to vector<32x64xi32>
    %799 = arith.cmpi slt, %795, %798 : vector<32x64xi32>
    %800 = arith.andi %797, %799 : vector<32x64xi1>
    %801 = vector.extract_strided_slice %407 {offsets = [9, 0], sizes = [23, 64], strides = [1, 1]} : vector<32x64xf32> to vector<23x64xf32>
    %802 = vector.extract_strided_slice %407 {offsets = [0, 0], sizes = [9, 64], strides = [1, 1]} : vector<32x64xf32> to vector<9x64xf32>
    %803 = tpu.concatenate %801, %802 in 0 : vector<23x64xf32>, vector<9x64xf32> -> vector<32x64xf32>
    %804 = vector.extract_strided_slice %411 {offsets = [24, 0], sizes = [1, 64], strides = [1, 1]} : vector<31x64xf32> to vector<1x64xf32>
    %cst_213 = arith.constant 0.000000e+00 : f32
    %805 = vector.broadcast %cst_213 : f32 to vector<32x64xf32>
    %806 = arith.select %800, %803, %805 : vector<32x64xi1>, vector<32x64xf32>
    %807 = vector.broadcast %804 : vector<1x64xf32> to vector<32x64xf32>
    %808 = arith.mulf %807, %806 : vector<32x64xf32>
    %809 = arith.addf %793, %808 : vector<32x64xf32>
    %c10_i32 = arith.constant 10 : i32
    %810 = vector.broadcast %c10_i32 : i32 to vector<32x64xi32>
    %811 = arith.addi %410, %810 : vector<32x64xi32>
    %c0_i32_214 = arith.constant 0 : i32
    %812 = vector.broadcast %c0_i32_214 : i32 to vector<32x64xi32>
    %813 = arith.cmpi sge, %811, %812 : vector<32x64xi32>
    %c16_i32_215 = arith.constant 16 : i32
    %814 = vector.broadcast %c16_i32_215 : i32 to vector<32x64xi32>
    %815 = arith.cmpi slt, %811, %814 : vector<32x64xi32>
    %816 = arith.andi %813, %815 : vector<32x64xi1>
    %817 = vector.extract_strided_slice %407 {offsets = [10, 0], sizes = [22, 64], strides = [1, 1]} : vector<32x64xf32> to vector<22x64xf32>
    %818 = vector.extract_strided_slice %407 {offsets = [0, 0], sizes = [10, 64], strides = [1, 1]} : vector<32x64xf32> to vector<10x64xf32>
    %819 = tpu.concatenate %817, %818 in 0 : vector<22x64xf32>, vector<10x64xf32> -> vector<32x64xf32>
    %820 = vector.extract_strided_slice %411 {offsets = [25, 0], sizes = [1, 64], strides = [1, 1]} : vector<31x64xf32> to vector<1x64xf32>
    %cst_216 = arith.constant 0.000000e+00 : f32
    %821 = vector.broadcast %cst_216 : f32 to vector<32x64xf32>
    %822 = arith.select %816, %819, %821 : vector<32x64xi1>, vector<32x64xf32>
    %823 = vector.broadcast %820 : vector<1x64xf32> to vector<32x64xf32>
    %824 = arith.mulf %823, %822 : vector<32x64xf32>
    %825 = arith.addf %809, %824 : vector<32x64xf32>
    %c11_i32 = arith.constant 11 : i32
    %826 = vector.broadcast %c11_i32 : i32 to vector<32x64xi32>
    %827 = arith.addi %410, %826 : vector<32x64xi32>
    %c0_i32_217 = arith.constant 0 : i32
    %828 = vector.broadcast %c0_i32_217 : i32 to vector<32x64xi32>
    %829 = arith.cmpi sge, %827, %828 : vector<32x64xi32>
    %c16_i32_218 = arith.constant 16 : i32
    %830 = vector.broadcast %c16_i32_218 : i32 to vector<32x64xi32>
    %831 = arith.cmpi slt, %827, %830 : vector<32x64xi32>
    %832 = arith.andi %829, %831 : vector<32x64xi1>
    %833 = vector.extract_strided_slice %407 {offsets = [11, 0], sizes = [21, 64], strides = [1, 1]} : vector<32x64xf32> to vector<21x64xf32>
    %834 = vector.extract_strided_slice %407 {offsets = [0, 0], sizes = [11, 64], strides = [1, 1]} : vector<32x64xf32> to vector<11x64xf32>
    %835 = tpu.concatenate %833, %834 in 0 : vector<21x64xf32>, vector<11x64xf32> -> vector<32x64xf32>
    %836 = vector.extract_strided_slice %411 {offsets = [26, 0], sizes = [1, 64], strides = [1, 1]} : vector<31x64xf32> to vector<1x64xf32>
    %cst_219 = arith.constant 0.000000e+00 : f32
    %837 = vector.broadcast %cst_219 : f32 to vector<32x64xf32>
    %838 = arith.select %832, %835, %837 : vector<32x64xi1>, vector<32x64xf32>
    %839 = vector.broadcast %836 : vector<1x64xf32> to vector<32x64xf32>
    %840 = arith.mulf %839, %838 : vector<32x64xf32>
    %841 = arith.addf %825, %840 : vector<32x64xf32>
    %c12_i32 = arith.constant 12 : i32
    %842 = vector.broadcast %c12_i32 : i32 to vector<32x64xi32>
    %843 = arith.addi %410, %842 : vector<32x64xi32>
    %c0_i32_220 = arith.constant 0 : i32
    %844 = vector.broadcast %c0_i32_220 : i32 to vector<32x64xi32>
    %845 = arith.cmpi sge, %843, %844 : vector<32x64xi32>
    %c16_i32_221 = arith.constant 16 : i32
    %846 = vector.broadcast %c16_i32_221 : i32 to vector<32x64xi32>
    %847 = arith.cmpi slt, %843, %846 : vector<32x64xi32>
    %848 = arith.andi %845, %847 : vector<32x64xi1>
    %849 = vector.extract_strided_slice %407 {offsets = [12, 0], sizes = [20, 64], strides = [1, 1]} : vector<32x64xf32> to vector<20x64xf32>
    %850 = vector.extract_strided_slice %407 {offsets = [0, 0], sizes = [12, 64], strides = [1, 1]} : vector<32x64xf32> to vector<12x64xf32>
    %851 = tpu.concatenate %849, %850 in 0 : vector<20x64xf32>, vector<12x64xf32> -> vector<32x64xf32>
    %852 = vector.extract_strided_slice %411 {offsets = [27, 0], sizes = [1, 64], strides = [1, 1]} : vector<31x64xf32> to vector<1x64xf32>
    %cst_222 = arith.constant 0.000000e+00 : f32
    %853 = vector.broadcast %cst_222 : f32 to vector<32x64xf32>
    %854 = arith.select %848, %851, %853 : vector<32x64xi1>, vector<32x64xf32>
    %855 = vector.broadcast %852 : vector<1x64xf32> to vector<32x64xf32>
    %856 = arith.mulf %855, %854 : vector<32x64xf32>
    %857 = arith.addf %841, %856 : vector<32x64xf32>
    %c13_i32 = arith.constant 13 : i32
    %858 = vector.broadcast %c13_i32 : i32 to vector<32x64xi32>
    %859 = arith.addi %410, %858 : vector<32x64xi32>
    %c0_i32_223 = arith.constant 0 : i32
    %860 = vector.broadcast %c0_i32_223 : i32 to vector<32x64xi32>
    %861 = arith.cmpi sge, %859, %860 : vector<32x64xi32>
    %c16_i32_224 = arith.constant 16 : i32
    %862 = vector.broadcast %c16_i32_224 : i32 to vector<32x64xi32>
    %863 = arith.cmpi slt, %859, %862 : vector<32x64xi32>
    %864 = arith.andi %861, %863 : vector<32x64xi1>
    %865 = vector.extract_strided_slice %407 {offsets = [13, 0], sizes = [19, 64], strides = [1, 1]} : vector<32x64xf32> to vector<19x64xf32>
    %866 = vector.extract_strided_slice %407 {offsets = [0, 0], sizes = [13, 64], strides = [1, 1]} : vector<32x64xf32> to vector<13x64xf32>
    %867 = tpu.concatenate %865, %866 in 0 : vector<19x64xf32>, vector<13x64xf32> -> vector<32x64xf32>
    %868 = vector.extract_strided_slice %411 {offsets = [28, 0], sizes = [1, 64], strides = [1, 1]} : vector<31x64xf32> to vector<1x64xf32>
    %cst_225 = arith.constant 0.000000e+00 : f32
    %869 = vector.broadcast %cst_225 : f32 to vector<32x64xf32>
    %870 = arith.select %864, %867, %869 : vector<32x64xi1>, vector<32x64xf32>
    %871 = vector.broadcast %868 : vector<1x64xf32> to vector<32x64xf32>
    %872 = arith.mulf %871, %870 : vector<32x64xf32>
    %873 = arith.addf %857, %872 : vector<32x64xf32>
    %c14_i32 = arith.constant 14 : i32
    %874 = vector.broadcast %c14_i32 : i32 to vector<32x64xi32>
    %875 = arith.addi %410, %874 : vector<32x64xi32>
    %c0_i32_226 = arith.constant 0 : i32
    %876 = vector.broadcast %c0_i32_226 : i32 to vector<32x64xi32>
    %877 = arith.cmpi sge, %875, %876 : vector<32x64xi32>
    %c16_i32_227 = arith.constant 16 : i32
    %878 = vector.broadcast %c16_i32_227 : i32 to vector<32x64xi32>
    %879 = arith.cmpi slt, %875, %878 : vector<32x64xi32>
    %880 = arith.andi %877, %879 : vector<32x64xi1>
    %881 = vector.extract_strided_slice %407 {offsets = [14, 0], sizes = [18, 64], strides = [1, 1]} : vector<32x64xf32> to vector<18x64xf32>
    %882 = vector.extract_strided_slice %407 {offsets = [0, 0], sizes = [14, 64], strides = [1, 1]} : vector<32x64xf32> to vector<14x64xf32>
    %883 = tpu.concatenate %881, %882 in 0 : vector<18x64xf32>, vector<14x64xf32> -> vector<32x64xf32>
    %884 = vector.extract_strided_slice %411 {offsets = [29, 0], sizes = [1, 64], strides = [1, 1]} : vector<31x64xf32> to vector<1x64xf32>
    %cst_228 = arith.constant 0.000000e+00 : f32
    %885 = vector.broadcast %cst_228 : f32 to vector<32x64xf32>
    %886 = arith.select %880, %883, %885 : vector<32x64xi1>, vector<32x64xf32>
    %887 = vector.broadcast %884 : vector<1x64xf32> to vector<32x64xf32>
    %888 = arith.mulf %887, %886 : vector<32x64xf32>
    %889 = arith.addf %873, %888 : vector<32x64xf32>
    %c15_i32_229 = arith.constant 15 : i32
    %890 = vector.broadcast %c15_i32_229 : i32 to vector<32x64xi32>
    %891 = arith.addi %410, %890 : vector<32x64xi32>
    %c0_i32_230 = arith.constant 0 : i32
    %892 = vector.broadcast %c0_i32_230 : i32 to vector<32x64xi32>
    %893 = arith.cmpi sge, %891, %892 : vector<32x64xi32>
    %c16_i32_231 = arith.constant 16 : i32
    %894 = vector.broadcast %c16_i32_231 : i32 to vector<32x64xi32>
    %895 = arith.cmpi slt, %891, %894 : vector<32x64xi32>
    %896 = arith.andi %893, %895 : vector<32x64xi1>
    %897 = vector.extract_strided_slice %407 {offsets = [15, 0], sizes = [17, 64], strides = [1, 1]} : vector<32x64xf32> to vector<17x64xf32>
    %898 = vector.extract_strided_slice %407 {offsets = [0, 0], sizes = [15, 64], strides = [1, 1]} : vector<32x64xf32> to vector<15x64xf32>
    %899 = tpu.concatenate %897, %898 in 0 : vector<17x64xf32>, vector<15x64xf32> -> vector<32x64xf32>
    %900 = vector.extract_strided_slice %411 {offsets = [30, 0], sizes = [1, 64], strides = [1, 1]} : vector<31x64xf32> to vector<1x64xf32>
    %cst_232 = arith.constant 0.000000e+00 : f32
    %901 = vector.broadcast %cst_232 : f32 to vector<32x64xf32>
    %902 = arith.select %896, %899, %901 : vector<32x64xi1>, vector<32x64xf32>
    %903 = vector.broadcast %900 : vector<1x64xf32> to vector<32x64xf32>
    %904 = arith.mulf %903, %902 : vector<32x64xf32>
    %905 = arith.addf %889, %904 : vector<32x64xf32>
    %c0_233 = arith.constant 0 : index
    %c0_234 = arith.constant 0 : index
    %906 = vector.load %arg26[%c0_233, %c0_234] : memref<1x64xf32, #tpu.memory_space<vmem>>, vector<1x64xf32>
    %907 = vector.broadcast %906 : vector<1x64xf32> to vector<32x64xf32>
    %908 = arith.addf %905, %907 : vector<32x64xf32>
    %c0_235 = arith.constant 0 : index
    %c0_236 = arith.constant 0 : index
    %909 = vector.load %arg27[%c0_235, %c0_236] : memref<1x64xf32, #tpu.memory_space<vmem>>, vector<1x64xf32>
    %910 = vector.broadcast %909 : vector<1x64xf32> to vector<32x64xf32>
    %911 = arith.mulf %908, %910 : vector<32x64xf32>
    %c0_237 = arith.constant 0 : index
    %c0_238 = arith.constant 0 : index
    %912 = vector.load %arg28[%c0_237, %c0_238] : memref<1x64xf32, #tpu.memory_space<vmem>>, vector<1x64xf32>
    %913 = vector.broadcast %912 : vector<1x64xf32> to vector<32x64xf32>
    %914 = arith.addf %911, %913 : vector<32x64xf32>
    %915 = math.absf %914 : vector<32x64xf32>
    %cst_239 = arith.constant 0.000000e+00 : f32
    %916 = vector.broadcast %cst_239 : f32 to vector<32x64xf32>
    %917 = arith.subf %916, %915 : vector<32x64xf32>
    %918 = math.exp %917 : vector<32x64xf32>
    %cst_240 = arith.constant 0.000000e+00 : f32
    %919 = vector.broadcast %cst_240 : f32 to vector<32x64xf32>
    %920 = arith.cmpf oge, %914, %919 : vector<32x64xf32>
    %cst_241 = arith.constant 1.000000e+00 : f32
    %921 = vector.broadcast %cst_241 : f32 to vector<32x64xf32>
    %922 = arith.addf %921, %918 : vector<32x64xf32>
    %cst_242 = arith.constant 1.000000e+00 : f32
    %923 = vector.broadcast %cst_242 : f32 to vector<32x64xf32>
    %924 = arith.divf %923, %922 : vector<32x64xf32>
    %cst_243 = arith.constant 1.000000e+00 : f32
    %925 = vector.broadcast %cst_243 : f32 to vector<32x64xf32>
    %926 = arith.addf %925, %918 : vector<32x64xf32>
    %927 = arith.divf %918, %926 : vector<32x64xf32>
    %928 = arith.select %920, %924, %927 : vector<32x64xi1>, vector<32x64xf32>
    %929 = arith.mulf %914, %928 : vector<32x64xf32>
    %c0_244 = arith.constant 0 : index
    %c0_245 = arith.constant 0 : index
    %930 = vector.load %arg29[%c0_244, %c0_245] : memref<64x64xf32, #tpu.memory_space<vmem>>, vector<64x64xf32>
    %cst_246 = arith.constant dense<0.000000e+00> : vector<32x64xf32>
    %931 = tpu.matmul %929, %930, %cst_246 {dimension_numbers = #tpu.dot_dimension_numbers<[1], [0], [0], [1], [0, 0, 1, 1], [], []>} : vector<32x64xf32>, vector<64x64xf32>, vector<32x64xf32> -> vector<32x64xf32>
    %c0_247 = arith.constant 0 : index
    %c0_248 = arith.constant 0 : index
    %932 = vector.load %arg30[%c0_247, %c0_248] : memref<1x64xf32, #tpu.memory_space<vmem>>, vector<1x64xf32>
    %933 = vector.broadcast %932 : vector<1x64xf32> to vector<32x64xf32>
    %934 = arith.addf %931, %933 : vector<32x64xf32>
    %935 = arith.addf %361, %934 : vector<32x64xf32>
    %c0_249 = arith.constant 0 : index
    %c0_250 = arith.constant 0 : index
    %936 = vector.load %arg31[%c0_249, %c0_250] : memref<1x64xf32, #tpu.memory_space<vmem>>, vector<1x64xf32>
    %c0_251 = arith.constant 0 : index
    %c0_252 = arith.constant 0 : index
    %937 = vector.load %arg32[%c0_251, %c0_252] : memref<1x64xf32, #tpu.memory_space<vmem>>, vector<1x64xf32>
    %c0_253 = arith.constant 0 : index
    %c0_254 = arith.constant 0 : index
    %938 = vector.load %arg33[%c0_253, %c0_254] : memref<64x256xf32, #tpu.memory_space<vmem>>, vector<64x256xf32>
    %c0_255 = arith.constant 0 : index
    %c0_256 = arith.constant 0 : index
    %939 = vector.load %arg34[%c0_255, %c0_256] : memref<1x256xf32, #tpu.memory_space<vmem>>, vector<1x256xf32>
    %c0_257 = arith.constant 0 : index
    %c0_258 = arith.constant 0 : index
    %940 = vector.load %arg35[%c0_257, %c0_258] : memref<256x64xf32, #tpu.memory_space<vmem>>, vector<256x64xf32>
    %c0_259 = arith.constant 0 : index
    %c0_260 = arith.constant 0 : index
    %941 = vector.load %arg36[%c0_259, %c0_260] : memref<1x64xf32, #tpu.memory_space<vmem>>, vector<1x64xf32>
    %cst_261 = arith.constant dense<0.000000e+00> : vector<32xf32>
    %942 = vector.multi_reduction <add>, %935, %cst_261 [1] : vector<32x64xf32> to vector<32xf32>
    %943 = vector.shape_cast %942 : vector<32xf32> to vector<32x1xf32>
    %cst_262 = arith.constant 6.400000e+01 : f32
    %944 = vector.broadcast %cst_262 : f32 to vector<32x1xf32>
    %945 = arith.divf %943, %944 : vector<32x1xf32>
    %946 = vector.broadcast %945 : vector<32x1xf32> to vector<32x64xf32>
    %947 = arith.subf %935, %946 : vector<32x64xf32>
    %948 = arith.mulf %947, %947 : vector<32x64xf32>
    %cst_263 = arith.constant dense<0.000000e+00> : vector<32xf32>
    %949 = vector.multi_reduction <add>, %948, %cst_263 [1] : vector<32x64xf32> to vector<32xf32>
    %950 = vector.shape_cast %949 : vector<32xf32> to vector<32x1xf32>
    %cst_264 = arith.constant 6.400000e+01 : f32
    %951 = vector.broadcast %cst_264 : f32 to vector<32x1xf32>
    %952 = arith.divf %950, %951 : vector<32x1xf32>
    %953 = vector.broadcast %945 : vector<32x1xf32> to vector<32x64xf32>
    %954 = arith.subf %935, %953 : vector<32x64xf32>
    %cst_265 = arith.constant 9.99999974E-6 : f32
    %955 = vector.broadcast %cst_265 : f32 to vector<32x1xf32>
    %956 = arith.addf %952, %955 : vector<32x1xf32>
    %957 = math.rsqrt %956 : vector<32x1xf32>
    %958 = vector.broadcast %957 : vector<32x1xf32> to vector<32x64xf32>
    %959 = arith.mulf %954, %958 : vector<32x64xf32>
    %960 = vector.broadcast %936 : vector<1x64xf32> to vector<32x64xf32>
    %961 = arith.mulf %959, %960 : vector<32x64xf32>
    %962 = vector.broadcast %937 : vector<1x64xf32> to vector<32x64xf32>
    %963 = arith.addf %961, %962 : vector<32x64xf32>
    %cst_266 = arith.constant dense<0.000000e+00> : vector<32x256xf32>
    %964 = tpu.matmul %963, %938, %cst_266 {dimension_numbers = #tpu.dot_dimension_numbers<[1], [0], [0], [1], [0, 0, 1, 1], [], []>} : vector<32x64xf32>, vector<64x256xf32>, vector<32x256xf32> -> vector<32x256xf32>
    %965 = vector.broadcast %939 : vector<1x256xf32> to vector<32x256xf32>
    %966 = arith.addf %964, %965 : vector<32x256xf32>
    %967 = math.absf %966 : vector<32x256xf32>
    %cst_267 = arith.constant 0.000000e+00 : f32
    %968 = vector.broadcast %cst_267 : f32 to vector<32x256xf32>
    %969 = arith.subf %968, %967 : vector<32x256xf32>
    %970 = math.exp %969 : vector<32x256xf32>
    %cst_268 = arith.constant 0.000000e+00 : f32
    %971 = vector.broadcast %cst_268 : f32 to vector<32x256xf32>
    %972 = arith.cmpf oge, %966, %971 : vector<32x256xf32>
    %cst_269 = arith.constant 1.000000e+00 : f32
    %973 = vector.broadcast %cst_269 : f32 to vector<32x256xf32>
    %974 = arith.addf %973, %970 : vector<32x256xf32>
    %cst_270 = arith.constant 1.000000e+00 : f32
    %975 = vector.broadcast %cst_270 : f32 to vector<32x256xf32>
    %976 = arith.divf %975, %974 : vector<32x256xf32>
    %cst_271 = arith.constant 1.000000e+00 : f32
    %977 = vector.broadcast %cst_271 : f32 to vector<32x256xf32>
    %978 = arith.addf %977, %970 : vector<32x256xf32>
    %979 = arith.divf %970, %978 : vector<32x256xf32>
    %980 = arith.select %972, %976, %979 : vector<32x256xi1>, vector<32x256xf32>
    %981 = arith.mulf %966, %980 : vector<32x256xf32>
    %cst_272 = arith.constant dense<0.000000e+00> : vector<32x64xf32>
    %982 = tpu.matmul %981, %940, %cst_272 {dimension_numbers = #tpu.dot_dimension_numbers<[1], [0], [0], [1], [0, 0, 1, 1], [], []>} : vector<32x256xf32>, vector<256x64xf32>, vector<32x64xf32> -> vector<32x64xf32>
    %983 = vector.broadcast %941 : vector<1x64xf32> to vector<32x64xf32>
    %984 = arith.addf %982, %983 : vector<32x64xf32>
    %cst_273 = arith.constant 5.000000e-01 : f32
    %985 = vector.broadcast %cst_273 : f32 to vector<32x64xf32>
    %986 = arith.mulf %985, %984 : vector<32x64xf32>
    %987 = arith.addf %935, %986 : vector<32x64xf32>
    %c0_274 = arith.constant 0 : index
    %c0_275 = arith.constant 0 : index
    %988 = vector.load %arg37[%c0_274, %c0_275] : memref<1x64xf32, #tpu.memory_space<vmem>>, vector<1x64xf32>
    %c0_276 = arith.constant 0 : index
    %c0_277 = arith.constant 0 : index
    %989 = vector.load %arg38[%c0_276, %c0_277] : memref<1x64xf32, #tpu.memory_space<vmem>>, vector<1x64xf32>
    %cst_278 = arith.constant dense<0.000000e+00> : vector<32xf32>
    %990 = vector.multi_reduction <add>, %987, %cst_278 [1] : vector<32x64xf32> to vector<32xf32>
    %991 = vector.shape_cast %990 : vector<32xf32> to vector<32x1xf32>
    %cst_279 = arith.constant 6.400000e+01 : f32
    %992 = vector.broadcast %cst_279 : f32 to vector<32x1xf32>
    %993 = arith.divf %991, %992 : vector<32x1xf32>
    %994 = vector.broadcast %993 : vector<32x1xf32> to vector<32x64xf32>
    %995 = arith.subf %987, %994 : vector<32x64xf32>
    %996 = arith.mulf %995, %995 : vector<32x64xf32>
    %cst_280 = arith.constant dense<0.000000e+00> : vector<32xf32>
    %997 = vector.multi_reduction <add>, %996, %cst_280 [1] : vector<32x64xf32> to vector<32xf32>
    %998 = vector.shape_cast %997 : vector<32xf32> to vector<32x1xf32>
    %cst_281 = arith.constant 6.400000e+01 : f32
    %999 = vector.broadcast %cst_281 : f32 to vector<32x1xf32>
    %1000 = arith.divf %998, %999 : vector<32x1xf32>
    %1001 = vector.broadcast %993 : vector<32x1xf32> to vector<32x64xf32>
    %1002 = arith.subf %987, %1001 : vector<32x64xf32>
    %cst_282 = arith.constant 9.99999974E-6 : f32
    %1003 = vector.broadcast %cst_282 : f32 to vector<32x1xf32>
    %1004 = arith.addf %1000, %1003 : vector<32x1xf32>
    %1005 = math.rsqrt %1004 : vector<32x1xf32>
    %1006 = vector.broadcast %1005 : vector<32x1xf32> to vector<32x64xf32>
    %1007 = arith.mulf %1002, %1006 : vector<32x64xf32>
    %1008 = vector.broadcast %988 : vector<1x64xf32> to vector<32x64xf32>
    %1009 = arith.mulf %1007, %1008 : vector<32x64xf32>
    %1010 = vector.broadcast %989 : vector<1x64xf32> to vector<32x64xf32>
    %1011 = arith.addf %1009, %1010 : vector<32x64xf32>
    %c0_283 = arith.constant 0 : index
    %c0_284 = arith.constant 0 : index
    %1012 = vector.load %arg39[%c0_283, %c0_284] : memref<32x64xf32, #tpu.memory_space<vmem>>, vector<32x64xf32>
    tpu.vector_store %arg39[%c0_283, %c0_284], %1011 {strides = array<i32>} : memref<32x64xf32, #tpu.memory_space<vmem>>, vector<32x64xf32>,
    return
  }
}

</mosaic_0001>

<bundles_post_ra>
// kernel: tile.19
= control target key start
LH: loop header
LB: loop body
LE: loop exit
PB: predicated region body
PF: predicated region fallthrough
CT: control target
= control target key end

     0   :  { %vm132_vm0 = vcmask 1047556   ;;  %s338_s15 = smov 48   ;;  %s339_s30 = smov 32   ;;  %vm134_vm1 = vcmask 130048   ;;  %vm171_vm2 = vcmask 523648   ;;  %vm214_vm3 = vcmask 392448   ;;  %s535_s0 = inlined_call_operand.vmem [shape: f32[2,1,16,4,16], index: 0, kind: input, shape index: {}]   ;;  %s536_s1 = inlined_call_operand.vmem [shape: f32[32,64], index: 1, kind: output, shape index: {}]  }
   0x1   :  { %v316_v0 = vld [vmem:[%s535_s0 + $0x1c] sm:$0xf]  ;;  %v317_v1 = vld [vmem:[%s535_s0 + $0x18] sm:$0xf]  ;;  %v318_v2 = vld [vmem:[%s535_s0 + $0x14] sm:$0xf] }
   0x2   :  { %103 = vst [vmem:[#allocation0 + $0x38] sm:$0xf] %v316_v0  ;;  %v319_v3 = vld [vmem:[%s535_s0 + $0x10] sm:$0xf]  ;;  %v320_v4 = vld [vmem:[%s535_s0 + $0xc] sm:$0xf] }
   0x3   :  { %107 = vst [vmem:[#allocation0 + $0x30] sm:$0xf] %v317_v1  ;;  %v321_v5 = vld [vmem:[%s535_s0 + $0x8] sm:$0xf]  ;;  %v322_v6 = vld [vmem:[%s535_s0 + $0x4] sm:$0xf] }
   0x4   :  { %111 = vst [vmem:[#allocation0 + $0x28] sm:$0xf] %v318_v2  ;;  %v128_v7 = vld [vmem:[%s535_s0] sm:$0xf]  ;;  %v300_v8 = vld [vmem:[%s535_s0 + $0x5c] sm:$0xf] }
   0x5   :  { %115 = vst [vmem:[#allocation0 + $0x20] sm:$0xf] %v319_v3  ;;  %v301_v9 = vld [vmem:[%s535_s0 + $0x58] sm:$0xf]  ;;  %v302_v10 = vld [vmem:[%s535_s0 + $0x54] sm:$0xf] }
   0x6   :  { %119 = vst [vmem:[#allocation0 + $0x18] sm:$0xf] %v320_v4  ;;  %v303_v11 = vld [vmem:[%s535_s0 + $0x50] sm:$0xf]  ;;  %v304_v12 = vld [vmem:[%s535_s0 + $0x4c] sm:$0xf] }
   0x7   :  { %123 = vst [vmem:[#allocation0 + $0x10] sm:$0xf] %v321_v5  ;;  %v305_v13 = vld [vmem:[%s535_s0 + $0x48] sm:$0xf]  ;;  %v306_v14 = vld [vmem:[%s535_s0 + $0x44] sm:$0xf] }
   0x8   :  { %127 = vst [vmem:[#allocation0 + $0x8] sm:$0xf] %v322_v6  ;;  %v307_v15 = vld [vmem:[%s535_s0 + $0x40] sm:$0xf]  ;;  %v308_v17 = vld [vmem:[%s535_s0 + $0x3c] sm:$0xf] }
   0x9   :  { %129 = vst [vmem:[#allocation0] sm:$0xf] %v128_v7  ;;  %v309_v18 = vld [vmem:[%s535_s0 + $0x38] sm:$0xf]  ;;  %v310_v21 = vld [vmem:[%s535_s0 + $0x34] sm:$0xf] }
   0xa   :  { %39 = vst [vmem:[#allocation0 + $0xb8] sm:$0xf] %v300_v8  ;;  %v311_v22 = vld [vmem:[%s535_s0 + $0x30] sm:$0xf]  ;;  %v312_v23 = vld [vmem:[%s535_s0 + $0x2c] sm:$0xf] }
   0xb   :  { %43 = vst [vmem:[#allocation0 + $0xb0] sm:$0xf] %v301_v9  ;;  %v313_v24 = vld [vmem:[%s535_s0 + $0x28] sm:$0xf]  ;;  %v314_v25 = vld [vmem:[%s535_s0 + $0x24] sm:$0xf] }
   0xc   :  { %47 = vst [vmem:[#allocation0 + $0xa8] sm:$0xf] %v302_v10  ;;  %v166_v16 = vld [vmem:[#allocation0 + $0x3] ss:$8 sm:$0xf0]   ;;  %vm257_vm4 = vcmask 261248  }
   0xd   :  { %51 = vst [vmem:[#allocation0 + $0xa0] sm:$0xf] %v303_v11  ;;  %v315_v26 = vld [vmem:[%s535_s0 + $0x20] sm:$0xf]  ;;  %v292_v30 = vld [vmem:[%s535_s0 + $0x7c] sm:$0xf] }
   0xe   :  { %55 = vst [vmem:[#allocation0 + $0x98] sm:$0xf] %v304_v12  ;;  %v209_v29 = vld [vmem:[#allocation0 + $0x2] ss:$8 sm:$0xf0]  }
   0xf   :  { %59 = vst [vmem:[#allocation0 + $0x90] sm:$0xf] %v305_v13  ;;  %v293_v31 = vld [vmem:[%s535_s0 + $0x78] sm:$0xf]  ;;  %v294_v35 = vld [vmem:[%s535_s0 + $0x74] sm:$0xf] }
  0x10   :  { %v164_v19 = vld [vmem:[#allocation0 + $0x3] ss:$8 sm:$0xf]   ;;  %63 = vst [vmem:[#allocation0 + $0x88] sm:$0xf] %v306_v14 }
  0x11   :  { %v168_v20 = vsel %vm132_vm0, %v166_v16, %v164_v19  ;;  %67 = vst [vmem:[#allocation0 + $0x80] sm:$0xf] %v307_v15  ;;  %v207_v27 = vld [vmem:[#allocation0 + $0x2] ss:$8 sm:$0xf]  }
  0x12   :  { %169 = vrot.lane.b32.xlu0 %v168_v20, %s338_s15  ;;  %71 = vst [vmem:[#allocation0 + $0x78] sm:$0xf] %v308_v17  ;;  %v211_v32 = vsel %vm132_vm0, %v209_v29, %v207_v27  ;;  %v295_v36 = vld [vmem:[%s535_s0 + $0x70] sm:$0xf]  ;;  %v296_v37 = vld [vmem:[%s535_s0 + $0x6c] sm:$0xf] }
  0x13   :  { %75 = vst [vmem:[#allocation0 + $0x70] sm:$0xf] %v309_v18  ;;  %212 = vrot.lane.b32.xlu2 %v211_v32, %s339_s30  ;;  %v297_v38 = vld [vmem:[%s535_s0 + $0x68] sm:$0xf]  ;;  %v298_v39 = vld [vmem:[%s535_s0 + $0x64] sm:$0xf] }
  0x14   :  { %79 = vst [vmem:[#allocation0 + $0x68] sm:$0xf] %v310_v21  ;;  %v187_v28 = vld [vmem:[#allocation0 + $0x83] ss:$8 sm:$0xf0]  }
  0x15   :  { %83 = vst [vmem:[#allocation0 + $0x60] sm:$0xf] %v311_v22  ;;  %v299_v40 = vld [vmem:[%s535_s0 + $0x60] sm:$0xf]  ;;  %s340_s0 = smov 16  }
  0x16   :  { %87 = vst [vmem:[#allocation0 + $0x58] sm:$0xf] %v312_v23  ;;  %v230_v48 = vld [vmem:[#allocation0 + $0x82] ss:$8 sm:$0xf0]  }
  0x17   :  { %91 = vst [vmem:[#allocation0 + $0x50] sm:$0xf] %v313_v24  ;;  %v250_v49 = vld [vmem:[#allocation0 + $0x1] ss:$8 sm:$0xf]  }
  0x18   :  { %v185_v33 = vld [vmem:[#allocation0 + $0x83] ss:$8 sm:$0xf]   ;;  %95 = vst [vmem:[#allocation0 + $0x48] sm:$0xf] %v314_v25 }
  0x19   :  { %v189_v34 = vsel %vm132_vm0, %v187_v28, %v185_v33  ;;  %99 = vst [vmem:[#allocation0 + $0x40] sm:$0xf] %v315_v26  ;;  %v228_v47 = vld [vmem:[#allocation0 + $0x82] ss:$8 sm:$0xf]  }
  0x1a   :  { %190 = vrot.lane.b32.xlu1 %v189_v34, %s338_s15  ;;  %7 = vst [vmem:[#allocation0 + $0xf8] sm:$0xf] %v292_v30  ;;  %v252_v51 = vld [vmem:[#allocation0 + $0x1] ss:$8 sm:$0xf0]   ;;  %v232_v52 = vsel %vm132_vm0, %v230_v48, %v228_v47 }
  0x1b   :  { %11 = vst [vmem:[#allocation0 + $0xf0] sm:$0xf] %v293_v31  ;;  %v254_v55 = vsel %vm132_vm0, %v252_v51, %v250_v49  ;;  %v271_v1 = vld [vmem:[#allocation0 + $0x81] ss:$8 sm:$0xf]  }
  0x1c   :  { %15 = vst [vmem:[#allocation0 + $0xe8] sm:$0xf] %v294_v35  ;;  %v176_v41 = vld [vmem:[#allocation0 + $0x43] ss:$8 sm:$0xf0]  }
  0x1d   :  { %19 = vst [vmem:[#allocation0 + $0xe0] sm:$0xf] %v295_v36  ;;  %v219_v42 = vld [vmem:[#allocation0 + $0x42] ss:$8 sm:$0xf0]  }
  0x1e   :  { %23 = vst [vmem:[#allocation0 + $0xd8] sm:$0xf] %v296_v37  ;;  %v262_v57 = vld [vmem:[#allocation0 + $0x41] ss:$8 sm:$0xf0]  }
  0x1f   :  { %27 = vst [vmem:[#allocation0 + $0xd0] sm:$0xf] %v297_v38  ;;  %v273_v2 = vld [vmem:[#allocation0 + $0x81] ss:$8 sm:$0xf0]  }
  0x20   :  { %v174_v43 = vld [vmem:[#allocation0 + $0x43] ss:$8 sm:$0xf]   ;;  %31 = vst [vmem:[#allocation0 + $0xc8] sm:$0xf] %v298_v39  ;;  %v275_v3 = vsel %vm132_vm0, %v273_v2, %v271_v1 }
  0x21   :  { %v178_v44 = vsel %vm132_vm0, %v176_v41, %v174_v43  ;;  %35 = vst [vmem:[#allocation0 + $0xc0] sm:$0xf] %v299_v40  ;;  %v217_v45 = vld [vmem:[#allocation0 + $0x42] ss:$8 sm:$0xf]  }
  0x22   :  { %179 = vrot.lane.b32.xlu0 %v178_v44, %s338_s15  ;;  %v221_v46 = vsel %vm132_vm0, %v219_v42, %v217_v45  ;;  %v260_v56 = vld [vmem:[#allocation0 + $0x41] ss:$8 sm:$0xf]   ;;  %v130_v4 = vld [vmem:[#allocation0] ss:$8 sm:$0xf]  }
  0x23   :  { %222 = vrot.lane.b32.xlu2 %v221_v46, %s339_s30  ;;  %v264_v63 = vsel %vm132_vm0, %v262_v57, %v260_v56  ;;  %v131_v5 = vld [vmem:[#allocation0] ss:$8 sm:$0xf0]  }
  0x24   :  { %v198_v50 = vld [vmem:[#allocation0 + $0xc3] ss:$8 sm:$0xf0]   ;;  %v241_v59 = vld [vmem:[#allocation0 + $0xc2] ss:$8 sm:$0xf0]   ;;  %v133_v6 = vsel %vm132_vm0, %v131_v5, %v130_v4 }
  0x25   :  { %v284_v61 = vld [vmem:[#allocation0 + $0xc1] ss:$8 sm:$0xf0]   ;;  %135 = vst.msk [vmem:[%s536_s1] sm:$0xff] %vm134_vm1, %v133_v6  }
  0x26   :  { %v146_v7 = vld [vmem:[#allocation0 + $0x80] ss:$8 sm:$0xf]  }
  0x27   :  { %v148_v8 = vld [vmem:[#allocation0 + $0x80] ss:$8 sm:$0xf0]  }
  0x28   :  { %v196_v53 = vld [vmem:[#allocation0 + $0xc3] ss:$8 sm:$0xf]   ;;  %v239_v58 = vld [vmem:[#allocation0 + $0xc2] ss:$8 sm:$0xf]   ;;  %v150_v9 = vsel %vm132_vm0, %v148_v8, %v146_v7 }
  0x29   :  { %v200_v54 = vsel %vm132_vm0, %v198_v50, %v196_v53  ;;  %v282_v60 = vld [vmem:[#allocation0 + $0xc1] ss:$8 sm:$0xf]   ;;  %v243_v62 = vsel %vm132_vm0, %v241_v59, %v239_v58  ;;  %324 = vst.msk [vmem:[%s536_s1 + $0x10] sm:$0xff] %vm134_vm1, %v150_v9  }
  0x2a   :  { %201 = vrot.lane.b32.xlu1 %v200_v54, %s338_s15  ;;  %233 = vrot.lane.b32.xlu0 %v232_v52, %s339_s30  ;;  %v286_v0 = vsel %vm132_vm0, %v284_v61, %v282_v60  ;;  %v137_v11 = vld [vmem:[#allocation0 + $0x40] ss:$8 sm:$0xf]  }
  0x2b   :  { %255 = vrot.lane.b32.xlu2 %v254_v55, %s340_s0  ;;  %v139_v12 = vld [vmem:[#allocation0 + $0x40] ss:$8 sm:$0xf0]  }
  0x2c   :  { %v141_v13 = vsel %vm132_vm0, %v139_v12, %v137_v11  ;;  %v155_v14 = vld [vmem:[#allocation0 + $0xc0] ss:$8 sm:$0xf]  }
  0x2d   :  { %323 = vst.msk [vmem:[%s536_s1 + $0x8] sm:$0xff] %vm134_vm1, %v141_v13   ;;  %v157_v15 = vld [vmem:[#allocation0 + $0xc0] ss:$8 sm:$0xf0]  }
  0x2e   :  { %v159_v16 = vsel %vm132_vm0, %v157_v15, %v155_v14 }
  0x2f   :  { %325 = vst.msk [vmem:[%s536_s1 + $0x18] sm:$0xff] %vm134_vm1, %v159_v16  }
  0x32   :  { %244 = vrot.lane.b32.xlu1 %v243_v62, %s339_s30  ;;  %265 = vrot.lane.b32.xlu0 %v264_v63, %s340_s0 }
  0x33   :  { %287 = vrot.lane.b32.xlu2 %v286_v0, %s340_s0 }
  0x3a   :  { %276 = vrot.lane.b32.xlu1 %v275_v3, %s340_s0 }
  0x6d   :  { %v213_v10 = vpop.permute.xlu2 %212  }
  0x7d   :  { %v223_v17 = vpop.permute.xlu2 %222  }
  0x84   :  { %v170_v18 = vpop.permute.xlu0 %169  }
  0x85   :  { %172 = vst.msk [vmem:[%s536_s1] sm:$0xff] %vm171_vm2, %v170_v18   ;;  %v256_v19 = vpop.permute.xlu2 %255  }
  0x86   :  { %215 = vst.msk [vmem:[%s536_s1] sm:$0xff] %vm214_vm3, %v213_v10  }
  0x87   :  { %258 = vst.msk [vmem:[%s536_s1] sm:$0xff] %vm257_vm4, %v256_v19  }
  0x8c   :  { %v191_v20 = vpop.permute.xlu1 %190  }
  0x8d   :  { %327 = vst.msk [vmem:[%s536_s1 + $0x10] sm:$0xff] %vm171_vm2, %v191_v20   ;;  %v288_v21 = vpop.permute.xlu2 %287  }
  0x94   :  { %v180_v22 = vpop.permute.xlu0 %179  }
  0x95   :  { %326 = vst.msk [vmem:[%s536_s1 + $0x8] sm:$0xff] %vm171_vm2, %v180_v22  }
  0x96   :  { %329 = vst.msk [vmem:[%s536_s1 + $0x8] sm:$0xff] %vm214_vm3, %v223_v17  }
  0x9c   :  { %v202_v23 = vpop.permute.xlu1 %201   ;;  %v234_v24 = vpop.permute.xlu0 %233  }
  0x9d   :  { %328 = vst.msk [vmem:[%s536_s1 + $0x18] sm:$0xff] %vm171_vm2, %v202_v23  }
  0x9e   :  { %330 = vst.msk [vmem:[%s536_s1 + $0x10] sm:$0xff] %vm214_vm3, %v234_v24  }
  0xa4   :  { %v245_v25 = vpop.permute.xlu1 %244   ;;  %v266_v26 = vpop.permute.xlu0 %265  }
  0xa5   :  { %331 = vst.msk [vmem:[%s536_s1 + $0x18] sm:$0xff] %vm214_vm3, %v245_v25  }
  0xa6   :  { %332 = vst.msk [vmem:[%s536_s1 + $0x8] sm:$0xff] %vm257_vm4, %v266_v26  }
  0xa7   :  { %334 = vst.msk [vmem:[%s536_s1 + $0x18] sm:$0xff] %vm257_vm4, %v288_v21  }
  0xac   :  { %v277_v27 = vpop.permute.xlu1 %276  }
  0xad   :  { %333 = vst.msk [vmem:[%s536_s1 + $0x10] sm:$0xff] %vm257_vm4, %v277_v27  }

// kernel: block_forward.1
= control target key start
LH: loop header
LB: loop body
LE: loop exit
PB: predicated region body
PF: predicated region fallthrough
CT: control target
= control target key end

     0   :  { %s4638_s6 = smov 1   ;;  %s4639_s10 = smov 2   ;;  %s7134_s0 = inlined_call_operand.smem [shape: u32[40], index: -1, kind: input, shape index: {}] }
   0x1   :  { %s4705_s5 = sld [smem:[%s7134_s0]]   ;;  %s4640_s14 = smov 3  }
   0x2   :  { %s4710_s9 = sld [smem:[%s7134_s0 + %s4638_s6]]   ;;  %s4641_s18 = smov 4  }
   0x3   :  { %s4715_s13 = sld [smem:[%s7134_s0 + %s4639_s10]]   ;;  %s4642_s22 = smov 5  }
   0x4   :  { %s4720_s17 = sld [smem:[%s7134_s0 + %s4640_s14]]   ;;  %s4643_s26 = smov 6  }
   0x5   :  { %s4725_s21 = sld [smem:[%s7134_s0 + %s4641_s18]]   ;;  %s4644_s30 = smov 7  }
   0x6   :  { %s4730_s25 = sld [smem:[%s7134_s0 + %s4642_s22]]   ;;  %s4645_s4 = smov 8  }
   0x7   :  { %s4735_s29 = sld [smem:[%s7134_s0 + %s4643_s26]]   ;;  %s4646_s10 = smov 9  }
   0x8   :  { %7171 = sst [smem:[#allocation5_spill]] %s4710_s9  ;;  %s4647_s15 = smov 10  }
   0x9   :  { %s4740_s3 = sld [smem:[%s7134_s0 + %s4644_s30]]   ;;  %s4648_s20 = smov 11  }
   0xa   :  { %s4745_s8 = sld [smem:[%s7134_s0 + %s4645_s4]]   ;;  %s4649_s26 = smov 12  }
   0xb   :  { %s4750_s14 = sld [smem:[%s7134_s0 + %s4646_s10]]   ;;  %s4650_s1 = smov 13  }
   0xc   :  { %s4755_s19 = sld [smem:[%s7134_s0 + %s4647_s15]]   ;;  %s4651_s7 = smov 14  }
   0xd   :  { %s4760_s24 = sld [smem:[%s7134_s0 + %s4648_s20]]   ;;  %s4652_s15 = smov 15  }
   0xe   :  { %s4765_s30 = sld [smem:[%s7134_s0 + %s4649_s26]]   ;;  %s4653_s22 = smov 16  }
   0xf   :  { %s4770_s6 = sld [smem:[%s7134_s0 + %s4650_s1]]   ;;  %s4654_s28 = smov 17  }
  0x10   :  { %s4775_s12 = sld [smem:[%s7134_s0 + %s4651_s7]]   ;;  %s4655_s7 = smov 18  }
  0x11   :  { %s4780_s20 = sld [smem:[%s7134_s0 + %s4652_s15]]   ;;  %s4656_s15 = smov 19  }
  0x12   :  { %s4785_s27 = sld [smem:[%s7134_s0 + %s4653_s22]]   ;;  %s4657_s22 = smov 20  }
  0x13   :  { %s4790_s4 = sld [smem:[%s7134_s0 + %s4654_s28]]   ;;  %s4658_s28 = smov 21  }
  0x14   :  { %s4795_s9 = sld [smem:[%s7134_s0 + %s4655_s7]]   ;;  %s4659_s7 = smov 22  }
  0x15   :  { %7172 = sst [smem:[#allocation6_spill]] %s4770_s6 }
  0x16   :  { %s4805_s6 = sld [smem:[%s7134_s0 + %s4657_s22]]   ;;  %s4661_s22 = smov 24  }
  0x17   :  { %7173 = sst [smem:[#allocation7_spill]] %s4780_s20 }
  0x18   :  { %s4800_s20 = sld [smem:[%s7134_s0 + %s4656_s15]]   ;;  %s4660_s15 = smov 23  }
  0x19   :  { %7174 = sst [smem:[#allocation8_spill]] %s4790_s4 }
  0x1a   :  { %7175 = sst [smem:[#allocation9_spill]] %s4795_s9 }
  0x1b   :  { %s4810_s4 = sld [smem:[%s7134_s0 + %s4658_s28]]   ;;  %s4662_s28 = smov 25  }
  0x1c   :  { %7177 = sst [smem:[#allocation11_spill]] %s4805_s6 }
  0x1d   :  { %s4815_s9 = sld [smem:[%s7134_s0 + %s4659_s7]]   ;;  %s4663_s7 = smov 26  }
  0x1e   :  { %7176 = sst [smem:[#allocation10_spill]] %s4800_s20 }
  0x1f   :  { %s4820_s20 = sld [smem:[%s7134_s0 + %s4660_s15]]   ;;  %s4664_s15 = smov 27  }
  0x20   :  { %s4825_s6 = sld [smem:[%s7134_s0 + %s4661_s22]]   ;;  %s4665_s22 = smov 28  }
  0x21   :  { %7178 = sst [smem:[#allocation12_spill]] %s4810_s4 }
  0x22   :  { %s4830_s4 = sld [smem:[%s7134_s0 + %s4662_s28]]   ;;  %s4666_s28 = smov 29  }
  0x23   :  { %7179 = sst [smem:[#allocation13_spill]] %s4815_s9 }
  0x24   :  { %s4835_s9 = sld [smem:[%s7134_s0 + %s4663_s7]]   ;;  %s4667_s7 = smov 30  }
  0x25   :  { %7180 = sst [smem:[#allocation14_spill]] %s4820_s20 }
  0x26   :  { %7181 = sst [smem:[#allocation15_spill]] %s4825_s6 }
  0x27   :  { %s4840_s20 = sld [smem:[%s7134_s0 + %s4664_s15]]   ;;  %s4668_s15 = smov 31  }
  0x28   :  { %7182 = sst [smem:[#allocation16_spill]] %s4830_s4 }
  0x29   :  { %s4845_s6 = sld [smem:[%s7134_s0 + %s4665_s22]]   ;;  %s4669_s22 = smov 32  }
  0x2a   :  { %7183 = sst [smem:[#allocation17_spill]] %s4835_s9 }
  0x2b   :  { %s4850_s4 = sld [smem:[%s7134_s0 + %s4666_s28]]   ;;  %s4670_s28 = smov 33  }
  0x2c   :  { %s4855_s9 = sld [smem:[%s7134_s0 + %s4667_s7]]   ;;  %s4671_s7 = smov 34  }
  0x2d   :  { %7184 = sst [smem:[#allocation18_spill]] %s4840_s20 }
  0x2e   :  { %s4860_s20 = sld [smem:[%s7134_s0 + %s4668_s15]]   ;;  %s4672_s15 = smov 35  }
  0x2f   :  { %7185 = sst [smem:[#allocation19_spill]] %s4845_s6 }
  0x30   :  { %s4865_s6 = sld [smem:[%s7134_s0 + %s4669_s22]]   ;;  %s4673_s22 = smov 36  }
  0x31   :  { %7186 = sst [smem:[#allocation20_spill]] %s4850_s4 }
  0x32   :  { %7187 = sst [smem:[#allocation21_spill]] %s4855_s9 }
  0x33   :  { %s4870_s4 = sld [smem:[%s7134_s0 + %s4670_s28]]   ;;  %s4674_s28 = smov 37  }
  0x34   :  { %7188 = sst [smem:[#allocation22_spill]] %s4860_s20 }
  0x35   :  { %s4875_s9 = sld [smem:[%s7134_s0 + %s4671_s7]]   ;;  %s4675_s7 = smov 38  }
  0x36   :  { %7189 = sst [smem:[#allocation23_spill]] %s4865_s6 }
  0x37   :  { %s4880_s20 = sld [smem:[%s7134_s0 + %s4672_s15]]   ;;  %s4676_s15 = smov 39  }
  0x38   :  { %s4885_s6 = sld [smem:[%s7134_s0 + %s4673_s22]]  }
  0x39   :  { %7190 = sst [smem:[#allocation24_spill]] %s4870_s4 }
  0x3a   :  { %s4890_s4 = sld [smem:[%s7134_s0 + %s4674_s28]]  }
  0x3b   :  { %7191 = sst [smem:[#allocation25_spill]] %s4875_s9 }
  0x3c   :  { %s4895_s9 = sld [smem:[%s7134_s0 + %s4675_s7]]  }
  0x3d   :  { %7192 = sst [smem:[#allocation26_spill]] %s4880_s20 }
  0x3e   :  { %s4900_s20 = sld [smem:[%s7134_s0 + %s4676_s15]]  }
  0x3f   :  { %v4903_v0 = vld [vmem:[%s4705_s5 + $0x10] sm:$0xff]  ;;  %vm7146_vm0 = vcmask 523264   ;;  %v4906_v1 = vld [vmem:[%s4705_s5] sm:$0xff]  ;;  %v4909_v2 = vld [vmem:[%s4705_s5 + $0x18] sm:$0xff] }
  0x40   :  { %v226_v3 = vsel %vm7146_vm0, %v4903_v0, 0.0  ;;  %v220_v4 = vsel %vm7146_vm0, %v4906_v1, 0.0  ;;  %v4916_v5 = vld [vmem:[%s4705_s5 + $0x8] sm:$0xff]  ;;  %v229_v6 = vsel %vm7146_vm0, %v4909_v2, 0.0 }
  0x41   :  { %227 = vadd.xlane.f32.xlu0 %v226_v3  ;;  %221 = vadd.xlane.f32.xlu1 %v220_v4  ;;  %v223_v7 = vsel %vm7146_vm0, %v4916_v5, 0.0 }
  0x49   :  { %230 = vadd.xlane.f32.xlu0 %v229_v6  ;;  %224 = vadd.xlane.f32.xlu1 %v223_v7 }
  0x4a   :  { %84 = vsyncpa [#allocation3], 0  ;;  %v4677_v8 = vmov 64.0   ;;  %v183_v35 = vld [vmem:[%s4725_s21 + $0x70] sm:$0xff]  ;;  %v181_v36 = vld [vmem:[%s4725_s21 + $0x60] sm:$0xff]  ;;  %s7198_s0 = sld [smem:[#allocation9_spill]] }
  0x4b   :  { %4458 = vrcp.f32 %v4677_v8  ;;  %354 = vmatpush.msra.mxu0 %v183_v35  ;;  %4368 = vmatpush.msra.mxu1 %v183_v35  ;;  %v179_v37 = vld [vmem:[%s4725_s21 + $0x50] sm:$0xff]  ;;  %v177_v38 = vld [vmem:[%s4725_s21 + $0x40] sm:$0xff]  ;;  %v184_v43 = vld [vmem:[%s4725_s21 + $0x78] sm:$0xff]  ;;  %s7199_s5 = sld [smem:[#allocation6_spill]]  ;;  %s4689_s23 = smov 66  }
  0x4c   :  { %v175_v39 = vld [vmem:[%s4725_s21 + $0x30] sm:$0xff]  ;;  %v173_v40 = vld [vmem:[%s4725_s21 + $0x20] sm:$0xff]  ;;  %v182_v44 = vld [vmem:[%s4725_s21 + $0x68] sm:$0xff]  ;;  %s7222_s22 = sld [smem:[#allocation5_spill]]  ;;  %s4690_s26 = smov 50  }
  0x4d   :  { %355 = vmatpush.msra.mxu0 %v181_v36  ;;  %4369 = vmatpush.msra.mxu1 %v181_v36  ;;  %v171_v41 = vld [vmem:[%s4725_s21 + $0x10] sm:$0xff]  ;;  %v169_v42 = vld [vmem:[%s4725_s21] sm:$0xff]  ;;  %v180_v47 = vld [vmem:[%s4725_s21 + $0x58] sm:$0xff]  ;;  %s4691_s28 = smov 68   ;;  %s4692_s1 = smov 52  }
  0x4e   :  { %v178_v50 = vld [vmem:[%s4725_s21 + $0x48] sm:$0xff]  ;;  %v176_v53 = vld [vmem:[%s4725_s21 + $0x38] sm:$0xff]  ;;  %s4693_s2 = smov 72   ;;  %s4694_s7 = smov 56  }
  0x4f   :  { %356 = vmatpush.msra.mxu0 %v179_v37  ;;  %4370 = vmatpush.msra.mxu1 %v179_v37  ;;  %v174_v54 = vld [vmem:[%s4725_s21 + $0x28] sm:$0xff]  ;;  %v172_v57 = vld [vmem:[%s4725_s21 + $0x18] sm:$0xff]  ;;  %s7223_s10 = sld [smem:[#allocation10_spill]] }
  0x50   :  { %v170_v60 = vld [vmem:[%s4725_s21 + $0x8] sm:$0xff]  ;;  %s4678_s21 = smov 64   ;;  %s7224_s11 = sld [smem:[#allocation11_spill]] }
  0x51   :  { %v4459_v9 = vpop.eup %4458  ;;  %357 = vmatpush.msra.mxu0 %v177_v38  ;;  %4371 = vmatpush.msra.mxu1 %v177_v38  ;;  %s7229_s15 = sld [smem:[#allocation14_spill]] }
  0x52   :  { %v233_v10 = vmul.f32 64.0, %v4459_v9  ;;  %vm237_vm1 = vweird.f32 %v4459_v9  ;;  %s7230_s16 = sld [smem:[#allocation12_spill]] }
  0x53   :  { %358 = vmatpush.msra.mxu0 %v175_v39  ;;  %4372 = vmatpush.msra.mxu1 %v175_v39  ;;  %s7231_s18 = sld [smem:[#allocation13_spill]] }
  0x54   :  { %v234_v11 = vsub.f32 1.0, %v233_v10 }
  0x55   :  { %359 = vmatpush.msra.mxu0 %v173_v40  ;;  %4373 = vmatpush.msra.mxu1 %v173_v40 }
  0x56   :  { %v235_v12 = vmul.f32 %v4459_v9, %v234_v11 }
  0x57   :  { %360 = vmatpush.msra.mxu0 %v171_v41  ;;  %4374 = vmatpush.msra.mxu1 %v171_v41 }
  0x58   :  { %v236_v13 = vadd.f32 %v4459_v9, %v235_v12 }
  0x59   :  { %361 = vmatpush.msra.mxu0 %v169_v42  ;;  %4375 = vmatpush.msra.mxu1 %v169_v42 }
  0x5a   :  { %v4922_v14 = vsel %vm237_vm1, %v4459_v9, %v236_v13 }
  0x5b   :  { %7193 = vst [vmem:[#allocation27_spill] sm:$0xff] %v4922_v14  ;;  %383 = vmatpush.msrb.mxu1 %v184_v43 }
  0x5d   :  { %384 = vmatpush.msrb.mxu1 %v182_v44 }
  0x5f   :  { %385 = vmatpush.msrb.mxu1 %v180_v47 }
  0x61   :  { %386 = vmatpush.msrb.mxu1 %v178_v50  ;;  %v197_v50 = vld [vmem:[%s4735_s29 + $0x58] sm:$0xff] }
  0x63   :  { %387 = vmatpush.msrb.mxu1 %v176_v53  ;;  %v194_v53 = vld [vmem:[%s4735_s29 + $0x40] sm:$0xff] }
  0x65   :  { %388 = vmatpush.msrb.mxu1 %v174_v54  ;;  %v185_v54 = vld [vmem:[%s4730_s25] sm:$0x3]  ;;  %s4679_s25 = smov 1  }
  0x67   :  { %389 = vmatpush.msrb.mxu1 %v172_v57  ;;  %v330_v57 = vperm.slane %v185_v54, 0 }
  0x69   :  { %390 = vmatpush.msrb.mxu1 %v170_v60  ;;  %v191_v60 = vld [vmem:[%s4735_s29 + $0x28] sm:$0xff] }
  0xb4   :  { %v228_v15 = vpop.xlane.xlu0 %227  ;;  %v222_v16 = vpop.xlane.xlu1 %221 }
  0xb5   :  { %v241_v17 = vmul.f32 %v4922_v14, %v228_v15  ;;  %v239_v18 = vmul.f32 %v4922_v14, %v222_v16 }
  0xb7   :  { %v4927_v19 = vsub.f32 %v4906_v1, %v239_v18  ;;  %v4930_v20 = vsub.f32 %v4903_v0, %v241_v17 }
  0xb9   :  { %v249_v21 = vmul.f32 %v4930_v20, %v4930_v20  ;;  %v247_v22 = vmul.f32 %v4927_v19, %v4927_v19 }
  0xbb   :  { %v257_v23 = vsel %vm7146_vm0, %v249_v21, 0.0  ;;  %v251_v24 = vsel %vm7146_vm0, %v247_v22, 0.0  ;;  %v4435_v22 = vld [vmem:[%s4715_s13] ss:$0 sm:$0xff]  ;;  %s7210_s13 = sld [smem:[#allocation8_spill]] }
  0xbc   :  { %258 = vadd.xlane.f32.xlu2 %v257_v23  ;;  %v231_v25 = vpop.xlane.xlu0 %230  ;;  %252 = vadd.xlane.f32.xlu0 %v251_v24  ;;  %v225_v26 = vpop.xlane.xlu1 %224 }
  0xbd   :  { %v242_v27 = vmul.f32 %v4922_v14, %v231_v25  ;;  %v240_v28 = vmul.f32 %v4922_v14, %v225_v26 }
  0xbf   :  { %v4941_v29 = vsub.f32 %v4909_v2, %v242_v27  ;;  %v4944_v30 = vsub.f32 %v4916_v5, %v240_v28  ;;  %v4436_v27 = vld [vmem:[%s4720_s17] ss:$0 sm:$0xff]  ;;  %s7213_s17 = sld [smem:[#allocation7_spill]] }
  0xc1   :  { %v250_v31 = vmul.f32 %v4941_v29, %v4941_v29  ;;  %v248_v32 = vmul.f32 %v4944_v30, %v4944_v30 }
  0xc3   :  { %v260_v33 = vsel %vm7146_vm0, %v250_v31, 0.0  ;;  %v254_v34 = vsel %vm7146_vm0, %v248_v32, 0.0 }
  0xc4   :  { %261 = vadd.xlane.f32.xlu2 %v260_v33  ;;  %255 = vadd.xlane.f32.xlu1 %v254_v34 }
 0x12f   :  { %v259_v45 = vpop.xlane.xlu2 %258  ;;  %v253_v46 = vpop.xlane.xlu0 %252 }
 0x130   :  { %v265_v48 = vmul.f32 %v259_v45, %v4922_v14  ;;  %v263_v49 = vmul.f32 %v253_v46, %v4922_v14 }
 0x132   :  { %v269_v51 = vadd.f32 1e-05, %v265_v48  ;;  %v267_v52 = vadd.f32 1e-05, %v263_v49  ;;  %v199_v48 = vld [vmem:[%s4735_s29 + $0x68] sm:$0xff]  ;;  %v198_v49 = vld [vmem:[%s4735_s29 + $0x60] sm:$0xff] }
 0x134   :  { %4460 = vrsqrt.f32 %v269_v51  ;;  %vm277_vm2 = vweird.f32 %v267_v52  ;;  %vm297_vm5 = vweird.f32 %v269_v51 }
 0x135   :  { %4462 = vrsqrt.f32 %v267_v52 }
 0x137   :  { %v262_v55 = vpop.xlane.xlu2 %261  ;;  %v256_v56 = vpop.xlane.xlu1 %255 }
 0x138   :  { %v266_v58 = vmul.f32 %v262_v55, %v4922_v14  ;;  %v264_v59 = vmul.f32 %v256_v56, %v4922_v14  ;;  %v193_v55 = vld [vmem:[%s4735_s29 + $0x38] sm:$0xff] }
 0x139   :  { %v217_v56 = vld [vmem:[%s4735_s29 + $0xf8] sm:$0xff] }
 0x13a   :  { %v4461_v61 = vpop.eup %4460  ;;  %v270_v62 = vadd.f32 1e-05, %v266_v58  ;;  %v268_v63 = vadd.f32 1e-05, %v264_v59  ;;  %628 = vmatpush.msra.mxu3 %v217_v56  ;;  %v192_v58 = vld [vmem:[%s4735_s29 + $0x30] sm:$0xff] }
 0x13b   :  { %v4463_v3 = vpop.eup %4462  ;;  %v292_v4 = vmul.f32 %v4461_v61, %v269_v51  ;;  %vm298_vm4 = vweird.f32 %v4461_v61  ;;  %v196_v51 = vld [vmem:[%s4735_s29 + $0x50] sm:$0xff] }
 0x13c   :  { %v272_v6 = vmul.f32 %v4463_v3, %v267_v52  ;;  %4464 = vrsqrt.f32 %v270_v62  ;;  %vm278_vm3 = vweird.f32 %v4463_v3  ;;  %vm299_vm7 = vmor %vm297_vm5, %vm298_vm4  ;;  %vm287_vm8 = vweird.f32 %v268_v63  ;;  %v195_v52 = vld [vmem:[%s4735_s29 + $0x48] sm:$0xff]  ;;  %v216_v59 = vld [vmem:[%s4735_s29 + $0xf0] sm:$0xff] }
 0x13d   :  { %v293_v7 = vmul.f32 %v4461_v61, %v292_v4  ;;  %4466 = vrsqrt.f32 %v268_v63  ;;  %vm279_vm6 = vmor %vm277_vm2, %vm278_vm3  ;;  %vm307_vm11 = vweird.f32 %v270_v62  ;;  %629 = vmatpush.msra.mxu3 %v216_v59  ;;  %v190_v4 = vld [vmem:[%s4735_s29 + $0x20] sm:$0xff] }
 0x13e   :  { %v273_v8 = vmul.f32 %v4463_v3, %v272_v6  ;;  %v214_v6 = vld [vmem:[%s4735_s29 + $0xe0] sm:$0xff] }
 0x13f   :  { %v294_v9 = vmul.f32 0.5, %v293_v7  ;;  %v202_v59 = vld [vmem:[%s4735_s29 + $0x80] sm:$0xff] }
 0x140   :  { %v274_v10 = vmul.f32 0.5, %v273_v8 }
 0x141   :  { %v295_v11 = vsub.f32 1.5, %v294_v9  ;;  %v189_v9 = vld [vmem:[%s4735_s29 + $0x18] sm:$0xff] }
 0x142   :  { %v4465_v12 = vpop.eup %4464  ;;  %v275_v13 = vsub.f32 1.5, %v274_v10  ;;  %v213_v10 = vld [vmem:[%s4735_s29 + $0xd8] sm:$0xff] }
 0x143   :  { %v4467_v15 = vpop.eup %4466  ;;  %v296_v16 = vmul.f32 %v4461_v61, %v295_v11  ;;  %v302_v17 = vmul.f32 %v4465_v12, %v270_v62  ;;  %vm308_vm10 = vweird.f32 %v4465_v12 }
 0x144   :  { %v276_v18 = vmul.f32 %v4463_v3, %v275_v13  ;;  %v282_v21 = vmul.f32 %v4467_v15, %v268_v63  ;;  %vm288_vm9 = vweird.f32 %v4467_v15  ;;  %vm309_vm13 = vmor %vm307_vm11, %vm308_vm10  ;;  %v188_v13 = vld [vmem:[%s4735_s29 + $0x10] sm:$0xff] }
 0x145   :  { %v303_v23 = vmul.f32 %v4465_v12, %v302_v17  ;;  %v300_v24 = vsel %vm299_vm7, %v4461_v61, %v296_v16  ;;  %vm289_vm12 = vmor %vm287_vm8, %vm288_vm9  ;;  %v215_v61 = vld [vmem:[%s4735_s29 + $0xe8] sm:$0xff] }
 0x146   :  { %v283_v25 = vmul.f32 %v4467_v15, %v282_v21  ;;  %v280_v26 = vsel %vm279_vm6, %v4463_v3, %v276_v18  ;;  %v313_v28 = vmul.f32 %v300_v24, %v4930_v20  ;;  %630 = vmatpush.msra.mxu3 %v215_v61  ;;  %v187_v18 = vld [vmem:[%s4735_s29 + $0x8] sm:$0xff] }
 0x147   :  { %v304_v31 = vmul.f32 0.5, %v303_v23  ;;  %v311_v32 = vmul.f32 %v280_v26, %v4927_v19  ;;  %v211_v21 = vld [vmem:[%s4735_s29 + $0xc8] sm:$0xff]  ;;  %v186_v26 = vld [vmem:[%s4735_s29] sm:$0xff] }
 0x148   :  { %v284_v33 = vmul.f32 0.5, %v283_v25  ;;  %v320_v34 = vmul.f32 %v4435_v22, %v313_v28  ;;  %631 = vmatpush.msra.mxu3 %v214_v6 }
 0x149   :  { %v305_v35 = vsub.f32 1.5, %v304_v31  ;;  %v318_v36 = vmul.f32 %v4435_v22, %v311_v32  ;;  %v209_v32 = vld [vmem:[%s4735_s29 + $0xb8] sm:$0xff] }
 0x14a   :  { %v285_v37 = vsub.f32 1.5, %v284_v33  ;;  %v327_v38 = vadd.f32 %v4436_v27, %v320_v34  ;;  %632 = vmatpush.msra.mxu3 %v213_v10 }
 0x14b   :  { %v306_v39 = vmul.f32 %v4465_v12, %v305_v35  ;;  %v325_v40 = vadd.f32 %v4436_v27, %v318_v36  ;;  %v5024_v35 = vperm.slane %v185_v54, 1  ;;  %v208_v36 = vld [vmem:[%s4735_s29 + $0xb0] sm:$0xff] }
 0x14c   :  { %v286_v41 = vmul.f32 %v4467_v15, %v285_v37  ;;  %4278 = vmatmul.msk.f32.vlgmr.msra.gmra.mxu1 %vm7146_vm0, %v327_v38 }
 0x14d   :  { %4276 = vmatmul.msk.f32.vlgmr.msra.gmra.mxu0 %vm7146_vm0, %v325_v40  ;;  %v310_v19 = vsel %vm309_vm13, %v4465_v12, %v306_v39 }
 0x14e   :  { %v290_v20 = vsel %vm289_vm12, %v4467_v15, %v286_v41  ;;  %v314_v42 = vmul.f32 %v310_v19, %v4941_v29  ;;  %v201_v29 = vld [vmem:[%s4735_s29 + $0x78] sm:$0xff]  ;;  %v212_v15 = vld [vmem:[%s4735_s29 + $0xd0] sm:$0xff] }
 0x14f   :  { %v312_v43 = vmul.f32 %v290_v20, %v4944_v30  ;;  %599 = vmatpush.msra.mxu2 %v201_v29  ;;  %v200_v30 = vld [vmem:[%s4735_s29 + $0x70] sm:$0xff]  ;;  %633 = vmatpush.msra.mxu3 %v212_v15 }
 0x150   :  { %v321_v44 = vmul.f32 %v4435_v22, %v314_v42 }
 0x151   :  { %v319_v45 = vmul.f32 %v4435_v22, %v312_v43  ;;  %600 = vmatpush.msra.mxu2 %v200_v30  ;;  %634 = vmatpush.msra.mxu3 %v211_v21  ;;  %v204_v30 = vld [vmem:[%s4735_s29 + $0x90] sm:$0xff] }
 0x152   :  { %v328_v46 = vadd.f32 %v4436_v27, %v321_v44 }
 0x153   :  { %v326_v47 = vadd.f32 %v4436_v27, %v319_v45  ;;  %601 = vmatpush.msra.mxu2 %v199_v48  ;;  %v210_v27 = vld [vmem:[%s4735_s29 + $0xc0] sm:$0xff] }
 0x154   :  { %4279 = vmatmul.msk.f32.gmra.mxu1 %vm7146_vm0, %v328_v46  ;;  %635 = vmatpush.msra.mxu3 %v210_v27  ;;  %v206_v45 = vld [vmem:[%s4735_s29 + $0xa0] sm:$0xff] }
 0x155   :  { %4277 = vmatmul.msk.f32.gmra.mxu0 %vm7146_vm0, %v326_v47  ;;  %602 = vmatpush.msra.mxu2 %v198_v49 }
 0x156   :  { %636 = vmatpush.msra.mxu3 %v209_v32 }
 0x157   :  { %603 = vmatpush.msra.mxu2 %v197_v50 }
 0x158   :  { %637 = vmatpush.msra.mxu3 %v208_v36 }
 0x159   :  { %604 = vmatpush.msra.mxu2 %v196_v51 }
 0x15b   :  { %605 = vmatpush.msra.mxu2 %v195_v52 }
 0x15c   :  { %4280 = vmatmul.msk.f32.vlgmr.msrb.gmra.mxu1 %vm7146_vm0, %v325_v40  ;;  %v207_v40 = vld [vmem:[%s4735_s29 + $0xa8] sm:$0xff] }
 0x15d   :  { %606 = vmatpush.msra.mxu2 %v194_v53  ;;  %638 = vmatpush.msra.mxu3 %v207_v40  ;;  %v203_v53 = vld [vmem:[%s4735_s29 + $0x88] sm:$0xff] }
 0x15f   :  { %607 = vmatpush.msra.mxu2 %v193_v55  ;;  %639 = vmatpush.msra.mxu3 %v206_v45 }
 0x161   :  { %608 = vmatpush.msra.mxu2 %v192_v58 }
 0x163   :  { %609 = vmatpush.msra.mxu2 %v191_v60 }
 0x164   :  { %4281 = vmatmul.msk.f32.gmra.mxu1 %vm7146_vm0, %v326_v47  ;;  %v205_v47 = vld [vmem:[%s4735_s29 + $0x98] sm:$0xff]  ;;  %s4680_s29 = smov 113  }
 0x165   :  { %610 = vmatpush.msra.mxu2 %v190_v4  ;;  %640 = vmatpush.msra.mxu3 %v205_v47 }
 0x167   :  { %611 = vmatpush.msra.mxu2 %v189_v9  ;;  %641 = vmatpush.msra.mxu3 %v204_v30 }
 0x169   :  { %612 = vmatpush.msra.mxu2 %v188_v13  ;;  %642 = vmatpush.msra.mxu3 %v203_v53 }
 0x16b   :  { %613 = vmatpush.msra.mxu2 %v187_v18  ;;  %643 = vmatpush.msra.mxu3 %v202_v59 }
 0x16c   :  { %4282 = vmatmul.msk.f32.gmra.mxu1 %vm7146_vm0, %v327_v38 }
 0x16d   :  { %614 = vmatpush.msra.mxu2 %v186_v26 }
 0x174   :  { %4283 = vmatmul.msk.f32.gmra.mxu1 %vm7146_vm0, %v328_v46 }
 0x1c9   :  { %v369_v62 = vpop.f32.mrf.mxu1 }
 0x1ca   :  { %v363_v63 = vpop.f32.mrf.mxu0  ;;  %v5001_v3 = vadd.f32 %v369_v62, %v330_v57 }
 0x1cb   :  { %v5005_v7 = vadd.f32 %v363_v63, %v330_v57 }
 0x1cc   :  { %v408_v8 = vand.u32 2147483647, %v5001_v3 }
 0x1cd   :  { %v404_v11 = vand.u32 2147483647, %v5005_v7  ;;  %vm436_vm4 = vcmp.ge.f32.partialorder %v5005_v7, 0.0 }
 0x1ce   :  { %v416_v12 = vsub.f32 0.0, %v408_v8 }
 0x1cf   :  { %v412_v16 = vsub.f32 0.0, %v404_v11 }
 0x1d0   :  { %v428_v17 = vmul.f32 1.442695, %v416_v12 }
 0x1d1   :  { %v420_v22 = vmul.f32 1.442695, %v412_v16  ;;  %v372_v23 = vpop.f32.mrf.mxu1 }
 0x1d2   :  { %4468 = vpow2.f32 %v428_v17  ;;  %v366_v24 = vpop.f32.mrf.mxu0  ;;  %v5015_v25 = vadd.f32 %v372_v23, %v330_v57 }
 0x1d3   :  { %4470 = vpow2.f32 %v420_v22  ;;  %v5019_v28 = vadd.f32 %v366_v24, %v330_v57 }
 0x1d4   :  { %v410_v31 = vand.u32 2147483647, %v5015_v25 }
 0x1d5   :  { %v406_v33 = vand.u32 2147483647, %v5019_v28  ;;  %vm438_vm8 = vcmp.ge.f32.partialorder %v5019_v28, 0.0 }
 0x1d6   :  { %v418_v34 = vsub.f32 0.0, %v410_v31 }
 0x1d7   :  { %v414_v37 = vsub.f32 0.0, %v406_v33 }
 0x1d8   :  { %v5027_v38 = vpop.eup %4468  ;;  %v432_v39 = vmul.f32 1.442695, %v418_v34 }
 0x1d9   :  { %v5030_v41 = vpop.eup %4470  ;;  %v5033_v19 = vadd.f32 1.0, %v5027_v38  ;;  %v424_v20 = vmul.f32 1.442695, %v414_v37  ;;  %v392_v42 = vpop.f32.mrf.mxu1 }
 0x1da   :  { %v444_v43 = vadd.f32 1.0, %v5030_v41  ;;  %4472 = vpow2.f32 %v432_v39  ;;  %v5037_v44 = vadd.f32 %v392_v42, %v5024_v35 }
 0x1db   :  { %4474 = vrcp.f32 %v5033_v19  ;;  %v521_v23 = vand.u32 2147483647, %v5033_v19  ;;  %vm517_vm5 = vweird.f32 %v5033_v19  ;;  %v523_v37 = vand.u32 2147483648, %v5033_v19 }
 0x1dc   :  { %4476 = vrcp.f32 %v444_v43  ;;  %v405_v46 = vand.u32 2147483647, %v5037_v44  ;;  %v463_v6 = vand.u32 2147483648, %v444_v43  ;;  %v461_v9 = vand.u32 2147483647, %v444_v43 }
 0x1dd   :  { %4478 = vpow2.f32 %v424_v20  ;;  %vm457_vm15 = vweird.f32 %v444_v43  ;;  %vm5094_vm7 = vcmp.eq.f32.partialorder %v521_v23, 8.507059e+37 }
 0x1de   :  { %v413_v29 = vsub.f32 0.0, %v405_v46  ;;  %v464_v21 = vor.u32 1.1754944e-38, %v463_v6  ;;  %vm462_vm2 = vcmp.eq.f32.partialorder %v461_v9, 8.507059e+37 }
 0x1e0   :  { %v5044_v48 = vpop.eup %4472  ;;  %v422_v49 = vmul.f32 1.442695, %v413_v29 }
 0x1e1   :  { %v5046_v50 = vpop.eup %4474  ;;  %v5049_v51 = vadd.f32 1.0, %v5044_v48  ;;  %v395_v52 = vpop.f32.mrf.mxu1 }
 0x1e2   :  { %v4477_v54 = vpop.eup %4476  ;;  %4480 = vpow2.f32 %v422_v49  ;;  %v5053_v55 = vadd.f32 %v395_v52, %v5024_v35  ;;  %v513_v56 = vmul.f32 %v5046_v50, %v5033_v19  ;;  %vm518_vm3 = vweird.f32 %v5046_v50 }
 0x1e3   :  { %v5057_v57 = vpop.eup %4478  ;;  %v453_v58 = vmul.f32 %v4477_v54, %v444_v43  ;;  %4482 = vrcp.f32 %v5049_v51  ;;  %vm458_vm14 = vweird.f32 %v4477_v54  ;;  %vm5090_vm6 = vmor %vm517_vm5, %vm518_vm3  ;;  %vm547_vm3 = vweird.f32 %v5049_v51 }
 0x1e4   :  { %v5061_v60 = vadd.f32 1.0, %v5057_v57  ;;  %v407_v61 = vand.u32 2147483647, %v5053_v55  ;;  %v514_v62 = vsub.f32 1.0, %v513_v56  ;;  %vm459_vm1 = vmor %vm457_vm15, %vm458_vm14 }
 0x1e5   :  { %v454_v63 = vsub.f32 1.0, %v453_v58 }
 0x1e6   :  { %4484 = vrcp.f32 %v5061_v60  ;;  %v415_v4 = vsub.f32 0.0, %v407_v61  ;;  %v515_v12 = vmul.f32 %v5046_v50, %v514_v62  ;;  %v491_v20 = vand.u32 2147483647, %v5061_v60 }
 0x1e7   :  { %v455_v8 = vmul.f32 %v4477_v54, %v454_v63  ;;  %v493_v19 = vand.u32 2147483648, %v5061_v60  ;;  %vm487_vm10 = vweird.f32 %v5061_v60 }
 0x1e8   :  { %v5066_v10 = vpop.eup %4480  ;;  %v426_v11 = vmul.f32 1.442695, %v415_v4  ;;  %v516_v31 = vadd.f32 %v5046_v50, %v515_v12  ;;  %vm492_vm11 = vcmp.eq.f32.partialorder %v491_v20, 8.507059e+37  ;;  %v551_v12 = vand.u32 2147483647, %v5049_v51 }
 0x1e9   :  { %v5070_v13 = vadd.f32 1.0, %v5066_v10  ;;  %v398_v15 = vpop.f32.mrf.mxu1  ;;  %v456_v16 = vadd.f32 %v4477_v54, %v455_v8  ;;  %v5072_v17 = vpop.eup %4482  ;;  %v494_v59 = vor.u32 1.1754944e-38, %v493_v19 }
 0x1ea   :  { %4486 = vpow2.f32 %v426_v11  ;;  %v5075_v18 = vadd.f32 %v398_v15, %v5024_v35  ;;  %v543_v34 = vmul.f32 %v5072_v17, %v5049_v51  ;;  %v520_v47 = vsel %vm5090_vm6, %v5046_v50, %v516_v31 }
 0x1eb   :  { %4488 = vrcp.f32 %v5070_v13  ;;  %v460_v22 = vsel %vm459_vm1, %v4477_v54, %v456_v16  ;;  %v476_v63 = vand.u32 2147483647, %v5070_v13  ;;  %v478_v4 = vand.u32 2147483648, %v5070_v13 }
 0x1ec   :  { %v4485_v24 = vpop.eup %4484  ;;  %v409_v26 = vand.u32 2147483647, %v5075_v18  ;;  %v465_v27 = vsel %vm462_vm2, %v464_v21, %v460_v22  ;;  %v544_v53 = vsub.f32 1.0, %v543_v34  ;;  %vm548_vm14 = vweird.f32 %v5072_v17 }
 0x1ed   :  { %v572_v32 = vmul.f32 %v5030_v41, %v465_v27  ;;  %v483_v33 = vmul.f32 %v4485_v24, %v5061_v60  ;;  %vm488_vm9 = vweird.f32 %v4485_v24  ;;  %v553_v15 = vand.u32 2147483648, %v5049_v51  ;;  %vm549_vm5 = vmor %vm547_vm3, %vm548_vm14 }
 0x1ee   :  { %v417_v36 = vsub.f32 0.0, %v409_v26  ;;  %vm489_vm12 = vmor %vm487_vm10, %vm488_vm9  ;;  %v545_v6 = vmul.f32 %v5072_v17, %v544_v53  ;;  %vm472_vm15 = vweird.f32 %v5070_v13  ;;  %vm477_vm2 = vcmp.eq.f32.partialorder %v476_v63, 8.507059e+37 }
 0x1ef   :  { %v580_v39 = vsel %vm436_vm4, %v465_v27, %v572_v32  ;;  %v484_v40 = vsub.f32 1.0, %v483_v33  ;;  %v479_v27 = vor.u32 1.1754944e-38, %v478_v4  ;;  %vm440_vm4 = vcmp.ge.f32.partialorder %v5001_v3, 0.0 }
 0x1f0   :  { %v5098_v43 = vpop.eup %4486  ;;  %v430_v45 = vmul.f32 1.442695, %v417_v36  ;;  %v588_v46 = vmul.f32 %v580_v39, %v5005_v7  ;;  %v524_v7 = vor.u32 1.1754944e-38, %v523_v37  ;;  %v546_v31 = vadd.f32 %v5072_v17, %v545_v6 }
 0x1f1   :  { %v4489_v29 = vpop.eup %4488  ;;  %v5107_v30 = vadd.f32 1.0, %v5098_v43  ;;  %v401_v49 = vpop.f32.mrf.mxu1  ;;  %v485_v52 = vmul.f32 %v4485_v24, %v484_v40  ;;  %vm437_vm6 = vcmp.ge.f32.partialorder %v5037_v44, 0.0  ;;  %v554_v40 = vor.u32 1.1754944e-38, %v553_v15 }
 0x1f2   :  { %4490 = vpow2.f32 %v430_v45  ;;  %v5110_v54 = vadd.f32 %v401_v49, %v5024_v35  ;;  %615 = vmatmul.f32.vlgmr.msra.gmra.mxu2 %v588_v46  ;;  %v468_v56 = vmul.f32 %v4489_v29, %v5070_v13  ;;  %v525_v61 = vsel %vm5094_vm7, %v524_v7, %v520_v47 }
 0x1f3   :  { %4492 = vrcp.f32 %v5107_v30  ;;  %v486_v58 = vadd.f32 %v4485_v24, %v485_v52  ;;  %vm473_vm13 = vweird.f32 %v4489_v29  ;;  %v576_v22 = vmul.f32 %v5027_v38, %v525_v61 }
 0x1f4   :  { %v411_v50 = vand.u32 2147483647, %v5110_v54  ;;  %v469_v62 = vsub.f32 1.0, %v468_v56  ;;  %vm474_vm1 = vmor %vm472_vm15, %vm473_vm13  ;;  %vm552_vm7 = vcmp.eq.f32.partialorder %v551_v12, 8.507059e+37  ;;  %v508_v51 = vand.u32 2147483648, %v5107_v30 }
 0x1f5   :  { %v490_v35 = vsel %vm489_vm12, %v4485_v24, %v486_v58  ;;  %v584_v37 = vsel %vm440_vm4, %v525_v61, %v576_v22  ;;  %vm502_vm9 = vweird.f32 %v5107_v30  ;;  %vm442_vm12 = vcmp.ge.f32.partialorder %v5015_v25, 0.0 }
 0x1f6   :  { %v419_v8 = vsub.f32 0.0, %v411_v50  ;;  %v495_v9 = vsel %vm492_vm11, %v494_v59, %v490_v35  ;;  %v470_v11 = vmul.f32 %v4489_v29, %v469_v62  ;;  %vm439_vm13 = vcmp.ge.f32.partialorder %v5053_v55, 0.0 }
 0x1f7   :  { %v574_v60 = vmul.f32 %v5057_v57, %v495_v9  ;;  %vm441_vm3 = vcmp.ge.f32.partialorder %v5075_v18, 0.0 }
 0x1f8   :  { %v5125_v16 = vpop.eup %4490  ;;  %v434_v21 = vmul.f32 1.442695, %v419_v8  ;;  %v471_v23 = vadd.f32 %v4489_v29, %v470_v11 }
 0x1f9   :  { %v4493_v24 = vpop.eup %4492  ;;  %v5130_v26 = vadd.f32 1.0, %v5125_v16  ;;  %v582_v57 = vsel %vm438_vm8, %v495_v9, %v574_v60 }
 0x1fa   :  { %4494 = vpow2.f32 %v434_v21  ;;  %v590_v32 = vmul.f32 %v582_v57, %v5019_v28  ;;  %v475_v33 = vsel %vm474_vm1, %v4489_v29, %v471_v23  ;;  %v498_v13 = vmul.f32 %v4493_v24, %v5107_v30 }
 0x1fb   :  { %4496 = vrcp.f32 %v5130_v26  ;;  %v480_v38 = vsel %vm477_vm2, %v479_v27, %v475_v33  ;;  %v550_v28 = vsel %vm549_vm5, %v5072_v17, %v546_v31  ;;  %vm503_vm8 = vweird.f32 %v4493_v24  ;;  %v4437_v27 = vld [vmem:[%s4740_s3] ss:$0 sm:$0xff]  ;;  %s4681_s3 = smov 114  }
 0x1fc   :  { %618 = vmatmul.f32.gmra.mxu2 %v590_v32  ;;  %v573_v34 = vmul.f32 %v5066_v10, %v480_v38  ;;  %v499_v36 = vsub.f32 1.0, %v498_v13  ;;  %v506_v10 = vand.u32 2147483647, %v5107_v30  ;;  %v555_v45 = vsel %vm552_vm7, %v554_v40, %v550_v28  ;;  %vm504_vm10 = vmor %vm502_vm9, %vm503_vm8 }
 0x1fd   :  { %v592_v17 = vmul.f32 %v584_v37, %v5001_v3  ;;  %v509_v29 = vor.u32 1.1754944e-38, %v508_v51  ;;  %v538_v30 = vand.u32 2147483648, %v5130_v26  ;;  %v536_v58 = vand.u32 2147483647, %v5130_v26 }
 0x1fe   :  { %v581_v39 = vsel %vm437_vm6, %v480_v38, %v573_v34  ;;  %v500_v42 = vmul.f32 %v4493_v24, %v499_v36  ;;  %vm507_vm11 = vcmp.eq.f32.partialorder %v506_v10, 8.507059e+37  ;;  %vm532_vm15 = vweird.f32 %v5130_v26 }
 0x1ff   :  { %v589_v20 = vmul.f32 %v581_v39, %v5037_v44  ;;  %v578_v44 = vmul.f32 %v5044_v48, %v555_v45  ;;  %v539_v35 = vor.u32 1.1754944e-38, %v538_v30  ;;  %vm537_vm2 = vcmp.eq.f32.partialorder %v536_v58, 8.507059e+37 }
 0x200   :  { %v4495_v41 = vpop.eup %4494  ;;  %v501_v47 = vadd.f32 %v4493_v24, %v500_v42  ;;  %vm443_vm8 = vcmp.ge.f32.partialorder %v5110_v54, 0.0 }
 0x201   :  { %v4497_v46 = vpop.eup %4496  ;;  %v451_v19 = vadd.f32 1.0, %v4495_v41  ;;  %644 = vmatmul.f32.vlgmr.msra.gmra.mxu3 %v589_v20  ;;  %v586_v50 = vsel %vm442_vm12, %v555_v45, %v578_v44 }
 0x202   :  { %v528_v49 = vmul.f32 %v4497_v46, %v5130_v26  ;;  %v505_v52 = vsel %vm504_vm10, %v4493_v24, %v501_v47  ;;  %vm533_vm14 = vweird.f32 %v4497_v46 }
 0x203   :  { %4498 = vrcp.f32 %v451_v19  ;;  %v510_v53 = vsel %vm507_vm11, %v509_v29, %v505_v52  ;;  %vm534_vm1 = vmor %vm532_vm15, %vm533_vm14  ;;  %v566_v12 = vand.u32 2147483647, %v451_v19  ;;  %vm562_vm5 = vweird.f32 %v451_v19 }
 0x204   :  { %621 = vmatmul.f32.gmra.mxu2 %v592_v17  ;;  %v529_v7 = vsub.f32 1.0, %v528_v49  ;;  %v575_v56 = vmul.f32 %v5098_v43, %v510_v53  ;;  %v594_v43 = vmul.f32 %v586_v50, %v5015_v25 }
 0x205   :  { %vm567_vm7 = vcmp.eq.f32.partialorder %v566_v12, 8.507059e+37  ;;  %v869_v12 = vld [vmem:[%s4775_s12 + $0x30] sm:$0xff] }
 0x206   :  { %v530_v3 = vmul.f32 %v4497_v46, %v529_v7  ;;  %v583_v59 = vsel %vm439_vm13, %v510_v53, %v575_v56 }
 0x207   :  { %v591_v48 = vmul.f32 %v583_v59, %v5053_v55  ;;  %v568_v55 = vand.u32 2147483648, %v451_v19 }
 0x208   :  { %v531_v61 = vadd.f32 %v4497_v46, %v530_v3 }
 0x209   :  { %v4499_v62 = vpop.eup %4498  ;;  %647 = vmatmul.f32.gmra.mxu3 %v591_v48  ;;  %v569_v21 = vor.u32 1.1754944e-38, %v568_v55  ;;  %v870_v55 = vld [vmem:[%s4775_s12 + $0x38] sm:$0xff] }
 0x20a   :  { %v535_v63 = vsel %vm534_vm1, %v4497_v46, %v531_v61  ;;  %v558_v4 = vmul.f32 %v4499_v62, %v451_v19  ;;  %vm563_vm4 = vweird.f32 %v4499_v62  ;;  %883 = vmatpush.msrb.mxu2 %v870_v55  ;;  %v925_v55 = vld [vmem:[%s4785_s27 + $0x28] sm:$0xff] }
 0x20b   :  { %v540_v6 = vsel %vm537_vm2, %v539_v35, %v535_v63  ;;  %vm564_vm6 = vmor %vm562_vm5, %vm563_vm4 }
 0x20c   :  { %624 = vmatmul.f32.gmra.mxu2 %v594_v43  ;;  %v577_v8 = vmul.f32 %v5125_v16, %v540_v6  ;;  %v559_v9 = vsub.f32 1.0, %v558_v4 }
 0x20d   :  { %884 = vmatpush.msrb.mxu2 %v869_v12 }
 0x20e   :  { %v585_v11 = vsel %vm441_vm3, %v540_v6, %v577_v8  ;;  %v560_v60 = vmul.f32 %v4499_v62, %v559_v9  ;;  %v776_v8 = vld [vmem:[%s4755_s19 + $0x38] sm:$0xff] }
 0x20f   :  { %v593_v15 = vmul.f32 %v585_v11, %v5075_v18  ;;  %v829_v9 = vld [vmem:[%s4765_s30 + $0x38] sm:$0xff]  ;;  %801 = vmatpush.msrb.mxu0 %v776_v8  ;;  %v775_v11 = vld [vmem:[%s4755_s19 + $0x30] sm:$0xff] }
 0x210   :  { %v561_v25 = vadd.f32 %v4499_v62, %v560_v60  ;;  %842 = vmatpush.msra.mxu1 %v829_v9  ;;  %v828_v60 = vld [vmem:[%s4765_s30 + $0x30] sm:$0xff] }
 0x211   :  { %650 = vmatmul.f32.gmra.mxu3 %v593_v15  ;;  %802 = vmatpush.msrb.mxu0 %v775_v11  ;;  %v774_v15 = vld [vmem:[%s4755_s19 + $0x28] sm:$0xff] }
 0x212   :  { %v565_v22 = vsel %vm564_vm6, %v4499_v62, %v561_v25  ;;  %843 = vmatpush.msra.mxu1 %v828_v60  ;;  %v827_v25 = vld [vmem:[%s4765_s30 + $0x28] sm:$0xff] }
 0x213   :  { %v570_v23 = vsel %vm567_vm7, %v569_v21, %v565_v22  ;;  %v868_v21 = vld [vmem:[%s4775_s12 + $0x28] sm:$0xff]  ;;  %803 = vmatpush.msrb.mxu0 %v774_v15  ;;  %v773_v22 = vld [vmem:[%s4755_s19 + $0x20] sm:$0xff] }
 0x214   :  { %v579_v16 = vmul.f32 %v4495_v41, %v570_v23  ;;  %844 = vmatpush.msra.mxu1 %v827_v25  ;;  %885 = vmatpush.msrb.mxu2 %v868_v21  ;;  %v924_v25 = vld [vmem:[%s4785_s27 + $0x20] sm:$0xff] }
 0x215   :  { %804 = vmatpush.msrb.mxu0 %v773_v22 }
 0x216   :  { %v587_v24 = vsel %vm443_vm8, %v570_v23, %v579_v16  ;;  %v826_v23 = vld [vmem:[%s4765_s30 + $0x20] sm:$0xff] }
 0x217   :  { %v595_v26 = vmul.f32 %v587_v24, %v5110_v54  ;;  %v867_v16 = vld [vmem:[%s4775_s12 + $0x20] sm:$0xff]  ;;  %845 = vmatpush.msra.mxu1 %v826_v23  ;;  %v772_v24 = vld [vmem:[%s4755_s19 + $0x18] sm:$0xff] }
 0x218   :  { %886 = vmatpush.msrb.mxu2 %v867_v16  ;;  %805 = vmatpush.msrb.mxu0 %v772_v24 }
 0x219   :  { %653 = vmatmul.f32.gmra.mxu3 %v595_v26  ;;  %v825_v26 = vld [vmem:[%s4765_s30 + $0x18] sm:$0xff] }
 0x21a   :  { %846 = vmatpush.msra.mxu1 %v825_v26 }
 0x275   :  { %v616_v57 = vpop.f32.mrf.mxu2 }
 0x276   :  { %v617_v31 = vadd.f32 %v4437_v27, %v616_v57  ;;  %v866_v57 = vld [vmem:[%s4775_s12 + $0x18] sm:$0xff] }
 0x277   :  { %887 = vmatpush.msrb.mxu2 %v866_v57  ;;  %v923_v57 = vld [vmem:[%s4785_s27 + $0x18] sm:$0xff] }
 0x27f   :  { %v619_v18 = vpop.f32.mrf.mxu2 }
 0x280   :  { %v620_v28 = vadd.f32 %v4437_v27, %v619_v18  ;;  %v770_v18 = vld [vmem:[%s4755_s19 + $0x8] sm:$0xff] }
 0x284   :  { %v645_v32 = vpop.f32.mrf.mxu3 }
 0x285   :  { %v646_v33 = vadd.f32 %v645_v32, %v617_v31  ;;  %v824_v31 = vld [vmem:[%s4765_s30 + $0x10] sm:$0xff] }
 0x286   :  { %v865_v32 = vld [vmem:[%s4775_s12 + $0x10] sm:$0xff]  ;;  %847 = vmatpush.msra.mxu1 %v824_v31 }
 0x287   :  { %v657_v38 = vmul.f32 0.5, %v646_v33  ;;  %v622_v39 = vpop.f32.mrf.mxu2  ;;  %888 = vmatpush.msrb.mxu2 %v865_v32  ;;  %v823_v33 = vld [vmem:[%s4765_s30 + $0x8] sm:$0xff] }
 0x288   :  { %v623_v51 = vadd.f32 %v4437_v27, %v622_v39  ;;  %848 = vmatpush.msra.mxu1 %v823_v33 }
 0x289   :  { %v5167_v13 = vadd.f32 %v657_v38, %v4906_v1  ;;  %v864_v38 = vld [vmem:[%s4775_s12 + $0x8] sm:$0xff] }
 0x28a   :  { %889 = vmatpush.msrb.mxu2 %v864_v38 }
 0x28b   :  { %v667_v34 = vsel %vm7146_vm0, %v5167_v13, 0.0 }
 0x28c   :  { %668 = vadd.xlane.f32.xlu2 %v667_v34  ;;  %v648_v36 = vpop.f32.mrf.mxu3  ;;  %v769_v34 = vld [vmem:[%s4755_s19] sm:$0xff] }
 0x28d   :  { %v649_v37 = vadd.f32 %v648_v36, %v620_v28  ;;  %v822_v28 = vld [vmem:[%s4765_s30] sm:$0xff]  ;;  %s4686_s30 = smov 8  }
 0x28e   :  { %v863_v36 = vld [vmem:[%s4775_s12] sm:$0xff]  ;;  %849 = vmatpush.msra.mxu1 %v822_v28  ;;  %s4687_s12 = smov 49  }
 0x28f   :  { %v658_v54 = vmul.f32 0.5, %v649_v37  ;;  %v625_v41 = vpop.f32.mrf.mxu2  ;;  %890 = vmatpush.msrb.mxu2 %v863_v36  ;;  %v921_v36 = vld [vmem:[%s4785_s27 + $0x8] sm:$0xff] }
 0x290   :  { %v626_v46 = vadd.f32 %v4437_v27, %v625_v41  ;;  %v771_v27 = vld [vmem:[%s4755_s19 + $0x10] sm:$0xff]  ;;  %s4684_s19 = smov 116  }
 0x291   :  { %v5172_v40 = vadd.f32 %v658_v54, %v4916_v5  ;;  %806 = vmatpush.msrb.mxu0 %v771_v27 }
 0x293   :  { %v670_v20 = vsel %vm7146_vm0, %v5172_v40, 0.0  ;;  %807 = vmatpush.msrb.mxu0 %v770_v18  ;;  %v922_v18 = vld [vmem:[%s4785_s27 + $0x10] sm:$0xff] }
 0x294   :  { %v651_v42 = vpop.f32.mrf.mxu3  ;;  %671 = vadd.xlane.f32.xlu0 %v670_v20 }
 0x295   :  { %v652_v1 = vadd.f32 %v651_v42, %v623_v51  ;;  %808 = vmatpush.msrb.mxu0 %v769_v34 }
 0x297   :  { %v659_v10 = vmul.f32 0.5, %v652_v1 }
 0x299   :  { %v5177_v45 = vadd.f32 %v659_v10, %v4903_v0 }
 0x29b   :  { %v673_v19 = vsel %vm7146_vm0, %v5177_v45, 0.0 }
 0x29c   :  { %v654_v47 = vpop.f32.mrf.mxu3  ;;  %674 = vadd.xlane.f32.xlu1 %v673_v19 }
 0x29d   :  { %v655_v5 = vadd.f32 %v654_v47, %v626_v46 }
 0x29f   :  { %v660_v17 = vmul.f32 0.5, %v655_v5 }
 0x2a1   :  { %v5182_v29 = vadd.f32 %v660_v17, %v4909_v2 }
 0x2a3   :  { %v676_v49 = vsel %vm7146_vm0, %v5182_v29, 0.0 }
 0x2a4   :  { %677 = vadd.xlane.f32.xlu2 %v676_v49 }
 0x2ff   :  { %v669_v44 = vpop.xlane.xlu2 %668 }
 0x300   :  { %v679_v52 = vmul.f32 %v669_v44, %v4922_v14 }
 0x302   :  { %v5188_v0 = vsub.f32 %v5167_v13, %v679_v52 }
 0x304   :  { %v687_v53 = vmul.f32 %v5188_v0, %v5188_v0 }
 0x306   :  { %v691_v7 = vsel %vm7146_vm0, %v687_v53, 0.0  ;;  %v5242_v53 = vld [vmem:[%s4745_s8] ss:$0 sm:$0xff]  ;;  %s4682_s8 = smov 2  }
 0x307   :  { %692 = vadd.xlane.f32.xlu0 %v691_v7  ;;  %v672_v56 = vpop.xlane.xlu0 %671 }
 0x308   :  { %v680_v2 = vmul.f32 %v672_v56, %v4922_v14 }
 0x30a   :  { %v5195_v30 = vsub.f32 %v5172_v40, %v680_v2 }
 0x30c   :  { %v688_v3 = vmul.f32 %v5195_v30, %v5195_v30 }
 0x30e   :  { %v694_v58 = vsel %vm7146_vm0, %v688_v3, 0.0  ;;  %v5246_v3 = vld [vmem:[%s4750_s14] ss:$0 sm:$0xff]  ;;  %s4683_s14 = smov 4  }
 0x30f   :  { %v675_v50 = vpop.xlane.xlu1 %674  ;;  %695 = vadd.xlane.f32.xlu1 %v694_v58  ;;  %v927_v58 = vld [vmem:[%s4785_s27 + $0x38] sm:$0xff] }
 0x310   :  { %v681_v59 = vmul.f32 %v675_v50, %v4922_v14  ;;  %4296 = vmatpush.xpose.msk.msrb.mxu3 %vm7146_vm0, %v927_v58 }
 0x312   :  { %v5202_v48 = vsub.f32 %v5177_v45, %v681_v59 }
 0x314   :  { %v689_v61 = vmul.f32 %v5202_v48, %v5202_v48 }
 0x316   :  { %v697_v62 = vsel %vm7146_vm0, %v689_v61, 0.0 }
 0x317   :  { %v678_v35 = vpop.xlane.xlu2 %677  ;;  %698 = vadd.xlane.f32.xlu2 %v697_v62  ;;  %v926_v62 = vld [vmem:[%s4785_s27 + $0x30] sm:$0xff] }
 0x318   :  { %v682_v43 = vmul.f32 %v678_v35, %v4922_v14  ;;  %4297 = vmatpush.xpose.msk.msrb.mxu3 %vm7146_vm0, %v926_v62 }
 0x31a   :  { %v5209_v63 = vsub.f32 %v5182_v29, %v682_v43 }
 0x31c   :  { %v690_v4 = vmul.f32 %v5209_v63, %v5209_v63  ;;  %4298 = vmatpush.xpose.msk.msrb.mxu3 %vm7146_vm0, %v925_v55 }
 0x31e   :  { %v700_v6 = vsel %vm7146_vm0, %v690_v4, 0.0 }
 0x31f   :  { %701 = vadd.xlane.f32.xlu0 %v700_v6 }
 0x320   :  { %4299 = vmatpush.xpose.msk.msrb.mxu3 %vm7146_vm0, %v924_v25 }
 0x324   :  { %4300 = vmatpush.xpose.msk.msrb.mxu3 %vm7146_vm0, %v923_v57 }
 0x328   :  { %4301 = vmatpush.xpose.msk.msrb.mxu3 %vm7146_vm0, %v922_v18 }
 0x32c   :  { %4302 = vmatpush.xpose.msk.msrb.mxu3 %vm7146_vm0, %v921_v36 }
 0x37a   :  { %v693_v37 = vpop.xlane.xlu0 %692 }
 0x37b   :  { %v703_v39 = vmul.f32 %v693_v37, %v4922_v14 }
 0x37d   :  { %v707_v54 = vadd.f32 1e-05, %v703_v39 }
 0x37f   :  { %4500 = vrsqrt.f32 %v707_v54  ;;  %vm717_vm10 = vweird.f32 %v707_v54 }
 0x382   :  { %v696_v51 = vpop.xlane.xlu1 %695 }
 0x383   :  { %v704_v20 = vmul.f32 %v696_v51, %v4922_v14  ;;  %v920_v51 = vld [vmem:[%s4785_s27] sm:$0xff]  ;;  %s4688_s27 = smov 65  }
 0x384   :  { %4303 = vmatpush.xpose.msk.msrb.mxu3 %vm7146_vm0, %v920_v51 }
 0x385   :  { %v4501_v42 = vpop.eup %4500  ;;  %v708_v10 = vadd.f32 1e-05, %v704_v20  ;;  %v1025_v20 = vlaneseq }
 0x386   :  { %v712_v1 = vmul.f32 %v4501_v42, %v707_v54  ;;  %vm718_vm9 = vweird.f32 %v4501_v42 }
 0x387   :  { %4502 = vrsqrt.f32 %v708_v10  ;;  %vm719_vm11 = vmor %vm717_vm10, %vm718_vm9  ;;  %vm727_vm13 = vweird.f32 %v708_v10 }
 0x388   :  { %v713_v41 = vmul.f32 %v4501_v42, %v712_v1  ;;  %v4442_v1 = vld [vmem:[%s7198_s0] ss:$0 sm:$0xff]  ;;  %s7232_s0 = sld [smem:[#allocation15_spill]] }
 0x38a   :  { %v714_v46 = vmul.f32 0.5, %v713_v41  ;;  %v699_v19 = vpop.xlane.xlu2 %698 }
 0x38b   :  { %v705_v5 = vmul.f32 %v699_v19, %v4922_v14 }
 0x38c   :  { %v715_v47 = vsub.f32 1.5, %v714_v46 }
 0x38d   :  { %v4503_v17 = vpop.eup %4502  ;;  %v709_v44 = vadd.f32 1e-05, %v705_v5  ;;  %v5296_v5 = vand.u32 127, %v1025_v20 }
 0x38e   :  { %v716_v49 = vmul.f32 %v4501_v42, %v715_v47  ;;  %v722_v52 = vmul.f32 %v4503_v17, %v708_v10  ;;  %vm728_vm12 = vweird.f32 %v4503_v17 }
 0x38f   :  { %4504 = vrsqrt.f32 %v709_v44  ;;  %vm729_vm14 = vmor %vm727_vm13, %vm728_vm12  ;;  %vm737_vm1 = vweird.f32 %v709_v44 }
 0x390   :  { %v720_v7 = vsel %vm719_vm11, %v4501_v42, %v716_v49  ;;  %v723_v2 = vmul.f32 %v4503_v17, %v722_v52  ;;  %v4440_v42 = vld [vmem:[%s4760_s24] ss:$0 sm:$0xff]  ;;  %s4685_s24 = smov 120  }
 0x391   :  { %v751_v56 = vmul.f32 %v720_v7, %v5188_v0  ;;  %v4443_v52 = vld [vmem:[%s7199_s5] ss:$0 sm:$0xff]  ;;  %s7233_s5 = sld [smem:[#allocation16_spill]] }
 0x392   :  { %v724_v50 = vmul.f32 0.5, %v723_v2  ;;  %v702_v59 = vpop.xlane.xlu0 %701 }
 0x393   :  { %v758_v61 = vmul.f32 %v5242_v53, %v751_v56  ;;  %v706_v35 = vmul.f32 %v702_v59, %v4922_v14 }
 0x394   :  { %v725_v43 = vsub.f32 1.5, %v724_v50 }
 0x395   :  { %v765_v4 = vadd.f32 %v5246_v3, %v758_v61  ;;  %v4505_v6 = vpop.eup %4504  ;;  %v710_v0 = vadd.f32 1e-05, %v706_v35 }
 0x396   :  { %v726_v8 = vmul.f32 %v4503_v17, %v725_v43  ;;  %v732_v9 = vmul.f32 %v4505_v6, %v709_v44  ;;  %vm738_vm15 = vweird.f32 %v4505_v6  ;;  %v1326_v44 = vshra.s32 %v5296_v5, 4 }
 0x397   :  { %4284 = vmatmul.msk.f32.vlgmr.msrb.gmra.mxu0 %vm7146_vm0, %v765_v4  ;;  %4288 = vmatmul.msk.f32.vlgmr.msra.gmra.mxu1 %vm7146_vm0, %v765_v4  ;;  %4506 = vrsqrt.f32 %v710_v0  ;;  %vm739_vm2 = vmor %vm737_vm1, %vm738_vm15  ;;  %vm747_vm4 = vweird.f32 %v710_v0 }
 0x398   :  { %4292 = vmatmul.msk.f32.vlgmr.msrb.gmra.mxu2 %vm7146_vm0, %v765_v4  ;;  %v733_v11 = vmul.f32 %v4505_v6, %v732_v9  ;;  %v730_v60 = vsel %vm729_vm14, %v4503_v17, %v726_v8  ;;  %vm997_vm14 = vcmask 1046528  }
 0x399   :  { %v752_v12 = vmul.f32 %v730_v60, %v5195_v30 }
 0x39a   :  { %v734_v15 = vmul.f32 0.5, %v733_v11 }
 0x39b   :  { %v759_v21 = vmul.f32 %v5242_v53, %v752_v12 }
 0x39c   :  { %v735_v22 = vsub.f32 1.5, %v734_v15 }
 0x39d   :  { %v4507_v23 = vpop.eup %4506  ;;  %v766_v16 = vadd.f32 %v5246_v3, %v759_v21 }
 0x39e   :  { %v736_v24 = vmul.f32 %v4505_v6, %v735_v22  ;;  %v742_v26 = vmul.f32 %v4507_v23, %v710_v0  ;;  %vm748_vm3 = vweird.f32 %v4507_v23 }
 0x39f   :  { %4285 = vmatmul.msk.f32.gmra.mxu0 %vm7146_vm0, %v766_v16  ;;  %4289 = vmatmul.msk.f32.gmra.mxu1 %vm7146_vm0, %v766_v16  ;;  %vm749_vm5 = vmor %vm747_vm4, %vm748_vm3 }
 0x3a0   :  { %v743_v30 = vmul.f32 %v4507_v23, %v742_v26  ;;  %4293 = vmatmul.msk.f32.gmra.mxu2 %vm7146_vm0, %v766_v16  ;;  %v740_v27 = vsel %vm739_vm2, %v4505_v6, %v736_v24 }
 0x3a1   :  { %v753_v31 = vmul.f32 %v740_v27, %v5202_v48 }
 0x3a2   :  { %v744_v32 = vmul.f32 0.5, %v743_v30 }
 0x3a3   :  { %v760_v33 = vmul.f32 %v5242_v53, %v753_v31 }
 0x3a4   :  { %v745_v38 = vsub.f32 1.5, %v744_v32 }
 0x3a5   :  { %v767_v34 = vadd.f32 %v5246_v3, %v760_v33 }
 0x3a6   :  { %v746_v28 = vmul.f32 %v4507_v23, %v745_v38 }
 0x3a7   :  { %4286 = vmatmul.msk.f32.gmra.mxu0 %vm7146_vm0, %v767_v34  ;;  %4290 = vmatmul.msk.f32.gmra.mxu1 %vm7146_vm0, %v767_v34 }
 0x3a8   :  { %4294 = vmatmul.msk.f32.gmra.mxu2 %vm7146_vm0, %v767_v34  ;;  %v750_v48 = vsel %vm749_vm5, %v4507_v23, %v746_v28 }
 0x3a9   :  { %v754_v37 = vmul.f32 %v750_v48, %v5209_v63  ;;  %v5290_v63 = vshrl.u32 %v1025_v20, 7 }
 0x3ab   :  { %v761_v39 = vmul.f32 %v5242_v53, %v754_v37  ;;  %v1317_v19 = vadd.s32 56, %v5290_v63  ;;  %v1316_v49 = vadd.s32 48, %v5290_v63  ;;  %v1314_v4 = vadd.s32 32, %v5290_v63 }
 0x3ac   :  { %v5327_v11 = vadd.s32 24, %v5290_v63  ;;  %v5341_v22 = vadd.s32 16, %v5290_v63  ;;  %v5353_v27 = vadd.s32 8, %v5290_v63  ;;  %v1318_v51 = vshra.s32 %v5290_v63, 4 }
 0x3ad   :  { %v768_v54 = vadd.f32 %v5246_v3, %v761_v39  ;;  %v1325_v17 = vshra.s32 %v1317_v19, 4  ;;  %v1324_v2 = vshra.s32 %v1316_v49, 4  ;;  %v1315_v3 = vadd.s32 40, %v5290_v63 }
 0x3ae   :  { %v1322_v55 = vshra.s32 %v1314_v4, 4  ;;  %v1321_v21 = vshra.s32 %v5327_v11, 4  ;;  %v1320_v30 = vshra.s32 %v5341_v22, 4  ;;  %v1319_v36 = vshra.s32 %v5353_v27, 4 }
 0x3af   :  { %4287 = vmatmul.msk.f32.gmra.mxu0 %vm7146_vm0, %v768_v54  ;;  %4291 = vmatmul.msk.f32.gmra.mxu1 %vm7146_vm0, %v768_v54  ;;  %vm5302_vm6 = vcmp.eq.s32.totalorder %v1325_v17, %v1326_v44  ;;  %vm5313_vm7 = vcmp.eq.s32.totalorder %v1324_v2, %v1326_v44  ;;  %v1323_v43 = vshra.s32 %v1315_v3, 4  ;;  %vm5384_vm13 = vcmp.eq.s32.totalorder %v1318_v51, %v1326_v44 }
 0x3b0   :  { %4295 = vmatmul.msk.f32.gmra.mxu2 %vm7146_vm0, %v768_v54  ;;  %vm5335_vm9 = vcmp.eq.s32.totalorder %v1322_v55, %v1326_v44  ;;  %vm5347_vm10 = vcmp.eq.s32.totalorder %v1321_v21, %v1326_v44  ;;  %vm5361_vm11 = vcmp.eq.s32.totalorder %v1320_v30, %v1326_v44  ;;  %vm5373_vm12 = vcmp.eq.s32.totalorder %v1319_v36, %v1326_v44 }
 0x3b1   :  { %vm5322_vm8 = vcmp.eq.s32.totalorder %v1323_v43, %v1326_v44  ;;  %v5488_v36 = vand.u32 15, %v5341_v22  ;;  %v5497_v22 = vand.u32 15, %v5327_v11 }
 0x3b3   :  { %v1036_v54 = vadd.s32 1, %v5488_v36  ;;  %7220 = vst [vmem:[#allocation30_spill] sm:$0xff] %v5497_v22 }
 0x414   :  { %v810_v10 = vpop.f32.mrf.mxu0  ;;  %v851_v41 = vpop.f32.mrf.mxu1 }
 0x415   :  { %v5292_v46 = vadd.f32 %v4440_v42, %v810_v10  ;;  %v852_v59 = vadd.f32 %v4443_v52, %v851_v41  ;;  %v4441_v10 = vld [vmem:[%s7210_s13] ss:$0 sm:$0xff]  ;;  %s7234_s13 = sld [smem:[#allocation20_spill]] }
 0x416   :  { %v4444_v41 = vld [vmem:[%s7213_s17] ss:$0 sm:$0xff]  ;;  %s7295_s17 = sld [smem:[#allocation17_spill]] }
 0x417   :  { %v916_v47 = vadd.f32 %v4442_v1, %v5292_v46  ;;  %v1341_v6 = vsel %vm5313_vm7, %v852_v59, 0.0  ;;  %v1339_v16 = vsel %vm5335_vm9, %v852_v59, 0.0  ;;  %v1337_v48 = vsel %vm5361_vm11, %v852_v59, 0.0 }
 0x418   :  { %v908_v49 = vadd.f32 %v4441_v10, %v5292_v46 }
 0x419   :  { %4304 = vmatmul.msk.f32.vlgmr.msrb.gmra.mxu3 %vm7146_vm0, %v916_v47  ;;  %v1335_v47 = vsel %vm5384_vm13, %v852_v59, 0.0 }
 0x41b   :  { %v892_v23 = vpop.f32.mrf.mxu2 }
 0x41c   :  { %v813_v53 = vpop.f32.mrf.mxu0  ;;  %v854_v7 = vpop.f32.mrf.mxu1  ;;  %v893_v44 = vadd.f32 %v4444_v41, %v892_v23 }
 0x41d   :  { %v5307_v58 = vadd.f32 %v4440_v42, %v813_v53  ;;  %v855_v50 = vadd.f32 %v4443_v52, %v854_v7 }
 0x41f   :  { %v917_v61 = vadd.f32 %v4442_v1, %v5307_v58  ;;  %v1342_v62 = vsel %vm5302_vm6, %v855_v50, 0.0  ;;  %v1340_v15 = vsel %vm5322_vm8, %v855_v50, 0.0  ;;  %v1338_v38 = vsel %vm5347_vm10, %v855_v50, 0.0 }
 0x420   :  { %4308 = vmatpush.xpose.msk.msra.mxu0 %vm7146_vm0, %v1342_v62  ;;  %v1336_v20 = vsel %vm5373_vm12, %v855_v50, 0.0  ;;  %v909_v7 = vadd.f32 %v4441_v10, %v5307_v58 }
 0x421   :  { %4305 = vmatmul.msk.f32.gmra.mxu3 %vm7146_vm0, %v917_v61 }
 0x423   :  { %v895_v39 = vpop.f32.mrf.mxu2 }
 0x424   :  { %v816_v0 = vpop.f32.mrf.mxu0  ;;  %v857_v8 = vpop.f32.mrf.mxu1  ;;  %4309 = vmatpush.xpose.msk.msra.mxu0 %vm7146_vm0, %v1341_v6  ;;  %v896_v19 = vadd.f32 %v4444_v41, %v895_v39 }
 0x425   :  { %v5329_v60 = vadd.f32 %v4440_v42, %v816_v0  ;;  %v858_v18 = vadd.f32 %v4443_v52, %v857_v8 }
 0x427   :  { %v918_v12 = vadd.f32 %v4442_v1, %v5329_v60  ;;  %v1402_v37 = vsel %vm5313_vm7, %v858_v18, 0.0  ;;  %v1400_v17 = vsel %vm5335_vm9, %v858_v18, 0.0  ;;  %v1398_v46 = vsel %vm5361_vm11, %v858_v18, 0.0 }
 0x428   :  { %4310 = vmatpush.xpose.msk.msra.mxu0 %vm7146_vm0, %v1340_v15  ;;  %v1396_v58 = vsel %vm5384_vm13, %v858_v18, 0.0  ;;  %v910_v59 = vadd.f32 %v4441_v10, %v5329_v60  ;;  %v5472_v18 = vand.u32 15, %v5353_v27 }
 0x429   :  { %4306 = vmatmul.msk.f32.gmra.mxu3 %vm7146_vm0, %v918_v12 }
 0x42a   :  { %7218 = vst [vmem:[#allocation28_spill] sm:$0xff] %v5472_v18  ;;  %v5481_v28 = vadd.s32 1, %v5472_v18 }
 0x42c   :  { %v819_v24 = vpop.f32.mrf.mxu0  ;;  %v860_v26 = vpop.f32.mrf.mxu1  ;;  %4311 = vmatpush.xpose.msk.msra.mxu0 %vm7146_vm0, %v1339_v16  ;;  %7219 = vst [vmem:[#allocation29_spill] sm:$0xff] %v5481_v28 }
 0x42d   :  { %v820_v31 = vadd.f32 %v4440_v42, %v819_v24  ;;  %v861_v32 = vadd.f32 %v4443_v52, %v860_v26  ;;  %v898_v52 = vpop.f32.mrf.mxu2 }
 0x42e   :  { %v899_v61 = vadd.f32 %v4444_v41, %v898_v52 }
 0x42f   :  { %v919_v33 = vadd.f32 %v4442_v1, %v820_v31  ;;  %v1403_v34 = vsel %vm5302_vm6, %v861_v32, 0.0  ;;  %v1401_v42 = vsel %vm5322_vm8, %v861_v32, 0.0  ;;  %v1399_v53 = vsel %vm5347_vm10, %v861_v32, 0.0 }
 0x430   :  { %4312 = vmatpush.xpose.msk.msra.mxu0 %vm7146_vm0, %v1338_v38  ;;  %4318 = vmatpush.xpose.msk.msrb.mxu1 %vm7146_vm0, %v1403_v34  ;;  %v1397_v2 = vsel %vm5373_vm12, %v861_v32, 0.0  ;;  %v911_v62 = vadd.f32 %v4441_v10, %v820_v31  ;;  %v5468_v31 = vand.u32 15, %v5290_v63  ;;  %v5477_v38 = vand.u32 15, %v5296_v5 }
 0x431   :  { %4307 = vmatmul.msk.f32.gmra.mxu3 %vm7146_vm0, %v919_v33  ;;  %v5485_v63 = vand.u32 15, %v5481_v28 }
 0x432   :  { %v1034_v32 = vadd.s32 1, %v5468_v31  ;;  %vm1053_vm15 = vcmp.ge.s32.totalorder %v5477_v38, 1  ;;  %vm1099_vm5 = vcmp.ge.s32.totalorder %v5477_v38, 2 }
 0x433   :  { %v1043_v39 = vand.u32 1, %v5485_v63 }
 0x434   :  { %4313 = vmatpush.xpose.msk.msra.mxu0 %vm7146_vm0, %v1337_v48  ;;  %4319 = vmatpush.xpose.msk.msrb.mxu1 %vm7146_vm0, %v1402_v37  ;;  %v5474_v33 = vand.u32 15, %v1034_v32 }
 0x435   :  { %v901_v3 = vpop.f32.mrf.mxu2  ;;  %vm1047_vm2 = vcmp.ne.s32.totalorder %v1043_v39, 0 }
 0x436   :  { %v902_v50 = vadd.f32 %v4444_v41, %v901_v3  ;;  %v1042_v34 = vand.u32 1, %v5474_v33  ;;  %v1091_v3 = vand.u32 2, %v5474_v33 }
 0x438   :  { %4314 = vmatpush.xpose.msk.msra.mxu0 %vm7146_vm0, %v1336_v20  ;;  %4320 = vmatpush.xpose.msk.msrb.mxu1 %vm7146_vm0, %v1401_v42  ;;  %vm1046_vm1 = vcmp.ne.s32.totalorder %v1042_v34, 0  ;;  %v5499_v42 = vand.u32 15, %v1036_v54 }
 0x43a   :  { %v1044_v41 = vand.u32 1, %v5499_v42 }
 0x43c   :  { %4315 = vmatpush.xpose.msk.msra.mxu0 %vm7146_vm0, %v1335_v47  ;;  %4321 = vmatpush.xpose.msk.msrb.mxu1 %vm7146_vm0, %v1400_v17  ;;  %vm1048_vm3 = vcmp.ne.s32.totalorder %v1044_v41, 0 }
 0x43f   :  { %4316 = vmatmul.msk.f32.vlgmr.msra.gmra.mxu0 %vm7146_vm0, %v908_v49 }
 0x440   :  { %4328 = vmatpush.msk.msrb.mxu0 %vm5302_vm6, %v896_v19  ;;  %4322 = vmatpush.xpose.msk.msrb.mxu1 %vm7146_vm0, %v1399_v53 }
 0x442   :  { %4329 = vmatpush.msk.msrb.mxu0 %vm5313_vm7, %v893_v44 }
 0x444   :  { %4330 = vmatpush.msk.msrb.mxu0 %vm5322_vm8, %v896_v19  ;;  %4323 = vmatpush.xpose.msk.msrb.mxu1 %vm7146_vm0, %v1398_v46 }
 0x446   :  { %4331 = vmatpush.msk.msrb.mxu0 %vm5335_vm9, %v893_v44 }
 0x447   :  { %4317 = vmatmul.msk.f32.gmra.mxu0 %vm7146_vm0, %v909_v7 }
 0x448   :  { %4332 = vmatpush.msk.msrb.mxu0 %vm5347_vm10, %v896_v19  ;;  %4324 = vmatpush.xpose.msk.msrb.mxu1 %vm7146_vm0, %v1397_v2 }
 0x44a   :  { %4333 = vmatpush.msk.msrb.mxu0 %vm5361_vm11, %v893_v44 }
 0x44c   :  { %4334 = vmatpush.msk.msrb.mxu0 %vm5373_vm12, %v896_v19  ;;  %4325 = vmatpush.xpose.msk.msrb.mxu1 %vm7146_vm0, %v1396_v58  ;;  %v5507_v19 = vadd.s32 1, %v5497_v22 }
 0x44e   :  { %4335 = vmatpush.msk.msrb.mxu0 %vm5384_vm13, %v893_v44  ;;  %7221 = vst [vmem:[#allocation31_spill] sm:$0xff] %v5507_v19  ;;  %v5510_v11 = vand.u32 15, %v5507_v19 }
 0x44f   :  { %4326 = vmatmul.msk.f32.vlgmr.msrb.gmra.mxu1 %vm7146_vm0, %v910_v59 }
 0x450   :  { %4338 = vmatpush.msk.msra.mxu1 %vm5302_vm6, %v902_v50  ;;  %v1045_v52 = vand.u32 1, %v5510_v11  ;;  %vm1095_vm6 = vcmp.ne.s32.totalorder %v1091_v3, 0 }
 0x452   :  { %4339 = vmatpush.msk.msra.mxu1 %vm5313_vm7, %v899_v61  ;;  %vm1049_vm4 = vcmp.ne.s32.totalorder %v1045_v52, 0 }
 0x454   :  { %4340 = vmatpush.msk.msra.mxu1 %vm5322_vm8, %v902_v50 }
 0x456   :  { %4341 = vmatpush.msk.msra.mxu1 %vm5335_vm9, %v899_v61 }
 0x457   :  { %4327 = vmatmul.msk.f32.gmra.mxu1 %vm7146_vm0, %v911_v62  ;;  %v1092_v62 = vand.u32 2, %v5485_v63 }
 0x458   :  { %4342 = vmatpush.msk.msra.mxu1 %vm5347_vm10, %v902_v50  ;;  %vm1145_vm10 = vcmp.ge.s32.totalorder %v5477_v38, 4 }
 0x459   :  { %vm1096_vm7 = vcmp.ne.s32.totalorder %v1092_v62, 0  ;;  %v1186_v62 = vand.u32 8, %v5510_v11 }
 0x45a   :  { %4343 = vmatpush.msk.msra.mxu1 %vm5361_vm11, %v899_v61 }
 0x45c   :  { %4344 = vmatpush.msk.msra.mxu1 %vm5373_vm12, %v902_v50 }
 0x45e   :  { %4345 = vmatpush.msk.msra.mxu1 %vm5384_vm13, %v899_v61 }
 0x49c   :  { %v981_v56 = vpop.f32.mrf.mxu3 }
 0x49d   :  { %v998_v43 = vrot.slane %v981_v56, 1 }
 0x4a4   :  { %v984_v35 = vpop.f32.mrf.mxu3 }
 0x4a5   :  { %v999_v4 = vrot.slane %v984_v35, 1 }
 0x4a7   :  { %v1000_v6 = vsel %vm997_vm14, %v998_v43, %v999_v4 }
 0x4a8   :  { %1009 = vrot.lane.b32.xlu1 %v1000_v6, %s4678_s21  ;;  %v1093_v6 = vand.u32 2, %v5499_v42 }
 0x4aa   :  { %vm1097_vm8 = vcmp.ne.s32.totalorder %v1093_v6, 0  ;;  %v1294_v6 = vsub.s32 %v5477_v38, %v5468_v31 }
 0x4ac   :  { %v987_v0 = vpop.f32.mrf.mxu3 }
 0x4ad   :  { %v1001_v8 = vrot.slane %v987_v0, 1 }
 0x4af   :  { %v1002_v9 = vsel %vm997_vm14, %v999_v4, %v1001_v8 }
 0x4b0   :  { %1011 = vrot.lane.b32.xlu2 %v1002_v9, %s4678_s21 }
 0x4b4   :  { %v990_v55 = vpop.f32.mrf.mxu3 }
 0x4b5   :  { %v1003_v60 = vrot.slane %v990_v55, 1 }
 0x4b7   :  { %v1007_v12 = vsel %vm997_vm14, %v1003_v60, %v998_v43  ;;  %v1004_v15 = vsel %vm997_vm14, %v1001_v8, %v1003_v60  ;;  %v1094_v60 = vand.u32 2, %v5510_v11 }
 0x4b8   :  { %1015 = vrot.lane.b32.xlu2 %v1007_v12, %s4678_s21  ;;  %1013 = vrot.lane.b32.xlu0 %v1004_v15, %s4678_s21 }
 0x4b9   :  { %vm1098_vm9 = vcmp.ne.s32.totalorder %v1094_v60, 0 }
 0x50a   :  { %v1012_v25 = vpop.permute.xlu2 %1011 }
 0x50b   :  { %v1022_v21 = vsel %vm7146_vm0, %v984_v35, %v1012_v25 }
 0x50c   :  { %1060 = vrot.lane.b32.xlu2 %v1022_v21, %s4679_s25 }
 0x512   :  { %v1016_v24 = vpop.permute.xlu2 %1015 }
 0x513   :  { %v1024_v57 = vsel %vm7146_vm0, %v990_v55, %v1016_v24 }
 0x51a   :  { %v1010_v23 = vpop.permute.xlu1 %1009 }
 0x51b   :  { %v1021_v16 = vsel %vm7146_vm0, %v981_v56, %v1010_v23  ;;  %v1137_v23 = vand.u32 4, %v5474_v33 }
 0x51c   :  { %1058 = vrot.lane.b32.xlu1 %v1021_v16, %s4679_s25  ;;  %1071 = vrot.lane.b32.xlu0 %v1021_v16, %s4680_s29 }
 0x51d   :  { %vm1141_vm11 = vcmp.ne.s32.totalorder %v1137_v23, 0 }
 0x524   :  { %1073 = vrot.lane.b32.xlu1 %v1022_v21, %s4680_s29 }
 0x52a   :  { %v1014_v26 = vpop.permute.xlu0 %1013 }
 0x52b   :  { %v1023_v30 = vsel %vm7146_vm0, %v987_v0, %v1014_v26 }
 0x52c   :  { %1064 = vrot.lane.b32.xlu1 %v1024_v57, %s4679_s25  ;;  %1075 = vrot.lane.b32.xlu2 %v1023_v30, %s4680_s29 }
 0x52d   :  { %1062 = vrot.lane.b32.xlu0 %v1023_v30, %s4679_s25 }
 0x535   :  { %1077 = vrot.lane.b32.xlu0 %v1024_v57, %s4680_s29 }
 0x566   :  { %v1061_v51 = vpop.permute.xlu2 %1060 }
 0x586   :  { %v1076_v47 = vpop.permute.xlu2 %1075 }
 0x58e   :  { %v1059_v27 = vpop.permute.xlu1 %1058  ;;  %v1072_v48 = vpop.permute.xlu0 %1071 }
 0x58f   :  { %v1083_v5 = vsel %vm1053_vm15, %v1059_v27, %v1072_v48 }
 0x590   :  { %v1087_v37 = vsel %vm1046_vm1, %v1083_v5, %v1021_v16  ;;  %v1139_v5 = vand.u32 4, %v5499_v42 }
 0x591   :  { %1117 = vrot.lane.b32.xlu1 %v1087_v37, %s4681_s3  ;;  %1104 = vrot.lane.b32.xlu2 %v1087_v37, %s4682_s8 }
 0x592   :  { %vm1143_vm13 = vcmp.ne.s32.totalorder %v1139_v5, 0 }
 0x596   :  { %v1074_v20 = vpop.permute.xlu1 %1073 }
 0x597   :  { %v1084_v1 = vsel %vm1053_vm15, %v1061_v51, %v1074_v20  ;;  %v1140_v20 = vand.u32 4, %v5510_v11 }
 0x598   :  { %v1088_v10 = vsel %vm1047_vm2, %v1084_v1, %v1022_v21  ;;  %vm1191_vm2 = vcmp.ge.s32.totalorder %v5477_v38, 8 }
 0x599   :  { %1106 = vrot.lane.b32.xlu0 %v1088_v10, %s4682_s8  ;;  %1119 = vrot.lane.b32.xlu2 %v1088_v10, %s4681_s3  ;;  %vm1144_vm1 = vcmp.ne.s32.totalorder %v1140_v20, 0 }
 0x59e   :  { %v1065_v53 = vpop.permute.xlu1 %1064 }
 0x59f   :  { %v1063_v17 = vpop.permute.xlu0 %1062 }
 0x5a0   :  { %v1085_v49 = vsel %vm1053_vm15, %v1063_v17, %v1076_v47  ;;  %v1183_v17 = vand.u32 8, %v5474_v33 }
 0x5a1   :  { %v1089_v44 = vsel %vm1048_vm3, %v1085_v49, %v1023_v30  ;;  %v1138_v30 = vand.u32 4, %v5485_v63 }
 0x5a2   :  { %1121 = vrot.lane.b32.xlu0 %v1089_v44, %s4681_s3  ;;  %1108 = vrot.lane.b32.xlu1 %v1089_v44, %s4682_s8  ;;  %vm1187_vm3 = vcmp.ne.s32.totalorder %v1183_v17, 0 }
 0x5a3   :  { %vm1142_vm12 = vcmp.ne.s32.totalorder %v1138_v30, 0 }
 0x5a7   :  { %v1078_v46 = vpop.permute.xlu0 %1077 }
 0x5a8   :  { %v1086_v7 = vsel %vm1053_vm15, %v1065_v53, %v1078_v46  ;;  %v1184_v46 = vand.u32 8, %v5485_v63  ;;  %v1185_v63 = vand.u32 8, %v5499_v42 }
 0x5a9   :  { %v1090_v2 = vsel %vm1049_vm4, %v1086_v7, %v1024_v57 }
 0x5aa   :  { %1123 = vrot.lane.b32.xlu1 %v1090_v2, %s4681_s3  ;;  %1110 = vrot.lane.b32.xlu2 %v1090_v2, %s4682_s8  ;;  %vm1188_vm4 = vcmp.ne.s32.totalorder %v1184_v46, 0 }
 0x5eb   :  { %v1105_v50 = vpop.permute.xlu2 %1104 }
 0x5f3   :  { %v1120_v56 = vpop.permute.xlu2 %1119 }
 0x603   :  { %v1118_v58 = vpop.permute.xlu1 %1117 }
 0x604   :  { %v1129_v59 = vsel %vm1099_vm5, %v1105_v50, %v1118_v58  ;;  %v1111_v12 = vpop.permute.xlu2 %1110 }
 0x605   :  { %v1133_v61 = vsel %vm1095_vm6, %v1129_v59, %v1087_v37  ;;  %vm1189_vm6 = vcmp.ne.s32.totalorder %v1185_v63, 0 }
 0x606   :  { %1150 = vrot.lane.b32.xlu0 %v1133_v61, %s4683_s14  ;;  %1163 = vrot.lane.b32.xlu2 %v1133_v61, %s4684_s19 }
 0x60b   :  { %v1107_v35 = vpop.permute.xlu0 %1106 }
 0x60c   :  { %v1130_v43 = vsel %vm1099_vm5, %v1107_v35, %v1120_v56 }
 0x60d   :  { %v1134_v4 = vsel %vm1096_vm7, %v1130_v43, %v1088_v10  ;;  %vm1190_vm7 = vcmp.ne.s32.totalorder %v1186_v62, 0 }
 0x60e   :  { %1165 = vrot.lane.b32.xlu0 %v1134_v4, %s4684_s19  ;;  %1152 = vrot.lane.b32.xlu1 %v1134_v4, %s4683_s14 }
 0x614   :  { %v1109_v0 = vpop.permute.xlu1 %1108  ;;  %v1122_v8 = vpop.permute.xlu0 %1121 }
 0x615   :  { %v1131_v9 = vsel %vm1099_vm5, %v1109_v0, %v1122_v8 }
 0x616   :  { %v1135_v55 = vsel %vm1097_vm8, %v1131_v9, %v1089_v44  ;;  %vm1070_vm8 = vcmask 7168  }
 0x617   :  { %1167 = vrot.lane.b32.xlu1 %v1135_v55, %s4684_s19  ;;  %1154 = vrot.lane.b32.xlu2 %v1135_v55, %s4683_s14 }
 0x61c   :  { %v1124_v15 = vpop.permute.xlu1 %1123 }
 0x61d   :  { %v1132_v25 = vsel %vm1099_vm5, %v1111_v12, %v1124_v15 }
 0x61e   :  { %v1136_v21 = vsel %vm1098_vm9, %v1132_v25, %v1090_v2  ;;  %vm1285_vm9 = vcmask 400384   ;;  %v1465_v25 = vld [vmem:[%s7222_s22] sm:$0xff] }
 0x61f   :  { %1156 = vrot.lane.b32.xlu0 %v1136_v21, %s4683_s14  ;;  %1169 = vrot.lane.b32.xlu2 %v1136_v21, %s4684_s19 }
 0x660   :  { %v1164_v16 = vpop.permute.xlu2 %1163 }
 0x671   :  { %v1155_v37 = vpop.permute.xlu2 %1154 }
 0x678   :  { %v1151_v24 = vpop.permute.xlu0 %1150 }
 0x679   :  { %v1175_v26 = vsel %vm1145_vm10, %v1151_v24, %v1164_v16  ;;  %v1170_v1 = vpop.permute.xlu2 %1169 }
 0x67a   :  { %v1179_v57 = vsel %vm1141_vm11, %v1175_v26, %v1133_v61  ;;  %vm1302_vm11 = vcmp.eq.s32.totalorder %v1294_v6, 1 }
 0x67b   :  { %1209 = vrot.lane.b32.xlu0 %v1179_v57, %s4685_s24  ;;  %1196 = vrot.lane.b32.xlu1 %v1179_v57, %s4686_s30 }
 0x680   :  { %v1153_v32 = vpop.permute.xlu1 %1152  ;;  %v1166_v34 = vpop.permute.xlu0 %1165 }
 0x681   :  { %v1176_v27 = vsel %vm1145_vm10, %v1153_v32, %v1166_v34  ;;  %v1295_v32 = vsub.s32 %v5477_v38, %v5472_v18 }
 0x682   :  { %v1180_v48 = vsel %vm1142_vm12, %v1176_v27, %v1134_v4  ;;  %vm1298_vm12 = vcmp.le.s32.totalorder %v1294_v6, 0 }
 0x683   :  { %1211 = vrot.lane.b32.xlu1 %v1180_v48, %s4685_s24  ;;  %1198 = vrot.lane.b32.xlu2 %v1180_v48, %s4686_s30 }
 0x689   :  { %v1168_v39 = vpop.permute.xlu1 %1167 }
 0x68a   :  { %v1177_v54 = vsel %vm1145_vm10, %v1155_v37, %v1168_v39 }
 0x68b   :  { %v1181_v51 = vsel %vm1143_vm13, %v1177_v54, %v1135_v55  ;;  %vm1469_vm13 = vcmp.gt.f32.partialorder %v1465_v25, 0.5 }
 0x68c   :  { %1200 = vrot.lane.b32.xlu0 %v1181_v51, %s4686_s30  ;;  %1213 = vrot.lane.b32.xlu2 %v1181_v51, %s4685_s24 }
 0x691   :  { %v1157_v10 = vpop.permute.xlu0 %1156 }
 0x692   :  { %v1178_v41 = vsel %vm1145_vm10, %v1157_v10, %v1170_v1 }
 0x693   :  { %v1182_v47 = vsel %vm1144_vm1, %v1178_v41, %v1136_v21  ;;  %v1390_v21 = vpop.f32.mrf.mxu0  ;;  %vm1303_vm1 = vcmp.eq.s32.totalorder %v1295_v32, 1  ;;  %v1296_v41 = vsub.s32 %v5477_v38, %v5488_v36 }
 0x694   :  { %1215 = vrot.lane.b32.xlu0 %v1182_v47, %s4685_s24  ;;  %1202 = vrot.lane.b32.xlu1 %v1182_v47, %s4686_s30 }
 0x69b   :  { %v1393_v20 = vpop.f32.mrf.mxu0 }
 0x6dd   :  { %v1199_v33 = vpop.permute.xlu2 %1198 }
 0x6e6   :  { %v1214_v50 = vpop.permute.xlu2 %1213 }
 0x6ed   :  { %v1197_v49 = vpop.permute.xlu1 %1196  ;;  %v1210_v44 = vpop.permute.xlu0 %1209 }
 0x6ee   :  { %v1221_v52 = vsel %vm1191_vm2, %v1197_v49, %v1210_v44 }
 0x6ef   :  { %v1225_v53 = vsel %vm1187_vm3, %v1221_v52, %v1179_v57  ;;  %vm1299_vm3 = vcmp.le.s32.totalorder %v1295_v32, 0 }
 0x6f0   :  { %1261 = vrot.lane.b32.xlu0 %v1225_v53, %s4687_s12  ;;  %1245 = vrot.lane.b32.xlu1 %v1225_v53, %s4688_s27 }
 0x6f1   :  { %1233 = vrot.lane.b32.xlu2 %v1225_v53, %s4679_s25 }
 0x6f5   :  { %v1212_v7 = vpop.permute.xlu1 %1211 }
 0x6f6   :  { %v1222_v2 = vsel %vm1191_vm2, %v1199_v33, %v1212_v7  ;;  %v1451_v33 = vpop.f32.mrf.mxu1 }
 0x6f7   :  { %v5573_v3 = vsel %vm1188_vm4, %v1222_v2, %v1180_v48 }
 0x6f8   :  { %1247 = vrot.lane.b32.xlu0 %v5573_v3, %s4688_s27  ;;  %1235 = vrot.lane.b32.xlu1 %v5573_v3, %s4679_s25 }
 0x6f9   :  { %1273 = vrot.lane.b32.xlu2 %v1225_v53, %s4680_s29 }
 0x6fe   :  { %v1201_v58 = vpop.permute.xlu0 %1200 }
 0x6ff   :  { %v1223_v59 = vsel %vm1191_vm2, %v1201_v58, %v1214_v50  ;;  %v1297_v50 = vsub.s32 %v5477_v38, %v5497_v22 }
 0x700   :  { %v5583_v61 = vsel %vm1189_vm6, %v1223_v59, %v1181_v51  ;;  %1275 = vrot.lane.b32.xlu1 %v5573_v3, %s4680_s29  ;;  %v1466_v51 = vld [vmem:[%s7222_s22 + $0x8] sm:$0xff]  ;;  %vm1304_vm6 = vcmp.eq.s32.totalorder %v1296_v41, 1 }
 0x701   :  { %1263 = vrot.lane.b32.xlu2 %v5573_v3, %s4687_s12  ;;  %1237 = vrot.lane.b32.xlu0 %v5583_v61, %s4679_s25  ;;  %vm1470_vm4 = vcmp.gt.f32.partialorder %v1466_v51, 0.5 }
 0x706   :  { %v1203_v42 = vpop.permute.xlu1 %1202  ;;  %v1216_v56 = vpop.permute.xlu0 %1215 }
 0x707   :  { %v1224_v35 = vsel %vm1191_vm2, %v1203_v42, %v1216_v56 }
 0x708   :  { %1265 = vrot.lane.b32.xlu1 %v5583_v61, %s4687_s12  ;;  %v5600_v43 = vsel %vm1190_vm7, %v1224_v35, %v1182_v47  ;;  %vm1300_vm7 = vcmp.le.s32.totalorder %v1296_v41, 0 }
 0x709   :  { %1249 = vrot.lane.b32.xlu2 %v5583_v61, %s4688_s27  ;;  %1277 = vrot.lane.b32.xlu0 %v5583_v61, %s4680_s29 }
 0x710   :  { %1251 = vrot.lane.b32.xlu1 %v5600_v43, %s4688_s27 }
 0x711   :  { %1267 = vrot.lane.b32.xlu0 %v5600_v43, %s4687_s12  ;;  %1239 = vrot.lane.b32.xlu2 %v5600_v43, %s4679_s25 }
 0x719   :  { %1279 = vrot.lane.b32.xlu2 %v5600_v43, %s4680_s29 }
 0x74b   :  { %v1234_v11 = vpop.permute.xlu2 %1233 }
 0x753   :  { %v1274_v4 = vpop.permute.xlu2 %1273 }
 0x75b   :  { %v1264_v12 = vpop.permute.xlu2 %1263 }
 0x762   :  { %v1246_v0 = vpop.permute.xlu1 %1245  ;;  %v1262_v8 = vpop.permute.xlu0 %1261 }
 0x763   :  { %v1257_v9 = vsel %vm1070_vm8, %v1234_v11, %v1246_v0  ;;  %v1286_v55 = vsel %vm1285_vm9, %v1262_v8, %v1274_v4  ;;  %v1250_v34 = vpop.permute.xlu2 %1249  ;;  %v1468_v0 = vld [vmem:[%s7222_s22 + $0x18] sm:$0xff]  ;;  %v1454_v8 = vpop.f32.mrf.mxu1 }
 0x764   :  { %v1290_v60 = vsel %vm1053_vm15, %v1257_v9, %v1286_v55 }
 0x765   :  { %v1306_v15 = vsel %vm1302_vm11, 0.0, %v1290_v60 }
 0x766   :  { %v1310_v23 = vsel %vm1298_vm12, %v1225_v53, %v1306_v15  ;;  %vm1305_vm12 = vcmp.eq.s32.totalorder %v1297_v50, 1 }
 0x767   :  { %v1457_v16 = vadd.f32 %v1390_v21, %v1310_v23 }
 0x769   :  { %v1461_v24 = vmul.f32 0.125, %v1457_v16 }
 0x76a   :  { %v1236_v26 = vpop.permute.xlu1 %1235  ;;  %v1248_v57 = vpop.permute.xlu0 %1247 }
 0x76b   :  { %v5617_v30 = vsel %vm1469_vm13, -1e+09, %v1461_v24  ;;  %v1258_v48 = vsel %vm1070_vm8, %v1236_v26, %v1248_v57  ;;  %v1240_v47 = vpop.permute.xlu2 %1239  ;;  %vm1301_vm13 = vcmp.le.s32.totalorder %v1297_v50, 0 }
 0x76c   :  { %1509 = vrot.lane.b32.xlu2 %v5617_v30, %s4680_s29  ;;  %1493 = vrot.lane.b32.xlu0 %v5617_v30, %s4679_s25 }
 0x76d   :  { %1481 = vrot.lane.b32.xlu1 %v5617_v30, %s4688_s27 }
 0x772   :  { %v1276_v27 = vpop.permute.xlu1 %1275 }
 0x773   :  { %v1287_v5 = vsel %vm1285_vm9, %v1264_v12, %v1276_v27  ;;  %v1238_v37 = vpop.permute.xlu0 %1237  ;;  %v1280_v42 = vpop.permute.xlu2 %1279 }
 0x774   :  { %v1291_v39 = vsel %vm1053_vm15, %v1258_v48, %v1287_v5  ;;  %v1259_v53 = vsel %vm1070_vm8, %v1238_v37, %v1250_v34 }
 0x775   :  { %v1307_v54 = vsel %vm1303_vm1, 0.0, %v1291_v39  ;;  %1521 = vrot.lane.b32.xlu1 %v5617_v30, %s4687_s12  ;;  %vm1472_vm1 = vcmp.gt.f32.partialorder %v1468_v0, 0.5 }
 0x776   :  { %v1311_v1 = vsel %vm1299_vm3, %v5573_v3, %v1307_v54  ;;  %v1467_v3 = vld [vmem:[%s7222_s22 + $0x10] sm:$0xff]  ;;  %vm1116_vm3 = vcmask 15360   ;;  %s4628_s22 = scalar_lea.hbm %s4900_s20, 32 }
 0x777   :  { %v1458_v10 = vadd.f32 %v1393_v20, %v1311_v1  ;;  %vm1471_vm11 = vcmp.gt.f32.partialorder %v1467_v3, 0.5 }
 0x779   :  { %v1462_v17 = vmul.f32 0.125, %v1458_v10 }
 0x77a   :  { %v1266_v49 = vpop.permute.xlu1 %1265 }
 0x77b   :  { %v1278_v44 = vpop.permute.xlu0 %1277  ;;  %v5637_v52 = vsel %vm1470_vm4, -1e+09, %v1462_v17  ;;  %vm1601_vm4 = vcmask 408576  }
 0x77c   :  { %v1288_v46 = vsel %vm1285_vm9, %v1266_v49, %v1278_v44  ;;  %1495 = vrot.lane.b32.xlu2 %v5637_v52, %s4679_s25  ;;  %1483 = vrot.lane.b32.xlu0 %v5637_v52, %s4688_s27 }
 0x77d   :  { %v1292_v7 = vsel %vm1053_vm15, %v1259_v53, %v1288_v46  ;;  %1511 = vrot.lane.b32.xlu1 %v5637_v52, %s4680_s29 }
 0x77e   :  { %v1308_v2 = vsel %vm1304_vm6, 0.0, %v1292_v7  ;;  %vm1670_vm6 = vcmask 424960  }
 0x77f   :  { %v1312_v63 = vsel %vm1300_vm7, %v5583_v61, %v1308_v2  ;;  %vm1162_vm7 = vcmask 31744  }
 0x780   :  { %v1459_v58 = vadd.f32 %v1451_v33, %v1312_v63 }
 0x782   :  { %v1463_v59 = vmul.f32 0.125, %v1459_v58  ;;  %v1252_v62 = vpop.permute.xlu1 %1251 }
 0x783   :  { %v1260_v56 = vsel %vm1070_vm8, %v1240_v47, %v1252_v62  ;;  %v1268_v35 = vpop.permute.xlu0 %1267 }
 0x784   :  { %v1289_v11 = vsel %vm1285_vm9, %v1268_v35, %v1280_v42  ;;  %1523 = vrot.lane.b32.xlu0 %v5637_v52, %s4687_s12  ;;  %v5657_v61 = vsel %vm1471_vm11, -1e+09, %v1463_v59  ;;  %vm1208_vm11 = vcmask 64512  }
 0x785   :  { %v1293_v4 = vsel %vm1053_vm15, %v1260_v56, %v1289_v11  ;;  %1497 = vrot.lane.b32.xlu1 %v5657_v61, %s4679_s25  ;;  %1485 = vrot.lane.b32.xlu2 %v5657_v61, %s4688_s27 }
 0x786   :  { %v1309_v6 = vsel %vm1305_vm12, 0.0, %v1293_v4  ;;  %vm1739_vm12 = vcmask 457728  }
 0x787   :  { %v1313_v9 = vsel %vm1301_vm13, %v5600_v43, %v1309_v6 }
 0x788   :  { %v1460_v55 = vadd.f32 %v1454_v8, %v1313_v9 }
 0x78a   :  { %v1464_v60 = vmul.f32 0.125, %v1460_v55 }
 0x78c   :  { %1513 = vrot.lane.b32.xlu0 %v5657_v61, %s4680_s29  ;;  %v5669_v12 = vsel %vm1472_vm1, -1e+09, %v1464_v60 }
 0x78d   :  { %1525 = vrot.lane.b32.xlu2 %v5657_v61, %s4687_s12  ;;  %1487 = vrot.lane.b32.xlu1 %v5669_v12, %s4688_s27 }
 0x794   :  { %1499 = vrot.lane.b32.xlu0 %v5669_v12, %s4679_s25 }
 0x795   :  { %1515 = vrot.lane.b32.xlu2 %v5669_v12, %s4680_s29  ;;  %1527 = vrot.lane.b32.xlu1 %v5669_v12, %s4687_s12 }
 0x7c6   :  { %v1510_v15 = vpop.permute.xlu2 %1509 }
 0x7d6   :  { %v1496_v24 = vpop.permute.xlu2 %1495 }
 0x7de   :  { %v1494_v25 = vpop.permute.xlu0 %1493 }
 0x7df   :  { %v1482_v43 = vpop.permute.xlu1 %1481  ;;  %v1486_v27 = vpop.permute.xlu2 %1485 }
 0x7e0   :  { %v1505_v23 = vsel %vm1070_vm8, %v1482_v43, %v1494_v25 }
 0x7e7   :  { %v1522_v21 = vpop.permute.xlu1 %1521  ;;  %v1526_v20 = vpop.permute.xlu2 %1525 }
 0x7e8   :  { %v1533_v16 = vsel %vm1285_vm9, %v1510_v15, %v1522_v21 }
 0x7e9   :  { %v1537_v26 = vsel %vm1053_vm15, %v1505_v23, %v1533_v16 }
 0x7ea   :  { %v1541_v57 = vmax.f32 %v5617_v30, %v1537_v26 }
 0x7ec   :  { %1561 = vrot.lane.b32.xlu2 %v1541_v57, %s4682_s8  ;;  %1549 = vrot.lane.b32.xlu0 %v1541_v57, %s4689_s23 }
 0x7ed   :  { %1577 = vrot.lane.b32.xlu1 %v1541_v57, %s4681_s3 }
 0x7ee   :  { %v1484_v32 = vpop.permute.xlu0 %1483 }
 0x7ef   :  { %v1512_v34 = vpop.permute.xlu1 %1511  ;;  %v1506_v5 = vsel %vm1070_vm8, %v1484_v32, %v1496_v24  ;;  %v1516_v53 = vpop.permute.xlu2 %1515 }
 0x7f4   :  { %1589 = vrot.lane.b32.xlu0 %v1541_v57, %s4690_s26 }
 0x7f6   :  { %v1524_v48 = vpop.permute.xlu0 %1523 }
 0x7f7   :  { %v1498_v37 = vpop.permute.xlu1 %1497  ;;  %v1534_v39 = vsel %vm1285_vm9, %v1512_v34, %v1524_v48 }
 0x7f8   :  { %v1538_v54 = vsel %vm1053_vm15, %v1506_v5, %v1534_v39  ;;  %v1507_v10 = vsel %vm1070_vm8, %v1486_v27, %v1498_v37 }
 0x7f9   :  { %v1542_v51 = vmax.f32 %v5637_v52, %v1538_v54 }
 0x7fb   :  { %1551 = vrot.lane.b32.xlu2 %v1542_v51, %s4689_s23  ;;  %1563 = vrot.lane.b32.xlu1 %v1542_v51, %s4682_s8 }
 0x7fc   :  { %1579 = vrot.lane.b32.xlu0 %v1542_v51, %s4681_s3 }
 0x7fe   :  { %v1514_v1 = vpop.permute.xlu0 %1513 }
 0x7ff   :  { %v1535_v41 = vsel %vm1285_vm9, %v1514_v1, %v1526_v20  ;;  %v1488_v47 = vpop.permute.xlu1 %1487 }
 0x800   :  { %v1539_v17 = vsel %vm1053_vm15, %v1507_v10, %v1535_v41 }
 0x801   :  { %v1543_v49 = vmax.f32 %v5657_v61, %v1539_v17 }
 0x803   :  { %1591 = vrot.lane.b32.xlu2 %v1542_v51, %s4690_s26  ;;  %1553 = vrot.lane.b32.xlu1 %v1543_v49, %s4689_s23 }
 0x804   :  { %1565 = vrot.lane.b32.xlu0 %v1543_v49, %s4682_s8 }
 0x806   :  { %v1500_v44 = vpop.permute.xlu0 %1499 }
 0x807   :  { %v1508_v46 = vsel %vm1070_vm8, %v1488_v47, %v1500_v44  ;;  %v1528_v33 = vpop.permute.xlu1 %1527 }
 0x808   :  { %v1536_v7 = vsel %vm1285_vm9, %v1516_v53, %v1528_v33 }
 0x809   :  { %v1540_v2 = vsel %vm1053_vm15, %v1508_v46, %v1536_v7 }
 0x80a   :  { %v1544_v3 = vmax.f32 %v5669_v12, %v1540_v2 }
 0x80b   :  { %1581 = vrot.lane.b32.xlu2 %v1543_v49, %s4681_s3  ;;  %1593 = vrot.lane.b32.xlu1 %v1543_v49, %s4690_s26 }
 0x80c   :  { %1555 = vrot.lane.b32.xlu0 %v1544_v3, %s4689_s23 }
 0x813   :  { %1583 = vrot.lane.b32.xlu1 %v1544_v3, %s4681_s3  ;;  %1567 = vrot.lane.b32.xlu2 %v1544_v3, %s4682_s8 }
 0x814   :  { %1595 = vrot.lane.b32.xlu0 %v1544_v3, %s4690_s26 }
 0x846   :  { %v1562_v63 = vpop.permute.xlu2 %1561 }
 0x855   :  { %v1552_v58 = vpop.permute.xlu2 %1551 }
 0x85d   :  { %v1592_v6 = vpop.permute.xlu2 %1591 }
 0x85e   :  { %v1550_v50 = vpop.permute.xlu0 %1549 }
 0x85f   :  { %v1578_v59 = vpop.permute.xlu1 %1577  ;;  %v1573_v42 = vsel %vm1116_vm3, %v1550_v50, %v1562_v63 }
 0x865   :  { %v1582_v25 = vpop.permute.xlu2 %1581 }
 0x866   :  { %v1590_v62 = vpop.permute.xlu0 %1589 }
 0x867   :  { %v1602_v56 = vsel %vm1601_vm4, %v1578_v59, %v1590_v62 }
 0x868   :  { %v1606_v35 = vsel %vm1099_vm5, %v1573_v42, %v1602_v56 }
 0x869   :  { %v1610_v11 = vmax.f32 %v1541_v57, %v1606_v35 }
 0x86b   :  { %1646 = vrot.lane.b32.xlu0 %v1610_v11, %s4684_s19  ;;  %1630 = vrot.lane.b32.xlu1 %v1610_v11, %s4683_s14 }
 0x86c   :  { %1618 = vrot.lane.b32.xlu2 %v1610_v11, %s4691_s28 }
 0x86d   :  { %v1564_v4 = vpop.permute.xlu1 %1563  ;;  %v1568_v34 = vpop.permute.xlu2 %1567 }
 0x86e   :  { %v1580_v0 = vpop.permute.xlu0 %1579  ;;  %v1574_v8 = vsel %vm1116_vm3, %v1552_v58, %v1564_v4 }
 0x86f   :  { %v1603_v9 = vsel %vm1601_vm4, %v1580_v0, %v1592_v6 }
 0x870   :  { %v1607_v55 = vsel %vm1099_vm5, %v1574_v8, %v1603_v9 }
 0x871   :  { %v1611_v60 = vmax.f32 %v1542_v51, %v1607_v55 }
 0x873   :  { %1632 = vrot.lane.b32.xlu0 %v1611_v60, %s4683_s14  ;;  %1620 = vrot.lane.b32.xlu1 %v1611_v60, %s4691_s28 }
 0x874   :  { %1658 = vrot.lane.b32.xlu2 %v1610_v11, %s4692_s1 }
 0x875   :  { %v1554_v43 = vpop.permute.xlu1 %1553 }
 0x876   :  { %v1566_v15 = vpop.permute.xlu0 %1565 }
 0x877   :  { %v1575_v23 = vsel %vm1116_vm3, %v1554_v43, %v1566_v15 }
 0x87b   :  { %1660 = vrot.lane.b32.xlu1 %v1611_v60, %s4692_s1 }
 0x87c   :  { %1648 = vrot.lane.b32.xlu2 %v1611_v60, %s4684_s19 }
 0x87d   :  { %v1594_v21 = vpop.permute.xlu1 %1593 }
 0x87e   :  { %v1556_v16 = vpop.permute.xlu0 %1555  ;;  %v1604_v24 = vsel %vm1601_vm4, %v1582_v25, %v1594_v21 }
 0x87f   :  { %v1608_v26 = vsel %vm1099_vm5, %v1575_v23, %v1604_v24  ;;  %v1576_v48 = vsel %vm1116_vm3, %v1556_v16, %v1568_v34 }
 0x880   :  { %v1612_v57 = vmax.f32 %v1543_v49, %v1608_v26 }
 0x882   :  { %1622 = vrot.lane.b32.xlu0 %v1612_v57, %s4691_s28 }
 0x883   :  { %1650 = vrot.lane.b32.xlu1 %v1612_v57, %s4684_s19 }
 0x884   :  { %1634 = vrot.lane.b32.xlu2 %v1612_v57, %s4683_s14 }
 0x885   :  { %v1584_v32 = vpop.permute.xlu1 %1583 }
 0x886   :  { %v1596_v27 = vpop.permute.xlu0 %1595 }
 0x887   :  { %v1605_v5 = vsel %vm1601_vm4, %v1584_v32, %v1596_v27 }
 0x888   :  { %v1609_v37 = vsel %vm1099_vm5, %v1576_v48, %v1605_v5 }
 0x889   :  { %v1613_v39 = vmax.f32 %v1544_v3, %v1609_v37 }
 0x88a   :  { %1662 = vrot.lane.b32.xlu0 %v1612_v57, %s4692_s1 }
 0x88b   :  { %1636 = vrot.lane.b32.xlu1 %v1613_v39, %s4683_s14 }
 0x88c   :  { %1624 = vrot.lane.b32.xlu2 %v1613_v39, %s4691_s28 }
 0x892   :  { %1652 = vrot.lane.b32.xlu0 %v1613_v39, %s4684_s19 }
 0x894   :  { %1664 = vrot.lane.b32.xlu2 %v1613_v39, %s4692_s1 }
 0x8c6   :  { %v1619_v54 = vpop.permute.xlu2 %1618 }
 0x8ce   :  { %v1659_v51 = vpop.permute.xlu2 %1658 }
 0x8d6   :  { %v1649_v44 = vpop.permute.xlu2 %1648 }
 0x8dd   :  { %v1647_v20 = vpop.permute.xlu0 %1646  ;;  %v1631_v1 = vpop.permute.xlu1 %1630 }
 0x8de   :  { %v1671_v10 = vsel %vm1670_vm6, %v1647_v20, %v1659_v51  ;;  %v1642_v41 = vsel %vm1162_vm7, %v1619_v54, %v1631_v1  ;;  %v1635_v3 = vpop.permute.xlu2 %1634 }
 0x8df   :  { %v1675_v47 = vsel %vm1145_vm10, %v1642_v41, %v1671_v10 }
 0x8e0   :  { %v1679_v17 = vmax.f32 %v1610_v11, %v1675_v47 }
 0x8e2   :  { %1715 = vrot.lane.b32.xlu2 %v1679_v17, %s4685_s24  ;;  %1699 = vrot.lane.b32.xlu0 %v1679_v17, %s4686_s30 }
 0x8e3   :  { %1687 = vrot.lane.b32.xlu1 %v1679_v17, %s4693_s2 }
 0x8e5   :  { %v1621_v49 = vpop.permute.xlu1 %1620  ;;  %v1633_v53 = vpop.permute.xlu0 %1632 }
 0x8e6   :  { %v1643_v33 = vsel %vm1162_vm7, %v1621_v49, %v1633_v53  ;;  %v1625_v59 = vpop.permute.xlu2 %1624 }
 0x8eb   :  { %1727 = vrot.lane.b32.xlu1 %v1679_v17, %s4694_s7 }
 0x8ed   :  { %v1661_v46 = vpop.permute.xlu1 %1660 }
 0x8ee   :  { %v1672_v7 = vsel %vm1670_vm6, %v1649_v44, %v1661_v46  ;;  %v1665_v6 = vpop.permute.xlu2 %1664 }
 0x8ef   :  { %v1676_v2 = vsel %vm1145_vm10, %v1643_v33, %v1672_v7 }
 0x8f0   :  { %v1680_v63 = vmax.f32 %v1611_v60, %v1676_v2 }
 0x8f2   :  { %1701 = vrot.lane.b32.xlu2 %v1680_v63, %s4686_s30  ;;  %1689 = vrot.lane.b32.xlu0 %v1680_v63, %s4693_s2 }
 0x8f3   :  { %1717 = vrot.lane.b32.xlu1 %v1680_v63, %s4685_s24 }
 0x8f4   :  { %v1623_v50 = vpop.permute.xlu0 %1622 }
 0x8f5   :  { %v1651_v58 = vpop.permute.xlu1 %1650  ;;  %v1644_v42 = vsel %vm1162_vm7, %v1623_v50, %v1635_v3 }
 0x8fa   :  { %1729 = vrot.lane.b32.xlu0 %v1680_v63, %s4694_s7 }
 0x8fc   :  { %v1663_v62 = vpop.permute.xlu0 %1662 }
 0x8fd   :  { %v1673_v56 = vsel %vm1670_vm6, %v1651_v58, %v1663_v62  ;;  %v1637_v4 = vpop.permute.xlu1 %1636 }
 0x8fe   :  { %v1677_v35 = vsel %vm1145_vm10, %v1644_v42, %v1673_v56  ;;  %v1645_v8 = vsel %vm1162_vm7, %v1625_v59, %v1637_v4 }
 0x8ff   :  { %v1681_v11 = vmax.f32 %v1612_v57, %v1677_v35 }
 0x901   :  { %1703 = vrot.lane.b32.xlu1 %v1681_v11, %s4686_s30  ;;  %1691 = vrot.lane.b32.xlu2 %v1681_v11, %s4693_s2 }
 0x902   :  { %1719 = vrot.lane.b32.xlu0 %v1681_v11, %s4685_s24 }
 0x904   :  { %v1653_v0 = vpop.permute.xlu0 %1652 }
 0x905   :  { %v1674_v9 = vsel %vm1670_vm6, %v1653_v0, %v1665_v6 }
 0x906   :  { %v1678_v55 = vsel %vm1145_vm10, %v1645_v8, %v1674_v9 }
 0x907   :  { %v5776_v60 = vmax.f32 %v1613_v39, %v1678_v55 }
 0x909   :  { %1731 = vrot.lane.b32.xlu2 %v1681_v11, %s4694_s7  ;;  %1693 = vrot.lane.b32.xlu1 %v5776_v60, %s4693_s2 }
 0x90a   :  { %1705 = vrot.lane.b32.xlu0 %v5776_v60, %s4686_s30 }
 0x911   :  { %1721 = vrot.lane.b32.xlu2 %v5776_v60, %s4685_s24  ;;  %1733 = vrot.lane.b32.xlu1 %v5776_v60, %s4694_s7 }
 0x93c   :  { %v1716_v15 = vpop.permute.xlu2 %1715 }
 0x94c   :  { %v1702_v57 = vpop.permute.xlu2 %1701 }
 0x954   :  { %v1700_v25 = vpop.permute.xlu0 %1699 }
 0x955   :  { %v1688_v43 = vpop.permute.xlu1 %1687 }
 0x956   :  { %v1711_v23 = vsel %vm1208_vm11, %v1688_v43, %v1700_v25 }
 0x95b   :  { %v1692_v48 = vpop.permute.xlu2 %1691 }
 0x95d   :  { %v1728_v21 = vpop.permute.xlu1 %1727 }
 0x95e   :  { %v1740_v16 = vsel %vm1739_vm12, %v1716_v15, %v1728_v21 }
 0x95f   :  { %v1744_v24 = vsel %vm1191_vm2, %v1711_v23, %v1740_v16 }
 0x960   :  { %v1748_v26 = vmax.f32 %v1679_v17, %v1744_v24 }
 0x962   :  { %v1752_v32 = vsub.f32 %v5617_v30, %v1748_v26 }
 0x963   :  { %v1732_v47 = vpop.permute.xlu2 %1731 }
 0x964   :  { %v1756_v34 = vmul.f32 1.442695, %v1752_v32  ;;  %v1690_v27 = vpop.permute.xlu0 %1689 }
 0x965   :  { %v1718_v5 = vpop.permute.xlu1 %1717  ;;  %v1712_v54 = vsel %vm1208_vm11, %v1690_v27, %v1702_v57 }
 0x966   :  { %4508 = vpow2.f32 %v1756_v34 }
 0x96b   :  { %v1722_v50 = vpop.permute.xlu2 %1721 }
 0x96c   :  { %v5792_v37 = vpop.eup %4508  ;;  %v1730_v39 = vpop.permute.xlu0 %1729 }
 0x96d   :  { %v1741_v51 = vsel %vm1739_vm12, %v1718_v5, %v1730_v39  ;;  %1796 = vrot.lane.b32.xlu1 %v5792_v37, %s4680_s29  ;;  %1780 = vrot.lane.b32.xlu2 %v5792_v37, %s4679_s25 }
 0x96e   :  { %v1745_v30 = vsel %vm1191_vm2, %v1712_v54, %v1741_v51  ;;  %1768 = vrot.lane.b32.xlu0 %v5792_v37, %s4688_s27 }
 0x96f   :  { %v1749_v20 = vmax.f32 %v1680_v63, %v1745_v30 }
 0x971   :  { %v1753_v1 = vsub.f32 %v5637_v52, %v1749_v20 }
 0x973   :  { %v1758_v10 = vmul.f32 1.442695, %v1753_v1  ;;  %v1704_v41 = vpop.permute.xlu1 %1703 }
 0x974   :  { %v1720_v17 = vpop.permute.xlu0 %1719  ;;  %v1713_v49 = vsel %vm1208_vm11, %v1692_v48, %v1704_v41 }
 0x975   :  { %4510 = vpow2.f32 %v1758_v10  ;;  %v1742_v44 = vsel %vm1739_vm12, %v1720_v17, %v1732_v47 }
 0x976   :  { %1808 = vrot.lane.b32.xlu0 %v5792_v37, %s4687_s12  ;;  %v1746_v53 = vsel %vm1191_vm2, %v1713_v49, %v1742_v44 }
 0x977   :  { %v1750_v46 = vmax.f32 %v1681_v11, %v1746_v53 }
 0x979   :  { %v1754_v33 = vsub.f32 %v5657_v61, %v1750_v46 }
 0x97b   :  { %v5812_v7 = vpop.eup %4510  ;;  %v1760_v52 = vmul.f32 1.442695, %v1754_v33  ;;  %v1694_v2 = vpop.permute.xlu1 %1693 }
 0x97c   :  { %1782 = vrot.lane.b32.xlu1 %v5812_v7, %s4679_s25  ;;  %1770 = vrot.lane.b32.xlu2 %v5812_v7, %s4688_s27  ;;  %v1706_v3 = vpop.permute.xlu0 %1705 }
 0x97d   :  { %4512 = vpow2.f32 %v1760_v52  ;;  %v1714_v61 = vsel %vm1208_vm11, %v1694_v2, %v1706_v3 }
 0x97e   :  { %1798 = vrot.lane.b32.xlu0 %v5812_v7, %s4680_s29 }
 0x983   :  { %v5820_v63 = vpop.eup %4512  ;;  %v1734_v58 = vpop.permute.xlu1 %1733 }
 0x984   :  { %1810 = vrot.lane.b32.xlu2 %v5812_v7, %s4687_s12  ;;  %1772 = vrot.lane.b32.xlu1 %v5820_v63, %s4688_s27  ;;  %v1743_v59 = vsel %vm1739_vm12, %v1722_v50, %v1734_v58 }
 0x985   :  { %v1747_v62 = vsel %vm1191_vm2, %v1714_v61, %v1743_v59 }
 0x986   :  { %1784 = vrot.lane.b32.xlu0 %v5820_v63, %s4679_s25  ;;  %v1751_v42 = vmax.f32 %v5776_v60, %v1747_v62 }
 0x988   :  { %v1755_v56 = vsub.f32 %v5669_v12, %v1751_v42 }
 0x98a   :  { %v1762_v35 = vmul.f32 1.442695, %v1755_v56 }
 0x98c   :  { %4514 = vpow2.f32 %v1762_v35  ;;  %1800 = vrot.lane.b32.xlu2 %v5820_v63, %s4680_s29  ;;  %1812 = vrot.lane.b32.xlu1 %v5820_v63, %s4687_s12 }
 0x992   :  { %v5838_v11 = vpop.eup %4514 }
 0x993   :  { %1774 = vrot.lane.b32.xlu0 %v5838_v11, %s4688_s27 }
 0x994   :  { %1802 = vrot.lane.b32.xlu1 %v5838_v11, %s4680_s29  ;;  %1786 = vrot.lane.b32.xlu2 %v5838_v11, %s4679_s25  ;;  %s7301_s25 = sld [smem:[#allocation19_spill]] }
 0x995   :  { %s7313_s29 = sld [smem:[#allocation21_spill]] }
 0x99b   :  { %1814 = vrot.lane.b32.xlu0 %v5838_v11, %s4687_s12 }
 0x9c7   :  { %v1781_v12 = vpop.permute.xlu2 %1780 }
 0x9d6   :  { %v1771_v6 = vpop.permute.xlu2 %1770 }
 0x9de   :  { %v1811_v21 = vpop.permute.xlu2 %1810 }
 0x9df   :  { %v1797_v0 = vpop.permute.xlu1 %1796 }
 0x9e0   :  { %v1769_v4 = vpop.permute.xlu0 %1768 }
 0x9e1   :  { %v1792_v9 = vsel %vm1070_vm8, %v1769_v4, %v1781_v12 }
 0x9e6   :  { %v1801_v34 = vpop.permute.xlu2 %1800 }
 0x9e8   :  { %v1809_v8 = vpop.permute.xlu0 %1808 }
 0x9e9   :  { %v1820_v55 = vsel %vm1285_vm9, %v1797_v0, %v1809_v8 }
 0x9ea   :  { %v1824_v60 = vsel %vm1053_vm15, %v1792_v9, %v1820_v55 }
 0x9eb   :  { %v1828_v43 = vadd.f32 %v5792_v37, %v1824_v60 }
 0x9ed   :  { %1864 = vrot.lane.b32.xlu0 %v1828_v43, %s4681_s3  ;;  %1848 = vrot.lane.b32.xlu1 %v1828_v43, %s4682_s8 }
 0x9ee   :  { %1836 = vrot.lane.b32.xlu2 %v1828_v43, %s4689_s23  ;;  %v1783_v15 = vpop.permute.xlu1 %1782  ;;  %v1787_v30 = vpop.permute.xlu2 %1786 }
 0x9ef   :  { %v1793_v25 = vsel %vm1070_vm8, %v1771_v6, %v1783_v15 }
 0x9f0   :  { %v1799_v23 = vpop.permute.xlu0 %1798 }
 0x9f1   :  { %v1821_v16 = vsel %vm1285_vm9, %v1799_v23, %v1811_v21 }
 0x9f2   :  { %v1825_v24 = vsel %vm1053_vm15, %v1793_v25, %v1821_v16 }
 0x9f3   :  { %v1829_v26 = vadd.f32 %v5812_v7, %v1825_v24 }
 0x9f5   :  { %1850 = vrot.lane.b32.xlu0 %v1829_v26, %s4682_s8  ;;  %1838 = vrot.lane.b32.xlu1 %v1829_v26, %s4689_s23 }
 0x9f6   :  { %1876 = vrot.lane.b32.xlu2 %v1828_v43, %s4690_s26  ;;  %v1773_v57 = vpop.permute.xlu1 %1772 }
 0x9f8   :  { %v1785_v32 = vpop.permute.xlu0 %1784 }
 0x9f9   :  { %v1794_v48 = vsel %vm1070_vm8, %v1773_v57, %v1785_v32 }
 0x9fd   :  { %1878 = vrot.lane.b32.xlu1 %v1829_v26, %s4690_s26 }
 0x9fe   :  { %1866 = vrot.lane.b32.xlu2 %v1829_v26, %s4681_s3  ;;  %v1813_v27 = vpop.permute.xlu1 %1812 }
 0x9ff   :  { %v1822_v5 = vsel %vm1285_vm9, %v1801_v34, %v1813_v27 }
 0xa00   :  { %v1826_v39 = vsel %vm1053_vm15, %v1794_v48, %v1822_v5 }
 0xa01   :  { %v1830_v54 = vadd.f32 %v5820_v63, %v1826_v39 }
 0xa03   :  { %1840 = vrot.lane.b32.xlu0 %v1830_v54, %s4689_s23 }
 0xa05   :  { %1868 = vrot.lane.b32.xlu1 %v1830_v54, %s4681_s3  ;;  %v1775_v51 = vpop.permute.xlu0 %1774 }
 0xa06   :  { %1852 = vrot.lane.b32.xlu2 %v1830_v54, %s4682_s8  ;;  %v1803_v20 = vpop.permute.xlu1 %1802  ;;  %v1795_v10 = vsel %vm1070_vm8, %v1775_v51, %v1787_v30 }
 0xa0b   :  { %1880 = vrot.lane.b32.xlu0 %v1830_v54, %s4690_s26 }
 0xa0d   :  { %v1815_v1 = vpop.permute.xlu0 %1814 }
 0xa0e   :  { %v1823_v41 = vsel %vm1285_vm9, %v1803_v20, %v1815_v1 }
 0xa0f   :  { %v1827_v47 = vsel %vm1053_vm15, %v1795_v10, %v1823_v41 }
 0xa10   :  { %v1831_v17 = vadd.f32 %v5838_v11, %v1827_v47 }
 0xa12   :  { %1854 = vrot.lane.b32.xlu1 %v1831_v17, %s4682_s8  ;;  %1842 = vrot.lane.b32.xlu2 %v1831_v17, %s4689_s23  ;;  %s7329_s8 = sld [smem:[#allocation22_spill]] }
 0xa13   :  { %1870 = vrot.lane.b32.xlu0 %v1831_v17, %s4681_s3  ;;  %s7325_s3 = sld [smem:[#allocation24_spill]] }
 0xa1a   :  { %1882 = vrot.lane.b32.xlu2 %v1831_v17, %s4690_s26 }
 0xa48   :  { %v1837_v49 = vpop.permute.xlu2 %1836 }
 0xa50   :  { %v1877_v44 = vpop.permute.xlu2 %1876 }
 0xa58   :  { %v1867_v58 = vpop.permute.xlu2 %1866 }
 0xa5f   :  { %v1865_v53 = vpop.permute.xlu0 %1864  ;;  %v1849_v46 = vpop.permute.xlu1 %1848 }
 0xa60   :  { %v1888_v33 = vsel %vm1601_vm4, %v1865_v53, %v1877_v44  ;;  %v1860_v52 = vsel %vm1116_vm3, %v1837_v49, %v1849_v46  ;;  %v1853_v12 = vpop.permute.xlu2 %1852 }
 0xa61   :  { %v1892_v2 = vsel %vm1099_vm5, %v1860_v52, %v1888_v33 }
 0xa62   :  { %v1896_v3 = vadd.f32 %v1892_v2, %v1828_v43 }
 0xa64   :  { %1932 = vrot.lane.b32.xlu2 %v1896_v3, %s4684_s19  ;;  %1916 = vrot.lane.b32.xlu0 %v1896_v3, %s4683_s14 }
 0xa65   :  { %1904 = vrot.lane.b32.xlu1 %v1896_v3, %s4691_s28 }
 0xa67   :  { %v1839_v50 = vpop.permute.xlu1 %1838  ;;  %v1851_v61 = vpop.permute.xlu0 %1850 }
 0xa68   :  { %v1861_v62 = vsel %vm1116_vm3, %v1839_v50, %v1851_v61 }
 0xa6c   :  { %v1843_v6 = vpop.permute.xlu2 %1842 }
 0xa6d   :  { %1944 = vrot.lane.b32.xlu1 %v1896_v3, %s4692_s1 }
 0xa6f   :  { %v1879_v59 = vpop.permute.xlu1 %1878 }
 0xa70   :  { %v1889_v42 = vsel %vm1601_vm4, %v1867_v58, %v1879_v59 }
 0xa71   :  { %v1893_v56 = vsel %vm1099_vm5, %v1861_v62, %v1889_v42 }
 0xa72   :  { %v1897_v35 = vadd.f32 %v1893_v56, %v1829_v26 }
 0xa74   :  { %1918 = vrot.lane.b32.xlu2 %v1897_v35, %s4683_s14  ;;  %1906 = vrot.lane.b32.xlu0 %v1897_v35, %s4691_s28  ;;  %v1883_v25 = vpop.permute.xlu2 %1882 }
 0xa75   :  { %1934 = vrot.lane.b32.xlu1 %v1897_v35, %s4684_s19  ;;  %v1841_v4 = vpop.permute.xlu0 %1840 }
 0xa76   :  { %v1862_v9 = vsel %vm1116_vm3, %v1841_v4, %v1853_v12 }
 0xa77   :  { %v1869_v0 = vpop.permute.xlu1 %1868 }
 0xa7c   :  { %1946 = vrot.lane.b32.xlu0 %v1897_v35, %s4692_s1 }
 0xa7d   :  { %v1881_v8 = vpop.permute.xlu0 %1880 }
 0xa7e   :  { %v1890_v55 = vsel %vm1601_vm4, %v1869_v0, %v1881_v8 }
 0xa7f   :  { %v1894_v60 = vsel %vm1099_vm5, %v1862_v9, %v1890_v55 }
 0xa80   :  { %v1898_v43 = vadd.f32 %v1894_v60, %v1830_v54 }
 0xa82   :  { %1920 = vrot.lane.b32.xlu1 %v1898_v43, %s4683_s14  ;;  %1908 = vrot.lane.b32.xlu2 %v1898_v43, %s4691_s28 }
 0xa84   :  { %1936 = vrot.lane.b32.xlu0 %v1898_v43, %s4684_s19  ;;  %v1855_v15 = vpop.permute.xlu1 %1854 }
 0xa85   :  { %v1871_v21 = vpop.permute.xlu0 %1870  ;;  %v1863_v23 = vsel %vm1116_vm3, %v1843_v6, %v1855_v15 }
 0xa86   :  { %v1891_v16 = vsel %vm1601_vm4, %v1871_v21, %v1883_v25 }
 0xa87   :  { %v1895_v24 = vsel %vm1099_vm5, %v1863_v23, %v1891_v16 }
 0xa88   :  { %v1899_v26 = vadd.f32 %v1895_v24, %v1831_v17 }
 0xa8a   :  { %1948 = vrot.lane.b32.xlu2 %v1898_v43, %s4692_s1  ;;  %1910 = vrot.lane.b32.xlu1 %v1899_v26, %s4691_s28 }
 0xa8c   :  { %1922 = vrot.lane.b32.xlu0 %v1899_v26, %s4683_s14  ;;  %s7330_s14 = sld [smem:[#allocation23_spill]] }
 0xa92   :  { %1938 = vrot.lane.b32.xlu2 %v1899_v26, %s4684_s19  ;;  %1950 = vrot.lane.b32.xlu1 %v1899_v26, %s4692_s1  ;;  %s7336_s19 = sld [smem:[#allocation25_spill]] }
 0xabe   :  { %v1933_v32 = vpop.permute.xlu2 %1932 }
 0xace   :  { %v1919_v51 = vpop.permute.xlu2 %1918 }
 0xad6   :  { %v1917_v34 = vpop.permute.xlu0 %1916 }
 0xad7   :  { %v1905_v57 = vpop.permute.xlu1 %1904 }
 0xad8   :  { %v1928_v48 = vsel %vm1162_vm7, %v1905_v57, %v1917_v34 }
 0xadc   :  { %v1909_v20 = vpop.permute.xlu2 %1908 }
 0xadf   :  { %v1945_v27 = vpop.permute.xlu1 %1944 }
 0xae0   :  { %v1956_v5 = vsel %vm1670_vm6, %v1933_v32, %v1945_v27  ;;  %v2125_v27 = vld [vmem:[%s7223_s10 + $0x38] sm:$0xff] }
 0xae1   :  { %v1960_v39 = vsel %vm1145_vm10, %v1928_v48, %v1956_v5  ;;  %v2124_v48 = vld [vmem:[%s7223_s10 + $0x30] sm:$0xff]  ;;  %2146 = vmatpush.msra.mxu2 %v2125_v27 }
 0xae2   :  { %v1964_v54 = vadd.f32 %v1960_v39, %v1896_v3 }
 0xae3   :  { %2147 = vmatpush.msra.mxu2 %v2124_v48 }
 0xae4   :  { %2000 = vrot.lane.b32.xlu1 %v1964_v54, %s4685_s24  ;;  %1984 = vrot.lane.b32.xlu2 %v1964_v54, %s4686_s30  ;;  %v1949_v46 = vpop.permute.xlu2 %1948 }
 0xae5   :  { %1972 = vrot.lane.b32.xlu0 %v1964_v54, %s4693_s2 }
 0xae6   :  { %v1907_v30 = vpop.permute.xlu0 %1906 }
 0xae7   :  { %v1935_v1 = vpop.permute.xlu1 %1934  ;;  %v1929_v41 = vsel %vm1162_vm7, %v1907_v30, %v1919_v51  ;;  %v2123_v51 = vld [vmem:[%s7223_s10 + $0x28] sm:$0xff] }
 0xae8   :  { %2148 = vmatpush.msra.mxu2 %v2123_v51 }
 0xaec   :  { %v1939_v61 = vpop.permute.xlu2 %1938 }
 0xaed   :  { %2012 = vrot.lane.b32.xlu0 %v1964_v54, %s4694_s7 }
 0xaee   :  { %v1947_v10 = vpop.permute.xlu0 %1946 }
 0xaef   :  { %v1957_v47 = vsel %vm1670_vm6, %v1935_v1, %v1947_v10 }
 0xaf0   :  { %v1961_v17 = vsel %vm1145_vm10, %v1929_v41, %v1957_v47  ;;  %v2121_v47 = vld [vmem:[%s7223_s10 + $0x18] sm:$0xff] }
 0xaf1   :  { %v1965_v49 = vadd.f32 %v1961_v17, %v1897_v35 }
 0xaf3   :  { %1986 = vrot.lane.b32.xlu1 %v1965_v49, %s4686_s30  ;;  %1974 = vrot.lane.b32.xlu2 %v1965_v49, %s4693_s2 }
 0xaf4   :  { %v1921_v44 = vpop.permute.xlu1 %1920 }
 0xaf5   :  { %2002 = vrot.lane.b32.xlu0 %v1965_v49, %s4685_s24  ;;  %v1930_v53 = vsel %vm1162_vm7, %v1909_v20, %v1921_v44  ;;  %v2122_v20 = vld [vmem:[%s7223_s10 + $0x20] sm:$0xff]  ;;  %v2119_v44 = vld [vmem:[%s7223_s10 + $0x8] sm:$0xff] }
 0xaf6   :  { %v1937_v33 = vpop.permute.xlu0 %1936  ;;  %2149 = vmatpush.msra.mxu2 %v2122_v20 }
 0xaf7   :  { %v1958_v52 = vsel %vm1670_vm6, %v1937_v33, %v1949_v46 }
 0xaf8   :  { %v1962_v2 = vsel %vm1145_vm10, %v1930_v53, %v1958_v52  ;;  %2150 = vmatpush.msra.mxu2 %v2121_v47 }
 0xaf9   :  { %v1966_v3 = vadd.f32 %v1962_v2, %v1898_v43 }
 0xafb   :  { %2014 = vrot.lane.b32.xlu2 %v1965_v49, %s4694_s7  ;;  %1976 = vrot.lane.b32.xlu1 %v1966_v3, %s4693_s2 }
 0xafc   :  { %v1911_v50 = vpop.permute.xlu1 %1910 }
 0xafd   :  { %1988 = vrot.lane.b32.xlu0 %v1966_v3, %s4686_s30 }
 0xafe   :  { %v1923_v58 = vpop.permute.xlu0 %1922 }
 0xaff   :  { %v1931_v62 = vsel %vm1162_vm7, %v1911_v50, %v1923_v58 }
 0xb03   :  { %2004 = vrot.lane.b32.xlu2 %v1966_v3, %s4685_s24  ;;  %2016 = vrot.lane.b32.xlu1 %v1966_v3, %s4694_s7 }
 0xb04   :  { %v1951_v59 = vpop.permute.xlu1 %1950 }
 0xb05   :  { %v1959_v42 = vsel %vm1670_vm6, %v1939_v61, %v1951_v59 }
 0xb06   :  { %v1963_v56 = vsel %vm1145_vm10, %v1931_v62, %v1959_v42 }
 0xb07   :  { %v5944_v35 = vadd.f32 %v1963_v56, %v1899_v26 }
 0xb09   :  { %1978 = vrot.lane.b32.xlu0 %v5944_v35, %s4693_s2 }
 0xb0b   :  { %2006 = vrot.lane.b32.xlu1 %v5944_v35, %s4685_s24  ;;  %1990 = vrot.lane.b32.xlu2 %v5944_v35, %s4686_s30  ;;  %s7338_s24 = sld [smem:[#allocation26_spill]] }
 0xb11   :  { %2018 = vrot.lane.b32.xlu0 %v5944_v35, %s4694_s7 }
 0xb3e   :  { %v1985_v12 = vpop.permute.xlu2 %1984 }
 0xb4d   :  { %v1975_v6 = vpop.permute.xlu2 %1974 }
 0xb55   :  { %v2015_v21 = vpop.permute.xlu2 %2014 }
 0xb56   :  { %v2001_v0 = vpop.permute.xlu1 %2000 }
 0xb57   :  { %v1973_v4 = vpop.permute.xlu0 %1972 }
 0xb58   :  { %v1996_v9 = vsel %vm1208_vm11, %v1973_v4, %v1985_v12 }
 0xb5d   :  { %v2005_v30 = vpop.permute.xlu2 %2004 }
 0xb5f   :  { %v2013_v8 = vpop.permute.xlu0 %2012 }
 0xb60   :  { %v2024_v55 = vsel %vm1739_vm12, %v2001_v0, %v2013_v8 }
 0xb61   :  { %v2028_v60 = vsel %vm1191_vm2, %v1996_v9, %v2024_v55 }
 0xb62   :  { %v2032_v43 = vadd.f32 %v2028_v60, %v1964_v54 }
 0xb64   :  { %4516 = vrcp.f32 %v2032_v43 }
 0xb65   :  { %v1987_v15 = vpop.permute.xlu1 %1986  ;;  %v1991_v33 = vpop.permute.xlu2 %1990 }
 0xb66   :  { %v1997_v25 = vsel %vm1208_vm11, %v1975_v6, %v1987_v15 }
 0xb67   :  { %v2003_v23 = vpop.permute.xlu0 %2002 }
 0xb68   :  { %v2025_v16 = vsel %vm1739_vm12, %v2003_v23, %v2015_v21 }
 0xb69   :  { %v2029_v24 = vsel %vm1191_vm2, %v1997_v25, %v2025_v16 }
 0xb6a   :  { %v4517_v26 = vpop.eup %4516  ;;  %v2033_v57 = vadd.f32 %v2029_v24, %v1965_v49 }
 0xb6b   :  { %v2040_v32 = vmul.f32 %v4517_v26, %v5792_v37 }
 0xb6c   :  { %4518 = vrcp.f32 %v2033_v57 }
 0xb6d   :  { %4336 = vmatmul.msk.f32.vlgmr.msrb.gmra.mxu0 %vm7146_vm0, %v2040_v32  ;;  %v1977_v34 = vpop.permute.xlu1 %1976 }
 0xb6f   :  { %v1989_v39 = vpop.permute.xlu0 %1988 }
 0xb70   :  { %v1998_v1 = vsel %vm1208_vm11, %v1977_v34, %v1989_v39 }
 0xb72   :  { %v4519_v5 = vpop.eup %4518 }
 0xb73   :  { %v2041_v54 = vmul.f32 %v4519_v5, %v5812_v7  ;;  %v2120_v7 = vld [vmem:[%s7223_s10 + $0x10] sm:$0xff] }
 0xb74   :  { %2151 = vmatpush.msra.mxu2 %v2120_v7  ;;  %v2289_v7 = vld [vmem:[%s7229_s15 + $0x30] sm:$0xff] }
 0xb75   :  { %4337 = vmatmul.msk.f32.gmra.mxu0 %vm7146_vm0, %v2041_v54  ;;  %v2017_v37 = vpop.permute.xlu1 %2016 }
 0xb76   :  { %v2026_v10 = vsel %vm1739_vm12, %v2005_v30, %v2017_v37  ;;  %2152 = vmatpush.msra.mxu2 %v2119_v44  ;;  %v2287_v44 = vld [vmem:[%s7229_s15 + $0x20] sm:$0xff] }
 0xb77   :  { %v2030_v41 = vsel %vm1191_vm2, %v1998_v1, %v2026_v10 }
 0xb78   :  { %v2034_v17 = vadd.f32 %v2030_v41, %v1966_v3 }
 0xb7a   :  { %4520 = vrcp.f32 %v2034_v17  ;;  %v2290_v17 = vld [vmem:[%s7229_s15 + $0x38] sm:$0xff] }
 0xb7b   :  { %v1979_v49 = vpop.permute.xlu0 %1978  ;;  %2315 = vmatpush.msra.mxu3 %v2290_v17 }
 0xb7c   :  { %v1999_v50 = vsel %vm1208_vm11, %v1979_v49, %v1991_v33  ;;  %v2288_v49 = vld [vmem:[%s7229_s15 + $0x28] sm:$0xff] }
 0xb7d   :  { %v2007_v52 = vpop.permute.xlu1 %2006  ;;  %2316 = vmatpush.msra.mxu3 %v2289_v7  ;;  %v2284_v33 = vld [vmem:[%s7229_s15 + $0x8] sm:$0xff] }
 0xb7f   :  { %2317 = vmatpush.msra.mxu3 %v2288_v49 }
 0xb80   :  { %v4521_v53 = vpop.eup %4520 }
 0xb81   :  { %v2042_v46 = vmul.f32 %v4521_v53, %v5820_v63  ;;  %v2118_v63 = vld [vmem:[%s7223_s10] sm:$0xff]  ;;  %2318 = vmatpush.msra.mxu3 %v2287_v44  ;;  %v2286_v53 = vld [vmem:[%s7229_s15 + $0x18] sm:$0xff] }
 0xb82   :  { %2153 = vmatpush.msra.mxu2 %v2118_v63 }
 0xb83   :  { %4346 = vmatmul.msk.f32.vlgmr.msra.gmra.mxu1 %vm7146_vm0, %v2042_v46  ;;  %v2019_v2 = vpop.permute.xlu0 %2018  ;;  %2319 = vmatpush.msra.mxu3 %v2286_v53  ;;  %v2285_v46 = vld [vmem:[%s7229_s15 + $0x10] sm:$0xff] }
 0xb84   :  { %v2027_v3 = vsel %vm1739_vm12, %v2007_v52, %v2019_v2  ;;  %v2283_v52 = vld [vmem:[%s7229_s15] sm:$0xff] }
 0xb85   :  { %v2031_v58 = vsel %vm1191_vm2, %v1999_v50, %v2027_v3  ;;  %2320 = vmatpush.msra.mxu3 %v2285_v46 }
 0xb86   :  { %v2035_v61 = vadd.f32 %v2031_v58, %v5944_v35  ;;  %v4445_v35 = vld [vmem:[%s7224_s11] ss:$0 sm:$0xff] }
 0xb87   :  { %2321 = vmatpush.msra.mxu3 %v2284_v33 }
 0xb88   :  { %4522 = vrcp.f32 %v2035_v61 }
 0xb89   :  { %2322 = vmatpush.msra.mxu3 %v2283_v52 }
 0xb8e   :  { %v4523_v59 = vpop.eup %4522 }
 0xb8f   :  { %v2043_v62 = vmul.f32 %v4523_v59, %v5838_v11 }
 0xb91   :  { %4347 = vmatmul.msk.f32.gmra.mxu1 %vm7146_vm0, %v2043_v62 }
 0xbea   :  { %v2075_v42 = vpop.f32.mrf.mxu0 }
 0xbeb   :  { %4348 = vmatmul.msk.f32.vlgmr.msra.gmra.mxu2 %vm7146_vm0, %v2075_v42 }
 0xbf2   :  { %v2078_v56 = vpop.f32.mrf.mxu0 }
 0xbf3   :  { %4349 = vmatmul.msk.f32.gmra.mxu2 %vm7146_vm0, %v2078_v56 }
 0xc00   :  { %v2112_v12 = vpop.f32.mrf.mxu1 }
 0xc01   :  { %4350 = vmatmul.msk.f32.gmra.mxu2 %vm7146_vm0, %v2112_v12 }
 0xc0e   :  { %v2115_v38 = vpop.f32.mrf.mxu1 }
 0xc0f   :  { %4351 = vmatmul.msk.f32.gmra.mxu2 %vm7146_vm0, %v2115_v38 }
 0xc6e   :  { %v2155_v4 = vpop.f32.mrf.mxu2 }
 0xc6f   :  { %v2167_v11 = vadd.f32 %v2155_v4, %v5167_v13 }
 0xc71   :  { %v5993_v6 = vadd.f32 %v4445_v35, %v2167_v11  ;;  %v4446_v11 = vld [vmem:[%s7230_s16] ss:$0 sm:$0xff] }
 0xc73   :  { %7225 = vst [vmem:[#allocation32_spill] sm:$0xff] %v5993_v6  ;;  %v2181_v0 = vsel %vm7146_vm0, %v5993_v6, 0.0 }
 0xc74   :  { %2182 = vadd.xlane.f32.xlu2 %v2181_v0 }
 0xc76   :  { %v2158_v8 = vpop.f32.mrf.mxu2 }
 0xc77   :  { %v2168_v9 = vadd.f32 %v2158_v8, %v5172_v40 }
 0xc79   :  { %v5998_v55 = vadd.f32 %v4445_v35, %v2168_v9 }
 0xc7b   :  { %7226 = vst [vmem:[#allocation33_spill] sm:$0xff] %v5998_v55  ;;  %v2184_v60 = vsel %vm7146_vm0, %v5998_v55, 0.0 }
 0xc7c   :  { %2185 = vadd.xlane.f32.xlu1 %v2184_v60 }
 0xc84   :  { %v2161_v43 = vpop.f32.mrf.mxu2 }
 0xc85   :  { %v2169_v15 = vadd.f32 %v2161_v43, %v5177_v45 }
 0xc87   :  { %v6003_v25 = vadd.f32 %v4445_v35, %v2169_v15  ;;  %v4447_v15 = vld [vmem:[%s7231_s18] ss:$0 sm:$0xff] }
 0xc89   :  { %7227 = vst [vmem:[#allocation34_spill] sm:$0xff] %v6003_v25  ;;  %v2187_v13 = vsel %vm7146_vm0, %v6003_v25, 0.0 }
 0xc8a   :  { %2188 = vadd.xlane.f32.xlu0 %v2187_v13 }
 0xc92   :  { %v2164_v21 = vpop.f32.mrf.mxu2 }
 0xc93   :  { %v2170_v23 = vadd.f32 %v2164_v21, %v5182_v29 }
 0xc95   :  { %v6008_v16 = vadd.f32 %v4445_v35, %v2170_v23 }
 0xc97   :  { %7228 = vst [vmem:[#allocation35_spill] sm:$0xff] %v6008_v16  ;;  %v2190_v40 = vsel %vm7146_vm0, %v6008_v16, 0.0 }
 0xc98   :  { %2191 = vadd.xlane.f32.xlu2 %v2190_v40 }
 0xce7   :  { %v2183_v24 = vpop.xlane.xlu2 %2182 }
 0xce8   :  { %v2193_v26 = vmul.f32 %v2183_v24, %v4922_v14 }
 0xcea   :  { %v2197_v45 = vsub.f32 %v5993_v6, %v2193_v26 }
 0xcec   :  { %v2201_v57 = vmul.f32 %v2197_v45, %v2197_v45 }
 0xcee   :  { %v2205_v32 = vsel %vm7146_vm0, %v2201_v57, 0.0 }
 0xcef   :  { %2206 = vadd.xlane.f32.xlu1 %v2205_v32  ;;  %v2186_v34 = vpop.xlane.xlu1 %2185 }
 0xcf0   :  { %v2194_v27 = vmul.f32 %v2186_v34, %v4922_v14 }
 0xcf2   :  { %v6017_v29 = vsub.f32 %v5998_v55, %v2194_v27 }
 0xcf4   :  { %v2202_v48 = vmul.f32 %v6017_v29, %v6017_v29 }
 0xcf6   :  { %v2208_v5 = vsel %vm7146_vm0, %v2202_v48, 0.0 }
 0xcf7   :  { %2209 = vadd.xlane.f32.xlu0 %v2208_v5 }
 0xcfd   :  { %v2189_v39 = vpop.xlane.xlu0 %2188 }
 0xcfe   :  { %v2195_v54 = vmul.f32 %v2189_v39, %v4922_v14 }
 0xd00   :  { %v6024_v51 = vsub.f32 %v6003_v25, %v2195_v54 }
 0xd02   :  { %v2203_v30 = vmul.f32 %v6024_v51, %v6024_v51 }
 0xd04   :  { %v2211_v37 = vsel %vm7146_vm0, %v2203_v30, 0.0 }
 0xd05   :  { %2212 = vadd.xlane.f32.xlu2 %v2211_v37 }
 0xd0b   :  { %v2192_v20 = vpop.xlane.xlu2 %2191 }
 0xd0c   :  { %v2196_v1 = vmul.f32 %v2192_v20, %v4922_v14 }
 0xd0e   :  { %v6031_v10 = vsub.f32 %v6008_v16, %v2196_v1 }
 0xd10   :  { %v2204_v41 = vmul.f32 %v6031_v10, %v6031_v10 }
 0xd12   :  { %v2214_v47 = vsel %vm7146_vm0, %v2204_v41, 0.0 }
 0xd13   :  { %2215 = vadd.xlane.f32.xlu1 %v2214_v47 }
 0xd62   :  { %v2207_v2 = vpop.xlane.xlu1 %2206 }
 0xd63   :  { %v2217_v50 = vmul.f32 %v2207_v2, %v4922_v14 }
 0xd65   :  { %v2221_v3 = vadd.f32 1e-05, %v2217_v50 }
 0xd67   :  { %4524 = vrsqrt.f32 %v2221_v3  ;;  %vm2231_vm5 = vweird.f32 %v2221_v3 }
 0xd6a   :  { %v2210_v58 = vpop.xlane.xlu0 %2209 }
 0xd6b   :  { %v2218_v61 = vmul.f32 %v2210_v58, %v4922_v14 }
 0xd6d   :  { %v4525_v59 = vpop.eup %4524  ;;  %v2222_v62 = vadd.f32 1e-05, %v2218_v61 }
 0xd6e   :  { %v2226_v63 = vmul.f32 %v4525_v59, %v2221_v3  ;;  %vm2232_vm15 = vweird.f32 %v4525_v59 }
 0xd6f   :  { %4526 = vrsqrt.f32 %v2222_v62  ;;  %vm2233_vm10 = vmor %vm2231_vm5, %vm2232_vm15  ;;  %vm2241_vm8 = vweird.f32 %v2222_v62 }
 0xd70   :  { %v2227_v42 = vmul.f32 %v4525_v59, %v2226_v63 }
 0xd72   :  { %v2228_v56 = vmul.f32 0.5, %v2227_v42 }
 0xd74   :  { %v2229_v12 = vsub.f32 1.5, %v2228_v56 }
 0xd75   :  { %v4527_v38 = vpop.eup %4526 }
 0xd76   :  { %v2230_v35 = vmul.f32 %v4525_v59, %v2229_v12  ;;  %v2236_v4 = vmul.f32 %v4527_v38, %v2222_v62  ;;  %vm2242_vm2 = vweird.f32 %v4527_v38 }
 0xd77   :  { %vm2243_vm9 = vmor %vm2241_vm8, %vm2242_vm2 }
 0xd78   :  { %v2234_v0 = vsel %vm2233_vm10, %v4525_v59, %v2230_v35  ;;  %v2237_v8 = vmul.f32 %v4527_v38, %v2236_v4  ;;  %v2213_v9 = vpop.xlane.xlu2 %2212 }
 0xd79   :  { %v2265_v60 = vmul.f32 %v2234_v0, %v2197_v45  ;;  %v2219_v43 = vmul.f32 %v2213_v9, %v4922_v14 }
 0xd7a   :  { %v2238_v13 = vmul.f32 0.5, %v2237_v8 }
 0xd7b   :  { %v2272_v21 = vmul.f32 %v4446_v11, %v2265_v60  ;;  %v2223_v23 = vadd.f32 1e-05, %v2219_v43 }
 0xd7c   :  { %v2239_v40 = vsub.f32 1.5, %v2238_v13 }
 0xd7d   :  { %4528 = vrsqrt.f32 %v2223_v23  ;;  %v2279_v24 = vadd.f32 %v4447_v15, %v2272_v21  ;;  %vm2251_vm1 = vweird.f32 %v2223_v23 }
 0xd7e   :  { %v2240_v26 = vmul.f32 %v4527_v38, %v2239_v40 }
 0xd7f   :  { %4352 = vmatmul.msk.f32.vlgmr.msra.gmra.mxu3 %vm7146_vm0, %v2279_v24 }
 0xd80   :  { %v2244_v57 = vsel %vm2243_vm9, %v4527_v38, %v2240_v26 }
 0xd81   :  { %v2266_v32 = vmul.f32 %v2244_v57, %v6017_v29 }
 0xd83   :  { %v4529_v34 = vpop.eup %4528  ;;  %v2273_v45 = vmul.f32 %v4446_v11, %v2266_v32 }
 0xd84   :  { %v2246_v27 = vmul.f32 %v4529_v34, %v2223_v23  ;;  %vm2252_vm13 = vweird.f32 %v4529_v34 }
 0xd85   :  { %v2280_v48 = vadd.f32 %v4447_v15, %v2273_v45  ;;  %vm2253_vm3 = vmor %vm2251_vm1, %vm2252_vm13 }
 0xd86   :  { %v2247_v5 = vmul.f32 %v4529_v34, %v2246_v27  ;;  %v2216_v39 = vpop.xlane.xlu1 %2215 }
 0xd87   :  { %4353 = vmatmul.msk.f32.gmra.mxu3 %vm7146_vm0, %v2280_v48  ;;  %v2220_v54 = vmul.f32 %v2216_v39, %v4922_v14 }
 0xd88   :  { %v2248_v30 = vmul.f32 0.5, %v2247_v5 }
 0xd89   :  { %v2224_v37 = vadd.f32 1e-05, %v2220_v54 }
 0xd8a   :  { %v2249_v20 = vsub.f32 1.5, %v2248_v30 }
 0xd8b   :  { %4530 = vrsqrt.f32 %v2224_v37  ;;  %vm2261_vm6 = vweird.f32 %v2224_v37 }
 0xd8c   :  { %v2250_v1 = vmul.f32 %v4529_v34, %v2249_v20 }
 0xd8e   :  { %v2254_v41 = vsel %vm2253_vm3, %v4529_v34, %v2250_v1 }
 0xd8f   :  { %v2267_v29 = vmul.f32 %v2254_v41, %v6024_v51  ;;  %v4448_v51 = vld [vmem:[%s7232_s0] ss:$0 sm:$0xff] }
 0xd91   :  { %v4531_v47 = vpop.eup %4530  ;;  %v2274_v17 = vmul.f32 %v4446_v11, %v2267_v29 }
 0xd92   :  { %v2256_v7 = vmul.f32 %v4531_v47, %v2224_v37  ;;  %vm2262_vm4 = vweird.f32 %v4531_v47 }
 0xd93   :  { %v2281_v49 = vadd.f32 %v4447_v15, %v2274_v17  ;;  %vm2263_vm7 = vmor %vm2261_vm6, %vm2262_vm4 }
 0xd94   :  { %v2257_v44 = vmul.f32 %v4531_v47, %v2256_v7 }
 0xd95   :  { %4354 = vmatmul.msk.f32.gmra.mxu3 %vm7146_vm0, %v2281_v49 }
 0xd96   :  { %v2258_v53 = vmul.f32 0.5, %v2257_v44 }
 0xd98   :  { %v2259_v46 = vsub.f32 1.5, %v2258_v53 }
 0xd9a   :  { %v2260_v33 = vmul.f32 %v4531_v47, %v2259_v46 }
 0xd9c   :  { %v2264_v52 = vsel %vm2263_vm7, %v4531_v47, %v2260_v33 }
 0xd9d   :  { %v2268_v2 = vmul.f32 %v2264_v52, %v6031_v10 }
 0xd9f   :  { %v2275_v50 = vmul.f32 %v4446_v11, %v2268_v2 }
 0xda1   :  { %v2282_v3 = vadd.f32 %v4447_v15, %v2275_v50 }
 0xda3   :  { %4355 = vmatmul.msk.f32.gmra.mxu3 %vm7146_vm0, %v2282_v3 }
 0xe02   :  { %v2324_v58 = vpop.f32.mrf.mxu3 }
 0xe03   :  { %v6058_v61 = vadd.f32 %v4448_v51, %v2324_v58 }
 0xe05   :  { %v2336_v59 = vand.u32 2147483647, %v6058_v61  ;;  %vm2352_vm10 = vcmp.ge.f32.partialorder %v6058_v61, 0.0 }
 0xe07   :  { %v2340_v62 = vsub.f32 0.0, %v2336_v59 }
 0xe09   :  { %v2344_v63 = vmul.f32 1.442695, %v2340_v62 }
 0xe0a   :  { %v2327_v42 = vpop.f32.mrf.mxu3 }
 0xe0b   :  { %4532 = vpow2.f32 %v2344_v63  ;;  %v6061_v56 = vadd.f32 %v4448_v51, %v2327_v42 }
 0xe0d   :  { %v2337_v12 = vand.u32 2147483647, %v6061_v56  ;;  %vm2353_vm1 = vcmp.ge.f32.partialorder %v6061_v56, 0.0 }
 0xe0f   :  { %v2341_v38 = vsub.f32 0.0, %v2337_v12 }
 0xe11   :  { %v4533_v10 = vpop.eup %4532  ;;  %v2346_v35 = vmul.f32 1.442695, %v2341_v38 }
 0xe12   :  { %v2356_v4 = vadd.f32 1.0, %v4533_v10 }
 0xe13   :  { %4534 = vpow2.f32 %v2346_v35 }
 0xe14   :  { %4536 = vrcp.f32 %v2356_v4  ;;  %v2371_v23 = vand.u32 2147483648, %v2356_v4  ;;  %v2369_v26 = vand.u32 2147483647, %v2356_v4  ;;  %vm2365_vm12 = vweird.f32 %v2356_v4 }
 0xe16   :  { %v2372_v34 = vor.u32 1.1754944e-38, %v2371_v23  ;;  %vm2370_vm5 = vcmp.eq.f32.partialorder %v2369_v26, 8.507059e+37 }
 0xe18   :  { %v2330_v11 = vpop.f32.mrf.mxu3 }
 0xe19   :  { %v4535_v0 = vpop.eup %4534  ;;  %v6064_v8 = vadd.f32 %v4448_v51, %v2330_v11 }
 0xe1a   :  { %v4537_v9 = vpop.eup %4536  ;;  %v2357_v60 = vadd.f32 1.0, %v4535_v0 }
 0xe1b   :  { %v2338_v43 = vand.u32 2147483647, %v6064_v8  ;;  %v2361_v15 = vmul.f32 %v4537_v9, %v2356_v4  ;;  %vm2366_vm11 = vweird.f32 %v4537_v9 }
 0xe1c   :  { %4538 = vrcp.f32 %v2357_v60  ;;  %vm2367_vm15 = vmor %vm2365_vm12, %vm2366_vm11  ;;  %v2384_v30 = vand.u32 2147483647, %v2357_v60  ;;  %v2386_v37 = vand.u32 2147483648, %v2357_v60  ;;  %vm2380_vm8 = vweird.f32 %v2357_v60 }
 0xe1d   :  { %v2342_v13 = vsub.f32 0.0, %v2338_v43  ;;  %v2362_v21 = vsub.f32 1.0, %v2361_v15  ;;  %vm2354_vm11 = vcmp.ge.f32.partialorder %v6064_v8, 0.0 }
 0xe1e   :  { %v2387_v49 = vor.u32 1.1754944e-38, %v2386_v37  ;;  %vm2385_vm13 = vcmp.eq.f32.partialorder %v2384_v30, 8.507059e+37 }
 0xe1f   :  { %v2348_v40 = vmul.f32 1.442695, %v2342_v13  ;;  %v2363_v24 = vmul.f32 %v4537_v9, %v2362_v21 }
 0xe21   :  { %4540 = vpow2.f32 %v2348_v40  ;;  %v2364_v57 = vadd.f32 %v4537_v9, %v2363_v24 }
 0xe22   :  { %v4539_v32 = vpop.eup %4538 }
 0xe23   :  { %v2368_v45 = vsel %vm2367_vm15, %v4537_v9, %v2364_v57  ;;  %v2376_v27 = vmul.f32 %v4539_v32, %v2357_v60  ;;  %vm2381_vm2 = vweird.f32 %v4539_v32 }
 0xe24   :  { %v2373_v48 = vsel %vm2370_vm5, %v2372_v34, %v2368_v45  ;;  %vm2382_vm9 = vmor %vm2380_vm8, %vm2381_vm2 }
 0xe25   :  { %v2420_v5 = vmul.f32 %v4533_v10, %v2373_v48  ;;  %v2377_v39 = vsub.f32 1.0, %v2376_v27 }
 0xe26   :  { %v2333_v54 = vpop.f32.mrf.mxu3 }
 0xe27   :  { %v4541_v20 = vpop.eup %4540  ;;  %v2424_v1 = vsel %vm2352_vm10, %v2373_v48, %v2420_v5  ;;  %v6068_v41 = vadd.f32 %v4448_v51, %v2333_v54  ;;  %v2378_v29 = vmul.f32 %v4539_v32, %v2377_v39 }
 0xe28   :  { %v2358_v47 = vadd.f32 1.0, %v4541_v20  ;;  %2432 = vrot.lane.b32.xlu0 %v2424_v1, %s4678_s21 }
 0xe29   :  { %v2339_v17 = vand.u32 2147483647, %v6068_v41  ;;  %v2379_v7 = vadd.f32 %v4539_v32, %v2378_v29  ;;  %vm2355_vm2 = vcmp.ge.f32.partialorder %v6068_v41, 0.0  ;;  %v3571_v29 = vld [vmem:[%s7234_s13 + $0x38] sm:$0xff] }
 0xe2a   :  { %4542 = vrcp.f32 %v2358_v47  ;;  %v2401_v58 = vand.u32 2147483648, %v2358_v47  ;;  %v2399_v63 = vand.u32 2147483647, %v2358_v47  ;;  %vm2395_vm4 = vweird.f32 %v2358_v47  ;;  %3596 = vmatpush.msra.mxu0 %v3571_v29 }
 0xe2b   :  { %v2343_v44 = vsub.f32 0.0, %v2339_v17  ;;  %v2383_v53 = vsel %vm2382_vm9, %v4539_v32, %v2379_v7  ;;  %v2448_v32 = vld [vmem:[%s7233_s5] sm:$0xff]  ;;  %v6188_v29 = vadd.s32 4294967287, %v5497_v22 }
 0xe2c   :  { %v2388_v46 = vsel %vm2385_vm13, %v2387_v49, %v2383_v53  ;;  %v2402_v38 = vor.u32 1.1754944e-38, %v2401_v58  ;;  %vm2400_vm7 = vcmp.eq.f32.partialorder %v2399_v63, 8.507059e+37  ;;  %v6079_v34 = vperm.slane %v2448_v32, 0  ;;  %v3568_v53 = vld [vmem:[%s7234_s13 + $0x20] sm:$0xff] }
 0xe2d   :  { %v2350_v33 = vmul.f32 1.442695, %v2343_v44  ;;  %v2421_v52 = vmul.f32 %v4535_v0, %v2388_v46  ;;  %v6081_v45 = vperm.slane %v2448_v32, 1  ;;  %v6085_v5 = vperm.slane %v2448_v32, 2  ;;  %v3569_v44 = vld [vmem:[%s7234_s13 + $0x28] sm:$0xff] }
 0xe2e   :  { %v2490_v27 = vmul.f32 0.0, %v6079_v34  ;;  %v6088_v30 = vperm.slane %v2448_v32, 3  ;;  %v6091_v1 = vperm.slane %v2448_v32, 4  ;;  %v6096_v49 = vperm.slane %v2448_v32, 5 }
 0xe2f   :  { %4544 = vpow2.f32 %v2350_v33  ;;  %v2425_v2 = vsel %vm2353_vm1, %v2388_v46, %v2421_v52  ;;  %v2533_v48 = vmul.f32 0.0, %v6081_v45  ;;  %v2576_v54 = vmul.f32 0.0, %v6085_v5 }
 0xe30   :  { %v4543_v50 = vpop.eup %4542  ;;  %2434 = vrot.lane.b32.xlu1 %v2425_v2, %s4678_s21  ;;  %v2662_v7 = vmul.f32 0.0, %v6091_v1  ;;  %v2705_v33 = vmul.f32 0.0, %v6096_v49  ;;  %v6101_v52 = vperm.slane %v2448_v32, 6  ;;  %v3567_v2 = vld [vmem:[%s7234_s13 + $0x18] sm:$0xff] }
 0xe31   :  { %v2391_v3 = vmul.f32 %v4543_v50, %v2358_v47  ;;  %vm2396_vm3 = vweird.f32 %v4543_v50  ;;  %v2537_v39 = vadd.f32 %v2533_v48, %v2490_v27  ;;  %v3570_v47 = vld [vmem:[%s7234_s13 + $0x30] sm:$0xff]  ;;  %v6173_v48 = vadd.s32 4294967283, %v5497_v22 }
 0xe32   :  { %vm2397_vm6 = vmor %vm2395_vm4, %vm2396_vm3  ;;  %3597 = vmatpush.msra.mxu0 %v3570_v47  ;;  %v2748_v58 = vmul.f32 0.0, %v6101_v52  ;;  %vm2514_vm3 = vcmask 1045504   ;;  %vm2557_vm4 = vcmask 1044480  }
 0xe33   :  { %v2392_v51 = vsub.f32 1.0, %v2391_v3  ;;  %v2580_v37 = vadd.f32 %v2576_v54, %v2537_v39  ;;  %v3566_v3 = vld [vmem:[%s7234_s13 + $0x10] sm:$0xff]  ;;  %v6176_v39 = vadd.s32 4294967284, %v5497_v22  ;;  %v6179_v54 = vadd.s32 4294967285, %v5497_v22 }
 0xe34   :  { %3598 = vmatpush.msra.mxu0 %v3569_v44  ;;  %v6235_v44 = vadd.s32 4294967292, %v5468_v31 }
 0xe35   :  { %v4545_v59 = vpop.eup %4544  ;;  %v2393_v62 = vmul.f32 %v4543_v50, %v2392_v51 }
 0xe36   :  { %v2359_v42 = vadd.f32 1.0, %v4545_v59  ;;  %3599 = vmatpush.msra.mxu0 %v3568_v53  ;;  %v6204_v53 = vadd.s32 4294967290, %v5488_v36 }
 0xe37   :  { %v2394_v12 = vadd.f32 %v4543_v50, %v2393_v62 }
 0xe38   :  { %4546 = vrcp.f32 %v2359_v42  ;;  %v2416_v43 = vand.u32 2147483648, %v2359_v42  ;;  %v2414_v13 = vand.u32 2147483647, %v2359_v42  ;;  %vm2410_vm15 = vweird.f32 %v2359_v42  ;;  %3600 = vmatpush.msra.mxu0 %v3567_v2 }
 0xe39   :  { %v2398_v10 = vsel %vm2397_vm6, %v4543_v50, %v2394_v12  ;;  %v6105_v50 = vld [vmem:[%s7233_s5 + $0x8] sm:$0xff]  ;;  %v6118_v12 = vadd.s32 4294967281, %v5472_v18  ;;  %vm2600_vm6 = vcmask 1043456  }
 0xe3a   :  { %v2403_v35 = vsel %vm2400_vm7, %v2402_v38, %v2398_v10  ;;  %v2417_v23 = vor.u32 1.1754944e-38, %v2416_v43  ;;  %vm2415_vm10 = vcmp.eq.f32.partialorder %v2414_v13, 8.507059e+37  ;;  %v6112_v62 = vperm.slane %v6105_v50, 7  ;;  %v3565_v38 = vld [vmem:[%s7234_s13 + $0x8] sm:$0xff]  ;;  %3601 = vmatpush.msra.mxu0 %v3566_v3 }
 0xe3b   :  { %v2422_v4 = vmul.f32 %v4541_v20, %v2403_v35  ;;  %v2619_v20 = vmul.f32 0.0, %v6088_v30  ;;  %v6122_v10 = vadd.s32 4294967282, %v5472_v18  ;;  %v6141_v43 = vadd.s32 4294967284, %v5472_v18 }
 0xe3c   :  { %7235 = vst [vmem:[#allocation36_spill] sm:$0xff] %v6112_v62  ;;  %3602 = vmatpush.msra.mxu0 %v3565_v38  ;;  %vm2457_vm8 = vcmp.ge.s32.totalorder %v6118_v12, 0  ;;  %v6216_v38 = vadd.s32 4294967291, %v5488_v36 }
 0xe3d   :  { %v2426_v11 = vsel %vm2354_vm11, %v2403_v35, %v2422_v4  ;;  %v2623_v17 = vadd.f32 %v2619_v20, %v2580_v37  ;;  %v6125_v35 = vadd.s32 4294967283, %v5472_v18  ;;  %v6128_v4 = vperm.slane %v6105_v50, 0 }
 0xe3e   :  { %v4547_v0 = vpop.eup %4546  ;;  %2436 = vrot.lane.b32.xlu0 %v2426_v11, %s4678_s21  ;;  %vm2503_vm9 = vcmp.ge.s32.totalorder %v6122_v10, 0  ;;  %v6182_v37 = vadd.s32 4294967286, %v5497_v22  ;;  %vm2589_vm7 = vcmp.ge.s32.totalorder %v6141_v43, 0 }
 0xe3f   :  { %v2406_v9 = vmul.f32 %v4547_v0, %v2359_v42  ;;  %vm2411_vm12 = vweird.f32 %v4547_v0  ;;  %v2666_v46 = vadd.f32 %v2662_v7, %v2623_v17  ;;  %v6115_v42 = vld [vmem:[%s7233_s5 + $0x10] sm:$0xff]  ;;  %vm2546_vm13 = vcmp.ge.s32.totalorder %v6125_v35, 0 }
 0xe40   :  { %vm2412_vm5 = vmor %vm2410_vm15, %vm2411_vm12  ;;  %7236 = vst [vmem:[#allocation37_spill] sm:$0xff] %v6115_v42  ;;  %v6131_v11 = vperm.slane %v6115_v42, 0  ;;  %v6193_v17 = vadd.s32 4294967291, %v5468_v31  ;;  %vm2643_vm15 = vcmask 1042432  }
 0xe41   :  { %v2407_v60 = vsub.f32 1.0, %v2406_v9  ;;  %v2709_v51 = vadd.f32 %v2705_v33, %v2666_v46  ;;  %v6137_v9 = vperm.slane %v6105_v50, 1 }
 0xe42   :  { %7237 = vst [vmem:[#allocation38_spill] sm:$0xff] %v6131_v11 }
 0xe43   :  { %v2408_v15 = vmul.f32 %v4547_v0, %v2407_v60  ;;  %v3564_v60 = vld [vmem:[%s7234_s13] sm:$0xff]  ;;  %v2752_v13 = vadd.f32 %v2748_v58, %v2709_v51  ;;  %v6229_v51 = vperm.slane %v6105_v50, 5 }
 0xe44   :  { %3603 = vmatpush.msra.mxu0 %v3564_v60  ;;  %v6219_v60 = vperm.slane %v6105_v50, 3 }
 0xe45   :  { %v2409_v21 = vadd.f32 %v4547_v0, %v2408_v15  ;;  %v6144_v15 = vadd.s32 4294967285, %v5472_v18 }
 0xe47   :  { %v2413_v40 = vsel %vm2412_vm5, %v4547_v0, %v2409_v21  ;;  %v6134_v0 = vadd.s32 4294967289, %v5468_v31  ;;  %vm2632_vm11 = vcmp.ge.s32.totalorder %v6144_v15, 0  ;;  %vm2686_vm5 = vcmask 1041408  }
 0xe48   :  { %v2418_v24 = vsel %vm2415_vm10, %v2417_v23, %v2413_v40  ;;  %v6151_v40 = vadd.s32 4294967286, %v5472_v18  ;;  %vm2729_vm10 = vcmask 1040384  }
 0xe49   :  { %v2423_v26 = vmul.f32 %v4545_v59, %v2418_v24  ;;  %v6109_v59 = vperm.slane %v2448_v32, 7  ;;  %v6164_v32 = vadd.s32 4294967282, %v5497_v22  ;;  %vm2789_vm1 = vcmp.ge.s32.totalorder %v6134_v0, 0 }
 0xe4a   :  { %vm2675_vm12 = vcmp.ge.s32.totalorder %v6151_v40, 0 }
 0xe4b   :  { %v2427_v57 = vsel %vm2355_vm2, %v2418_v24, %v2423_v26  ;;  %v2777_v21 = vmul.f32 0.0, %v6109_v59  ;;  %v6154_v24 = vadd.s32 4294967287, %v5472_v18  ;;  %v6157_v26 = vperm.slane %v6105_v50, 2 }
 0xe4c   :  { %2438 = vrot.lane.b32.xlu2 %v2427_v57, %s4678_s21  ;;  %v6161_v57 = vadd.s32 4294967281, %v5497_v22  ;;  %vm2548_vm2 = vcmp.ge.s32.totalorder %v6173_v48, 0  ;;  %s7298_s21 = sld [smem:[#allocation18_spill]] }
 0xe4d   :  { %v6190_v47 = vadd.f32 %v2777_v21, %v2752_v13 }
 0xe9a   :  { %v2433_v63 = vpop.permute.xlu0 %2432 }
 0xe9b   :  { %v6148_v23 = vmul.f32 %v2433_v63, %v6058_v61  ;;  %v6169_v61 = vadd.s32 4294967290, %v5468_v31 }
 0xe9d   :  { %v2477_v7 = vrot.slane %v6148_v23, 1  ;;  %v2563_v46 = vrot.slane %v6148_v23, 3  ;;  %v6213_v58 = vmul.f32 %v6109_v59, %v6148_v23  ;;  %v7242_v2 = vrot.slane %v6148_v23, 2 }
 0xe9e   :  { %vm2818_vm0 = vcmp.ge.s32.totalorder %v6169_v61, 0  ;;  %v7247_v22 = vrot.slane %v6148_v23, 5  ;;  %v7255_v11 = vrot.slane %v6148_v23, 4 }
 0xea2   :  { %v2435_v27 = vpop.permute.xlu1 %2434 }
 0xea3   :  { %v6185_v20 = vmul.f32 %v2435_v27, %v6061_v56  ;;  %v6201_v56 = vadd.s32 4294967289, %v5488_v36  ;;  %v6226_v27 = vperm.slane %v6105_v50, 4 }
 0xea5   :  { %v7238_v25 = vrot.slane %v6185_v20, 1  ;;  %v7263_v28 = vrot.slane %v6185_v20, 2 }
 0xea6   :  { %v2439_v63 = vpop.permute.xlu2 %2438 }
 0xea7   :  { %v6223_v21 = vmul.f32 %v2439_v63, %v6068_v41  ;;  %v6249_v13 = vsel %vm997_vm14, %v2477_v7, %v7238_v25 }
 0xea8   :  { %7239 = vst [vmem:[#allocation39_spill] sm:$0xff] %v6249_v13 }
 0xea9   :  { %v7151_v14 = vrot.slane %v6223_v21, 4  ;;  %v7240_v41 = vrot.slane %v6223_v21, 1  ;;  %v7243_v33 = vrot.slane %v6223_v21, 2  ;;  %v7245_v3 = vrot.slane %v6223_v21, 3 }
 0xeaa   :  { %v7250_v10 = vrot.slane %v6223_v21, 6 }
 0xeab   :  { %v6254_v63 = vsel %vm997_vm14, %v7240_v41, %v2477_v7  ;;  %v6263_v16 = vsel %vm2514_vm3, %v7243_v33, %v7242_v2  ;;  %v6268_v25 = vsel %vm2557_vm4, %v7245_v3, %v2563_v46  ;;  %v7246_v2 = vrot.slane %v6148_v23, 4 }
 0xeac   :  { %7241 = vst [vmem:[#allocation40_spill] sm:$0xff] %v6254_v63  ;;  %v2486_v7 = vsel %vm2457_vm8, %v6254_v63, 0.0  ;;  %v2529_v41 = vsel %vm2503_vm9, %v6263_v16, 0.0  ;;  %v2572_v33 = vsel %vm2546_vm13, %v6268_v25, 0.0  ;;  %v2801_v55 = vsel %vm2789_vm1, %v6254_v63, 0.0 }
 0xead   :  { %7244 = vst [vmem:[#allocation41_spill] sm:$0xff] %v6263_v16  ;;  %v6285_v3 = vsel %vm2600_vm6, %v7151_v14, %v7246_v2  ;;  %v2491_v12 = vmul.f32 %v6079_v34, %v2486_v7  ;;  %v2534_v35 = vmul.f32 %v6081_v45, %v2529_v41  ;;  %vm2591_vm8 = vcmp.ge.s32.totalorder %v6176_v39, 0 }
 0xeae   :  { %v2577_v6 = vmul.f32 %v6085_v5, %v2572_v33  ;;  %v7248_v2 = vrot.slane %v6223_v21, 5  ;;  %v7249_v7 = vrot.slane %v6148_v23, 6  ;;  %v2615_v33 = vsel %vm2589_vm7, %v6285_v3, 0.0 }
 0xeaf   :  { %v2538_v19 = vadd.f32 %v2534_v35, %v2491_v12  ;;  %vm2634_vm9 = vcmp.ge.s32.totalorder %v6179_v54, 0  ;;  %vm2677_vm13 = vcmp.ge.s32.totalorder %v6182_v37, 0  ;;  %v2806_v12 = vmul.f32 %v6128_v4, %v2801_v55 }
 0xeb0   :  { %v6301_v14 = vsel %vm2643_vm15, %v7248_v2, %v7247_v22  ;;  %v6308_v0 = vsel %vm2686_vm5, %v7250_v10, %v7249_v7  ;;  %v6324_v2 = vmul.f32 %v6128_v4, %v6249_v13  ;;  %v2437_v43 = vpop.permute.xlu0 %2436  ;;  %v7251_v35 = vrot.slane %v6185_v20, 2 }
 0xeb1   :  { %v2658_v22 = vsel %vm2632_vm11, %v6301_v14, 0.0  ;;  %v2701_v10 = vsel %vm2675_vm12, %v6308_v0, 0.0  ;;  %v7252_v7 = vrot.slane %v6148_v23, 2  ;;  %v7253_v41 = vrot.slane %v6185_v20, 3 }
 0xeb2   :  { %vm2720_vm1 = vcmp.ge.s32.totalorder %v6188_v29, 0  ;;  %v6341_v40 = vmul.f32 %v2437_v43, %v6064_v8  ;;  %v2581_v18 = vadd.f32 %v2577_v6, %v2538_v19  ;;  %v7254_v55 = vrot.slane %v6185_v20, 4 }
 0xeb3   :  { %v6332_v15 = vsel %vm2514_vm3, %v7252_v7, %v7251_v35  ;;  %v6337_v63 = vsel %vm2557_vm4, %v2563_v46, %v7253_v41  ;;  %v7256_v35 = vrot.slane %v6148_v23, 7  ;;  %v7257_v7 = vrot.slane %v6223_v21, 7 }
 0xeb4   :  { %v6348_v13 = vsel %vm2600_vm6, %v7255_v11, %v7254_v55  ;;  %vm2791_vm7 = vcmp.ge.s32.totalorder %v6201_v56, 0  ;;  %v2620_v19 = vmul.f32 %v6088_v30, %v2615_v33  ;;  %v7259_v6 = vrot.slane %v6185_v20, 5 }
 0xeb5   :  { %v6355_v46 = vsel %vm2729_vm10, %v7257_v7, %v7256_v35  ;;  %v7260_v8 = vrot.slane %v6148_v23, 5  ;;  %v2663_v41 = vmul.f32 %v6091_v1, %v2658_v22  ;;  %v2706_v43 = vmul.f32 %v6096_v49, %v2701_v10 }
 0xeb6   :  { %7258 = vst [vmem:[#allocation42_spill] sm:$0xff] %v6355_v46  ;;  %v7163_v55 = vrot.slane %v6341_v40, 1  ;;  %v7164_v35 = vrot.slane %v6341_v40, 2  ;;  %v7165_v7 = vrot.slane %v6341_v40, 3  ;;  %v2624_v33 = vadd.f32 %v2620_v19, %v2581_v18 }
 0xeb7   :  { %v6366_v11 = vsel %vm2643_vm15, %v7260_v8, %v7259_v6  ;;  %vm7261_vm11 = vcmp.ge.s32.totalorder %v6154_v24, 0  ;;  %v2810_v22 = vadd.f32 %v2806_v12, %v6190_v47  ;;  %v7262_v10 = vrot.slane %v6185_v20, 1 }
 0xeb8   :  { %v2744_v6 = vsel %vm7261_vm11, %v6355_v46, 0.0  ;;  %v6392_v18 = vsel %vm2514_vm3, %v7263_v28, %v7164_v35  ;;  %vm7264_vm11 = vcmp.ge.s32.totalorder %v6161_v57, 0  ;;  %vm7265_vm12 = vcmp.ge.s32.totalorder %v6164_v32, 0 }
 0xeb9   :  { %v6385_v8 = vsel %vm997_vm14, %v7262_v10, %v7163_v55  ;;  %v2531_v10 = vsel %vm7265_vm12, %v6392_v18, 0.0  ;;  %v7266_v55 = vrot.slane %v6185_v20, 3  ;;  %v7267_v28 = vrot.slane %v6341_v40, 4 }
 0xeba   :  { %v2488_v12 = vsel %vm7264_vm11, %v6385_v8, 0.0  ;;  %v7268_v35 = vrot.slane %v6185_v20, 4  ;;  %v2536_v19 = vmul.f32 %v6081_v45, %v2531_v10  ;;  %v7269_v62 = vrot.slane %v6341_v40, 5 }
 0xebb   :  { %v6407_v42 = vsel %vm2557_vm4, %v7266_v55, %v7165_v7  ;;  %v2493_v57 = vmul.f32 %v6079_v34, %v2488_v12  ;;  %v2830_v55 = vsel %vm2818_vm0, %v6263_v16, 0.0  ;;  %v2667_v45 = vadd.f32 %v2663_v41, %v2624_v33 }
 0xebc   :  { %v6414_v24 = vsel %vm2600_vm6, %v7268_v35, %v7267_v28  ;;  %v2574_v32 = vsel %vm2548_vm2, %v6407_v42, 0.0  ;;  %v7270_v35 = vrot.slane %v6185_v20, 5  ;;  %v2749_v12 = vmul.f32 %v6101_v52, %v2744_v6 }
 0xebd   :  { %v2617_v7 = vsel %vm2591_vm8, %v6414_v24, 0.0  ;;  %v2540_v48 = vadd.f32 %v2536_v19, %v2493_v57  ;;  %v2579_v10 = vmul.f32 %v6085_v5, %v2574_v32  ;;  %v7271_v61 = vrot.slane %v6341_v40, 6 }
 0xebe   :  { %v6432_v34 = vsel %vm2643_vm15, %v7270_v35, %v7269_v62  ;;  %v7272_v28 = vrot.slane %v6185_v20, 6  ;;  %v7273_v16 = vrot.slane %v6341_v40, 7  ;;  %v7274_v46 = vrot.slane %v6185_v20, 7 }
 0xebf   :  { %v2660_v41 = vsel %vm2634_vm9, %v6432_v34, 0.0  ;;  %v2710_v33 = vadd.f32 %v2706_v43, %v2667_v45  ;;  %v2835_v6 = vmul.f32 %v6137_v9, %v2830_v55  ;;  %v2583_v19 = vadd.f32 %v2579_v10, %v2540_v48 }
 0xec0   :  { %v6441_v39 = vsel %vm2686_vm5, %v7272_v28, %v7271_v61  ;;  %v6448_v62 = vsel %vm2729_vm10, %v7274_v46, %v7273_v16  ;;  %v2622_v57 = vmul.f32 %v6088_v30, %v2617_v7  ;;  %v2836_v16 = vmul.f32 %v6137_v9, %v6332_v15 }
 0xec1   :  { %v2703_v5 = vsel %vm2677_vm13, %v6441_v39, 0.0  ;;  %v2746_v32 = vsel %vm2720_vm1, %v6448_v62, 0.0  ;;  %v2753_v46 = vadd.f32 %v2749_v12, %v2710_v33  ;;  %v2803_v54 = vsel %vm2791_vm7, %v6385_v8, 0.0 }
 0xec2   :  { %vm7275_vm0 = vcmp.ge.s32.totalorder %v6204_v53, 0  ;;  %vm7276_vm2 = vcmp.ge.s32.totalorder %v6193_v17, 0  ;;  %v2626_v43 = vadd.f32 %v2622_v57, %v2583_v19  ;;  %v2665_v29 = vmul.f32 %v6091_v1, %v2660_v41 }
 0xec3   :  { %v2832_v37 = vsel %vm7275_vm0, %v6392_v18, 0.0  ;;  %v2859_v30 = vsel %vm7276_vm2, %v6268_v25, 0.0  ;;  %v2708_v7 = vmul.f32 %v6096_v49, %v2703_v5  ;;  %v2808_v55 = vmul.f32 %v6128_v4, %v2803_v54 }
 0xec4   :  { %v2751_v35 = vmul.f32 %v6101_v52, %v2746_v32  ;;  %v2782_v56 = vadd.f32 %v6213_v58, %v2753_v46  ;;  %v2839_v45 = vadd.f32 %v2835_v6, %v2810_v22  ;;  %vm7277_vm8 = vcmp.ge.s32.totalorder %v6216_v38, 0 }
 0xec5   :  { %v2861_v53 = vsel %vm7277_vm8, %v6407_v42, 0.0  ;;  %v2669_v12 = vadd.f32 %v2665_v29, %v2626_v43  ;;  %v2812_v17 = vadd.f32 %v2808_v55, %v6190_v47  ;;  %v2837_v48 = vmul.f32 %v6137_v9, %v2832_v37 }
 0xec6   :  { %v2864_v1 = vmul.f32 %v6157_v26, %v2859_v30  ;;  %v2811_v49 = vadd.f32 %v6324_v2, %v2782_v56  ;;  %v2866_v10 = vmul.f32 %v6157_v26, %v2861_v53  ;;  %v2874_v52 = vadd.s32 4294967292, %v5488_v36 }
 0xec7   :  { %vm2876_vm9 = vcmp.ge.s32.totalorder %v6235_v44, 0  ;;  %v2712_v58 = vadd.f32 %v2708_v7, %v2669_v12  ;;  %v2841_v22 = vadd.f32 %v2837_v48, %v2812_v17  ;;  %v2865_v47 = vmul.f32 %v6157_v26, %v6337_v63 }
 0xec8   :  { %v2868_v61 = vadd.f32 %v2864_v1, %v2839_v45  ;;  %v2888_v38 = vsel %vm2876_vm9, %v6285_v3, 0.0  ;;  %v2840_v28 = vadd.f32 %v2836_v16, %v2811_v49  ;;  %vm2878_vm13 = vcmp.ge.s32.totalorder %v2874_v52, 0 }
 0xec9   :  { %v2901_v41 = vadd.s32 4294967293, %v5468_v31  ;;  %v2870_v5 = vadd.f32 %v2866_v10, %v2841_v22  ;;  %v2890_v2 = vsel %vm2878_vm13, %v6414_v24, 0.0  ;;  %v2893_v33 = vmul.f32 %v6219_v60, %v2888_v38 }
 0xeca   :  { %v2903_v6 = vadd.s32 4294967293, %v5488_v36  ;;  %v2755_v44 = vadd.f32 %v2751_v35, %v2712_v58  ;;  %v2869_v19 = vadd.f32 %v2865_v47, %v2840_v28  ;;  %v2895_v57 = vmul.f32 %v6219_v60, %v2890_v2  ;;  %v7282_v2 = vld [vmem:[#allocation42_spill] sm:$0xff] }
 0xecb   :  { %vm2905_vm1 = vcmp.ge.s32.totalorder %v2901_v41, 0  ;;  %v7278_v32 = vrot.slane %v6185_v20, 6  ;;  %v7279_v16 = vrot.slane %v6148_v23, 6  ;;  %v2897_v54 = vadd.f32 %v2893_v33, %v2868_v61 }
 0xecc   :  { %vm2907_vm7 = vcmp.ge.s32.totalorder %v2903_v6, 0  ;;  %v2917_v37 = vsel %vm2905_vm1, %v6301_v14, 0.0  ;;  %v2780_v30 = vmul.f32 %v6109_v59, %v6341_v40  ;;  %v2894_v43 = vmul.f32 %v6219_v60, %v6348_v13 }
 0xecd   :  { %v6500_v46 = vsel %vm2686_vm5, %v7279_v16, %v7278_v32  ;;  %v2899_v29 = vadd.f32 %v2895_v57, %v2870_v5  ;;  %v2919_v7 = vsel %vm2907_vm7, %v6432_v34, 0.0  ;;  %v7280_v55 = vrot.slane %v6223_v21, 1 }
 0xece   :  { %v7281_v35 = vrot.slane %v6341_v40, 1  ;;  %v2922_v45 = vmul.f32 %v6226_v27, %v2917_v37  ;;  %v2930_v53 = vadd.s32 4294967294, %v5468_v31  ;;  %v2932_v12 = vadd.s32 4294967294, %v5488_v36  ;;  %v7285_v37 = vld [vmem:[#allocation36_spill] sm:$0xff] }
 0xecf   :  { %v2784_v17 = vadd.f32 %v2780_v30, %v2755_v44  ;;  %v2898_v59 = vadd.f32 %v2894_v43, %v2869_v19  ;;  %v2924_v48 = vmul.f32 %v6226_v27, %v2919_v7  ;;  %v2959_v1 = vadd.s32 4294967295, %v5468_v31 }
 0xed0   :  { %v2472_v56 = vsel %vm997_vm14, %v7281_v35, %v7280_v55  ;;  %v2923_v49 = vmul.f32 %v6226_v27, %v6366_v11  ;;  %v2926_v10 = vadd.f32 %v2922_v45, %v2897_v54  ;;  %vm2934_vm12 = vcmp.ge.s32.totalorder %v2930_v53, 0  ;;  %v7288_v35 = vld [vmem:[#allocation37_spill] sm:$0xff] }
 0xed1   :  { %vm2936_vm11 = vcmp.ge.s32.totalorder %v2932_v12, 0  ;;  %v2928_v52 = vadd.f32 %v2924_v48, %v2899_v29  ;;  %v2946_v58 = vsel %vm2934_vm12, %v6308_v0, 0.0  ;;  %v2961_v61 = vadd.s32 4294967295, %v5488_v36 }
 0xed2   :  { %v2948_v22 = vsel %vm2936_vm11, %v6441_v39, 0.0  ;;  %v2809_v38 = vmul.f32 %v6128_v4, %v2472_v56  ;;  %v2951_v28 = vmul.f32 %v6229_v51, %v2946_v58  ;;  %vm2963_vm14 = vcmp.ge.s32.totalorder %v2959_v1, 0  ;;  %v7290_v1 = vld [vmem:[#allocation39_spill] sm:$0xff] }
 0xed3   :  { %v6526_v47 = vperm.slane %v6105_v50, 6  ;;  %v2927_v41 = vadd.f32 %v2923_v49, %v2898_v59  ;;  %v2953_v5 = vmul.f32 %v6229_v51, %v2948_v22  ;;  %vm2965_vm0 = vcmp.ge.s32.totalorder %v2961_v61, 0  ;;  %v7289_v59 = vld [vmem:[#allocation29_spill] sm:$0xff]  ;;  %v7291_v49 = vld [vmem:[#allocation38_spill] sm:$0xff] }
 0xed4   :  { %v2975_v33 = vsel %vm2963_vm14, %v7282_v2, 0.0  ;;  %v7283_v6 = vrot.slane %v6223_v21, 2  ;;  %v7284_v44 = vrot.slane %v6341_v40, 2  ;;  %v2955_v4 = vadd.f32 %v2951_v28, %v2926_v10 }
 0xed5   :  { %v2977_v57 = vsel %vm2965_vm0, %v6448_v62, 0.0  ;;  %v2980_v32 = vmul.f32 %v6526_v47, %v2975_v33  ;;  %v2813_v50 = vadd.f32 %v2809_v38, %v2784_v17  ;;  %v2952_v16 = vmul.f32 %v6229_v51, %v6500_v46 }
 0xed6   :  { %v6535_v19 = vsel %vm2514_vm3, %v7284_v44, %v7283_v6  ;;  %v2957_v54 = vadd.f32 %v2953_v5, %v2928_v52  ;;  %v3005_v30 = vmul.f32 %v7285_v37, %v6148_v23  ;;  %v7286_v43 = vrot.slane %v6185_v20, 7 }
 0xed7   :  { %v7287_v29 = vrot.slane %v6148_v23, 7  ;;  %v2984_v55 = vadd.f32 %v2980_v32, %v2955_v4  ;;  %v6549_v45 = vperm.slane %v7288_v35, 1  ;;  %v2838_v53 = vmul.f32 %v6137_v9, %v6535_v19 }
 0xed8   :  { %v2956_v12 = vadd.f32 %v2952_v16, %v2927_v41  ;;  %v2982_v17 = vmul.f32 %v6526_v47, %v2977_v57  ;;  %vm3018_vm3 = vcmp.lt.s32.totalorder %v7289_v59, 16  ;;  %v3006_v48 = vmul.f32 %v7285_v37, %v6185_v20  ;;  %v6581_v57 = vld [vmem:[%s7233_s5 + $0x18] sm:$0x7f] }
 0xed9   :  { %v2737_v7 = vsel %vm2729_vm10, %v7287_v29, %v7286_v43  ;;  %v3030_v23 = vmul.f32 %v7291_v49, %v7290_v1  ;;  %v3009_v10 = vadd.f32 %v3005_v30, %v2984_v55  ;;  %v6560_v52 = vperm.slane %v7288_v35, 2 }
 0xeda   :  { %v6562_v58 = vadd.f32 %v2838_v53, %v2813_v50  ;;  %v2981_v9 = vmul.f32 %v6526_v47, %v2737_v7  ;;  %v2986_v22 = vadd.f32 %v2982_v17, %v2957_v54  ;;  %v6566_v61 = vperm.slane %v7288_v35, 3 }
 0xedb   :  { %v3034_v38 = vadd.f32 %v3030_v23, %v3009_v10  ;;  %v3059_v28 = vmul.f32 %v6549_v45, %v6332_v15  ;;  %v3241_v41 = vadd.s32 9, %v5468_v31  ;;  %v3270_v5 = vadd.s32 10, %v5468_v31 }
 0xedc   :  { %v2985_v33 = vadd.f32 %v2981_v9, %v2956_v12  ;;  %v3007_v6 = vmul.f32 %v7285_v37, %v6341_v40  ;;  %v6575_v44 = vperm.slane %v7288_v35, 4  ;;  %v6578_v4 = vperm.slane %v7288_v35, 5 }
 0xedd   :  { %v3032_v32 = vmul.f32 %v7291_v49, %v2472_v56  ;;  %v3063_v50 = vadd.f32 %v3059_v28, %v3034_v38  ;;  %v3088_v15 = vmul.f32 %v6560_v52, %v6337_v63  ;;  %v3299_v16 = vadd.s32 11, %v5468_v31 }
 0xede   :  { %v3011_v54 = vadd.f32 %v3007_v6, %v2986_v22  ;;  %v3117_v30 = vmul.f32 %v6566_v61, %v6348_v13  ;;  %vm3249_vm2 = vcmp.lt.s32.totalorder %v3241_v41, 16  ;;  %vm3278_vm8 = vcmp.lt.s32.totalorder %v3270_v5, 16 }
 0xedf   :  { %v3092_v43 = vadd.f32 %v3088_v15, %v3063_v50  ;;  %v6590_v29 = vperm.slane %v7288_v35, 6  ;;  %v6593_v55 = vperm.slane %v7288_v35, 7  ;;  %vm3307_vm9 = vcmp.lt.s32.totalorder %v3299_v16, 16 }
 0xee0   :  { %v3010_v56 = vadd.f32 %v3006_v48, %v2985_v33  ;;  %v3146_v63 = vmul.f32 %v6575_v44, %v6366_v11  ;;  %v3175_v53 = vmul.f32 %v6578_v4, %v6500_v46  ;;  %v6600_v12 = vperm.slane %v6581_v57, 0  ;;  %v7292_v33 = vld [vmem:[#allocation28_spill] sm:$0xff] }
 0xee1   :  { %v3121_v13 = vadd.f32 %v3117_v30, %v3092_v43  ;;  %v3257_v17 = vsel %vm3249_vm2, %v6385_v8, 0.0  ;;  %v3286_v1 = vsel %vm3278_vm8, %v6392_v18, 0.0  ;;  %v3328_v23 = vadd.s32 12, %v5468_v31 }
 0xee2   :  { %v6605_v35 = vadd.f32 %v3032_v32, %v3011_v54  ;;  %v6608_v48 = vperm.slane %v6581_v57, 1  ;;  %v3315_v11 = vsel %vm3307_vm9, %v6407_v42, 0.0  ;;  %v3357_v10 = vadd.s32 13, %v5468_v31 }
 0xee3   :  { %v3150_v46 = vadd.f32 %v3146_v63, %v3121_v13  ;;  %v3204_v9 = vmul.f32 %v6590_v29, %v2737_v7  ;;  %v3233_v22 = vmul.f32 %v6593_v55, %v6185_v20  ;;  %v6616_v38 = vperm.slane %v6581_v57, 2 }
 0xee4   :  { %v3262_v28 = vmul.f32 %v6600_v12, %v3257_v17  ;;  %v3291_v41 = vmul.f32 %v6608_v48, %v3286_v1  ;;  %v3026_v5 = vsel %vm3018_vm3, %v6385_v8, 0.0  ;;  %v3039_v6 = vadd.s32 2, %v7292_v33 }
 0xee5   :  { %v3179_v32 = vadd.f32 %v3175_v53, %v3150_v46  ;;  %v3320_v50 = vmul.f32 %v6616_v38, %v3315_v11  ;;  %vm3336_vm13 = vcmp.lt.s32.totalorder %v3328_v23, 16  ;;  %v6626_v7 = vperm.slane %v6581_v57, 3 }
 0xee6   :  { %vm3365_vm1 = vcmp.lt.s32.totalorder %v3357_v10, 16  ;;  %v3031_v20 = vmul.f32 %v7291_v49, %v3026_v5  ;;  %vm3047_vm7 = vcmp.lt.s32.totalorder %v3039_v6, 16  ;;  %v3068_v15 = vadd.s32 3, %v7292_v33 }
 0xee7   :  { %v3208_v16 = vadd.f32 %v3204_v9, %v3179_v32  ;;  %v3386_v54 = vadd.s32 14, %v5468_v31  ;;  %v3055_v8 = vsel %vm3047_vm7, %v6392_v18, 0.0  ;;  %v3097_v59 = vadd.s32 4, %v7292_v33 }
 0xee8   :  { %v3035_v30 = vadd.f32 %v3031_v20, %v3010_v56  ;;  %v3060_v43 = vmul.f32 %v6549_v45, %v3055_v8  ;;  %vm3076_vm12 = vcmp.lt.s32.totalorder %v3068_v15, 16  ;;  %v3126_v63 = vadd.s32 5, %v7292_v33 }
 0xee9   :  { %v3237_v53 = vadd.f32 %v3233_v22, %v3208_v16  ;;  %v3084_v13 = vsel %vm3076_vm12, %v6407_v42, 0.0  ;;  %vm3105_vm11 = vcmp.lt.s32.totalorder %v3097_v59, 16  ;;  %v3155_v17 = vadd.s32 6, %v7292_v33 }
 0xeea   :  { %v3064_v1 = vadd.f32 %v3060_v43, %v3035_v30  ;;  %v3089_v11 = vmul.f32 %v6560_v52, %v3084_v13  ;;  %v3113_v46 = vsel %vm3105_vm11, %v6414_v24, 0.0  ;;  %vm3134_vm14 = vcmp.lt.s32.totalorder %v3126_v63, 16 }
 0xeeb   :  { %v3266_v18 = vadd.f32 %v3262_v28, %v3237_v53  ;;  %v3415_v56 = vadd.s32 15, %v5468_v31  ;;  %v3142_v9 = vsel %vm3134_vm14, %v6432_v34, 0.0  ;;  %vm3163_vm0 = vcmp.lt.s32.totalorder %v3155_v17, 16 }
 0xeec   :  { %v3344_v22 = vsel %vm3336_vm13, %v6414_v24, 0.0  ;;  %v3093_v5 = vadd.f32 %v3089_v11, %v3064_v1  ;;  %v3118_v42 = vmul.f32 %v6566_v61, %v3113_v46  ;;  %v3184_v6 = vadd.s32 7, %v7292_v33 }
 0xeed   :  { %v3295_v32 = vadd.f32 %v3291_v41, %v3266_v18  ;;  %v6646_v20 = vperm.slane %v6581_v57, 4  ;;  %vm3394_vm3 = vcmp.lt.s32.totalorder %v3386_v54, 16  ;;  %v3171_v28 = vsel %vm3163_vm0, %v6441_v39, 0.0 }
 0xeee   :  { %v3373_v31 = vsel %vm3365_vm1, %v6432_v34, 0.0  ;;  %v3122_v15 = vadd.f32 %v3118_v42, %v3093_v5  ;;  %v3147_v16 = vmul.f32 %v6575_v44, %v3142_v9  ;;  %vm3192_vm2 = vcmp.lt.s32.totalorder %v3184_v6, 16  ;;  %v6686_v6 = vld [vmem:[%s7295_s17] ss:$0 sm:$0xff] }
 0xeef   :  { %v3324_v24 = vadd.f32 %v3320_v50, %v3295_v32  ;;  %v3349_v23 = vmul.f32 %v6626_v7, %v3344_v22  ;;  %vm3423_vm8 = vcmp.lt.s32.totalorder %v3415_v56, 16  ;;  %v3200_v33 = vsel %vm3192_vm2, %v6448_v62, 0.0 }
 0xef0   :  { %v3402_v41 = vsel %vm3394_vm3, %v6441_v39, 0.0  ;;  %v3151_v8 = vadd.f32 %v3147_v16, %v3122_v15  ;;  %v3176_v54 = vmul.f32 %v6578_v4, %v3171_v28  ;;  %v7293_v59 = vrot.slane %v6223_v21, 3 }
 0xef1   :  { %v7294_v10 = vrot.slane %v6341_v40, 3  ;;  %v3353_v30 = vadd.f32 %v3349_v23, %v3324_v24  ;;  %v3378_v43 = vmul.f32 %v6646_v20, %v3373_v31  ;;  %v6663_v50 = vperm.slane %v6581_v57, 5 }
 0xef2   :  { %v6666_v63 = vperm.slane %v6581_v57, 6  ;;  %v3431_v39 = vsel %vm3423_vm8, %v6448_v62, 0.0  ;;  %v3180_v53 = vadd.f32 %v3176_v54, %v3151_v8  ;;  %v3205_v13 = vmul.f32 %v6590_v29, %v3200_v33  ;;  %v6700_v33 = vld [vmem:[%s7298_s21] ss:$0 sm:$0xff] }
 0xef3   :  { %v2560_v34 = vsel %vm2557_vm4, %v7294_v10, %v7293_v59  ;;  %v3061_v17 = vmul.f32 %v6549_v45, %v6535_v19  ;;  %v3382_v1 = vadd.f32 %v3378_v43, %v3353_v30  ;;  %v3407_v11 = vmul.f32 %v6663_v50, %v3402_v41 }
 0xef4   :  { %v7296_v46 = vrot.slane %v6223_v21, 4  ;;  %v7297_v18 = vrot.slane %v6341_v40, 4  ;;  %v2867_v57 = vmul.f32 %v6157_v26, %v2560_v34  ;;  %v3209_v9 = vadd.f32 %v3205_v13, %v3180_v53 }
 0xef5   :  { %v6680_v62 = vmul.f32 0.0, %v6593_v55  ;;  %v3065_v22 = vadd.f32 %v3061_v17, %v6605_v35  ;;  %v3090_v19 = vmul.f32 %v6560_v52, %v2560_v34  ;;  %v3411_v5 = vadd.f32 %v3407_v11, %v3382_v1 }
 0xef6   :  { %v2603_v56 = vsel %vm2600_vm6, %v7297_v18, %v7296_v46  ;;  %v3436_v42 = vmul.f32 %v6666_v63, %v3431_v39  ;;  %v7299_v32 = vrot.slane %v6223_v21, 5  ;;  %v7300_v28 = vrot.slane %v6341_v40, 5  ;;  %v6715_v39 = vld [vmem:[%s7301_s25] ss:$0 sm:$0xff] }
 0xef7   :  { %v2871_v31 = vadd.f32 %v2867_v57, %v6562_v58  ;;  %v3238_v15 = vadd.f32 %v6680_v62, %v3209_v9  ;;  %v6696_v35 = vmul.f32 0.0, %v6600_v12  ;;  %v3094_v16 = vadd.f32 %v3090_v19, %v3065_v22 }
 0xef8   :  { %v2646_v26 = vsel %vm2643_vm15, %v7300_v28, %v7299_v32  ;;  %v3119_v24 = vmul.f32 %v6566_v61, %v2603_v56  ;;  %v3440_v23 = vadd.f32 %v3436_v42, %v3411_v5  ;;  %v7302_v41 = vrot.slane %v6223_v21, 6 }
 0xef9   :  { %v7303_v8 = vrot.slane %v6341_v40, 6  ;;  %v2896_v59 = vmul.f32 %v6219_v60, %v2603_v56  ;;  %v3267_v58 = vadd.f32 %v6696_v35, %v3238_v15  ;;  %v6710_v10 = vmul.f32 0.0, %v6608_v48 }
 0xefa   :  { %v3123_v34 = vadd.f32 %v3119_v24, %v3094_v16  ;;  %v3148_v30 = vmul.f32 %v6575_v44, %v2646_v26  ;;  %v3448_v43 = vadd.f32 %v6686_v6, %v3440_v23  ;;  %v7304_v53 = vrot.slane %v6223_v21, 7 }
 0xefb   :  { %v2689_v54 = vsel %vm2686_vm5, %v7303_v8, %v7302_v41  ;;  %v7305_v13 = vrot.slane %v6341_v40, 7  ;;  %v2900_v1 = vadd.f32 %v2896_v59, %v2871_v31  ;;  %v3296_v60 = vadd.f32 %v6710_v10, %v3267_v58 }
 0xefc   :  { %v6724_v11 = vmul.f32 0.0, %v6616_v38  ;;  %v3152_v46 = vadd.f32 %v3148_v30, %v3123_v34  ;;  %v3177_v18 = vmul.f32 %v6578_v4, %v2689_v54  ;;  %v3456_v56 = vmul.f32 %v6700_v33, %v3448_v43  ;;  %v7306_v30 = vld [vmem:[#allocation40_spill] sm:$0xff] }
 0xefd   :  { %v2732_v17 = vsel %vm2729_vm10, %v7305_v13, %v7304_v53  ;;  %v3243_v57 = vadd.s32 9, %v5488_v36  ;;  %v6731_v22 = vmul.f32 0.0, %v6626_v7  ;;  %v2925_v40 = vmul.f32 %v6226_v27, %v2646_v26 }
 0xefe   :  { %v3325_v9 = vadd.f32 %v6724_v11, %v3296_v60  ;;  %v3181_v19 = vadd.f32 %v3177_v18, %v3152_v46  ;;  %v6735_v5 = vadd.f32 %v6715_v39, %v3456_v56  ;;  %v3206_v42 = vmul.f32 %v6590_v29, %v2732_v17  ;;  %v7307_v46 = vld [vmem:[#allocation41_spill] sm:$0xff] }
 0xeff   :  { %v6740_v28 = vmul.f32 0.0, %v6646_v20  ;;  %v2929_v31 = vadd.f32 %v2925_v40, %v2900_v1  ;;  %vm3251_vm4 = vcmp.lt.s32.totalorder %v3243_v57, 16  ;;  %v3272_v24 = vadd.s32 10, %v5488_v36  ;;  %v7308_v57 = vld [vmem:[#allocation31_spill] sm:$0xff] }
 0xf00   :  { %v3354_v32 = vadd.f32 %v6731_v22, %v3325_v9  ;;  %v3468_v15 = vand.u32 2147483647, %v6735_v5  ;;  %v3210_v16 = vadd.f32 %v3206_v42, %v3181_v19  ;;  %v6746_v26 = vmul.f32 0.0, %v6663_v50 }
 0xf01   :  { %v2954_v41 = vmul.f32 %v6229_v51, %v2689_v54  ;;  %v3235_v8 = vmul.f32 %v6593_v55, %v6223_v21  ;;  %v3301_v59 = vadd.s32 11, %v5488_v36  ;;  %v6754_v34 = vmul.f32 0.0, %v6666_v63 }
 0xf02   :  { %v3383_v27 = vadd.f32 %v6740_v28, %v3354_v32  ;;  %v3472_v23 = vsub.f32 0.0, %v3468_v15  ;;  %v3259_v43 = vsel %vm3251_vm4, %v7306_v30, 0.0  ;;  %vm3280_vm6 = vcmp.lt.s32.totalorder %v3272_v24, 16 }
 0xf03   :  { %v2958_v13 = vadd.f32 %v2954_v41, %v2929_v31  ;;  %v3239_v1 = vadd.f32 %v3235_v8, %v3210_v16  ;;  %v2983_v51 = vmul.f32 %v6526_v47, %v2732_v17  ;;  %v3264_v55 = vmul.f32 %v6600_v12, %v3259_v43  ;;  %v7309_v47 = vld [vmem:[#allocation30_spill] sm:$0xff] }
 0xf04   :  { %v3412_v58 = vadd.f32 %v6746_v26, %v3383_v27  ;;  %v3476_v53 = vmul.f32 1.442695, %v3472_v23  ;;  %vm3309_vm15 = vcmp.lt.s32.totalorder %v3301_v59, 16  ;;  %v3288_v18 = vsel %vm3280_vm6, %v7307_v46, 0.0 }
 0xf05   :  { %v3330_v56 = vadd.s32 12, %v5488_v36  ;;  %vm3020_vm5 = vcmp.lt.s32.totalorder %v7308_v57, 16  ;;  %v2987_v9 = vadd.f32 %v2983_v51, %v2958_v13  ;;  %v3268_v40 = vadd.f32 %v3264_v55, %v3239_v1 }
 0xf06   :  { %v3441_v60 = vadd.f32 %v6754_v34, %v3412_v58  ;;  %4548 = vpow2.f32 %v3476_v53  ;;  %v3317_v42 = vsel %vm3309_vm15, %v6268_v25, 0.0  ;;  %v3359_v32 = vadd.s32 13, %v5488_v36 }
 0xf07   :  { %v3041_v17 = vadd.s32 2, %v7309_v47  ;;  %v3008_v12 = vmul.f32 %v7285_v37, %v6223_v21  ;;  %v3293_v31 = vmul.f32 %v6608_v48, %v3288_v18  ;;  %v3388_v15 = vadd.s32 14, %v5488_v36 }
 0xf08   :  { %v3449_v54 = vadd.f32 %v6686_v6, %v3441_v60  ;;  %v3028_v24 = vsel %vm3020_vm5, %v7306_v30, 0.0  ;;  %vm3338_vm10 = vcmp.lt.s32.totalorder %v3330_v56, 16  ;;  %v3070_v27 = vadd.s32 3, %v7309_v47 }
 0xf09   :  { %v3012_v41 = vadd.f32 %v3008_v12, %v2987_v9  ;;  %v3297_v8 = vadd.f32 %v3293_v31, %v3268_v40  ;;  %v3322_v59 = vmul.f32 %v6616_v38, %v3317_v42  ;;  %v3417_v21 = vadd.s32 15, %v5488_v36 }
 0xf0a   :  { %v3457_v19 = vmul.f32 %v6700_v33, %v3449_v54  ;;  %vm3367_vm9 = vcmp.lt.s32.totalorder %v3359_v32, 16  ;;  %vm3049_vm13 = vcmp.lt.s32.totalorder %v3041_v17, 16  ;;  %v3346_v58 = vsel %vm3338_vm10, %v6285_v3, 0.0 }
 0xf0b   :  { %vm3396_vm1 = vcmp.lt.s32.totalorder %v3388_v15, 16  ;;  %v3099_v30 = vadd.s32 4, %v7309_v47  ;;  %v3033_v43 = vmul.f32 %v7291_v49, %v3028_v24  ;;  %v3326_v53 = vadd.f32 %v3322_v59, %v3297_v8 }
 0xf0c   :  { %v6773_v16 = vadd.f32 %v6715_v39, %v3457_v19  ;;  %v6777_v23 = vpop.eup %4548  ;;  %vm3078_vm7 = vcmp.lt.s32.totalorder %v3070_v27, 16  ;;  %v3375_v36 = vsel %vm3367_vm9, %v6301_v14, 0.0  ;;  %v3057_v13 = vsel %vm3049_vm13, %v7307_v46, 0.0 }
 0xf0d   :  { %v6782_v37 = vadd.f32 1.0, %v6777_v23  ;;  %v3037_v1 = vadd.f32 %v3033_v43, %v3012_v41  ;;  %v3351_v60 = vmul.f32 %v6626_v7, %v3346_v58  ;;  %v3404_v51 = vsel %vm3396_vm1, %v6308_v0, 0.0 }
 0xf0e   :  { %v3469_v48 = vand.u32 2147483647, %v6773_v16  ;;  %vm3425_vm12 = vcmp.lt.s32.totalorder %v3417_v21, 16  ;;  %v3086_v54 = vsel %vm3078_vm7, %v6268_v25, 0.0  ;;  %vm3107_vm11 = vcmp.lt.s32.totalorder %v3099_v30, 16 }
 0xf0f   :  { %4550 = vrcp.f32 %v6782_v37  ;;  %v3128_v18 = vadd.s32 5, %v7309_v47  ;;  %v3355_v49 = vadd.f32 %v3351_v60, %v3326_v53  ;;  %v3380_v56 = vmul.f32 %v6646_v20, %v3375_v36 }
 0xf10   :  { %v3473_v38 = vsub.f32 0.0, %v3469_v48  ;;  %v3062_v57 = vmul.f32 %v6549_v45, %v3057_v13  ;;  %v3409_v46 = vmul.f32 %v6663_v50, %v3404_v51  ;;  %v3433_v9 = vsel %vm3425_vm12, %v7282_v2, 0.0 }
 0xf11   :  { %v3157_v7 = vadd.s32 6, %v7309_v47  ;;  %v3384_v19 = vadd.f32 %v3380_v56, %v3355_v49  ;;  %v3091_v25 = vmul.f32 %v6560_v52, %v3086_v54  ;;  %v3115_v32 = vsel %vm3107_vm11, %v6285_v3, 0.0 }
 0xf12   :  { %v3478_v55 = vmul.f32 1.442695, %v3473_v38  ;;  %v3066_v42 = vadd.f32 %v3062_v57, %v3037_v1  ;;  %vm3136_vm14 = vcmp.lt.s32.totalorder %v3128_v18, 16  ;;  %v3438_v45 = vmul.f32 %v6666_v63, %v3433_v9 }
 0xf13   :  { %v3413_v20 = vadd.f32 %v3409_v46, %v3384_v19  ;;  %v3120_v50 = vmul.f32 %v6566_v61, %v3115_v32  ;;  %v3186_v15 = vadd.s32 7, %v7309_v47  ;;  %v3503_v24 = vand.u32 2147483648, %v6782_v37 }
 0xf14   :  { %4552 = vpow2.f32 %v3478_v55  ;;  %v3095_v12 = vadd.f32 %v3091_v25, %v3066_v42  ;;  %v3144_v41 = vsel %vm3136_vm14, %v6301_v14, 0.0  ;;  %vm3165_vm0 = vcmp.lt.s32.totalorder %v3157_v7, 16 }
 0xf15   :  { %v4551_v40 = vpop.eup %4550  ;;  %v3442_v27 = vadd.f32 %v3438_v45, %v3413_v20  ;;  %v3501_v8 = vand.u32 2147483647, %v6782_v37  ;;  %vm3497_vm2 = vweird.f32 %v6782_v37  ;;  %v3149_v61 = vmul.f32 %v6575_v44, %v3144_v41 }
 0xf16   :  { %v3493_v17 = vmul.f32 %v4551_v40, %v6782_v37  ;;  %vm3498_vm3 = vweird.f32 %v4551_v40  ;;  %v3124_v59 = vadd.f32 %v3120_v50, %v3095_v12  ;;  %v3504_v47 = vor.u32 1.1754944e-38, %v3503_v24 }
 0xf17   :  { %v3450_v63 = vadd.f32 %v6686_v6, %v3442_v27  ;;  %vm3499_vm8 = vmor %vm3497_vm2, %vm3498_vm3  ;;  %v3173_v14 = vsel %vm3165_vm0, %v6308_v0, 0.0  ;;  %vm3194_vm4 = vcmp.lt.s32.totalorder %v3186_v15, 16  ;;  %vm3502_vm6 = vcmp.eq.f32.partialorder %v3501_v8, 8.507059e+37 }
 0xf18   :  { %v3494_v31 = vsub.f32 1.0, %v3493_v17  ;;  %v3153_v43 = vadd.f32 %v3149_v61, %v3124_v59  ;;  %v3178_v37 = vmul.f32 %v6578_v4, %v3173_v14  ;;  %v3202_v44 = vsel %vm3194_vm4, %v7282_v2, 0.0 }
 0xf19   :  { %v3458_v30 = vmul.f32 %v6700_v33, %v3450_v63  ;;  %vm3484_vm15 = vcmp.ge.f32.partialorder %v6735_v5, 0.0  ;;  %v3207_v55 = vmul.f32 %v6590_v29, %v3202_v44  ;;  %vm7310_vm5 = vcmask 523264  }
 0xf1a   :  { %v4553_v52 = vpop.eup %4552  ;;  %v3495_v3 = vmul.f32 %v4551_v40, %v3494_v31  ;;  %v3182_v1 = vadd.f32 %v3178_v37, %v3153_v43  ;;  %vm3485_vm7 = vcmp.ge.f32.partialorder %v6773_v16, 0.0  ;;  %vm7311_vm12 = vmmov %vm7310_vm5 }
 0xf1b   :  { %v3489_v21 = vadd.f32 1.0, %v4553_v52  ;;  %v6816_v36 = vadd.f32 %v6715_v39, %v3458_v30 }
 0xf1c   :  { %v3496_v48 = vadd.f32 %v4551_v40, %v3495_v3  ;;  %v3211_v18 = vadd.f32 %v3207_v55, %v3182_v1 }
 0xf1d   :  { %4554 = vrcp.f32 %v3489_v21  ;;  %v3470_v0 = vand.u32 2147483647, %v6816_v36  ;;  %v3518_v56 = vand.u32 2147483648, %v3489_v21  ;;  %v3516_v46 = vand.u32 2147483647, %v3489_v21 }
 0xf1e   :  { %v3500_v58 = vsel %vm3499_vm8, %v4551_v40, %v3496_v48  ;;  %v3240_v2 = vadd.f32 %v6680_v62, %v3211_v18  ;;  %vm3512_vm9 = vweird.f32 %v3489_v21  ;;  %vm3486_vm2 = vcmp.ge.f32.partialorder %v6816_v36, 0.0  ;;  %vm7312_vm8 = vmmov %vm7310_vm5 }
 0xf1f   :  { %v3505_v53 = vsel %vm3502_vm6, %v3504_v47, %v3500_v58  ;;  %v3519_v29 = vor.u32 1.1754944e-38, %v3518_v56  ;;  %vm3517_vm1 = vcmp.eq.f32.partialorder %v3516_v46, 8.507059e+37  ;;  %v7319_v46 = vld [vmem:[#allocation34_spill] sm:$0xff] }
 0xf20   :  { %v3552_v38 = vmul.f32 %v6777_v23, %v3505_v53  ;;  %v3474_v23 = vsub.f32 0.0, %v3470_v0  ;;  %v3269_v9 = vadd.f32 %v6696_v35, %v3240_v2  ;;  %v4452_v0 = vld [vmem:[%s7313_s29] ss:$0 sm:$0xff] }
 0xf22   :  { %v3556_v13 = vsel %vm3484_vm15, %v3505_v53, %v3552_v38  ;;  %v3480_v4 = vmul.f32 1.442695, %v3474_v23 }
 0xf23   :  { %v4555_v60 = vpop.eup %4554  ;;  %v3560_v51 = vmul.f32 %v3556_v13, %v6735_v5  ;;  %v3298_v5 = vadd.f32 %v6710_v10, %v3269_v9 }
 0xf24   :  { %v3508_v54 = vmul.f32 %v4555_v60, %v3489_v21  ;;  %vm3513_vm10 = vweird.f32 %v4555_v60  ;;  %4556 = vpow2.f32 %v3480_v4 }
 0xf25   :  { %4356 = vmatmul.msk.f32.vlgmr.msra.gmra.mxu0 %vm7310_vm5, %v3560_v51  ;;  %vm3514_vm13 = vmor %vm3512_vm9, %vm3513_vm10  ;;  %v3327_v42 = vadd.f32 %v6724_v11, %v3298_v5  ;;  %v7315_v51 = vld [vmem:[#allocation32_spill] sm:$0xff] }
 0xf26   :  { %v3509_v49 = vsub.f32 1.0, %v3508_v54  ;;  %vm7314_vm9 = vmmov %vm7312_vm8 }
 0xf27   :  { %v3356_v17 = vadd.f32 %v6731_v22, %v3327_v42 }
 0xf28   :  { %v3510_v57 = vmul.f32 %v4555_v60, %v3509_v49  ;;  %v7317_v49 = vld [vmem:[#allocation33_spill] sm:$0xff] }
 0xf29   :  { %v3385_v45 = vadd.f32 %v6740_v28, %v3356_v17 }
 0xf2a   :  { %v3511_v7 = vadd.f32 %v4555_v60, %v3510_v57  ;;  %v4557_v25 = vpop.eup %4556 }
 0xf2b   :  { %v3490_v62 = vadd.f32 1.0, %v4557_v25  ;;  %v3414_v10 = vadd.f32 %v6746_v26, %v3385_v45 }
 0xf2c   :  { %v3515_v40 = vsel %vm3514_vm13, %v4555_v60, %v3511_v7  ;;  %vm7316_vm13 = vmmov %vm7312_vm8 }
 0xf2d   :  { %v3520_v19 = vsel %vm3517_vm1, %v3519_v29, %v3515_v40  ;;  %4558 = vrcp.f32 %v3490_v62  ;;  %v3443_v12 = vadd.f32 %v6754_v34, %v3414_v10  ;;  %v3533_v22 = vand.u32 2147483648, %v3490_v62  ;;  %vm7318_vm1 = vmmov %vm7312_vm8  ;;  %v7321_v40 = vld [vmem:[#allocation35_spill] sm:$0xff] }
 0xf2e   :  { %v3553_v32 = vmul.f32 %v4553_v52, %v3520_v19  ;;  %vm3527_vm14 = vweird.f32 %v3490_v62 }
 0xf2f   :  { %v3451_v50 = vadd.f32 %v6686_v6, %v3443_v12  ;;  %v3534_v26 = vor.u32 1.1754944e-38, %v3533_v22 }
 0xf30   :  { %v3557_v20 = vsel %vm3485_vm7, %v3520_v19, %v3553_v32  ;;  %vm7320_vm7 = vmmov %vm7318_vm1  ;;  %v7323_v32 = vld [vmem:[#allocation27_spill] sm:$0xff] }
 0xf31   :  { %v3561_v35 = vmul.f32 %v3557_v20, %v6773_v16  ;;  %v3459_v24 = vmul.f32 %v6700_v33, %v3451_v50  ;;  %v3531_v16 = vand.u32 2147483647, %v3490_v62 }
 0xf33   :  { %4357 = vmatmul.msk.f32.gmra.mxu0 %vm7311_vm12, %v3561_v35  ;;  %v4559_v11 = vpop.eup %4558  ;;  %v3467_v41 = vadd.f32 %v6715_v39, %v3459_v24  ;;  %vm3532_vm3 = vcmp.eq.f32.partialorder %v3531_v16, 8.507059e+37  ;;  %vm7322_vm12 = vmmov %vm7318_vm1 }
 0xf34   :  { %v3523_v31 = vmul.f32 %v4559_v11, %v3490_v62  ;;  %vm3528_vm11 = vweird.f32 %v4559_v11 }
 0xf35   :  { %v3471_v52 = vand.u32 2147483647, %v3467_v41  ;;  %vm3529_vm0 = vmor %vm3527_vm14, %vm3528_vm11  ;;  %vm3487_vm10 = vcmp.ge.f32.partialorder %v3467_v41, 0.0 }
 0xf36   :  { %v3524_v15 = vsub.f32 1.0, %v3523_v31  ;;  %vm7324_vm11 = vmmov %vm7318_vm1 }
 0xf37   :  { %v3475_v34 = vsub.f32 0.0, %v3471_v52  ;;  %vm7326_vm14 = vmmov %vm7318_vm1 }
 0xf38   :  { %v3525_v27 = vmul.f32 %v4559_v11, %v3524_v15 }
 0xf39   :  { %v3482_v6 = vmul.f32 1.442695, %v3475_v34  ;;  %v3636_v34 = vld [vmem:[%s7325_s3 + $0x68] sm:$0xff] }
 0xf3a   :  { %v3526_v28 = vadd.f32 %v4559_v11, %v3525_v27 }
 0xf3b   :  { %4560 = vpow2.f32 %v3482_v6 }
 0xf3c   :  { %v3530_v3 = vsel %vm3529_vm0, %v4559_v11, %v3526_v28  ;;  %vm7327_vm0 = vmmov %vm7318_vm1 }
 0xf3d   :  { %v3535_v8 = vsel %vm3532_vm3, %v3534_v26, %v3530_v3  ;;  %vm7328_vm3 = vmmov %vm7327_vm0  ;;  %v3638_v3 = vld [vmem:[%s7325_s3 + $0x78] sm:$0xff] }
 0xf3e   :  { %v3554_v59 = vmul.f32 %v4557_v25, %v3535_v8  ;;  %3829 = vmatpush.msrb.mxu2 %v3638_v3 }
 0xf40   :  { %v3558_v33 = vsel %vm3486_vm2, %v3535_v8, %v3554_v59  ;;  %v3637_v8 = vld [vmem:[%s7325_s3 + $0x70] sm:$0xff]  ;;  %v3634_v59 = vld [vmem:[%s7325_s3 + $0x58] sm:$0xff]  ;;  %3830 = vmatpush.msrb.mxu2 %v3636_v34 }
 0xf41   :  { %v3562_v21 = vmul.f32 %v3558_v33, %v6816_v36  ;;  %v4561_v39 = vpop.eup %4560  ;;  %3800 = vmatpush.msrb.mxu1 %v3637_v8 }
 0xf42   :  { %v3491_v63 = vadd.f32 1.0, %v4561_v39  ;;  %3831 = vmatpush.msrb.mxu2 %v3634_v59 }
 0xf43   :  { %4358 = vmatmul.msk.f32.gmra.mxu0 %vm7312_vm8, %v3562_v21 }
 0xf44   :  { %4562 = vrcp.f32 %v3491_v63  ;;  %v3548_v14 = vand.u32 2147483648, %v3491_v63  ;;  %v3546_v30 = vand.u32 2147483647, %v3491_v63  ;;  %vm3542_vm6 = vweird.f32 %v3491_v63 }
 0xf46   :  { %v3549_v53 = vor.u32 1.1754944e-38, %v3548_v14  ;;  %vm3547_vm5 = vcmp.eq.f32.partialorder %v3546_v30, 8.507059e+37  ;;  %v3629_v14 = vld [vmem:[%s7325_s3 + $0x30] sm:$0xff] }
 0xf4a   :  { %v4563_v48 = vpop.eup %4562 }
 0xf4b   :  { %v3538_v61 = vmul.f32 %v4563_v48, %v3491_v63  ;;  %vm3543_vm4 = vweird.f32 %v4563_v48  ;;  %v3632_v63 = vld [vmem:[%s7325_s3 + $0x48] sm:$0xff] }
 0xf4c   :  { %vm3544_vm15 = vmor %vm3542_vm6, %vm3543_vm4  ;;  %3832 = vmatpush.msrb.mxu2 %v3632_v63 }
 0xf4d   :  { %v3539_v47 = vsub.f32 1.0, %v3538_v61  ;;  %v3630_v61 = vld [vmem:[%s7325_s3 + $0x38] sm:$0xff]  ;;  %vm7331_vm6 = vmmov %vm7327_vm0 }
 0xf4e   :  { %3833 = vmatpush.msrb.mxu2 %v3630_v61 }
 0xf4f   :  { %v3540_v58 = vmul.f32 %v4563_v48, %v3539_v47  ;;  %v3631_v47 = vld [vmem:[%s7325_s3 + $0x40] sm:$0xff] }
 0xf51   :  { %v3541_v43 = vadd.f32 %v4563_v48, %v3540_v58 }
 0xf53   :  { %v3545_v38 = vsel %vm3544_vm15, %v4563_v48, %v3541_v43  ;;  %v3633_v48 = vld [vmem:[%s7325_s3 + $0x50] sm:$0xff]  ;;  %vm7332_vm15 = vmmov %vm7327_vm0 }
 0xf54   :  { %v3550_v36 = vsel %vm3547_vm5, %v3549_v53, %v3545_v38 }
 0xf55   :  { %v3555_v37 = vmul.f32 %v4561_v39, %v3550_v36  ;;  %v3635_v39 = vld [vmem:[%s7325_s3 + $0x60] sm:$0xff] }
 0xf56   :  { %3801 = vmatpush.msrb.mxu1 %v3635_v39 }
 0xf57   :  { %v3559_v44 = vsel %vm3487_vm10, %v3550_v36, %v3555_v37 }
 0xf58   :  { %v3563_v13 = vmul.f32 %v3559_v44, %v3467_v41  ;;  %3802 = vmatpush.msrb.mxu1 %v3633_v48 }
 0xf5a   :  { %4359 = vmatmul.msk.f32.gmra.mxu0 %vm7314_vm9, %v3563_v13  ;;  %3803 = vmatpush.msrb.mxu1 %v3631_v47 }
 0xf5c   :  { %3804 = vmatpush.msrb.mxu1 %v3629_v14  ;;  %v3639_v14 = vld [vmem:[%s7336_s19] sm:$0x3] }
 0xfa2   :  { %v3605_v1 = vpop.f32.mrf.mxu0 }
 0xfa3   :  { %v3606_v60 = vadd.f32 %v4452_v0, %v3605_v1 }
 0xfa5   :  { %v6845_v55 = vadd.f32 %v3606_v60, %v7315_v51  ;;  %v3627_v51 = vld [vmem:[%s7325_s3 + $0x20] sm:$0xff] }
 0xfa6   :  { %3805 = vmatpush.msrb.mxu1 %v3627_v51 }
 0xfa7   :  { %v3673_v54 = vsel %vm7316_vm13, %v6845_v55, 0.0 }
 0xfa8   :  { %3674 = vadd.xlane.f32.xlu2 %v3673_v54  ;;  %v3628_v54 = vld [vmem:[%s7325_s3 + $0x28] sm:$0xff] }
 0xfa9   :  { %3834 = vmatpush.msrb.mxu2 %v3628_v54  ;;  %v3671_v54 = vld [vmem:[%s7338_s24 + $0xf8] sm:$0xff] }
 0xfaa   :  { %4074 = vmatpush.msrb.mxu0 %v3671_v54 }
 0xfb0   :  { %v3608_v23 = vpop.f32.mrf.mxu0 }
 0xfb1   :  { %v3609_v18 = vadd.f32 %v4452_v0, %v3608_v23  ;;  %v3625_v23 = vld [vmem:[%s7325_s3 + $0x10] sm:$0xff] }
 0xfb2   :  { %3806 = vmatpush.msrb.mxu1 %v3625_v23 }
 0xfb3   :  { %v6850_v4 = vadd.f32 %v3609_v18, %v7317_v49  ;;  %v3626_v49 = vld [vmem:[%s7325_s3 + $0x18] sm:$0xff] }
 0xfb4   :  { %3835 = vmatpush.msrb.mxu2 %v3626_v49  ;;  %v3670_v49 = vld [vmem:[%s7338_s24 + $0xf0] sm:$0xff] }
 0xfb5   :  { %v3676_v56 = vsel %vm7318_vm1, %v6850_v4, 0.0  ;;  %4075 = vmatpush.msrb.mxu0 %v3670_v49 }
 0xfb6   :  { %3677 = vadd.xlane.f32.xlu0 %v3676_v56 }
 0xfc0   :  { %v3611_v2 = vpop.f32.mrf.mxu0 }
 0xfc1   :  { %v3612_v57 = vadd.f32 %v4452_v0, %v3611_v2  ;;  %v3623_v2 = vld [vmem:[%s7325_s3] sm:$0xff] }
 0xfc2   :  { %3807 = vmatpush.msrb.mxu1 %v3623_v2  ;;  %v3669_v2 = vld [vmem:[%s7338_s24 + $0xe8] sm:$0xff] }
 0xfc3   :  { %v6855_v9 = vadd.f32 %v3612_v57, %v7319_v46  ;;  %v3624_v57 = vld [vmem:[%s7325_s3 + $0x8] sm:$0xff]  ;;  %v4454_v46 = vld [vmem:[%s7330_s14] ss:$0 sm:$0xff]  ;;  %4076 = vmatpush.msrb.mxu0 %v3669_v2 }
 0xfc4   :  { %3836 = vmatpush.msrb.mxu2 %v3624_v57  ;;  %v3652_v57 = vld [vmem:[%s7338_s24 + $0x60] sm:$0xff] }
 0xfc5   :  { %v3679_v7 = vsel %vm7320_vm7, %v6855_v9, 0.0 }
 0xfc6   :  { %3680 = vadd.xlane.f32.xlu1 %v3679_v7 }
 0xfd7   :  { %v3614_v29 = vpop.f32.mrf.mxu0 }
 0xfd8   :  { %v3615_v5 = vadd.f32 %v4452_v0, %v3614_v29  ;;  %v6901_v0 = vld [vmem:[%s7329_s8] ss:$0 sm:$0xff] }
 0xfda   :  { %v6860_v19 = vadd.f32 %v3615_v5, %v7321_v40 }
 0xfdc   :  { %v3682_v42 = vsel %vm7322_vm12, %v6860_v19, 0.0  ;;  %vm7333_vm12 = vmmov %vm7327_vm0 }
 0xfdd   :  { %3683 = vadd.xlane.f32.xlu2 %v3682_v42 }
0x101b   :  { %v3675_v25 = vpop.xlane.xlu2 %3674 }
0x101c   :  { %v3685_v62 = vmul.f32 %v3675_v25, %v7323_v32 }
0x101e   :  { %v3689_v17 = vsub.f32 %v6845_v55, %v3685_v62 }
0x1020   :  { %v3693_v20 = vmul.f32 %v3689_v17, %v3689_v17 }
0x1022   :  { %v3697_v35 = vsel %vm7324_vm11, %v3693_v20, 0.0  ;;  %vm7334_vm11 = vmmov %vm7327_vm0 }
0x1023   :  { %3698 = vadd.xlane.f32.xlu0 %v3697_v35 }
0x1029   :  { %v3678_v45 = vpop.xlane.xlu0 %3677 }
0x102a   :  { %v3686_v10 = vmul.f32 %v3678_v45, %v7323_v32 }
0x102c   :  { %v6869_v12 = vsub.f32 %v6850_v4, %v3686_v10 }
0x102e   :  { %v3694_v11 = vmul.f32 %v6869_v12, %v6869_v12 }
0x1030   :  { %v3700_v31 = vsel %vm7326_vm14, %v3694_v11, 0.0  ;;  %vm7335_vm14 = vmmov %vm7327_vm0 }
0x1031   :  { %3701 = vadd.xlane.f32.xlu1 %v3700_v31 }
0x1039   :  { %v3681_v50 = vpop.xlane.xlu1 %3680 }
0x103a   :  { %v3687_v15 = vmul.f32 %v3681_v50, %v7323_v32 }
0x103c   :  { %v6876_v24 = vsub.f32 %v6855_v9, %v3687_v15 }
0x103e   :  { %v3695_v22 = vmul.f32 %v6876_v24, %v6876_v24 }
0x1040   :  { %v3703_v27 = vsel %vm7327_vm0, %v3695_v22, 0.0 }
0x1041   :  { %3704 = vadd.xlane.f32.xlu2 %v3703_v27 }
0x1050   :  { %v3684_v16 = vpop.xlane.xlu2 %3683 }
0x1051   :  { %v3688_v41 = vmul.f32 %v3684_v16, %v7323_v32 }
0x1053   :  { %v6883_v28 = vsub.f32 %v6860_v19, %v3688_v41 }
0x1055   :  { %v3696_v52 = vmul.f32 %v6883_v28, %v6883_v28 }
0x1057   :  { %v3706_v26 = vsel %vm7328_vm3, %v3696_v52, 0.0 }
0x1058   :  { %3707 = vadd.xlane.f32.xlu0 %v3706_v26 }
0x1096   :  { %v3699_v6 = vpop.xlane.xlu0 %3698 }
0x1097   :  { %v3709_v33 = vmul.f32 %v3699_v6, %v7323_v32 }
0x1099   :  { %v3713_v21 = vadd.f32 1e-05, %v3709_v33 }
0x109b   :  { %4564 = vrsqrt.f32 %v3713_v21  ;;  %vm3723_vm8 = vweird.f32 %v3713_v21 }
0x10a1   :  { %v4565_v58 = vpop.eup %4564 }
0x10a2   :  { %v3718_v30 = vmul.f32 %v4565_v58, %v3713_v21  ;;  %vm3724_vm2 = vweird.f32 %v4565_v58 }
0x10a3   :  { %vm3725_vm4 = vmor %vm3723_vm8, %vm3724_vm2 }
0x10a4   :  { %v3719_v43 = vmul.f32 %v4565_v58, %v3718_v30  ;;  %v3702_v53 = vpop.xlane.xlu1 %3701 }
0x10a5   :  { %v3710_v38 = vmul.f32 %v3702_v53, %v7323_v32 }
0x10a6   :  { %v3720_v36 = vmul.f32 0.5, %v3719_v43 }
0x10a7   :  { %v3714_v37 = vadd.f32 1e-05, %v3710_v38  ;;  %v6934_v38 = vperm.slane %v3639_v14, 1 }
0x10a8   :  { %v3721_v44 = vsub.f32 1.5, %v3720_v36 }
0x10a9   :  { %4566 = vrsqrt.f32 %v3714_v37  ;;  %vm3733_vm10 = vweird.f32 %v3714_v37 }
0x10aa   :  { %v3722_v13 = vmul.f32 %v4565_v58, %v3721_v44 }
0x10ac   :  { %v3726_v1 = vsel %vm3725_vm4, %v4565_v58, %v3722_v13  ;;  %vm7337_vm4 = vmmov %vm7327_vm0  ;;  %v6928_v58 = vperm.slane %v3639_v14, 0 }
0x10ad   :  { %v3757_v60 = vmul.f32 %v3726_v1, %v3689_v17  ;;  %v3655_v1 = vld [vmem:[%s7338_s24 + $0x78] sm:$0xff] }
0x10ae   :  { %4045 = vmatpush.msrb.mxu3 %v3655_v1 }
0x10af   :  { %v3764_v18 = vmul.f32 %v6901_v0, %v3757_v60  ;;  %v4567_v56 = vpop.eup %4566  ;;  %v3654_v60 = vld [vmem:[%s7338_s24 + $0x70] sm:$0xff] }
0x10b0   :  { %v3728_v29 = vmul.f32 %v4567_v56, %v3714_v37  ;;  %vm3734_vm5 = vweird.f32 %v4567_v56  ;;  %4046 = vmatpush.msrb.mxu3 %v3654_v60 }
0x10b1   :  { %v3771_v7 = vadd.f32 %v4454_v46, %v3764_v18  ;;  %vm3735_vm9 = vmor %vm3733_vm10, %vm3734_vm5  ;;  %v3653_v18 = vld [vmem:[%s7338_s24 + $0x68] sm:$0xff] }
0x10b2   :  { %v3729_v5 = vmul.f32 %v4567_v56, %v3728_v29  ;;  %4047 = vmatpush.msrb.mxu3 %v3653_v18  ;;  %v3650_v29 = vld [vmem:[%s7338_s24 + $0x50] sm:$0xff] }
0x10b3   :  { %4360 = vmatmul.msk.f32.vlgmr.msrb.gmra.mxu1 %vm7331_vm6, %v3771_v7  ;;  %4364 = vmatmul.msk.f32.vlgmr.msrb.gmra.mxu2 %vm7332_vm15, %v3771_v7  ;;  %vm7339_vm6 = vmmov %vm7327_vm0  ;;  %v3668_v7 = vld [vmem:[%s7338_s24 + $0xe0] sm:$0xff] }
0x10b4   :  { %v3705_v40 = vpop.xlane.xlu2 %3704  ;;  %v3730_v25 = vmul.f32 0.5, %v3729_v5  ;;  %4048 = vmatpush.msrb.mxu3 %v3652_v57  ;;  %4077 = vmatpush.msrb.mxu0 %v3668_v7 }
0x10b5   :  { %v3711_v42 = vmul.f32 %v3705_v40, %v7323_v32  ;;  %v3667_v40 = vld [vmem:[%s7338_s24 + $0xd8] sm:$0xff] }
0x10b6   :  { %v3731_v17 = vsub.f32 1.5, %v3730_v25  ;;  %v3649_v25 = vld [vmem:[%s7338_s24 + $0x48] sm:$0xff]  ;;  %4078 = vmatpush.msrb.mxu0 %v3667_v40  ;;  %v3663_v40 = vld [vmem:[%s7338_s24 + $0xb8] sm:$0xff] }
0x10b7   :  { %v3715_v62 = vadd.f32 1e-05, %v3711_v42 }
0x10b8   :  { %v3732_v35 = vmul.f32 %v4567_v56, %v3731_v17 }
0x10b9   :  { %4568 = vrsqrt.f32 %v3715_v62  ;;  %vm3743_vm1 = vweird.f32 %v3715_v62 }
0x10ba   :  { %v3736_v11 = vsel %vm3735_vm9, %v4567_v56, %v3732_v35 }
0x10bb   :  { %v3758_v15 = vmul.f32 %v3736_v11, %v6869_v12 }
0x10bd   :  { %v3765_v27 = vmul.f32 %v6901_v0, %v3758_v15 }
0x10bf   :  { %v4569_v20 = vpop.eup %4568  ;;  %v3772_v41 = vadd.f32 %v4454_v46, %v3765_v27 }
0x10c0   :  { %v3738_v45 = vmul.f32 %v4569_v20, %v3715_v62  ;;  %vm3744_vm13 = vweird.f32 %v4569_v20  ;;  %v3666_v62 = vld [vmem:[%s7338_s24 + $0xd0] sm:$0xff] }
0x10c1   :  { %vm3745_vm7 = vmor %vm3743_vm1, %vm3744_vm13  ;;  %4361 = vmatmul.msk.f32.gmra.mxu1 %vm7333_vm12, %v3772_v41  ;;  %4365 = vmatmul.msk.f32.gmra.mxu2 %vm7334_vm11, %v3772_v41  ;;  %v3645_v41 = vld [vmem:[%s7338_s24 + $0x28] sm:$0xff] }
0x10c2   :  { %v3739_v10 = vmul.f32 %v4569_v20, %v3738_v45  ;;  %v3648_v45 = vld [vmem:[%s7338_s24 + $0x40] sm:$0xff]  ;;  %4079 = vmatpush.msrb.mxu0 %v3666_v62  ;;  %v3662_v62 = vld [vmem:[%s7338_s24 + $0xb0] sm:$0xff] }
0x10c4   :  { %v3740_v31 = vmul.f32 0.5, %v3739_v10  ;;  %v3647_v10 = vld [vmem:[%s7338_s24 + $0x38] sm:$0xff] }
0x10c6   :  { %v3741_v50 = vsub.f32 1.5, %v3740_v31 }
0x10c8   :  { %v3742_v22 = vmul.f32 %v4569_v20, %v3741_v50  ;;  %v3664_v50 = vld [vmem:[%s7338_s24 + $0xc0] sm:$0xff] }
0x10ca   :  { %v3746_v16 = vsel %vm3745_vm7, %v4569_v20, %v3742_v22  ;;  %v3665_v20 = vld [vmem:[%s7338_s24 + $0xc8] sm:$0xff]  ;;  %v3646_v22 = vld [vmem:[%s7338_s24 + $0x30] sm:$0xff] }
0x10cb   :  { %v3759_v52 = vmul.f32 %v3746_v16, %v6876_v24  ;;  %v3708_v3 = vpop.xlane.xlu0 %3707  ;;  %4080 = vmatpush.msrb.mxu0 %v3665_v20 }
0x10cc   :  { %v3712_v8 = vmul.f32 %v3708_v3, %v7323_v32 }
0x10cd   :  { %v3766_v26 = vmul.f32 %v6901_v0, %v3759_v52  ;;  %4081 = vmatpush.msrb.mxu0 %v3664_v50 }
0x10ce   :  { %v3716_v12 = vadd.f32 1e-05, %v3712_v8 }
0x10cf   :  { %v3773_v34 = vadd.f32 %v4454_v46, %v3766_v26  ;;  %4082 = vmatpush.msrb.mxu0 %v3663_v40 }
0x10d0   :  { %4570 = vrsqrt.f32 %v3716_v12  ;;  %vm3753_vm2 = vweird.f32 %v3716_v12 }
0x10d1   :  { %4362 = vmatmul.msk.f32.gmra.mxu1 %vm7335_vm14, %v3773_v34  ;;  %4366 = vmatmul.msk.f32.gmra.mxu2 %vm7327_vm0, %v3773_v34 }
0x10d2   :  { %4083 = vmatpush.msrb.mxu0 %v3662_v62 }
0x10d6   :  { %v4571_v59 = vpop.eup %4570 }
0x10d7   :  { %v3748_v6 = vmul.f32 %v4571_v59, %v3716_v12  ;;  %vm3754_vm3 = vweird.f32 %v4571_v59 }
0x10d8   :  { %vm3755_vm8 = vmor %vm3753_vm2, %vm3754_vm3 }
0x10d9   :  { %v3749_v24 = vmul.f32 %v4571_v59, %v3748_v6 }
0x10db   :  { %v3750_v33 = vmul.f32 0.5, %v3749_v24 }
0x10dd   :  { %v3751_v21 = vsub.f32 1.5, %v3750_v33 }
0x10df   :  { %v3752_v39 = vmul.f32 %v4571_v59, %v3751_v21 }
0x10e1   :  { %v3756_v63 = vsel %vm3755_vm8, %v4571_v59, %v3752_v39 }
0x10e2   :  { %v3760_v48 = vmul.f32 %v3756_v63, %v6883_v28 }
0x10e4   :  { %v3767_v61 = vmul.f32 %v6901_v0, %v3760_v48 }
0x10e6   :  { %v3774_v47 = vadd.f32 %v4454_v46, %v3767_v61  ;;  %v3651_v46 = vld [vmem:[%s7338_s24 + $0x58] sm:$0xff]  ;;  %v3656_v61 = vld [vmem:[%s7338_s24 + $0x80] sm:$0xff] }
0x10e7   :  { %4049 = vmatpush.msrb.mxu3 %v3651_v46 }
0x10e8   :  { %4363 = vmatmul.msk.f32.gmra.mxu1 %vm7337_vm4, %v3774_v47  ;;  %4367 = vmatmul.msk.f32.gmra.mxu2 %vm7339_vm6, %v3774_v47 }
0x10e9   :  { %4050 = vmatpush.msrb.mxu3 %v3650_v29  ;;  %v3644_v29 = vld [vmem:[%s7338_s24 + $0x20] sm:$0xff] }
0x10eb   :  { %4051 = vmatpush.msrb.mxu3 %v3649_v25 }
0x10ed   :  { %4052 = vmatpush.msrb.mxu3 %v3648_v45 }
0x10ef   :  { %4053 = vmatpush.msrb.mxu3 %v3647_v10 }
0x10f1   :  { %4054 = vmatpush.msrb.mxu3 %v3646_v22 }
0x10f3   :  { %4055 = vmatpush.msrb.mxu3 %v3645_v41  ;;  %v3660_v41 = vld [vmem:[%s7338_s24 + $0xa0] sm:$0xff] }
0x10f5   :  { %4056 = vmatpush.msrb.mxu3 %v3644_v29 }
0x1130   :  { %v3809_v30 = vpop.f32.mrf.mxu1 }
0x1131   :  { %v6931_v43 = vadd.f32 %v3809_v30, %v6928_v58 }
0x1133   :  { %v3850_v28 = vand.u32 2147483647, %v6931_v43  ;;  %vm3882_vm11 = vcmp.ge.f32.partialorder %v6931_v43, 0.0 }
0x1135   :  { %v3858_v53 = vsub.f32 0.0, %v3850_v28 }
0x1136   :  { %v3838_v36 = vpop.f32.mrf.mxu2 }
0x1137   :  { %v3866_v37 = vmul.f32 1.442695, %v3858_v53  ;;  %v6937_v44 = vadd.f32 %v3838_v36, %v6934_v38 }
0x1139   :  { %4572 = vpow2.f32 %v3866_v37  ;;  %v3851_v13 = vand.u32 2147483647, %v6937_v44  ;;  %vm3883_vm14 = vcmp.ge.f32.partialorder %v6937_v44, 0.0 }
0x113b   :  { %v3859_v0 = vsub.f32 0.0, %v3851_v13 }
0x113d   :  { %v3868_v51 = vmul.f32 1.442695, %v3859_v0 }
0x113e   :  { %v3812_v31 = vpop.f32.mrf.mxu1 }
0x113f   :  { %v6943_v23 = vpop.eup %4572  ;;  %4574 = vpow2.f32 %v3868_v51  ;;  %v6971_v15 = vadd.f32 %v3812_v31, %v6928_v58 }
0x1140   :  { %v6948_v56 = vadd.f32 1.0, %v6943_v23 }
0x1141   :  { %v3852_v16 = vand.u32 2147483647, %v6971_v15  ;;  %vm3884_vm3 = vcmp.ge.f32.partialorder %v6971_v15, 0.0 }
0x1142   :  { %4576 = vrcp.f32 %v6948_v56  ;;  %v3909_v24 = vand.u32 2147483648, %v6948_v56  ;;  %vm3903_vm5 = vweird.f32 %v6948_v56  ;;  %v3907_v48 = vand.u32 2147483647, %v6948_v56 }
0x1143   :  { %v3860_v3 = vsub.f32 0.0, %v3852_v16  ;;  %v3641_v16 = vld [vmem:[%s7338_s24 + $0x8] sm:$0xff] }
0x1144   :  { %v3841_v8 = vpop.f32.mrf.mxu2  ;;  %v3910_v28 = vor.u32 1.1754944e-38, %v3909_v24  ;;  %vm3908_vm13 = vcmp.eq.f32.partialorder %v3907_v48, 8.507059e+37 }
0x1145   :  { %v6956_v5 = vpop.eup %4574  ;;  %v3870_v12 = vmul.f32 1.442695, %v3860_v3  ;;  %v6978_v59 = vadd.f32 %v3841_v8, %v6934_v38 }
0x1146   :  { %v6960_v42 = vadd.f32 1.0, %v6956_v5 }
0x1147   :  { %v3853_v39 = vand.u32 2147483647, %v6978_v59 }
0x1148   :  { %v4577_v17 = vpop.eup %4576  ;;  %4578 = vrcp.f32 %v6960_v42  ;;  %vm3918_vm1 = vweird.f32 %v6960_v42  ;;  %v3922_v13 = vand.u32 2147483647, %v6960_v42  ;;  %v3924_v0 = vand.u32 2147483648, %v6960_v42 }
0x1149   :  { %v3899_v35 = vmul.f32 %v4577_v17, %v6948_v56  ;;  %vm3904_vm15 = vweird.f32 %v4577_v17  ;;  %4580 = vpow2.f32 %v3870_v12  ;;  %v3861_v47 = vsub.f32 0.0, %v3853_v39 }
0x114a   :  { %vm6987_vm10 = vmor %vm3903_vm5, %vm3904_vm15  ;;  %v3925_v46 = vor.u32 1.1754944e-38, %v3924_v0  ;;  %vm3923_vm12 = vcmp.eq.f32.partialorder %v3922_v13, 8.507059e+37  ;;  %vm3885_vm5 = vcmp.ge.f32.partialorder %v6978_v59, 0.0 }
0x114b   :  { %v3900_v11 = vsub.f32 1.0, %v3899_v35  ;;  %v3872_v36 = vmul.f32 1.442695, %v3861_v47  ;;  %v3661_v35 = vld [vmem:[%s7338_s24 + $0xa8] sm:$0xff] }
0x114c   :  { %4084 = vmatpush.msrb.mxu0 %v3661_v35 }
0x114d   :  { %v3901_v52 = vmul.f32 %v4577_v17, %v3900_v11  ;;  %4582 = vpow2.f32 %v3872_v36 }
0x114e   :  { %v4579_v27 = vpop.eup %4578  ;;  %v3815_v33 = vpop.f32.mrf.mxu1  ;;  %4085 = vmatpush.msrb.mxu0 %v3660_v41 }
0x114f   :  { %v3914_v26 = vmul.f32 %v4579_v27, %v6960_v42  ;;  %v3902_v6 = vadd.f32 %v4577_v17, %v3901_v52  ;;  %v6983_v63 = vadd.f32 %v3815_v33, %v6928_v58  ;;  %vm3919_vm9 = vweird.f32 %v4579_v27  ;;  %v6997_v60 = vpop.eup %4580  ;;  %v3643_v42 = vld [vmem:[%s7338_s24 + $0x18] sm:$0xff]  ;;  %v3640_v52 = vld [vmem:[%s7338_s24] sm:$0xff] }
0x1150   :  { %vm3920_vm7 = vmor %vm3918_vm1, %vm3919_vm9  ;;  %v7003_v49 = vadd.f32 1.0, %v6997_v60  ;;  %4057 = vmatpush.msrb.mxu3 %v3643_v42 }
0x1151   :  { %v3915_v34 = vsub.f32 1.0, %v3914_v26  ;;  %v3854_v14 = vand.u32 2147483647, %v6983_v63  ;;  %v3906_v30 = vsel %vm6987_vm10, %v4577_v17, %v3902_v6  ;;  %v3657_v6 = vld [vmem:[%s7338_s24 + $0x88] sm:$0xff] }
0x1152   :  { %v3911_v51 = vsel %vm3908_vm13, %v3910_v28, %v3906_v30  ;;  %v3937_v33 = vand.u32 2147483647, %v7003_v49  ;;  %vm3933_vm2 = vweird.f32 %v7003_v49 }
0x1153   :  { %v3916_v21 = vmul.f32 %v4579_v27, %v3915_v34  ;;  %v3862_v37 = vsub.f32 0.0, %v3854_v14  ;;  %v4018_v57 = vmul.f32 %v6943_v23, %v3911_v51  ;;  %v7012_v17 = vpop.eup %4582  ;;  %v3642_v23 = vld [vmem:[%s7338_s24 + $0x10] sm:$0xff] }
0x1154   :  { %v3844_v1 = vpop.f32.mrf.mxu2  ;;  %v7018_v10 = vadd.f32 1.0, %v7012_v17  ;;  %4058 = vmatpush.msrb.mxu3 %v3642_v23  ;;  %v3658_v34 = vld [vmem:[%s7338_s24 + $0x90] sm:$0xff]  ;;  %vm3938_vm6 = vcmp.eq.f32.partialorder %v3937_v33, 8.507059e+37 }
0x1155   :  { %v3917_v53 = vadd.f32 %v4579_v27, %v3916_v21  ;;  %v3874_v54 = vmul.f32 1.442695, %v3862_v37  ;;  %v7000_v18 = vadd.f32 %v3844_v1, %v6934_v38  ;;  %v4026_v45 = vsel %vm3882_vm11, %v3911_v51, %v4018_v57 }
0x1156   :  { %4059 = vmatpush.msrb.mxu3 %v3641_v16  ;;  %vm3948_vm4 = vweird.f32 %v7018_v10  ;;  %v3954_v51 = vand.u32 2147483648, %v7018_v10 }
0x1157   :  { %v3921_v56 = vsel %vm3920_vm7, %v4579_v27, %v3917_v53  ;;  %4584 = vpow2.f32 %v3874_v54  ;;  %v3855_v2 = vand.u32 2147483647, %v7000_v18  ;;  %v4034_v27 = vmul.f32 %v4026_v45, %v6931_v43 }
0x1158   :  { %4586 = vrcp.f32 %v7003_v49  ;;  %v3926_v25 = vsel %vm3923_vm12, %v3925_v46, %v3921_v56  ;;  %4060 = vmatpush.msrb.mxu3 %v3640_v52  ;;  %v3939_v43 = vand.u32 2147483648, %v7003_v49 }
0x1159   :  { %v3863_v7 = vsub.f32 0.0, %v3855_v2  ;;  %v4019_v31 = vmul.f32 %v6956_v5, %v3926_v25  ;;  %v3659_v5 = vld [vmem:[%s7338_s24 + $0x98] sm:$0xff]  ;;  %4061 = vmatmul.f32.vlgmr.msrb.gmra.mxu3 %v4034_v27 }
0x115a   :  { %4086 = vmatpush.msrb.mxu0 %v3659_v5  ;;  %v3940_v28 = vor.u32 1.1754944e-38, %v3939_v43 }
0x115b   :  { %v3876_v20 = vmul.f32 1.442695, %v3863_v7  ;;  %v4027_v3 = vsel %vm3883_vm14, %v3926_v25, %v4019_v31  ;;  %v3955_v25 = vor.u32 1.1754944e-38, %v3954_v51  ;;  %vm3886_vm14 = vcmp.ge.f32.partialorder %v6983_v63, 0.0 }
0x115c   :  { %v4035_v39 = vmul.f32 %v4027_v3, %v6937_v44  ;;  %4087 = vmatpush.msrb.mxu0 %v3658_v34  ;;  %v3952_v44 = vand.u32 2147483647, %v7018_v10 }
0x115d   :  { %v7020_v11 = vpop.eup %4584  ;;  %4588 = vpow2.f32 %v3876_v20 }
0x115e   :  { %v4587_v50 = vpop.eup %4586  ;;  %4590 = vrcp.f32 %v7018_v10  ;;  %v7025_v22 = vadd.f32 1.0, %v7020_v11  ;;  %4088 = vmatpush.msrb.mxu0 %v3657_v6  ;;  %vm3953_vm1 = vcmp.eq.f32.partialorder %v3952_v44, 8.507059e+37 }
0x115f   :  { %v3929_v26 = vmul.f32 %v4587_v50, %v7003_v49  ;;  %vm3934_vm0 = vweird.f32 %v4587_v50 }
0x1160   :  { %4592 = vrcp.f32 %v7025_v22  ;;  %vm3935_vm8 = vmor %vm3933_vm2, %vm3934_vm0  ;;  %4089 = vmatpush.msrb.mxu0 %v3656_v61  ;;  %v3967_v54 = vand.u32 2147483647, %v7025_v22  ;;  %vm3963_vm10 = vweird.f32 %v7025_v22 }
0x1161   :  { %v3930_v8 = vsub.f32 1.0, %v3929_v26  ;;  %4090 = vmatmul.f32.vlgmr.msrb.gmra.mxu0 %v4035_v39 }
0x1162   :  { %vm3968_vm7 = vcmp.eq.f32.partialorder %v3967_v54, 8.507059e+37 }
0x1163   :  { %v7037_v12 = vpop.eup %4588  ;;  %v3931_v24 = vmul.f32 %v4587_v50, %v3930_v8 }
0x1164   :  { %v4591_v21 = vpop.eup %4590  ;;  %v7043_v48 = vadd.f32 1.0, %v7037_v12 }
0x1165   :  { %v3932_v47 = vadd.f32 %v4587_v50, %v3931_v24  ;;  %v3944_v14 = vmul.f32 %v4591_v21, %v7018_v10  ;;  %v3818_v53 = vpop.f32.mrf.mxu1  ;;  %vm3949_vm15 = vweird.f32 %v4591_v21 }
0x1166   :  { %v4593_v30 = vpop.eup %4592  ;;  %4594 = vrcp.f32 %v7043_v48  ;;  %v7054_v0 = vadd.f32 %v3818_v53, %v6928_v58  ;;  %v3969_v58 = vand.u32 2147483648, %v7025_v22  ;;  %vm3950_vm13 = vmor %vm3948_vm4, %vm3949_vm15  ;;  %v3982_v41 = vand.u32 2147483647, %v7043_v48 }
0x1167   :  { %v3936_v36 = vsel %vm3935_vm8, %v4587_v50, %v3932_v47  ;;  %v3945_v37 = vsub.f32 1.0, %v3944_v14  ;;  %v3959_v13 = vmul.f32 %v4593_v30, %v7025_v22  ;;  %vm3964_vm9 = vweird.f32 %v4593_v30 }
0x1168   :  { %v3941_v1 = vsel %vm3938_vm6, %v3940_v28, %v3936_v36  ;;  %v3856_v57 = vand.u32 2147483647, %v7054_v0  ;;  %vm3965_vm12 = vmor %vm3963_vm10, %vm3964_vm9  ;;  %vm3978_vm0 = vweird.f32 %v7043_v48  ;;  %vm3983_vm2 = vcmp.eq.f32.partialorder %v3982_v41, 8.507059e+37 }
0x1169   :  { %v4020_v49 = vmul.f32 %v6997_v60, %v3941_v1  ;;  %v3946_v56 = vmul.f32 %v4591_v21, %v3945_v37  ;;  %v3960_v2 = vsub.f32 1.0, %v3959_v13  ;;  %vm3887_vm8 = vcmp.ge.f32.partialorder %v7000_v18, 0.0 }
0x116a   :  { %v3864_v42 = vsub.f32 0.0, %v3856_v57  ;;  %vm3888_vm9 = vcmp.ge.f32.partialorder %v7054_v0, 0.0 }
0x116b   :  { %v4028_v46 = vsel %vm3884_vm3, %v3941_v1, %v4020_v49  ;;  %v3947_v7 = vadd.f32 %v4591_v21, %v3946_v56  ;;  %v3961_v29 = vmul.f32 %v4593_v30, %v3960_v2  ;;  %v3847_v62 = vpop.f32.mrf.mxu2 }
0x116c   :  { %v4595_v40 = vpop.eup %4594  ;;  %v4036_v60 = vmul.f32 %v4028_v46, %v6971_v15  ;;  %v3878_v45 = vmul.f32 1.442695, %v3864_v42  ;;  %v7070_v31 = vadd.f32 %v3847_v62, %v6934_v38  ;;  %v3970_v15 = vor.u32 1.1754944e-38, %v3969_v58 }
0x116d   :  { %v3951_v20 = vsel %vm3950_vm13, %v4591_v21, %v3947_v7  ;;  %v3962_v23 = vadd.f32 %v4593_v30, %v3961_v29  ;;  %v3974_v35 = vmul.f32 %v4595_v40, %v7043_v48  ;;  %v3984_v38 = vand.u32 2147483648, %v7043_v48 }
0x116e   :  { %4064 = vmatmul.f32.gmra.mxu3 %v4036_v60  ;;  %v3956_v50 = vsel %vm3953_vm1, %v3955_v25, %v3951_v20  ;;  %4596 = vpow2.f32 %v3878_v45  ;;  %v3857_v52 = vand.u32 2147483647, %v7070_v31  ;;  %vm3979_vm11 = vweird.f32 %v4595_v40 }
0x116f   :  { %v4021_v10 = vmul.f32 %v7012_v17, %v3956_v50  ;;  %v3966_v27 = vsel %vm3965_vm12, %v4593_v30, %v3962_v23  ;;  %v3975_v16 = vsub.f32 1.0, %v3974_v35  ;;  %vm3980_vm3 = vmor %vm3978_vm0, %vm3979_vm11  ;;  %v3985_v33 = vor.u32 1.1754944e-38, %v3984_v38  ;;  %v4455_v23 = vld [vmem:[%s4885_s6] ss:$0 sm:$0xff]  ;;  %s4695_s6 = smov [#allocation2]  }
0x1170   :  { %v3971_v26 = vsel %vm3968_vm7, %v3970_v15, %v3966_v27  ;;  %v3865_v34 = vsub.f32 0.0, %v3857_v52  ;;  %vm3889_vm12 = vcmp.ge.f32.partialorder %v7070_v31, 0.0  ;;  %vm7342_vm11 = vcmask 523264  }
0x1171   :  { %v4029_v5 = vsel %vm3885_vm5, %v3956_v50, %v4021_v10  ;;  %v4022_v3 = vmul.f32 %v7020_v11, %v3971_v26  ;;  %v3976_v22 = vmul.f32 %v4595_v40, %v3975_v16  ;;  %vm7344_vm0 = vmmov %vm7342_vm11 }
0x1172   :  { %v4037_v17 = vmul.f32 %v4029_v5, %v6978_v59  ;;  %v3880_v6 = vmul.f32 1.442695, %v3865_v34 }
0x1173   :  { %v4030_v8 = vsel %vm3886_vm14, %v3971_v26, %v4022_v3  ;;  %v3977_v43 = vadd.f32 %v4595_v40, %v3976_v22  ;;  %vm7343_vm14 = vmmov %vm7342_vm11 }
0x1174   :  { %4093 = vmatmul.f32.gmra.mxu0 %v4037_v17  ;;  %v4038_v24 = vmul.f32 %v4030_v8, %v6983_v63  ;;  %v4597_v11 = vpop.eup %4596  ;;  %4598 = vpow2.f32 %v3880_v6 }
0x1175   :  { %v3981_v21 = vsel %vm3980_vm3, %v4595_v40, %v3977_v43  ;;  %v3896_v61 = vadd.f32 1.0, %v4597_v11  ;;  %vm7345_vm3 = vmmov %vm7344_vm0 }
0x1176   :  { %4067 = vmatmul.f32.gmra.mxu3 %v4038_v24  ;;  %v3986_v39 = vsel %vm3983_vm2, %v3985_v33, %v3981_v21  ;;  %vm7346_vm2 = vmmov %vm7344_vm0 }
0x1177   :  { %v4023_v59 = vmul.f32 %v7037_v12, %v3986_v39  ;;  %4600 = vrcp.f32 %v3896_v61  ;;  %v3999_v53 = vand.u32 2147483648, %v3896_v61  ;;  %v3997_v37 = vand.u32 2147483647, %v3896_v61 }
0x1178   :  { %vm3993_vm6 = vweird.f32 %v3896_v61 }
0x1179   :  { %v4031_v47 = vsel %vm3887_vm8, %v3986_v39, %v4023_v59  ;;  %v4000_v51 = vor.u32 1.1754944e-38, %v3999_v53  ;;  %vm3998_vm5 = vcmp.eq.f32.partialorder %v3997_v37, 8.507059e+37  ;;  %vm7347_vm8 = vmmov %vm7344_vm0 }
0x117a   :  { %v4039_v48 = vmul.f32 %v4031_v47, %v7000_v18  ;;  %v4599_v14 = vpop.eup %4598 }
0x117b   :  { %v3897_v63 = vadd.f32 1.0, %v4599_v14 }
0x117c   :  { %4096 = vmatmul.f32.gmra.mxu0 %v4039_v48 }
0x117d   :  { %v4601_v30 = vpop.eup %4600  ;;  %4602 = vrcp.f32 %v3897_v63  ;;  %v4014_v56 = vand.u32 2147483648, %v3897_v63  ;;  %v4012_v58 = vand.u32 2147483647, %v3897_v63  ;;  %vm4008_vm13 = vweird.f32 %v3897_v63 }
0x117e   :  { %v3989_v28 = vmul.f32 %v4601_v30, %v3896_v61  ;;  %vm3994_vm4 = vweird.f32 %v4601_v30 }
0x117f   :  { %vm3995_vm15 = vmor %vm3993_vm6, %vm3994_vm4  ;;  %v4015_v40 = vor.u32 1.1754944e-38, %v4014_v56  ;;  %vm4013_vm7 = vcmp.eq.f32.partialorder %v4012_v58, 8.507059e+37 }
0x1180   :  { %v3990_v44 = vsub.f32 1.0, %v3989_v28  ;;  %vm7348_vm4 = vmmov %vm7344_vm0 }
0x1181   :  { %vm7349_vm6 = vmmov %vm7344_vm0 }
0x1182   :  { %v3991_v36 = vmul.f32 %v4601_v30, %v3990_v44 }
0x1183   :  { %v4603_v13 = vpop.eup %4602 }
0x1184   :  { %v3992_v1 = vadd.f32 %v4601_v30, %v3991_v36  ;;  %v4004_v12 = vmul.f32 %v4603_v13, %v3897_v63  ;;  %vm4009_vm10 = vweird.f32 %v4603_v13 }
0x1185   :  { %vm4010_vm1 = vmor %vm4008_vm13, %vm4009_vm10 }
0x1186   :  { %v3996_v54 = vsel %vm3995_vm15, %v4601_v30, %v3992_v1  ;;  %v4005_v18 = vsub.f32 1.0, %v4004_v12 }
0x1187   :  { %v4001_v49 = vsel %vm3998_vm5, %v4000_v51, %v3996_v54 }
0x1188   :  { %v4024_v2 = vmul.f32 %v4597_v11, %v4001_v49  ;;  %v4006_v57 = vmul.f32 %v4603_v13, %v4005_v18 }
0x118a   :  { %v4032_v46 = vsel %vm3888_vm9, %v4001_v49, %v4024_v2  ;;  %v4007_v7 = vadd.f32 %v4603_v13, %v4006_v57  ;;  %vm7350_vm9 = vmmov %vm7344_vm0 }
0x118b   :  { %v4040_v29 = vmul.f32 %v4032_v46, %v7054_v0 }
0x118c   :  { %v4011_v42 = vsel %vm4010_vm1, %v4603_v13, %v4007_v7 }
0x118d   :  { %4070 = vmatmul.f32.gmra.mxu3 %v4040_v29  ;;  %v4016_v60 = vsel %vm4013_vm7, %v4015_v40, %v4011_v42 }
0x118e   :  { %v4025_v25 = vmul.f32 %v4599_v14, %v4016_v60 }
0x1190   :  { %v4033_v62 = vsel %vm3889_vm12, %v4016_v60, %v4025_v25 }
0x1191   :  { %v4041_v20 = vmul.f32 %v4033_v62, %v7070_v31 }
0x1193   :  { %4099 = vmatmul.f32.gmra.mxu0 %v4041_v20 }
0x11dc   :  { %v4062_v35 = vpop.f32.mrf.mxu3 }
0x11dd   :  { %v4063_v45 = vadd.f32 %v4455_v23, %v4062_v35 }
0x11de   :  { %v4091_v50 = vpop.f32.mrf.mxu0 }
0x11df   :  { %v4092_v15 = vadd.f32 %v4091_v50, %v4063_v45 }
0x11e1   :  { %v4103_v10 = vmul.f32 0.5, %v4092_v15  ;;  %v4457_v15 = vld [vmem:[%s4895_s9] ss:$0 sm:$0xff]  ;;  %s4225_s9 = sshll.u32 %s4900_s20, 4  ;;  %s4226_s9 = int_to_ptr.hbm [resolvable:$true] %s4225_s9 }
0x11e2   :  { %s4624_s12 = sshra.s32 %s4226_s9, 4  ;;  %s4625_s12 = int_to_ptr.hbm [resolvable:$true] %s4624_s12 }
0x11e3   :  { %v4107_v0 = vadd.f32 %v4103_v10, %v6845_v55  ;;  %s4626_s27 = scalar_lea.hbm %s4625_s12, 32  ;;  %p4629_p1 = scmp.lt.s32.totalorder %s4625_s12, %s4900_s20 }
0x11e4   :  { %p4627_p0 = scmp.ne.s32.totalorder %s4625_s12, %s4626_s27  ;;  %p4630_p2 = scmp.lt.s32.totalorder %s4628_s22, %s4626_s27 }
0x11e5   :  { %v4113_v27 = vsel %vm7342_vm11, %v4107_v0, 0.0 }
0x11e6   :  { %4114 = vadd.xlane.f32.xlu1 %v4113_v27  ;;  %p4631_p3 = por %p4630_p2, %p4629_p1 }
0x11e8   :  { %p4632_p4 = pnand %p4631_p3, %p4627_p0 }
0x11f1   :  { %v4065_v16 = vpop.f32.mrf.mxu3  ;;  %v4094_v41 = vpop.f32.mrf.mxu0 }
0x11f2   :  { %v4066_v52 = vadd.f32 %v4455_v23, %v4065_v16 }
0x11f4   :  { %v4095_v26 = vadd.f32 %v4094_v41, %v4066_v52 }
0x11f6   :  { %v4104_v38 = vmul.f32 0.5, %v4095_v26 }
0x11f8   :  { %v4108_v5 = vadd.f32 %v4104_v38, %v6850_v4 }
0x11f9   :  { %v4068_v31 = vpop.f32.mrf.mxu3  ;;  %v4097_v34 = vpop.f32.mrf.mxu0 }
0x11fa   :  { %v4069_v3 = vadd.f32 %v4455_v23, %v4068_v31  ;;  %v4116_v22 = vsel %vm7343_vm14, %v4108_v5, 0.0  ;;  %vm7351_vm14 = vmmov %vm7344_vm0 }
0x11fb   :  { %4117 = vadd.xlane.f32.xlu2 %v4116_v22 }
0x11fc   :  { %v4098_v17 = vadd.f32 %v4097_v34, %v4069_v3 }
0x11fe   :  { %v4105_v8 = vmul.f32 0.5, %v4098_v17 }
0x1200   :  { %v4109_v55 = vadd.f32 %v4105_v8, %v6855_v9 }
0x1202   :  { %v4119_v43 = vsel %vm7344_vm0, %v4109_v55, 0.0 }
0x1203   :  { %4120 = vadd.xlane.f32.xlu0 %v4119_v43 }
0x1210   :  { %v4071_v6 = vpop.f32.mrf.mxu3  ;;  %v4100_v33 = vpop.f32.mrf.mxu0 }
0x1211   :  { %v4072_v24 = vadd.f32 %v4455_v23, %v4071_v6  ;;  %v4456_v23 = vld [vmem:[%s4890_s4] ss:$0 sm:$0xff]  ;;  %s4223_s4 = sshll.u32 %s4695_s6, 4  ;;  %s4224_s4 = int_to_ptr.vmem [resolvable:$true] %s4223_s4 }
0x1213   :  { %v4101_v21 = vadd.f32 %v4100_v33, %v4072_v24 }
0x1215   :  { %v4106_v11 = vmul.f32 0.5, %v4101_v21 }
0x1217   :  { %v4110_v4 = vadd.f32 %v4106_v11, %v6860_v19 }
0x1219   :  { %v4122_v39 = vsel %vm7345_vm3, %v4110_v4, 0.0  ;;  %vm7352_vm3 = vmmov %vm7346_vm2 }
0x121a   :  { %4123 = vadd.xlane.f32.xlu1 %v4122_v39 }
0x1259   :  { %v4115_v61 = vpop.xlane.xlu1 %4114 }
0x125a   :  { %v4125_v59 = vmul.f32 %v4115_v61, %v7323_v32 }
0x125c   :  { %v4129_v47 = vsub.f32 %v4107_v0, %v4125_v59 }
0x125e   :  { %v4133_v48 = vmul.f32 %v4129_v47, %v4129_v47 }
0x1260   :  { %v4137_v9 = vsel %vm7346_vm2, %v4133_v48, 0.0 }
0x1261   :  { %4138 = vadd.xlane.f32.xlu2 %v4137_v9 }
0x126e   :  { %v4118_v14 = vpop.xlane.xlu2 %4117 }
0x126f   :  { %v4126_v63 = vmul.f32 %v4118_v14, %v7323_v32 }
0x1271   :  { %v4130_v30 = vsub.f32 %v4108_v5, %v4126_v63 }
0x1273   :  { %v4134_v28 = vmul.f32 %v4130_v30, %v4130_v30 }
0x1275   :  { %v4140_v44 = vsel %vm7347_vm8, %v4134_v28, 0.0 }
0x1276   :  { %4141 = vadd.xlane.f32.xlu0 %v4140_v44  ;;  %v4121_v19 = vpop.xlane.xlu0 %4120 }
0x1277   :  { %v4127_v53 = vmul.f32 %v4121_v19, %v7323_v32 }
0x1279   :  { %v7107_v36 = vsub.f32 %v4109_v55, %v4127_v53 }
0x127b   :  { %v4135_v37 = vmul.f32 %v7107_v36, %v7107_v36 }
0x127d   :  { %v4143_v13 = vsel %vm7348_vm4, %v4135_v37, 0.0 }
0x127e   :  { %4144 = vadd.xlane.f32.xlu1 %v4143_v13 }
0x128d   :  { %v4124_v1 = vpop.xlane.xlu1 %4123 }
0x128e   :  { %v4128_v12 = vmul.f32 %v4124_v1, %v7323_v32 }
0x1290   :  { %v7113_v51 = vsub.f32 %v4110_v4, %v4128_v12 }
0x1292   :  { %v4136_v54 = vmul.f32 %v7113_v51, %v7113_v51 }
0x1294   :  { %v4146_v18 = vsel %vm7349_vm6, %v4136_v54, 0.0  ;;  %vm7353_vm6 = vmmov %vm7352_vm3 }
0x1295   :  { %4147 = vadd.xlane.f32.xlu2 %v4146_v18 }
0x12d4   :  { %v4139_v49 = vpop.xlane.xlu2 %4138 }
0x12d5   :  { %v4149_v56 = vmul.f32 %v4139_v49, %v7323_v32 }
0x12d7   :  { %v4153_v2 = vadd.f32 1e-05, %v4149_v56 }
0x12d9   :  { %4604 = vrsqrt.f32 %v4153_v2  ;;  %vm4163_vm5 = vweird.f32 %v4153_v2 }
0x12df   :  { %v4605_v57 = vpop.eup %4604 }
0x12e0   :  { %v4158_v46 = vmul.f32 %v4605_v57, %v4153_v2  ;;  %vm4164_vm15 = vweird.f32 %v4605_v57 }
0x12e1   :  { %vm4165_vm10 = vmor %vm4163_vm5, %vm4164_vm15 }
0x12e2   :  { %v4159_v29 = vmul.f32 %v4605_v57, %v4158_v46 }
0x12e4   :  { %v4160_v42 = vmul.f32 0.5, %v4159_v29 }
0x12e6   :  { %v4161_v60 = vsub.f32 1.5, %v4160_v42 }
0x12e8   :  { %v4162_v62 = vmul.f32 %v4605_v57, %v4161_v60 }
0x12e9   :  { %v4142_v58 = vpop.xlane.xlu0 %4141 }
0x12ea   :  { %v4150_v7 = vmul.f32 %v4142_v58, %v7323_v32  ;;  %v4166_v45 = vsel %vm4165_vm10, %v4605_v57, %v4162_v62 }
0x12eb   :  { %v4197_v10 = vmul.f32 %v4166_v45, %v4129_v47 }
0x12ec   :  { %v4154_v40 = vadd.f32 1e-05, %v4150_v7 }
0x12ed   :  { %v4204_v27 = vmul.f32 %v4456_v23, %v4197_v10 }
0x12ee   :  { %4606 = vrsqrt.f32 %v4154_v40  ;;  %vm4173_vm1 = vweird.f32 %v4154_v40 }
0x12ef   :  { %v4211_v41 = vadd.f32 %v4457_v15, %v4204_v27 }
0x12f1   :  { %v4145_v25 = vpop.xlane.xlu1 %4144  ;;  %4215 = vst.msk [vmem:[#allocation2] sm:$0xff] %vm7350_vm9, %v4211_v41 }
0x12f2   :  { %v4151_v20 = vmul.f32 %v4145_v25, %v7323_v32 }
0x12f4   :  { %v4607_v35 = vpop.eup %4606  ;;  %v4155_v50 = vadd.f32 1e-05, %v4151_v20 }
0x12f5   :  { %v4168_v0 = vmul.f32 %v4607_v35, %v4154_v40  ;;  %vm4174_vm13 = vweird.f32 %v4607_v35 }
0x12f6   :  { %4608 = vrsqrt.f32 %v4155_v50  ;;  %vm4175_vm7 = vmor %vm4173_vm1, %vm4174_vm13  ;;  %vm4183_vm11 = vweird.f32 %v4155_v50 }
0x12f7   :  { %v4169_v16 = vmul.f32 %v4607_v35, %v4168_v0 }
0x12f9   :  { %v4170_v52 = vmul.f32 0.5, %v4169_v16 }
0x12fb   :  { %v4171_v26 = vsub.f32 1.5, %v4170_v52 }
0x12fc   :  { %v4609_v38 = vpop.eup %4608 }
0x12fd   :  { %v4172_v5 = vmul.f32 %v4607_v35, %v4171_v26  ;;  %v4178_v31 = vmul.f32 %v4609_v38, %v4155_v50  ;;  %vm4184_vm12 = vweird.f32 %v4609_v38 }
0x12fe   :  { %vm4185_vm0 = vmor %vm4183_vm11, %vm4184_vm12 }
0x12ff   :  { %v4176_v3 = vsel %vm4175_vm7, %v4607_v35, %v4172_v5  ;;  %v4179_v22 = vmul.f32 %v4609_v38, %v4178_v31 }
0x1300   :  { %v4198_v34 = vmul.f32 %v4176_v3, %v4130_v30 }
0x1301   :  { %v4180_v17 = vmul.f32 0.5, %v4179_v22 }
0x1302   :  { %v4205_v8 = vmul.f32 %v4456_v23, %v4198_v34 }
0x1303   :  { %v4181_v55 = vsub.f32 1.5, %v4180_v17 }
0x1304   :  { %v4212_v43 = vadd.f32 %v4457_v15, %v4205_v8 }
0x1305   :  { %v4182_v6 = vmul.f32 %v4609_v38, %v4181_v55 }
0x1306   :  { %4216 = vst.msk [vmem:[#allocation2 + $0x8] sm:$0xff] %vm7351_vm14, %v4212_v43 }
0x1307   :  { %v4186_v24 = vsel %vm4185_vm0, %v4609_v38, %v4182_v6 }
0x1308   :  { %v4199_v33 = vmul.f32 %v4186_v24, %v7107_v36  ;;  %v4148_v11 = vpop.xlane.xlu2 %4147 }
0x1309   :  { %v4152_v4 = vmul.f32 %v4148_v11, %v7323_v32 }
0x130a   :  { %v4206_v21 = vmul.f32 %v4456_v23, %v4199_v33 }
0x130b   :  { %v4156_v61 = vadd.f32 1e-05, %v4152_v4 }
0x130c   :  { %v4213_v39 = vadd.f32 %v4457_v15, %v4206_v21 }
0x130d   :  { %4610 = vrsqrt.f32 %v4156_v61  ;;  %vm4193_vm8 = vweird.f32 %v4156_v61 }
0x130e   :  { %4217 = vst.msk [vmem:[#allocation2 + $0x10] sm:$0xff] %vm7352_vm3, %v4213_v39 }
0x1313   :  { %v4611_v59 = vpop.eup %4610 }
0x1314   :  { %v4188_v47 = vmul.f32 %v4611_v59, %v4156_v61  ;;  %vm4194_vm2 = vweird.f32 %v4611_v59 }
0x1315   :  { %vm4195_vm4 = vmor %vm4193_vm8, %vm4194_vm2 }
0x1316   :  { %v4189_v48 = vmul.f32 %v4611_v59, %v4188_v47 }
0x1318   :  { %v4190_v9 = vmul.f32 0.5, %v4189_v48 }
0x131a   :  { %v4191_v14 = vsub.f32 1.5, %v4190_v9 }
0x131c   :  { %v4192_v63 = vmul.f32 %v4611_v59, %v4191_v14 }
0x131e   :  { %v4196_v30 = vsel %vm4195_vm4, %v4611_v59, %v4192_v63 }
0x131f   :  { %v4200_v32 = vmul.f32 %v4196_v30, %v7113_v51 }
0x1321   :  { %v4207_v28 = vmul.f32 %v4456_v23, %v4200_v32 }
0x1323   :  { %v4214_v44 = vadd.f32 %v4457_v15, %v4207_v28 }
0x1325   :  { %4218 = vst.msk [vmem:[#allocation2 + $0x18] sm:$0xff] %vm7353_vm6, %v4214_v44 }
0x1326   :  { %4635 = shalt.err (!%p4632_p4)
}
0x1327   :  { %s4696_s23 = smov 128  }
0x1328   :  { %4231 = dma.vmem_to_hbm [thread:$0]  %s4224_s4, 512, %s4226_s9, [#allocation3], %s4696_s23, %s4696_s23, %s4686_s30  }
0x1329   :  { %4636 = dma.done.wait [#allocation3], 512  }
0x132a   :  { %4637 = vsyncadd [#allocation3], 4294966784 }
0x132b   :  { %4236 = vsyncpa [#allocation3], 1 }

</bundles_post_ra>
